<compile_context>
chip_gen: v7x
topology: tpu7x:2x2x1
jax: 0.10.0
libtpu: 0.0.40
codegen_flags: <defaults>
</compile_context>

<pallas_src>
import jax
import jax.numpy as jnp
from jax.experimental import pallas as pl
from jax.experimental.pallas import tpu as pltpu


FILTER_SIZE = 11
K_PAD = FILTER_SIZE + 1        # im2col contraction padded to 12*64 = 768 lanes
N_FILTER = 64
LOGIT_PAD = 128                # lane-dense padded width of the logits store


# ----------------------------- fused kernel ----------------------------------
def _fused_kernel(x_ref,
                  cw1_ref, cb1_ref, cw2_ref, cb2_ref,
                  cw3_ref, cb3_ref, cw4_ref, cb4_ref,
                  wih1_ref, lb1_ref, whh1_ref, w2cat_ref, lb2_ref,
                  hw_ref, hb_ref,
                  out_ref,
                  pad_scr, col_scr, state_scr, h2_scr):
    B, W, C = x_ref.shape          # C == N_FILTER (input features zero-padded)
    H = whh1_ref.shape[0]
    K = FILTER_SIZE
    PAD = K // 2

    # Zero scratch once.  The conv halo rows and the padded im2col tail lanes
    # must be real zeros (0 * stale-Inf VMEM garbage would make NaNs); every
    # other scratch location is fully overwritten before it is read.
    pad_scr[...] = jnp.zeros(pad_scr.shape, jnp.float32)
    col_scr[...] = jnp.zeros(col_scr.shape, jnp.float32)

    # ----------------- conv1d stack: ONE im2col matmul per layer -------------
    # (B*W, 768) x (768, 64) bf16 fills the MXU contraction dim instead of 11
    # under-filled per-tap pushes; accumulation stays f32.
    h = x_ref[...]                                         # (B, W, 64) f32
    for w_ref, b_ref in ((cw1_ref, cb1_ref), (cw2_ref, cb2_ref),
                         (cw3_ref, cb3_ref), (cw4_ref, cb4_ref)):
        pad_scr[:, PAD:PAD + W, :] = h                     # halo rows stay zero
        for k in range(K):                                 # stage taps as lane blocks
            col_scr[:, :, k * C:(k + 1) * C] = pad_scr[:, k:k + W, :]
        cols = col_scr[...].reshape(B * W, K_PAD * C).astype(jnp.bfloat16)
        hf = jnp.dot(cols, w_ref[...], preferred_element_type=jnp.float32)
        h = (hf + b_ref[...]).reshape(B, W, C)             # f32 for next layer

    # --------------- 2-layer LSTM: time axis = B, LSTM batch = W -------------
    # Hoisted layer-1 input projection (+bias) for all T=B steps: one bf16
    # (B*W, 64) x (64, 4H) matmul outside the recurrence.
    xp1 = (jnp.dot(h.reshape(B * W, C).astype(jnp.bfloat16), wih1_ref[...],
                   preferred_element_type=jnp.float32) + lb1_ref[...])

    whh1 = whh1_ref[...]           # (H, 4H)  f32 — recurrence kept f32
    w2cat = w2cat_ref[...]         # (2H, 4H) f32 == [wih2 ; whh2]
    lb2 = lb2_ref[...]

    def gates(pre, c_prev):
        # g-gate columns were pre-scaled by 2 in pack_params, so a single
        # full-width sigmoid gives i/f/o directly and g via
        # tanh(x) == 2*sigmoid(2x) - 1  -> one 4H-lane EUP pass per cell.
        sg = jax.nn.sigmoid(pre)
        i_g = sg[:, 0 * H:1 * H]
        f_g = sg[:, 1 * H:2 * H]
        g_g = 2.0 * sg[:, 2 * H:3 * H] - 1.0
        o_g = sg[:, 3 * H:4 * H]
        c_new = f_g * c_prev + i_g * g_g
        h_new = o_g * jnp.tanh(c_new)
        return h_new, c_new

    state_scr[...] = jnp.zeros(state_scr.shape, jnp.float32)   # [h1 | h2] = 0
    h1 = jnp.zeros((W, H), jnp.float32)
    c1 = jnp.zeros((W, H), jnp.float32)
    c2 = jnp.zeros((W, H), jnp.float32)

    # TODO(synk): nn.LSTM inter-layer dropout is training-only; this inference
    # forward omits it (equivalent to model.eval()).
    # TODO(synk): if the time axis (B) grows beyond toy size, switch this
    # unrolled loop to lax.fori_loop(..., unroll=2..4) carrying (h1, c1, c2)
    # and slice xp1 per iteration to bound vreg live ranges.
    for t in range(B):
        pre1 = xp1[t * W:(t + 1) * W, :] + jnp.dot(
            h1, whh1, preferred_element_type=jnp.float32)
        h1, c1 = gates(pre1, c1)
        state_scr[:, :H] = h1                         # refresh h1 half of [h1|h2]
        pre2 = jnp.dot(state_scr[...], w2cat,         # ONE fused layer-2 matmul
                       preferred_element_type=jnp.float32) + lb2
        h2, c2 = gates(pre2, c2)
        state_scr[:, H:] = h2                         # h2 half used next step
        h2_scr[t] = h2                                # contiguous slab store

    # --------- folded dense head:  out[t] = sum_w h2[t,w,:] @ hw[w] + hb -----
    # hw is the pack-time product dense2 . dense1 reshaped to (W, H, 128); the
    # per-w accumulation avoids a minor-dim (B,W,H)->(B,W*H) value reshape
    # while keeping the single HBM logits store lane dense (128 wide).
    acc = jnp.zeros((B, out_ref.shape[-1]), jnp.float32)
    for w in range(W):
        acc = acc + jnp.dot(h2_scr[:, w, :].astype(jnp.bfloat16), hw_ref[w],
                            preferred_element_type=jnp.float32)
    out_ref[...] = acc + hb_ref[...]


# ----------------------------- parameter handling -----------------------------
def init_params(key, n_feature, window, hidden, n_class):
    """Parameters in PyTorch layout (Conv1d (Cout,Cin,K), Linear (out,in), ...)."""
    keys = jax.random.split(key, 20)
    s = 0.05

    def rn(k, shape):
        return (s * jax.random.normal(k, shape)).astype(jnp.float32)

    p = {}
    p["conv1_w"] = rn(keys[0], (N_FILTER, n_feature, FILTER_SIZE))
    p["conv1_b"] = rn(keys[1], (N_FILTER,))
    p["conv2_w"] = rn(keys[2], (N_FILTER, N_FILTER, FILTER_SIZE))
    p["conv2_b"] = rn(keys[3], (N_FILTER,))
    p["conv3_w"] = rn(keys[4], (N_FILTER, N_FILTER, FILTER_SIZE))
    p["conv3_b"] = rn(keys[5], (N_FILTER,))
    p["conv4_w"] = rn(keys[6], (N_FILTER, N_FILTER, FILTER_SIZE))
    p["conv4_b"] = rn(keys[7], (N_FILTER,))
    p["w_ih_l0"] = rn(keys[8], (4 * hidden, N_FILTER))
    p["w_hh_l0"] = rn(keys[9], (4 * hidden, hidden))
    p["b_ih_l0"] = rn(keys[10], (4 * hidden,))
    p["b_hh_l0"] = rn(keys[11], (4 * hidden,))
    p["w_ih_l1"] = rn(keys[12], (4 * hidden, hidden))
    p["w_hh_l1"] = rn(keys[13], (4 * hidden, hidden))
    p["b_ih_l1"] = rn(keys[14], (4 * hidden,))
    p["b_hh_l1"] = rn(keys[15], (4 * hidden,))
    p["dense1_w"] = rn(keys[16], (512, window * hidden))
    p["dense1_b"] = rn(keys[17], (512,))
    p["dense2_w"] = rn(keys[18], (n_class, 512))
    p["dense2_b"] = rn(keys[19], (n_class,))
    return p


def pack_params(p):
    """One-time repack of PyTorch-layout weights into the kernel layout."""
    H = p["w_hh_l0"].shape[1]
    WH = p["dense1_w"].shape[1]
    W = WH // H
    n_class = p["dense2_w"].shape[0]
    K = FILTER_SIZE

    def conv_pack(w):                     # (Cout, Cin, K) -> (K_PAD*64, Cout) bf16
        cout, cin, k = w.shape
        wt = jnp.transpose(w, (2, 1, 0))  # (K, Cin, Cout), row index = k*64 + cin
        wt = jnp.pad(wt, ((0, K_PAD - k), (0, N_FILTER - cin), (0, 0)))
        return wt.reshape(K_PAD * N_FILTER, cout).astype(jnp.bfloat16)

    def dbl_g(m):                         # pre-scale g-gate block (last dim = 4H) by 2
        g = jnp.ones((4 * H,), m.dtype).at[2 * H:3 * H].set(2.0)
        return m * g

    # Folded affine head: dense2(dense1(x)) == x @ head_w + head_b.
    # Exact because the reference has NO nonlinearity between the two Linears
    # (and no ReLU after the convs) — matches the PyTorch module as written.
    head_w = p["dense1_w"].T @ p["dense2_w"].T                # (W*H, n_class)
    head_w = jnp.pad(head_w, ((0, 0), (0, LOGIT_PAD - n_class)))
    head_b = p["dense1_b"] @ p["dense2_w"].T + p["dense2_b"]  # (n_class,)
    head_b = jnp.pad(head_b, ((0, LOGIT_PAD - n_class),))

    return {
        "cw1": conv_pack(p["conv1_w"]), "cb1": p["conv1_b"].reshape(1, -1),
        "cw2": conv_pack(p["conv2_w"]), "cb2": p["conv2_b"].reshape(1, -1),
        "cw3": conv_pack(p["conv3_w"]), "cb3": p["conv3_b"].reshape(1, -1),
        "cw4": conv_pack(p["conv4_w"]), "cb4": p["conv4_b"].reshape(1, -1),
        "wih1": dbl_g(p["w_ih_l0"].T).astype(jnp.bfloat16),
        "lb1": dbl_g(p["b_ih_l0"] + p["b_hh_l0"]).reshape(1, -1),
        "whh1": dbl_g(p["w_hh_l0"].T),                               # f32
        "w2cat": jnp.concatenate([dbl_g(p["w_ih_l1"].T),
                                  dbl_g(p["w_hh_l1"].T)], axis=0),   # (2H,4H) f32
        "lb2": dbl_g(p["b_ih_l1"] + p["b_hh_l1"]).reshape(1, -1),
        "hw": head_w.reshape(W, H, LOGIT_PAD).astype(jnp.bfloat16),
        "hb": head_b.reshape(1, -1),
    }


# ------------------------------- fused forward --------------------------------
def deep_conv_lstm_forward(x, pp, n_class):
    B, W, F = x.shape
    H = pp["whh1"].shape[0]
    PAD = FILTER_SIZE // 2
    assert n_class <= LOGIT_PAD

    # Pad input features to the uniform 64-channel conv layout; the matching
    # packed conv1 weight rows are zero so the extra lanes are inert.
    x64 = jnp.pad(x, ((0, 0), (0, 0), (0, N_FILTER - F)))

    arg_names = ["cw1", "cb1", "cw2", "cb2", "cw3", "cb3", "cw4", "cb4",
                 "wih1", "lb1", "whh1", "w2cat", "lb2", "hw", "hb"]
    args = [x64] + [pp[n] for n in arg_names]

    # Advisory cost estimate for the XLA scheduler.
    conv_flops = 4 * 2 * B * W * (K_PAD * N_FILTER) * N_FILTER
    lstm_flops = (2 * B * W * N_FILTER * 4 * H            # hoisted input proj
                  + B * 2 * W * (H + 2 * H) * 4 * H)      # recurrence matmuls
    head_flops = 2 * B * W * H * LOGIT_PAD
    transcendentals = B * 2 * (W * 4 * H + W * H)
    bytes_accessed = (4 * int(x64.size)
                      + int(sum(int(v.size) * v.dtype.itemsize for v in pp.values()))
                      + 4 * B * LOGIT_PAD)

    # TODO(synk): on v7x, shard a leading grid axis over independent
    # sequences/requests (NOT over B, the LSTM time axis) with
    # dimension_semantics=("parallel",) so the second TensorCore is used; a
    # single forward as specified has no such independent axis.
    vmem_spec = pl.BlockSpec(memory_space=pltpu.MemorySpace.VMEM)
    out = pl.pallas_call(
        _fused_kernel,
        out_shape=jax.ShapeDtypeStruct((B, LOGIT_PAD), jnp.float32),
        in_specs=[vmem_spec] * len(args),
        out_specs=vmem_spec,
        scratch_shapes=[
            pltpu.VMEM((B, W + 2 * PAD, N_FILTER), jnp.float32),   # conv halo
            pltpu.VMEM((B, W, K_PAD * N_FILTER), jnp.float32),     # im2col staging
            pltpu.VMEM((W, 2 * H), jnp.float32),                   # [h1 | h2] state
            pltpu.VMEM((B, W, H), jnp.float32),                    # LSTM outputs
        ],
        cost_estimate=pl.CostEstimate(
            flops=conv_flops + lstm_flops + head_flops,
            transcendentals=transcendentals,
            bytes_accessed=bytes_accessed),
    )(*args)
    return out[:, :n_class]


# --------------------------- pure-JAX reference -------------------------------
def reference_forward(x, p):
    B, W, _ = x.shape
    pad = FILTER_SIZE // 2
    h = x
    for i in range(1, 5):
        w = p[f"conv{i}_w"]
        b = p[f"conv{i}_b"]
        hp = jnp.pad(h, ((0, 0), (pad, pad), (0, 0)))
        acc = 0.0
        for k in range(FILTER_SIZE):
            acc = acc + jnp.einsum("bwc,oc->bwo", hp[:, k:k + W, :], w[:, :, k])
        h = acc + b

    H = p["w_hh_l0"].shape[1]

    def cell(xt, hprev, cprev, wih, whh, bih, bhh):
        g = xt @ wih.T + hprev @ whh.T + bih + bhh
        i = jax.nn.sigmoid(g[:, :H])
        f = jax.nn.sigmoid(g[:, H:2 * H])
        gg = jnp.tanh(g[:, 2 * H:3 * H])
        o = jax.nn.sigmoid(g[:, 3 * H:])
        c = f * cprev + i * gg
        return o * jnp.tanh(c), c

    h1 = jnp.zeros((W, H)); c1 = jnp.zeros((W, H))
    h2 = jnp.zeros((W, H)); c2 = jnp.zeros((W, H))
    outs = []
    for t in range(B):
        h1, c1 = cell(h[t], h1, c1, p["w_ih_l0"], p["w_hh_l0"],
                      p["b_ih_l0"], p["b_hh_l0"])
        h2, c2 = cell(h1, h2, c2, p["w_ih_l1"], p["w_hh_l1"],
                      p["b_ih_l1"], p["b_hh_l1"])
        outs.append(h2)
    lstm_out = jnp.stack(outs, axis=0)               # (B, W, H)
    flat = lstm_out.reshape(B, W * H)
    d1 = flat @ p["dense1_w"].T + p["dense1_b"]
    return d1 @ p["dense2_w"].T + p["dense2_b"]


if __name__ == "__main__":
    B, W, F = 4, 16, 8          # batch, window_size, n_feature
    H, n_class = 32, 6          # args.unit, n_class  (W * H == 512 == dense1 in)

    key = jax.random.PRNGKey(0)
    pkey, xkey = jax.random.split(key)
    params = init_params(pkey, F, W, H, n_class)
    packed = pack_params(params)                     # one-time weight packing
    x = jax.random.normal(xkey, (B, W, F), dtype=jnp.float32)

    fwd = jax.jit(deep_conv_lstm_forward, static_argnames=("n_class",))
    out = jax.block_until_ready(fwd(x, packed, n_class=n_class))

    assert out.shape == (B, n_class), out.shape
    assert bool(jnp.all(jnp.isfinite(out)))

    ref = reference_forward(x, params)
    max_err = float(jnp.max(jnp.abs(out - ref)))
    # bf16 matmul inputs (f32 accumulation, f32 LSTM recurrence) => relaxed
    # tolerance versus the all-f32 reference.
    assert max_err < 5e-2, f"mismatch vs pure-JAX reference: {max_err}"

    print("KERNEL_OK")
</pallas_src>

<mosaic_0001>
module attributes {stable_mosaic.version = 11 : i64} {
  func.func @_fused_kernel(%arg0: memref<4x16x64xf32, #tpu.memory_space<vmem>>, %arg1: memref<768x64xbf16, #tpu.memory_space<vmem>>, %arg2: memref<1x64xf32, #tpu.memory_space<vmem>>, %arg3: memref<768x64xbf16, #tpu.memory_space<vmem>>, %arg4: memref<1x64xf32, #tpu.memory_space<vmem>>, %arg5: memref<768x64xbf16, #tpu.memory_space<vmem>>, %arg6: memref<1x64xf32, #tpu.memory_space<vmem>>, %arg7: memref<768x64xbf16, #tpu.memory_space<vmem>>, %arg8: memref<1x64xf32, #tpu.memory_space<vmem>>, %arg9: memref<64x128xbf16, #tpu.memory_space<vmem>>, %arg10: memref<1x128xf32, #tpu.memory_space<vmem>>, %arg11: memref<32x128xf32, #tpu.memory_space<vmem>>, %arg12: memref<64x128xf32, #tpu.memory_space<vmem>>, %arg13: memref<1x128xf32, #tpu.memory_space<vmem>>, %arg14: memref<16x32x128xbf16, #tpu.memory_space<vmem>>, %arg15: memref<1x128xf32, #tpu.memory_space<vmem>>, %arg16: memref<4x128xf32, #tpu.memory_space<vmem>>, %arg17: memref<4x26x64xf32, #tpu.memory_space<vmem>>, %arg18: memref<4x16x768xf32, #tpu.memory_space<vmem>>, %arg19: memref<16x64xf32, #tpu.memory_space<vmem>>, %arg20: memref<4x16x32xf32, #tpu.memory_space<vmem>>) attributes {dimension_semantics = [], scalar_prefetch = 0 : i64, scratch_operands = 4 : i64, tpu.core_type = #tpu.core_type<tc>} {
    %cst = arith.constant 0.000000e+00 : f32
    %0 = vector.broadcast %cst : f32 to vector<4x26x64xf32>
    %c0 = arith.constant 0 : index
    %c0_0 = arith.constant 0 : index
    %c0_1 = arith.constant 0 : index
    %1 = vector.load %arg17[%c0, %c0_0, %c0_1] : memref<4x26x64xf32, #tpu.memory_space<vmem>>, vector<4x26x64xf32>
    tpu.vector_store %arg17[%c0, %c0_0, %c0_1], %0 {strides = array<i32>} : memref<4x26x64xf32, #tpu.memory_space<vmem>>, vector<4x26x64xf32>,
    %cst_2 = arith.constant 0.000000e+00 : f32
    %2 = vector.broadcast %cst_2 : f32 to vector<4x16x768xf32>
    %c0_3 = arith.constant 0 : index
    %c0_4 = arith.constant 0 : index
    %c0_5 = arith.constant 0 : index
    %3 = vector.load %arg18[%c0_3, %c0_4, %c0_5] : memref<4x16x768xf32, #tpu.memory_space<vmem>>, vector<4x16x768xf32>
    tpu.vector_store %arg18[%c0_3, %c0_4, %c0_5], %2 {strides = array<i32>} : memref<4x16x768xf32, #tpu.memory_space<vmem>>, vector<4x16x768xf32>,
    %c0_6 = arith.constant 0 : index
    %c0_7 = arith.constant 0 : index
    %c0_8 = arith.constant 0 : index
    %4 = vector.load %arg0[%c0_6, %c0_7, %c0_8] : memref<4x16x64xf32, #tpu.memory_space<vmem>>, vector<4x16x64xf32>
    %c0_9 = arith.constant 0 : index
    %c5 = arith.constant 5 : index
    %c0_10 = arith.constant 0 : index
    %5 = vector.load %arg17[%c0_9, %c5, %c0_10] : memref<4x26x64xf32, #tpu.memory_space<vmem>>, vector<4x16x64xf32>
    tpu.vector_store %arg17[%c0_9, %c5, %c0_10], %4 {strides = array<i32>} : memref<4x26x64xf32, #tpu.memory_space<vmem>>, vector<4x16x64xf32>,
    %c0_11 = arith.constant 0 : index
    %c0_12 = arith.constant 0 : index
    %c0_13 = arith.constant 0 : index
    %6 = vector.load %arg17[%c0_11, %c0_12, %c0_13] : memref<4x26x64xf32, #tpu.memory_space<vmem>>, vector<4x16x64xf32>
    %c0_14 = arith.constant 0 : index
    %c0_15 = arith.constant 0 : index
    %c0_16 = arith.constant 0 : index
    %7 = vector.load %arg18[%c0_14, %c0_15, %c0_16] : memref<4x16x768xf32, #tpu.memory_space<vmem>>, vector<4x16x64xf32>
    tpu.vector_store %arg18[%c0_14, %c0_15, %c0_16], %6 {strides = array<i32>} : memref<4x16x768xf32, #tpu.memory_space<vmem>>, vector<4x16x64xf32>,
    %c0_17 = arith.constant 0 : index
    %c1 = arith.constant 1 : index
    %c0_18 = arith.constant 0 : index
    %8 = vector.load %arg17[%c0_17, %c1, %c0_18] : memref<4x26x64xf32, #tpu.memory_space<vmem>>, vector<4x16x64xf32>
    %c0_19 = arith.constant 0 : index
    %c0_20 = arith.constant 0 : index
    %c64 = arith.constant 64 : index
    %9 = vector.load %arg18[%c0_19, %c0_20, %c64] : memref<4x16x768xf32, #tpu.memory_space<vmem>>, vector<4x16x64xf32>
    tpu.vector_store %arg18[%c0_19, %c0_20, %c64], %8 {strides = array<i32>} : memref<4x16x768xf32, #tpu.memory_space<vmem>>, vector<4x16x64xf32>,
    %c0_21 = arith.constant 0 : index
    %c2 = arith.constant 2 : index
    %c0_22 = arith.constant 0 : index
    %10 = vector.load %arg17[%c0_21, %c2, %c0_22] : memref<4x26x64xf32, #tpu.memory_space<vmem>>, vector<4x16x64xf32>
    %c0_23 = arith.constant 0 : index
    %c0_24 = arith.constant 0 : index
    %c128 = arith.constant 128 : index
    %11 = vector.load %arg18[%c0_23, %c0_24, %c128] : memref<4x16x768xf32, #tpu.memory_space<vmem>>, vector<4x16x64xf32>
    tpu.vector_store %arg18[%c0_23, %c0_24, %c128], %10 {strides = array<i32>} : memref<4x16x768xf32, #tpu.memory_space<vmem>>, vector<4x16x64xf32>,
    %c0_25 = arith.constant 0 : index
    %c3 = arith.constant 3 : index
    %c0_26 = arith.constant 0 : index
    %12 = vector.load %arg17[%c0_25, %c3, %c0_26] : memref<4x26x64xf32, #tpu.memory_space<vmem>>, vector<4x16x64xf32>
    %c0_27 = arith.constant 0 : index
    %c0_28 = arith.constant 0 : index
    %c192 = arith.constant 192 : index
    %13 = vector.load %arg18[%c0_27, %c0_28, %c192] : memref<4x16x768xf32, #tpu.memory_space<vmem>>, vector<4x16x64xf32>
    tpu.vector_store %arg18[%c0_27, %c0_28, %c192], %12 {strides = array<i32>} : memref<4x16x768xf32, #tpu.memory_space<vmem>>, vector<4x16x64xf32>,
    %c0_29 = arith.constant 0 : index
    %c4 = arith.constant 4 : index
    %c0_30 = arith.constant 0 : index
    %14 = vector.load %arg17[%c0_29, %c4, %c0_30] : memref<4x26x64xf32, #tpu.memory_space<vmem>>, vector<4x16x64xf32>
    %c0_31 = arith.constant 0 : index
    %c0_32 = arith.constant 0 : index
    %c256 = arith.constant 256 : index
    %15 = vector.load %arg18[%c0_31, %c0_32, %c256] : memref<4x16x768xf32, #tpu.memory_space<vmem>>, vector<4x16x64xf32>
    tpu.vector_store %arg18[%c0_31, %c0_32, %c256], %14 {strides = array<i32>} : memref<4x16x768xf32, #tpu.memory_space<vmem>>, vector<4x16x64xf32>,
    %c0_33 = arith.constant 0 : index
    %c5_34 = arith.constant 5 : index
    %c0_35 = arith.constant 0 : index
    %16 = vector.load %arg17[%c0_33, %c5_34, %c0_35] : memref<4x26x64xf32, #tpu.memory_space<vmem>>, vector<4x16x64xf32>
    %c0_36 = arith.constant 0 : index
    %c0_37 = arith.constant 0 : index
    %c320 = arith.constant 320 : index
    %17 = vector.load %arg18[%c0_36, %c0_37, %c320] : memref<4x16x768xf32, #tpu.memory_space<vmem>>, vector<4x16x64xf32>
    tpu.vector_store %arg18[%c0_36, %c0_37, %c320], %16 {strides = array<i32>} : memref<4x16x768xf32, #tpu.memory_space<vmem>>, vector<4x16x64xf32>,
    %c0_38 = arith.constant 0 : index
    %c6 = arith.constant 6 : index
    %c0_39 = arith.constant 0 : index
    %18 = vector.load %arg17[%c0_38, %c6, %c0_39] : memref<4x26x64xf32, #tpu.memory_space<vmem>>, vector<4x16x64xf32>
    %c0_40 = arith.constant 0 : index
    %c0_41 = arith.constant 0 : index
    %c384 = arith.constant 384 : index
    %19 = vector.load %arg18[%c0_40, %c0_41, %c384] : memref<4x16x768xf32, #tpu.memory_space<vmem>>, vector<4x16x64xf32>
    tpu.vector_store %arg18[%c0_40, %c0_41, %c384], %18 {strides = array<i32>} : memref<4x16x768xf32, #tpu.memory_space<vmem>>, vector<4x16x64xf32>,
    %c0_42 = arith.constant 0 : index
    %c7 = arith.constant 7 : index
    %c0_43 = arith.constant 0 : index
    %20 = vector.load %arg17[%c0_42, %c7, %c0_43] : memref<4x26x64xf32, #tpu.memory_space<vmem>>, vector<4x16x64xf32>
    %c0_44 = arith.constant 0 : index
    %c0_45 = arith.constant 0 : index
    %c448 = arith.constant 448 : index
    %21 = vector.load %arg18[%c0_44, %c0_45, %c448] : memref<4x16x768xf32, #tpu.memory_space<vmem>>, vector<4x16x64xf32>
    tpu.vector_store %arg18[%c0_44, %c0_45, %c448], %20 {strides = array<i32>} : memref<4x16x768xf32, #tpu.memory_space<vmem>>, vector<4x16x64xf32>,
    %c0_46 = arith.constant 0 : index
    %c8 = arith.constant 8 : index
    %c0_47 = arith.constant 0 : index
    %22 = vector.load %arg17[%c0_46, %c8, %c0_47] : memref<4x26x64xf32, #tpu.memory_space<vmem>>, vector<4x16x64xf32>
    %c0_48 = arith.constant 0 : index
    %c0_49 = arith.constant 0 : index
    %c512 = arith.constant 512 : index
    %23 = vector.load %arg18[%c0_48, %c0_49, %c512] : memref<4x16x768xf32, #tpu.memory_space<vmem>>, vector<4x16x64xf32>
    tpu.vector_store %arg18[%c0_48, %c0_49, %c512], %22 {strides = array<i32>} : memref<4x16x768xf32, #tpu.memory_space<vmem>>, vector<4x16x64xf32>,
    %c0_50 = arith.constant 0 : index
    %c9 = arith.constant 9 : index
    %c0_51 = arith.constant 0 : index
    %24 = vector.load %arg17[%c0_50, %c9, %c0_51] : memref<4x26x64xf32, #tpu.memory_space<vmem>>, vector<4x16x64xf32>
    %c0_52 = arith.constant 0 : index
    %c0_53 = arith.constant 0 : index
    %c576 = arith.constant 576 : index
    %25 = vector.load %arg18[%c0_52, %c0_53, %c576] : memref<4x16x768xf32, #tpu.memory_space<vmem>>, vector<4x16x64xf32>
    tpu.vector_store %arg18[%c0_52, %c0_53, %c576], %24 {strides = array<i32>} : memref<4x16x768xf32, #tpu.memory_space<vmem>>, vector<4x16x64xf32>,
    %c0_54 = arith.constant 0 : index
    %c10 = arith.constant 10 : index
    %c0_55 = arith.constant 0 : index
    %26 = vector.load %arg17[%c0_54, %c10, %c0_55] : memref<4x26x64xf32, #tpu.memory_space<vmem>>, vector<4x16x64xf32>
    %c0_56 = arith.constant 0 : index
    %c0_57 = arith.constant 0 : index
    %c640 = arith.constant 640 : index
    %27 = vector.load %arg18[%c0_56, %c0_57, %c640] : memref<4x16x768xf32, #tpu.memory_space<vmem>>, vector<4x16x64xf32>
    tpu.vector_store %arg18[%c0_56, %c0_57, %c640], %26 {strides = array<i32>} : memref<4x16x768xf32, #tpu.memory_space<vmem>>, vector<4x16x64xf32>,
    %c0_58 = arith.constant 0 : index
    %c0_59 = arith.constant 0 : index
    %c0_60 = arith.constant 0 : index
    %28 = vector.load %arg18[%c0_58, %c0_59, %c0_60] : memref<4x16x768xf32, #tpu.memory_space<vmem>>, vector<4x16x768xf32>
    %29 = vector.shape_cast %28 : vector<4x16x768xf32> to vector<64x768xf32>
    %30 = arith.truncf %29 : vector<64x768xf32> to vector<64x768xbf16>
    %c0_61 = arith.constant 0 : index
    %c0_62 = arith.constant 0 : index
    %31 = vector.load %arg1[%c0_61, %c0_62] : memref<768x64xbf16, #tpu.memory_space<vmem>>, vector<768x64xbf16>
    %cst_63 = arith.constant dense<0.000000e+00> : vector<64x64xf32>
    %32 = tpu.matmul %30, %31, %cst_63 {dimension_numbers = #tpu.dot_dimension_numbers<[1], [0], [0], [1], [0, 0, 1, 1], [], []>} : vector<64x768xbf16>, vector<768x64xbf16>, vector<64x64xf32> -> vector<64x64xf32>
    %c0_64 = arith.constant 0 : index
    %c0_65 = arith.constant 0 : index
    %33 = vector.load %arg2[%c0_64, %c0_65] : memref<1x64xf32, #tpu.memory_space<vmem>>, vector<1x64xf32>
    %34 = vector.broadcast %33 : vector<1x64xf32> to vector<64x64xf32>
    %35 = arith.addf %32, %34 : vector<64x64xf32>
    %36 = vector.shape_cast %35 : vector<64x64xf32> to vector<4x16x64xf32>
    %c0_66 = arith.constant 0 : index
    %c5_67 = arith.constant 5 : index
    %c0_68 = arith.constant 0 : index
    %37 = vector.load %arg17[%c0_66, %c5_67, %c0_68] : memref<4x26x64xf32, #tpu.memory_space<vmem>>, vector<4x16x64xf32>
    tpu.vector_store %arg17[%c0_66, %c5_67, %c0_68], %36 {strides = array<i32>} : memref<4x26x64xf32, #tpu.memory_space<vmem>>, vector<4x16x64xf32>,
    %c0_69 = arith.constant 0 : index
    %c0_70 = arith.constant 0 : index
    %c0_71 = arith.constant 0 : index
    %38 = vector.load %arg17[%c0_69, %c0_70, %c0_71] : memref<4x26x64xf32, #tpu.memory_space<vmem>>, vector<4x16x64xf32>
    %c0_72 = arith.constant 0 : index
    %c0_73 = arith.constant 0 : index
    %c0_74 = arith.constant 0 : index
    %39 = vector.load %arg18[%c0_72, %c0_73, %c0_74] : memref<4x16x768xf32, #tpu.memory_space<vmem>>, vector<4x16x64xf32>
    tpu.vector_store %arg18[%c0_72, %c0_73, %c0_74], %38 {strides = array<i32>} : memref<4x16x768xf32, #tpu.memory_space<vmem>>, vector<4x16x64xf32>,
    %c0_75 = arith.constant 0 : index
    %c1_76 = arith.constant 1 : index
    %c0_77 = arith.constant 0 : index
    %40 = vector.load %arg17[%c0_75, %c1_76, %c0_77] : memref<4x26x64xf32, #tpu.memory_space<vmem>>, vector<4x16x64xf32>
    %c0_78 = arith.constant 0 : index
    %c0_79 = arith.constant 0 : index
    %c64_80 = arith.constant 64 : index
    %41 = vector.load %arg18[%c0_78, %c0_79, %c64_80] : memref<4x16x768xf32, #tpu.memory_space<vmem>>, vector<4x16x64xf32>
    tpu.vector_store %arg18[%c0_78, %c0_79, %c64_80], %40 {strides = array<i32>} : memref<4x16x768xf32, #tpu.memory_space<vmem>>, vector<4x16x64xf32>,
    %c0_81 = arith.constant 0 : index
    %c2_82 = arith.constant 2 : index
    %c0_83 = arith.constant 0 : index
    %42 = vector.load %arg17[%c0_81, %c2_82, %c0_83] : memref<4x26x64xf32, #tpu.memory_space<vmem>>, vector<4x16x64xf32>
    %c0_84 = arith.constant 0 : index
    %c0_85 = arith.constant 0 : index
    %c128_86 = arith.constant 128 : index
    %43 = vector.load %arg18[%c0_84, %c0_85, %c128_86] : memref<4x16x768xf32, #tpu.memory_space<vmem>>, vector<4x16x64xf32>
    tpu.vector_store %arg18[%c0_84, %c0_85, %c128_86], %42 {strides = array<i32>} : memref<4x16x768xf32, #tpu.memory_space<vmem>>, vector<4x16x64xf32>,
    %c0_87 = arith.constant 0 : index
    %c3_88 = arith.constant 3 : index
    %c0_89 = arith.constant 0 : index
    %44 = vector.load %arg17[%c0_87, %c3_88, %c0_89] : memref<4x26x64xf32, #tpu.memory_space<vmem>>, vector<4x16x64xf32>
    %c0_90 = arith.constant 0 : index
    %c0_91 = arith.constant 0 : index
    %c192_92 = arith.constant 192 : index
    %45 = vector.load %arg18[%c0_90, %c0_91, %c192_92] : memref<4x16x768xf32, #tpu.memory_space<vmem>>, vector<4x16x64xf32>
    tpu.vector_store %arg18[%c0_90, %c0_91, %c192_92], %44 {strides = array<i32>} : memref<4x16x768xf32, #tpu.memory_space<vmem>>, vector<4x16x64xf32>,
    %c0_93 = arith.constant 0 : index
    %c4_94 = arith.constant 4 : index
    %c0_95 = arith.constant 0 : index
    %46 = vector.load %arg17[%c0_93, %c4_94, %c0_95] : memref<4x26x64xf32, #tpu.memory_space<vmem>>, vector<4x16x64xf32>
    %c0_96 = arith.constant 0 : index
    %c0_97 = arith.constant 0 : index
    %c256_98 = arith.constant 256 : index
    %47 = vector.load %arg18[%c0_96, %c0_97, %c256_98] : memref<4x16x768xf32, #tpu.memory_space<vmem>>, vector<4x16x64xf32>
    tpu.vector_store %arg18[%c0_96, %c0_97, %c256_98], %46 {strides = array<i32>} : memref<4x16x768xf32, #tpu.memory_space<vmem>>, vector<4x16x64xf32>,
    %c0_99 = arith.constant 0 : index
    %c5_100 = arith.constant 5 : index
    %c0_101 = arith.constant 0 : index
    %48 = vector.load %arg17[%c0_99, %c5_100, %c0_101] : memref<4x26x64xf32, #tpu.memory_space<vmem>>, vector<4x16x64xf32>
    %c0_102 = arith.constant 0 : index
    %c0_103 = arith.constant 0 : index
    %c320_104 = arith.constant 320 : index
    %49 = vector.load %arg18[%c0_102, %c0_103, %c320_104] : memref<4x16x768xf32, #tpu.memory_space<vmem>>, vector<4x16x64xf32>
    tpu.vector_store %arg18[%c0_102, %c0_103, %c320_104], %48 {strides = array<i32>} : memref<4x16x768xf32, #tpu.memory_space<vmem>>, vector<4x16x64xf32>,
    %c0_105 = arith.constant 0 : index
    %c6_106 = arith.constant 6 : index
    %c0_107 = arith.constant 0 : index
    %50 = vector.load %arg17[%c0_105, %c6_106, %c0_107] : memref<4x26x64xf32, #tpu.memory_space<vmem>>, vector<4x16x64xf32>
    %c0_108 = arith.constant 0 : index
    %c0_109 = arith.constant 0 : index
    %c384_110 = arith.constant 384 : index
    %51 = vector.load %arg18[%c0_108, %c0_109, %c384_110] : memref<4x16x768xf32, #tpu.memory_space<vmem>>, vector<4x16x64xf32>
    tpu.vector_store %arg18[%c0_108, %c0_109, %c384_110], %50 {strides = array<i32>} : memref<4x16x768xf32, #tpu.memory_space<vmem>>, vector<4x16x64xf32>,
    %c0_111 = arith.constant 0 : index
    %c7_112 = arith.constant 7 : index
    %c0_113 = arith.constant 0 : index
    %52 = vector.load %arg17[%c0_111, %c7_112, %c0_113] : memref<4x26x64xf32, #tpu.memory_space<vmem>>, vector<4x16x64xf32>
    %c0_114 = arith.constant 0 : index
    %c0_115 = arith.constant 0 : index
    %c448_116 = arith.constant 448 : index
    %53 = vector.load %arg18[%c0_114, %c0_115, %c448_116] : memref<4x16x768xf32, #tpu.memory_space<vmem>>, vector<4x16x64xf32>
    tpu.vector_store %arg18[%c0_114, %c0_115, %c448_116], %52 {strides = array<i32>} : memref<4x16x768xf32, #tpu.memory_space<vmem>>, vector<4x16x64xf32>,
    %c0_117 = arith.constant 0 : index
    %c8_118 = arith.constant 8 : index
    %c0_119 = arith.constant 0 : index
    %54 = vector.load %arg17[%c0_117, %c8_118, %c0_119] : memref<4x26x64xf32, #tpu.memory_space<vmem>>, vector<4x16x64xf32>
    %c0_120 = arith.constant 0 : index
    %c0_121 = arith.constant 0 : index
    %c512_122 = arith.constant 512 : index
    %55 = vector.load %arg18[%c0_120, %c0_121, %c512_122] : memref<4x16x768xf32, #tpu.memory_space<vmem>>, vector<4x16x64xf32>
    tpu.vector_store %arg18[%c0_120, %c0_121, %c512_122], %54 {strides = array<i32>} : memref<4x16x768xf32, #tpu.memory_space<vmem>>, vector<4x16x64xf32>,
    %c0_123 = arith.constant 0 : index
    %c9_124 = arith.constant 9 : index
    %c0_125 = arith.constant 0 : index
    %56 = vector.load %arg17[%c0_123, %c9_124, %c0_125] : memref<4x26x64xf32, #tpu.memory_space<vmem>>, vector<4x16x64xf32>
    %c0_126 = arith.constant 0 : index
    %c0_127 = arith.constant 0 : index
    %c576_128 = arith.constant 576 : index
    %57 = vector.load %arg18[%c0_126, %c0_127, %c576_128] : memref<4x16x768xf32, #tpu.memory_space<vmem>>, vector<4x16x64xf32>
    tpu.vector_store %arg18[%c0_126, %c0_127, %c576_128], %56 {strides = array<i32>} : memref<4x16x768xf32, #tpu.memory_space<vmem>>, vector<4x16x64xf32>,
    %c0_129 = arith.constant 0 : index
    %c10_130 = arith.constant 10 : index
    %c0_131 = arith.constant 0 : index
    %58 = vector.load %arg17[%c0_129, %c10_130, %c0_131] : memref<4x26x64xf32, #tpu.memory_space<vmem>>, vector<4x16x64xf32>
    %c0_132 = arith.constant 0 : index
    %c0_133 = arith.constant 0 : index
    %c640_134 = arith.constant 640 : index
    %59 = vector.load %arg18[%c0_132, %c0_133, %c640_134] : memref<4x16x768xf32, #tpu.memory_space<vmem>>, vector<4x16x64xf32>
    tpu.vector_store %arg18[%c0_132, %c0_133, %c640_134], %58 {strides = array<i32>} : memref<4x16x768xf32, #tpu.memory_space<vmem>>, vector<4x16x64xf32>,
    %c0_135 = arith.constant 0 : index
    %c0_136 = arith.constant 0 : index
    %c0_137 = arith.constant 0 : index
    %60 = vector.load %arg18[%c0_135, %c0_136, %c0_137] : memref<4x16x768xf32, #tpu.memory_space<vmem>>, vector<4x16x768xf32>
    %61 = vector.shape_cast %60 : vector<4x16x768xf32> to vector<64x768xf32>
    %62 = arith.truncf %61 : vector<64x768xf32> to vector<64x768xbf16>
    %c0_138 = arith.constant 0 : index
    %c0_139 = arith.constant 0 : index
    %63 = vector.load %arg3[%c0_138, %c0_139] : memref<768x64xbf16, #tpu.memory_space<vmem>>, vector<768x64xbf16>
    %cst_140 = arith.constant dense<0.000000e+00> : vector<64x64xf32>
    %64 = tpu.matmul %62, %63, %cst_140 {dimension_numbers = #tpu.dot_dimension_numbers<[1], [0], [0], [1], [0, 0, 1, 1], [], []>} : vector<64x768xbf16>, vector<768x64xbf16>, vector<64x64xf32> -> vector<64x64xf32>
    %c0_141 = arith.constant 0 : index
    %c0_142 = arith.constant 0 : index
    %65 = vector.load %arg4[%c0_141, %c0_142] : memref<1x64xf32, #tpu.memory_space<vmem>>, vector<1x64xf32>
    %66 = vector.broadcast %65 : vector<1x64xf32> to vector<64x64xf32>
    %67 = arith.addf %64, %66 : vector<64x64xf32>
    %68 = vector.shape_cast %67 : vector<64x64xf32> to vector<4x16x64xf32>
    %c0_143 = arith.constant 0 : index
    %c5_144 = arith.constant 5 : index
    %c0_145 = arith.constant 0 : index
    %69 = vector.load %arg17[%c0_143, %c5_144, %c0_145] : memref<4x26x64xf32, #tpu.memory_space<vmem>>, vector<4x16x64xf32>
    tpu.vector_store %arg17[%c0_143, %c5_144, %c0_145], %68 {strides = array<i32>} : memref<4x26x64xf32, #tpu.memory_space<vmem>>, vector<4x16x64xf32>,
    %c0_146 = arith.constant 0 : index
    %c0_147 = arith.constant 0 : index
    %c0_148 = arith.constant 0 : index
    %70 = vector.load %arg17[%c0_146, %c0_147, %c0_148] : memref<4x26x64xf32, #tpu.memory_space<vmem>>, vector<4x16x64xf32>
    %c0_149 = arith.constant 0 : index
    %c0_150 = arith.constant 0 : index
    %c0_151 = arith.constant 0 : index
    %71 = vector.load %arg18[%c0_149, %c0_150, %c0_151] : memref<4x16x768xf32, #tpu.memory_space<vmem>>, vector<4x16x64xf32>
    tpu.vector_store %arg18[%c0_149, %c0_150, %c0_151], %70 {strides = array<i32>} : memref<4x16x768xf32, #tpu.memory_space<vmem>>, vector<4x16x64xf32>,
    %c0_152 = arith.constant 0 : index
    %c1_153 = arith.constant 1 : index
    %c0_154 = arith.constant 0 : index
    %72 = vector.load %arg17[%c0_152, %c1_153, %c0_154] : memref<4x26x64xf32, #tpu.memory_space<vmem>>, vector<4x16x64xf32>
    %c0_155 = arith.constant 0 : index
    %c0_156 = arith.constant 0 : index
    %c64_157 = arith.constant 64 : index
    %73 = vector.load %arg18[%c0_155, %c0_156, %c64_157] : memref<4x16x768xf32, #tpu.memory_space<vmem>>, vector<4x16x64xf32>
    tpu.vector_store %arg18[%c0_155, %c0_156, %c64_157], %72 {strides = array<i32>} : memref<4x16x768xf32, #tpu.memory_space<vmem>>, vector<4x16x64xf32>,
    %c0_158 = arith.constant 0 : index
    %c2_159 = arith.constant 2 : index
    %c0_160 = arith.constant 0 : index
    %74 = vector.load %arg17[%c0_158, %c2_159, %c0_160] : memref<4x26x64xf32, #tpu.memory_space<vmem>>, vector<4x16x64xf32>
    %c0_161 = arith.constant 0 : index
    %c0_162 = arith.constant 0 : index
    %c128_163 = arith.constant 128 : index
    %75 = vector.load %arg18[%c0_161, %c0_162, %c128_163] : memref<4x16x768xf32, #tpu.memory_space<vmem>>, vector<4x16x64xf32>
    tpu.vector_store %arg18[%c0_161, %c0_162, %c128_163], %74 {strides = array<i32>} : memref<4x16x768xf32, #tpu.memory_space<vmem>>, vector<4x16x64xf32>,
    %c0_164 = arith.constant 0 : index
    %c3_165 = arith.constant 3 : index
    %c0_166 = arith.constant 0 : index
    %76 = vector.load %arg17[%c0_164, %c3_165, %c0_166] : memref<4x26x64xf32, #tpu.memory_space<vmem>>, vector<4x16x64xf32>
    %c0_167 = arith.constant 0 : index
    %c0_168 = arith.constant 0 : index
    %c192_169 = arith.constant 192 : index
    %77 = vector.load %arg18[%c0_167, %c0_168, %c192_169] : memref<4x16x768xf32, #tpu.memory_space<vmem>>, vector<4x16x64xf32>
    tpu.vector_store %arg18[%c0_167, %c0_168, %c192_169], %76 {strides = array<i32>} : memref<4x16x768xf32, #tpu.memory_space<vmem>>, vector<4x16x64xf32>,
    %c0_170 = arith.constant 0 : index
    %c4_171 = arith.constant 4 : index
    %c0_172 = arith.constant 0 : index
    %78 = vector.load %arg17[%c0_170, %c4_171, %c0_172] : memref<4x26x64xf32, #tpu.memory_space<vmem>>, vector<4x16x64xf32>
    %c0_173 = arith.constant 0 : index
    %c0_174 = arith.constant 0 : index
    %c256_175 = arith.constant 256 : index
    %79 = vector.load %arg18[%c0_173, %c0_174, %c256_175] : memref<4x16x768xf32, #tpu.memory_space<vmem>>, vector<4x16x64xf32>
    tpu.vector_store %arg18[%c0_173, %c0_174, %c256_175], %78 {strides = array<i32>} : memref<4x16x768xf32, #tpu.memory_space<vmem>>, vector<4x16x64xf32>,
    %c0_176 = arith.constant 0 : index
    %c5_177 = arith.constant 5 : index
    %c0_178 = arith.constant 0 : index
    %80 = vector.load %arg17[%c0_176, %c5_177, %c0_178] : memref<4x26x64xf32, #tpu.memory_space<vmem>>, vector<4x16x64xf32>
    %c0_179 = arith.constant 0 : index
    %c0_180 = arith.constant 0 : index
    %c320_181 = arith.constant 320 : index
    %81 = vector.load %arg18[%c0_179, %c0_180, %c320_181] : memref<4x16x768xf32, #tpu.memory_space<vmem>>, vector<4x16x64xf32>
    tpu.vector_store %arg18[%c0_179, %c0_180, %c320_181], %80 {strides = array<i32>} : memref<4x16x768xf32, #tpu.memory_space<vmem>>, vector<4x16x64xf32>,
    %c0_182 = arith.constant 0 : index
    %c6_183 = arith.constant 6 : index
    %c0_184 = arith.constant 0 : index
    %82 = vector.load %arg17[%c0_182, %c6_183, %c0_184] : memref<4x26x64xf32, #tpu.memory_space<vmem>>, vector<4x16x64xf32>
    %c0_185 = arith.constant 0 : index
    %c0_186 = arith.constant 0 : index
    %c384_187 = arith.constant 384 : index
    %83 = vector.load %arg18[%c0_185, %c0_186, %c384_187] : memref<4x16x768xf32, #tpu.memory_space<vmem>>, vector<4x16x64xf32>
    tpu.vector_store %arg18[%c0_185, %c0_186, %c384_187], %82 {strides = array<i32>} : memref<4x16x768xf32, #tpu.memory_space<vmem>>, vector<4x16x64xf32>,
    %c0_188 = arith.constant 0 : index
    %c7_189 = arith.constant 7 : index
    %c0_190 = arith.constant 0 : index
    %84 = vector.load %arg17[%c0_188, %c7_189, %c0_190] : memref<4x26x64xf32, #tpu.memory_space<vmem>>, vector<4x16x64xf32>
    %c0_191 = arith.constant 0 : index
    %c0_192 = arith.constant 0 : index
    %c448_193 = arith.constant 448 : index
    %85 = vector.load %arg18[%c0_191, %c0_192, %c448_193] : memref<4x16x768xf32, #tpu.memory_space<vmem>>, vector<4x16x64xf32>
    tpu.vector_store %arg18[%c0_191, %c0_192, %c448_193], %84 {strides = array<i32>} : memref<4x16x768xf32, #tpu.memory_space<vmem>>, vector<4x16x64xf32>,
    %c0_194 = arith.constant 0 : index
    %c8_195 = arith.constant 8 : index
    %c0_196 = arith.constant 0 : index
    %86 = vector.load %arg17[%c0_194, %c8_195, %c0_196] : memref<4x26x64xf32, #tpu.memory_space<vmem>>, vector<4x16x64xf32>
    %c0_197 = arith.constant 0 : index
    %c0_198 = arith.constant 0 : index
    %c512_199 = arith.constant 512 : index
    %87 = vector.load %arg18[%c0_197, %c0_198, %c512_199] : memref<4x16x768xf32, #tpu.memory_space<vmem>>, vector<4x16x64xf32>
    tpu.vector_store %arg18[%c0_197, %c0_198, %c512_199], %86 {strides = array<i32>} : memref<4x16x768xf32, #tpu.memory_space<vmem>>, vector<4x16x64xf32>,
    %c0_200 = arith.constant 0 : index
    %c9_201 = arith.constant 9 : index
    %c0_202 = arith.constant 0 : index
    %88 = vector.load %arg17[%c0_200, %c9_201, %c0_202] : memref<4x26x64xf32, #tpu.memory_space<vmem>>, vector<4x16x64xf32>
    %c0_203 = arith.constant 0 : index
    %c0_204 = arith.constant 0 : index
    %c576_205 = arith.constant 576 : index
    %89 = vector.load %arg18[%c0_203, %c0_204, %c576_205] : memref<4x16x768xf32, #tpu.memory_space<vmem>>, vector<4x16x64xf32>
    tpu.vector_store %arg18[%c0_203, %c0_204, %c576_205], %88 {strides = array<i32>} : memref<4x16x768xf32, #tpu.memory_space<vmem>>, vector<4x16x64xf32>,
    %c0_206 = arith.constant 0 : index
    %c10_207 = arith.constant 10 : index
    %c0_208 = arith.constant 0 : index
    %90 = vector.load %arg17[%c0_206, %c10_207, %c0_208] : memref<4x26x64xf32, #tpu.memory_space<vmem>>, vector<4x16x64xf32>
    %c0_209 = arith.constant 0 : index
    %c0_210 = arith.constant 0 : index
    %c640_211 = arith.constant 640 : index
    %91 = vector.load %arg18[%c0_209, %c0_210, %c640_211] : memref<4x16x768xf32, #tpu.memory_space<vmem>>, vector<4x16x64xf32>
    tpu.vector_store %arg18[%c0_209, %c0_210, %c640_211], %90 {strides = array<i32>} : memref<4x16x768xf32, #tpu.memory_space<vmem>>, vector<4x16x64xf32>,
    %c0_212 = arith.constant 0 : index
    %c0_213 = arith.constant 0 : index
    %c0_214 = arith.constant 0 : index
    %92 = vector.load %arg18[%c0_212, %c0_213, %c0_214] : memref<4x16x768xf32, #tpu.memory_space<vmem>>, vector<4x16x768xf32>
    %93 = vector.shape_cast %92 : vector<4x16x768xf32> to vector<64x768xf32>
    %94 = arith.truncf %93 : vector<64x768xf32> to vector<64x768xbf16>
    %c0_215 = arith.constant 0 : index
    %c0_216 = arith.constant 0 : index
    %95 = vector.load %arg5[%c0_215, %c0_216] : memref<768x64xbf16, #tpu.memory_space<vmem>>, vector<768x64xbf16>
    %cst_217 = arith.constant dense<0.000000e+00> : vector<64x64xf32>
    %96 = tpu.matmul %94, %95, %cst_217 {dimension_numbers = #tpu.dot_dimension_numbers<[1], [0], [0], [1], [0, 0, 1, 1], [], []>} : vector<64x768xbf16>, vector<768x64xbf16>, vector<64x64xf32> -> vector<64x64xf32>
    %c0_218 = arith.constant 0 : index
    %c0_219 = arith.constant 0 : index
    %97 = vector.load %arg6[%c0_218, %c0_219] : memref<1x64xf32, #tpu.memory_space<vmem>>, vector<1x64xf32>
    %98 = vector.broadcast %97 : vector<1x64xf32> to vector<64x64xf32>
    %99 = arith.addf %96, %98 : vector<64x64xf32>
    %100 = vector.shape_cast %99 : vector<64x64xf32> to vector<4x16x64xf32>
    %c0_220 = arith.constant 0 : index
    %c5_221 = arith.constant 5 : index
    %c0_222 = arith.constant 0 : index
    %101 = vector.load %arg17[%c0_220, %c5_221, %c0_222] : memref<4x26x64xf32, #tpu.memory_space<vmem>>, vector<4x16x64xf32>
    tpu.vector_store %arg17[%c0_220, %c5_221, %c0_222], %100 {strides = array<i32>} : memref<4x26x64xf32, #tpu.memory_space<vmem>>, vector<4x16x64xf32>,
    %c0_223 = arith.constant 0 : index
    %c0_224 = arith.constant 0 : index
    %c0_225 = arith.constant 0 : index
    %102 = vector.load %arg17[%c0_223, %c0_224, %c0_225] : memref<4x26x64xf32, #tpu.memory_space<vmem>>, vector<4x16x64xf32>
    %c0_226 = arith.constant 0 : index
    %c0_227 = arith.constant 0 : index
    %c0_228 = arith.constant 0 : index
    %103 = vector.load %arg18[%c0_226, %c0_227, %c0_228] : memref<4x16x768xf32, #tpu.memory_space<vmem>>, vector<4x16x64xf32>
    tpu.vector_store %arg18[%c0_226, %c0_227, %c0_228], %102 {strides = array<i32>} : memref<4x16x768xf32, #tpu.memory_space<vmem>>, vector<4x16x64xf32>,
    %c0_229 = arith.constant 0 : index
    %c1_230 = arith.constant 1 : index
    %c0_231 = arith.constant 0 : index
    %104 = vector.load %arg17[%c0_229, %c1_230, %c0_231] : memref<4x26x64xf32, #tpu.memory_space<vmem>>, vector<4x16x64xf32>
    %c0_232 = arith.constant 0 : index
    %c0_233 = arith.constant 0 : index
    %c64_234 = arith.constant 64 : index
    %105 = vector.load %arg18[%c0_232, %c0_233, %c64_234] : memref<4x16x768xf32, #tpu.memory_space<vmem>>, vector<4x16x64xf32>
    tpu.vector_store %arg18[%c0_232, %c0_233, %c64_234], %104 {strides = array<i32>} : memref<4x16x768xf32, #tpu.memory_space<vmem>>, vector<4x16x64xf32>,
    %c0_235 = arith.constant 0 : index
    %c2_236 = arith.constant 2 : index
    %c0_237 = arith.constant 0 : index
    %106 = vector.load %arg17[%c0_235, %c2_236, %c0_237] : memref<4x26x64xf32, #tpu.memory_space<vmem>>, vector<4x16x64xf32>
    %c0_238 = arith.constant 0 : index
    %c0_239 = arith.constant 0 : index
    %c128_240 = arith.constant 128 : index
    %107 = vector.load %arg18[%c0_238, %c0_239, %c128_240] : memref<4x16x768xf32, #tpu.memory_space<vmem>>, vector<4x16x64xf32>
    tpu.vector_store %arg18[%c0_238, %c0_239, %c128_240], %106 {strides = array<i32>} : memref<4x16x768xf32, #tpu.memory_space<vmem>>, vector<4x16x64xf32>,
    %c0_241 = arith.constant 0 : index
    %c3_242 = arith.constant 3 : index
    %c0_243 = arith.constant 0 : index
    %108 = vector.load %arg17[%c0_241, %c3_242, %c0_243] : memref<4x26x64xf32, #tpu.memory_space<vmem>>, vector<4x16x64xf32>
    %c0_244 = arith.constant 0 : index
    %c0_245 = arith.constant 0 : index
    %c192_246 = arith.constant 192 : index
    %109 = vector.load %arg18[%c0_244, %c0_245, %c192_246] : memref<4x16x768xf32, #tpu.memory_space<vmem>>, vector<4x16x64xf32>
    tpu.vector_store %arg18[%c0_244, %c0_245, %c192_246], %108 {strides = array<i32>} : memref<4x16x768xf32, #tpu.memory_space<vmem>>, vector<4x16x64xf32>,
    %c0_247 = arith.constant 0 : index
    %c4_248 = arith.constant 4 : index
    %c0_249 = arith.constant 0 : index
    %110 = vector.load %arg17[%c0_247, %c4_248, %c0_249] : memref<4x26x64xf32, #tpu.memory_space<vmem>>, vector<4x16x64xf32>
    %c0_250 = arith.constant 0 : index
    %c0_251 = arith.constant 0 : index
    %c256_252 = arith.constant 256 : index
    %111 = vector.load %arg18[%c0_250, %c0_251, %c256_252] : memref<4x16x768xf32, #tpu.memory_space<vmem>>, vector<4x16x64xf32>
    tpu.vector_store %arg18[%c0_250, %c0_251, %c256_252], %110 {strides = array<i32>} : memref<4x16x768xf32, #tpu.memory_space<vmem>>, vector<4x16x64xf32>,
    %c0_253 = arith.constant 0 : index
    %c5_254 = arith.constant 5 : index
    %c0_255 = arith.constant 0 : index
    %112 = vector.load %arg17[%c0_253, %c5_254, %c0_255] : memref<4x26x64xf32, #tpu.memory_space<vmem>>, vector<4x16x64xf32>
    %c0_256 = arith.constant 0 : index
    %c0_257 = arith.constant 0 : index
    %c320_258 = arith.constant 320 : index
    %113 = vector.load %arg18[%c0_256, %c0_257, %c320_258] : memref<4x16x768xf32, #tpu.memory_space<vmem>>, vector<4x16x64xf32>
    tpu.vector_store %arg18[%c0_256, %c0_257, %c320_258], %112 {strides = array<i32>} : memref<4x16x768xf32, #tpu.memory_space<vmem>>, vector<4x16x64xf32>,
    %c0_259 = arith.constant 0 : index
    %c6_260 = arith.constant 6 : index
    %c0_261 = arith.constant 0 : index
    %114 = vector.load %arg17[%c0_259, %c6_260, %c0_261] : memref<4x26x64xf32, #tpu.memory_space<vmem>>, vector<4x16x64xf32>
    %c0_262 = arith.constant 0 : index
    %c0_263 = arith.constant 0 : index
    %c384_264 = arith.constant 384 : index
    %115 = vector.load %arg18[%c0_262, %c0_263, %c384_264] : memref<4x16x768xf32, #tpu.memory_space<vmem>>, vector<4x16x64xf32>
    tpu.vector_store %arg18[%c0_262, %c0_263, %c384_264], %114 {strides = array<i32>} : memref<4x16x768xf32, #tpu.memory_space<vmem>>, vector<4x16x64xf32>,
    %c0_265 = arith.constant 0 : index
    %c7_266 = arith.constant 7 : index
    %c0_267 = arith.constant 0 : index
    %116 = vector.load %arg17[%c0_265, %c7_266, %c0_267] : memref<4x26x64xf32, #tpu.memory_space<vmem>>, vector<4x16x64xf32>
    %c0_268 = arith.constant 0 : index
    %c0_269 = arith.constant 0 : index
    %c448_270 = arith.constant 448 : index
    %117 = vector.load %arg18[%c0_268, %c0_269, %c448_270] : memref<4x16x768xf32, #tpu.memory_space<vmem>>, vector<4x16x64xf32>
    tpu.vector_store %arg18[%c0_268, %c0_269, %c448_270], %116 {strides = array<i32>} : memref<4x16x768xf32, #tpu.memory_space<vmem>>, vector<4x16x64xf32>,
    %c0_271 = arith.constant 0 : index
    %c8_272 = arith.constant 8 : index
    %c0_273 = arith.constant 0 : index
    %118 = vector.load %arg17[%c0_271, %c8_272, %c0_273] : memref<4x26x64xf32, #tpu.memory_space<vmem>>, vector<4x16x64xf32>
    %c0_274 = arith.constant 0 : index
    %c0_275 = arith.constant 0 : index
    %c512_276 = arith.constant 512 : index
    %119 = vector.load %arg18[%c0_274, %c0_275, %c512_276] : memref<4x16x768xf32, #tpu.memory_space<vmem>>, vector<4x16x64xf32>
    tpu.vector_store %arg18[%c0_274, %c0_275, %c512_276], %118 {strides = array<i32>} : memref<4x16x768xf32, #tpu.memory_space<vmem>>, vector<4x16x64xf32>,
    %c0_277 = arith.constant 0 : index
    %c9_278 = arith.constant 9 : index
    %c0_279 = arith.constant 0 : index
    %120 = vector.load %arg17[%c0_277, %c9_278, %c0_279] : memref<4x26x64xf32, #tpu.memory_space<vmem>>, vector<4x16x64xf32>
    %c0_280 = arith.constant 0 : index
    %c0_281 = arith.constant 0 : index
    %c576_282 = arith.constant 576 : index
    %121 = vector.load %arg18[%c0_280, %c0_281, %c576_282] : memref<4x16x768xf32, #tpu.memory_space<vmem>>, vector<4x16x64xf32>
    tpu.vector_store %arg18[%c0_280, %c0_281, %c576_282], %120 {strides = array<i32>} : memref<4x16x768xf32, #tpu.memory_space<vmem>>, vector<4x16x64xf32>,
    %c0_283 = arith.constant 0 : index
    %c10_284 = arith.constant 10 : index
    %c0_285 = arith.constant 0 : index
    %122 = vector.load %arg17[%c0_283, %c10_284, %c0_285] : memref<4x26x64xf32, #tpu.memory_space<vmem>>, vector<4x16x64xf32>
    %c0_286 = arith.constant 0 : index
    %c0_287 = arith.constant 0 : index
    %c640_288 = arith.constant 640 : index
    %123 = vector.load %arg18[%c0_286, %c0_287, %c640_288] : memref<4x16x768xf32, #tpu.memory_space<vmem>>, vector<4x16x64xf32>
    tpu.vector_store %arg18[%c0_286, %c0_287, %c640_288], %122 {strides = array<i32>} : memref<4x16x768xf32, #tpu.memory_space<vmem>>, vector<4x16x64xf32>,
    %c0_289 = arith.constant 0 : index
    %c0_290 = arith.constant 0 : index
    %c0_291 = arith.constant 0 : index
    %124 = vector.load %arg18[%c0_289, %c0_290, %c0_291] : memref<4x16x768xf32, #tpu.memory_space<vmem>>, vector<4x16x768xf32>
    %125 = vector.shape_cast %124 : vector<4x16x768xf32> to vector<64x768xf32>
    %126 = arith.truncf %125 : vector<64x768xf32> to vector<64x768xbf16>
    %c0_292 = arith.constant 0 : index
    %c0_293 = arith.constant 0 : index
    %127 = vector.load %arg7[%c0_292, %c0_293] : memref<768x64xbf16, #tpu.memory_space<vmem>>, vector<768x64xbf16>
    %cst_294 = arith.constant dense<0.000000e+00> : vector<64x64xf32>
    %128 = tpu.matmul %126, %127, %cst_294 {dimension_numbers = #tpu.dot_dimension_numbers<[1], [0], [0], [1], [0, 0, 1, 1], [], []>} : vector<64x768xbf16>, vector<768x64xbf16>, vector<64x64xf32> -> vector<64x64xf32>
    %c0_295 = arith.constant 0 : index
    %c0_296 = arith.constant 0 : index
    %129 = vector.load %arg8[%c0_295, %c0_296] : memref<1x64xf32, #tpu.memory_space<vmem>>, vector<1x64xf32>
    %130 = vector.broadcast %129 : vector<1x64xf32> to vector<64x64xf32>
    %131 = arith.addf %128, %130 : vector<64x64xf32>
    %132 = vector.shape_cast %131 : vector<64x64xf32> to vector<4x16x64xf32>
    %133 = vector.shape_cast %132 : vector<4x16x64xf32> to vector<64x64xf32>
    %134 = arith.truncf %133 : vector<64x64xf32> to vector<64x64xbf16>
    %c0_297 = arith.constant 0 : index
    %c0_298 = arith.constant 0 : index
    %135 = vector.load %arg9[%c0_297, %c0_298] : memref<64x128xbf16, #tpu.memory_space<vmem>>, vector<64x128xbf16>
    %cst_299 = arith.constant dense<0.000000e+00> : vector<64x128xf32>
    %136 = tpu.matmul %134, %135, %cst_299 {dimension_numbers = #tpu.dot_dimension_numbers<[1], [0], [0], [1], [0, 0, 1, 1], [], []>} : vector<64x64xbf16>, vector<64x128xbf16>, vector<64x128xf32> -> vector<64x128xf32>
    %c0_300 = arith.constant 0 : index
    %c0_301 = arith.constant 0 : index
    %137 = vector.load %arg10[%c0_300, %c0_301] : memref<1x128xf32, #tpu.memory_space<vmem>>, vector<1x128xf32>
    %138 = vector.broadcast %137 : vector<1x128xf32> to vector<64x128xf32>
    %139 = arith.addf %136, %138 : vector<64x128xf32>
    %c0_302 = arith.constant 0 : index
    %c0_303 = arith.constant 0 : index
    %140 = vector.load %arg11[%c0_302, %c0_303] : memref<32x128xf32, #tpu.memory_space<vmem>>, vector<32x128xf32>
    %c0_304 = arith.constant 0 : index
    %c0_305 = arith.constant 0 : index
    %141 = vector.load %arg12[%c0_304, %c0_305] : memref<64x128xf32, #tpu.memory_space<vmem>>, vector<64x128xf32>
    %c0_306 = arith.constant 0 : index
    %c0_307 = arith.constant 0 : index
    %142 = vector.load %arg13[%c0_306, %c0_307] : memref<1x128xf32, #tpu.memory_space<vmem>>, vector<1x128xf32>
    %cst_308 = arith.constant 0.000000e+00 : f32
    %143 = vector.broadcast %cst_308 : f32 to vector<16x64xf32>
    %c0_309 = arith.constant 0 : index
    %c0_310 = arith.constant 0 : index
    %144 = vector.load %arg19[%c0_309, %c0_310] : memref<16x64xf32, #tpu.memory_space<vmem>>, vector<16x64xf32>
    tpu.vector_store %arg19[%c0_309, %c0_310], %143 {strides = array<i32>} : memref<16x64xf32, #tpu.memory_space<vmem>>, vector<16x64xf32>,
    %cst_311 = arith.constant 0.000000e+00 : f32
    %145 = vector.broadcast %cst_311 : f32 to vector<16x32xf32>
    %cst_312 = arith.constant 0.000000e+00 : f32
    %146 = vector.broadcast %cst_312 : f32 to vector<16x32xf32>
    %cst_313 = arith.constant 0.000000e+00 : f32
    %147 = vector.broadcast %cst_313 : f32 to vector<16x32xf32>
    %148 = vector.extract_strided_slice %139 {offsets = [0, 0], sizes = [16, 128], strides = [1, 1]} : vector<64x128xf32> to vector<16x128xf32>
    %cst_314 = arith.constant dense<0.000000e+00> : vector<16x128xf32>
    %149 = tpu.matmul %145, %140, %cst_314 {dimension_numbers = #tpu.dot_dimension_numbers<[1], [0], [0], [1], [0, 0, 1, 1], [], []>} : vector<16x32xf32>, vector<32x128xf32>, vector<16x128xf32> -> vector<16x128xf32>
    %150 = arith.addf %148, %149 : vector<16x128xf32>
    %151 = arith.negf %150 : vector<16x128xf32>
    %152 = math.exp %151 : vector<16x128xf32>
    %cst_315 = arith.constant 1.000000e+00 : f32
    %153 = vector.broadcast %cst_315 : f32 to vector<16x128xf32>
    %154 = arith.addf %153, %152 : vector<16x128xf32>
    %155 = arith.divf %153, %154 : vector<16x128xf32>
    %156 = vector.extract_strided_slice %155 {offsets = [0, 0], sizes = [16, 32], strides = [1, 1]} : vector<16x128xf32> to vector<16x32xf32>
    %157 = vector.extract_strided_slice %155 {offsets = [0, 32], sizes = [16, 32], strides = [1, 1]} : vector<16x128xf32> to vector<16x32xf32>
    %158 = vector.extract_strided_slice %155 {offsets = [0, 64], sizes = [16, 32], strides = [1, 1]} : vector<16x128xf32> to vector<16x32xf32>
    %cst_316 = arith.constant 2.000000e+00 : f32
    %159 = vector.broadcast %cst_316 : f32 to vector<16x32xf32>
    %160 = arith.mulf %159, %158 : vector<16x32xf32>
    %cst_317 = arith.constant 1.000000e+00 : f32
    %161 = vector.broadcast %cst_317 : f32 to vector<16x32xf32>
    %162 = arith.subf %160, %161 : vector<16x32xf32>
    %163 = vector.extract_strided_slice %155 {offsets = [0, 96], sizes = [16, 32], strides = [1, 1]} : vector<16x128xf32> to vector<16x32xf32>
    %164 = arith.mulf %157, %146 : vector<16x32xf32>
    %165 = arith.mulf %156, %162 : vector<16x32xf32>
    %166 = arith.addf %164, %165 : vector<16x32xf32>
    %167 = math.tanh %166 : vector<16x32xf32>
    %168 = arith.mulf %163, %167 : vector<16x32xf32>
    %c0_318 = arith.constant 0 : index
    %c0_319 = arith.constant 0 : index
    %169 = vector.load %arg19[%c0_318, %c0_319] : memref<16x64xf32, #tpu.memory_space<vmem>>, vector<16x32xf32>
    tpu.vector_store %arg19[%c0_318, %c0_319], %168 {strides = array<i32>} : memref<16x64xf32, #tpu.memory_space<vmem>>, vector<16x32xf32>,
    %c0_320 = arith.constant 0 : index
    %c0_321 = arith.constant 0 : index
    %170 = vector.load %arg19[%c0_320, %c0_321] : memref<16x64xf32, #tpu.memory_space<vmem>>, vector<16x64xf32>
    %cst_322 = arith.constant dense<0.000000e+00> : vector<16x128xf32>
    %171 = tpu.matmul %170, %141, %cst_322 {dimension_numbers = #tpu.dot_dimension_numbers<[1], [0], [0], [1], [0, 0, 1, 1], [], []>} : vector<16x64xf32>, vector<64x128xf32>, vector<16x128xf32> -> vector<16x128xf32>
    %172 = vector.broadcast %142 : vector<1x128xf32> to vector<16x128xf32>
    %173 = arith.addf %171, %172 : vector<16x128xf32>
    %174 = arith.negf %173 : vector<16x128xf32>
    %175 = math.exp %174 : vector<16x128xf32>
    %cst_323 = arith.constant 1.000000e+00 : f32
    %176 = vector.broadcast %cst_323 : f32 to vector<16x128xf32>
    %177 = arith.addf %176, %175 : vector<16x128xf32>
    %178 = arith.divf %176, %177 : vector<16x128xf32>
    %179 = vector.extract_strided_slice %178 {offsets = [0, 0], sizes = [16, 32], strides = [1, 1]} : vector<16x128xf32> to vector<16x32xf32>
    %180 = vector.extract_strided_slice %178 {offsets = [0, 32], sizes = [16, 32], strides = [1, 1]} : vector<16x128xf32> to vector<16x32xf32>
    %181 = vector.extract_strided_slice %178 {offsets = [0, 64], sizes = [16, 32], strides = [1, 1]} : vector<16x128xf32> to vector<16x32xf32>
    %cst_324 = arith.constant 2.000000e+00 : f32
    %182 = vector.broadcast %cst_324 : f32 to vector<16x32xf32>
    %183 = arith.mulf %182, %181 : vector<16x32xf32>
    %cst_325 = arith.constant 1.000000e+00 : f32
    %184 = vector.broadcast %cst_325 : f32 to vector<16x32xf32>
    %185 = arith.subf %183, %184 : vector<16x32xf32>
    %186 = vector.extract_strided_slice %178 {offsets = [0, 96], sizes = [16, 32], strides = [1, 1]} : vector<16x128xf32> to vector<16x32xf32>
    %187 = arith.mulf %180, %147 : vector<16x32xf32>
    %188 = arith.mulf %179, %185 : vector<16x32xf32>
    %189 = arith.addf %187, %188 : vector<16x32xf32>
    %190 = math.tanh %189 : vector<16x32xf32>
    %191 = arith.mulf %186, %190 : vector<16x32xf32>
    %c0_326 = arith.constant 0 : index
    %c32 = arith.constant 32 : index
    %192 = vector.load %arg19[%c0_326, %c32] : memref<16x64xf32, #tpu.memory_space<vmem>>, vector<16x32xf32>
    tpu.vector_store %arg19[%c0_326, %c32], %191 {strides = array<i32>} : memref<16x64xf32, #tpu.memory_space<vmem>>, vector<16x32xf32>,
    %c0_327 = arith.constant 0 : index
    %c0_328 = arith.constant 0 : index
    %c0_329 = arith.constant 0 : index
    %193 = vector.load %arg20[%c0_327, %c0_328, %c0_329] : memref<4x16x32xf32, #tpu.memory_space<vmem>>, vector<1x16x32xf32>
    %194 = vector.shape_cast %193 : vector<1x16x32xf32> to vector<16x32xf32>
    %195 = vector.shape_cast %191 : vector<16x32xf32> to vector<1x16x32xf32>
    tpu.vector_store %arg20[%c0_327, %c0_328, %c0_329], %195 {strides = array<i32>} : memref<4x16x32xf32, #tpu.memory_space<vmem>>, vector<1x16x32xf32>,
    %196 = vector.extract_strided_slice %139 {offsets = [16, 0], sizes = [16, 128], strides = [1, 1]} : vector<64x128xf32> to vector<16x128xf32>
    %cst_330 = arith.constant dense<0.000000e+00> : vector<16x128xf32>
    %197 = tpu.matmul %168, %140, %cst_330 {dimension_numbers = #tpu.dot_dimension_numbers<[1], [0], [0], [1], [0, 0, 1, 1], [], []>} : vector<16x32xf32>, vector<32x128xf32>, vector<16x128xf32> -> vector<16x128xf32>
    %198 = arith.addf %196, %197 : vector<16x128xf32>
    %199 = arith.negf %198 : vector<16x128xf32>
    %200 = math.exp %199 : vector<16x128xf32>
    %cst_331 = arith.constant 1.000000e+00 : f32
    %201 = vector.broadcast %cst_331 : f32 to vector<16x128xf32>
    %202 = arith.addf %201, %200 : vector<16x128xf32>
    %203 = arith.divf %201, %202 : vector<16x128xf32>
    %204 = vector.extract_strided_slice %203 {offsets = [0, 0], sizes = [16, 32], strides = [1, 1]} : vector<16x128xf32> to vector<16x32xf32>
    %205 = vector.extract_strided_slice %203 {offsets = [0, 32], sizes = [16, 32], strides = [1, 1]} : vector<16x128xf32> to vector<16x32xf32>
    %206 = vector.extract_strided_slice %203 {offsets = [0, 64], sizes = [16, 32], strides = [1, 1]} : vector<16x128xf32> to vector<16x32xf32>
    %cst_332 = arith.constant 2.000000e+00 : f32
    %207 = vector.broadcast %cst_332 : f32 to vector<16x32xf32>
    %208 = arith.mulf %207, %206 : vector<16x32xf32>
    %cst_333 = arith.constant 1.000000e+00 : f32
    %209 = vector.broadcast %cst_333 : f32 to vector<16x32xf32>
    %210 = arith.subf %208, %209 : vector<16x32xf32>
    %211 = vector.extract_strided_slice %203 {offsets = [0, 96], sizes = [16, 32], strides = [1, 1]} : vector<16x128xf32> to vector<16x32xf32>
    %212 = arith.mulf %205, %166 : vector<16x32xf32>
    %213 = arith.mulf %204, %210 : vector<16x32xf32>
    %214 = arith.addf %212, %213 : vector<16x32xf32>
    %215 = math.tanh %214 : vector<16x32xf32>
    %216 = arith.mulf %211, %215 : vector<16x32xf32>
    %c0_334 = arith.constant 0 : index
    %c0_335 = arith.constant 0 : index
    %217 = vector.load %arg19[%c0_334, %c0_335] : memref<16x64xf32, #tpu.memory_space<vmem>>, vector<16x32xf32>
    tpu.vector_store %arg19[%c0_334, %c0_335], %216 {strides = array<i32>} : memref<16x64xf32, #tpu.memory_space<vmem>>, vector<16x32xf32>,
    %c0_336 = arith.constant 0 : index
    %c0_337 = arith.constant 0 : index
    %218 = vector.load %arg19[%c0_336, %c0_337] : memref<16x64xf32, #tpu.memory_space<vmem>>, vector<16x64xf32>
    %cst_338 = arith.constant dense<0.000000e+00> : vector<16x128xf32>
    %219 = tpu.matmul %218, %141, %cst_338 {dimension_numbers = #tpu.dot_dimension_numbers<[1], [0], [0], [1], [0, 0, 1, 1], [], []>} : vector<16x64xf32>, vector<64x128xf32>, vector<16x128xf32> -> vector<16x128xf32>
    %220 = vector.broadcast %142 : vector<1x128xf32> to vector<16x128xf32>
    %221 = arith.addf %219, %220 : vector<16x128xf32>
    %222 = arith.negf %221 : vector<16x128xf32>
    %223 = math.exp %222 : vector<16x128xf32>
    %cst_339 = arith.constant 1.000000e+00 : f32
    %224 = vector.broadcast %cst_339 : f32 to vector<16x128xf32>
    %225 = arith.addf %224, %223 : vector<16x128xf32>
    %226 = arith.divf %224, %225 : vector<16x128xf32>
    %227 = vector.extract_strided_slice %226 {offsets = [0, 0], sizes = [16, 32], strides = [1, 1]} : vector<16x128xf32> to vector<16x32xf32>
    %228 = vector.extract_strided_slice %226 {offsets = [0, 32], sizes = [16, 32], strides = [1, 1]} : vector<16x128xf32> to vector<16x32xf32>
    %229 = vector.extract_strided_slice %226 {offsets = [0, 64], sizes = [16, 32], strides = [1, 1]} : vector<16x128xf32> to vector<16x32xf32>
    %cst_340 = arith.constant 2.000000e+00 : f32
    %230 = vector.broadcast %cst_340 : f32 to vector<16x32xf32>
    %231 = arith.mulf %230, %229 : vector<16x32xf32>
    %cst_341 = arith.constant 1.000000e+00 : f32
    %232 = vector.broadcast %cst_341 : f32 to vector<16x32xf32>
    %233 = arith.subf %231, %232 : vector<16x32xf32>
    %234 = vector.extract_strided_slice %226 {offsets = [0, 96], sizes = [16, 32], strides = [1, 1]} : vector<16x128xf32> to vector<16x32xf32>
    %235 = arith.mulf %228, %189 : vector<16x32xf32>
    %236 = arith.mulf %227, %233 : vector<16x32xf32>
    %237 = arith.addf %235, %236 : vector<16x32xf32>
    %238 = math.tanh %237 : vector<16x32xf32>
    %239 = arith.mulf %234, %238 : vector<16x32xf32>
    %c0_342 = arith.constant 0 : index
    %c32_343 = arith.constant 32 : index
    %240 = vector.load %arg19[%c0_342, %c32_343] : memref<16x64xf32, #tpu.memory_space<vmem>>, vector<16x32xf32>
    tpu.vector_store %arg19[%c0_342, %c32_343], %239 {strides = array<i32>} : memref<16x64xf32, #tpu.memory_space<vmem>>, vector<16x32xf32>,
    %c1_344 = arith.constant 1 : index
    %c0_345 = arith.constant 0 : index
    %c0_346 = arith.constant 0 : index
    %241 = vector.load %arg20[%c1_344, %c0_345, %c0_346] : memref<4x16x32xf32, #tpu.memory_space<vmem>>, vector<1x16x32xf32>
    %242 = vector.shape_cast %241 : vector<1x16x32xf32> to vector<16x32xf32>
    %243 = vector.shape_cast %239 : vector<16x32xf32> to vector<1x16x32xf32>
    tpu.vector_store %arg20[%c1_344, %c0_345, %c0_346], %243 {strides = array<i32>} : memref<4x16x32xf32, #tpu.memory_space<vmem>>, vector<1x16x32xf32>,
    %244 = vector.extract_strided_slice %139 {offsets = [32, 0], sizes = [16, 128], strides = [1, 1]} : vector<64x128xf32> to vector<16x128xf32>
    %cst_347 = arith.constant dense<0.000000e+00> : vector<16x128xf32>
    %245 = tpu.matmul %216, %140, %cst_347 {dimension_numbers = #tpu.dot_dimension_numbers<[1], [0], [0], [1], [0, 0, 1, 1], [], []>} : vector<16x32xf32>, vector<32x128xf32>, vector<16x128xf32> -> vector<16x128xf32>
    %246 = arith.addf %244, %245 : vector<16x128xf32>
    %247 = arith.negf %246 : vector<16x128xf32>
    %248 = math.exp %247 : vector<16x128xf32>
    %cst_348 = arith.constant 1.000000e+00 : f32
    %249 = vector.broadcast %cst_348 : f32 to vector<16x128xf32>
    %250 = arith.addf %249, %248 : vector<16x128xf32>
    %251 = arith.divf %249, %250 : vector<16x128xf32>
    %252 = vector.extract_strided_slice %251 {offsets = [0, 0], sizes = [16, 32], strides = [1, 1]} : vector<16x128xf32> to vector<16x32xf32>
    %253 = vector.extract_strided_slice %251 {offsets = [0, 32], sizes = [16, 32], strides = [1, 1]} : vector<16x128xf32> to vector<16x32xf32>
    %254 = vector.extract_strided_slice %251 {offsets = [0, 64], sizes = [16, 32], strides = [1, 1]} : vector<16x128xf32> to vector<16x32xf32>
    %cst_349 = arith.constant 2.000000e+00 : f32
    %255 = vector.broadcast %cst_349 : f32 to vector<16x32xf32>
    %256 = arith.mulf %255, %254 : vector<16x32xf32>
    %cst_350 = arith.constant 1.000000e+00 : f32
    %257 = vector.broadcast %cst_350 : f32 to vector<16x32xf32>
    %258 = arith.subf %256, %257 : vector<16x32xf32>
    %259 = vector.extract_strided_slice %251 {offsets = [0, 96], sizes = [16, 32], strides = [1, 1]} : vector<16x128xf32> to vector<16x32xf32>
    %260 = arith.mulf %253, %214 : vector<16x32xf32>
    %261 = arith.mulf %252, %258 : vector<16x32xf32>
    %262 = arith.addf %260, %261 : vector<16x32xf32>
    %263 = math.tanh %262 : vector<16x32xf32>
    %264 = arith.mulf %259, %263 : vector<16x32xf32>
    %c0_351 = arith.constant 0 : index
    %c0_352 = arith.constant 0 : index
    %265 = vector.load %arg19[%c0_351, %c0_352] : memref<16x64xf32, #tpu.memory_space<vmem>>, vector<16x32xf32>
    tpu.vector_store %arg19[%c0_351, %c0_352], %264 {strides = array<i32>} : memref<16x64xf32, #tpu.memory_space<vmem>>, vector<16x32xf32>,
    %c0_353 = arith.constant 0 : index
    %c0_354 = arith.constant 0 : index
    %266 = vector.load %arg19[%c0_353, %c0_354] : memref<16x64xf32, #tpu.memory_space<vmem>>, vector<16x64xf32>
    %cst_355 = arith.constant dense<0.000000e+00> : vector<16x128xf32>
    %267 = tpu.matmul %266, %141, %cst_355 {dimension_numbers = #tpu.dot_dimension_numbers<[1], [0], [0], [1], [0, 0, 1, 1], [], []>} : vector<16x64xf32>, vector<64x128xf32>, vector<16x128xf32> -> vector<16x128xf32>
    %268 = vector.broadcast %142 : vector<1x128xf32> to vector<16x128xf32>
    %269 = arith.addf %267, %268 : vector<16x128xf32>
    %270 = arith.negf %269 : vector<16x128xf32>
    %271 = math.exp %270 : vector<16x128xf32>
    %cst_356 = arith.constant 1.000000e+00 : f32
    %272 = vector.broadcast %cst_356 : f32 to vector<16x128xf32>
    %273 = arith.addf %272, %271 : vector<16x128xf32>
    %274 = arith.divf %272, %273 : vector<16x128xf32>
    %275 = vector.extract_strided_slice %274 {offsets = [0, 0], sizes = [16, 32], strides = [1, 1]} : vector<16x128xf32> to vector<16x32xf32>
    %276 = vector.extract_strided_slice %274 {offsets = [0, 32], sizes = [16, 32], strides = [1, 1]} : vector<16x128xf32> to vector<16x32xf32>
    %277 = vector.extract_strided_slice %274 {offsets = [0, 64], sizes = [16, 32], strides = [1, 1]} : vector<16x128xf32> to vector<16x32xf32>
    %cst_357 = arith.constant 2.000000e+00 : f32
    %278 = vector.broadcast %cst_357 : f32 to vector<16x32xf32>
    %279 = arith.mulf %278, %277 : vector<16x32xf32>
    %cst_358 = arith.constant 1.000000e+00 : f32
    %280 = vector.broadcast %cst_358 : f32 to vector<16x32xf32>
    %281 = arith.subf %279, %280 : vector<16x32xf32>
    %282 = vector.extract_strided_slice %274 {offsets = [0, 96], sizes = [16, 32], strides = [1, 1]} : vector<16x128xf32> to vector<16x32xf32>
    %283 = arith.mulf %276, %237 : vector<16x32xf32>
    %284 = arith.mulf %275, %281 : vector<16x32xf32>
    %285 = arith.addf %283, %284 : vector<16x32xf32>
    %286 = math.tanh %285 : vector<16x32xf32>
    %287 = arith.mulf %282, %286 : vector<16x32xf32>
    %c0_359 = arith.constant 0 : index
    %c32_360 = arith.constant 32 : index
    %288 = vector.load %arg19[%c0_359, %c32_360] : memref<16x64xf32, #tpu.memory_space<vmem>>, vector<16x32xf32>
    tpu.vector_store %arg19[%c0_359, %c32_360], %287 {strides = array<i32>} : memref<16x64xf32, #tpu.memory_space<vmem>>, vector<16x32xf32>,
    %c2_361 = arith.constant 2 : index
    %c0_362 = arith.constant 0 : index
    %c0_363 = arith.constant 0 : index
    %289 = vector.load %arg20[%c2_361, %c0_362, %c0_363] : memref<4x16x32xf32, #tpu.memory_space<vmem>>, vector<1x16x32xf32>
    %290 = vector.shape_cast %289 : vector<1x16x32xf32> to vector<16x32xf32>
    %291 = vector.shape_cast %287 : vector<16x32xf32> to vector<1x16x32xf32>
    tpu.vector_store %arg20[%c2_361, %c0_362, %c0_363], %291 {strides = array<i32>} : memref<4x16x32xf32, #tpu.memory_space<vmem>>, vector<1x16x32xf32>,
    %292 = vector.extract_strided_slice %139 {offsets = [48, 0], sizes = [16, 128], strides = [1, 1]} : vector<64x128xf32> to vector<16x128xf32>
    %cst_364 = arith.constant dense<0.000000e+00> : vector<16x128xf32>
    %293 = tpu.matmul %264, %140, %cst_364 {dimension_numbers = #tpu.dot_dimension_numbers<[1], [0], [0], [1], [0, 0, 1, 1], [], []>} : vector<16x32xf32>, vector<32x128xf32>, vector<16x128xf32> -> vector<16x128xf32>
    %294 = arith.addf %292, %293 : vector<16x128xf32>
    %295 = arith.negf %294 : vector<16x128xf32>
    %296 = math.exp %295 : vector<16x128xf32>
    %cst_365 = arith.constant 1.000000e+00 : f32
    %297 = vector.broadcast %cst_365 : f32 to vector<16x128xf32>
    %298 = arith.addf %297, %296 : vector<16x128xf32>
    %299 = arith.divf %297, %298 : vector<16x128xf32>
    %300 = vector.extract_strided_slice %299 {offsets = [0, 0], sizes = [16, 32], strides = [1, 1]} : vector<16x128xf32> to vector<16x32xf32>
    %301 = vector.extract_strided_slice %299 {offsets = [0, 32], sizes = [16, 32], strides = [1, 1]} : vector<16x128xf32> to vector<16x32xf32>
    %302 = vector.extract_strided_slice %299 {offsets = [0, 64], sizes = [16, 32], strides = [1, 1]} : vector<16x128xf32> to vector<16x32xf32>
    %cst_366 = arith.constant 2.000000e+00 : f32
    %303 = vector.broadcast %cst_366 : f32 to vector<16x32xf32>
    %304 = arith.mulf %303, %302 : vector<16x32xf32>
    %cst_367 = arith.constant 1.000000e+00 : f32
    %305 = vector.broadcast %cst_367 : f32 to vector<16x32xf32>
    %306 = arith.subf %304, %305 : vector<16x32xf32>
    %307 = vector.extract_strided_slice %299 {offsets = [0, 96], sizes = [16, 32], strides = [1, 1]} : vector<16x128xf32> to vector<16x32xf32>
    %308 = arith.mulf %301, %262 : vector<16x32xf32>
    %309 = arith.mulf %300, %306 : vector<16x32xf32>
    %310 = arith.addf %308, %309 : vector<16x32xf32>
    %311 = math.tanh %310 : vector<16x32xf32>
    %312 = arith.mulf %307, %311 : vector<16x32xf32>
    %c0_368 = arith.constant 0 : index
    %c0_369 = arith.constant 0 : index
    %313 = vector.load %arg19[%c0_368, %c0_369] : memref<16x64xf32, #tpu.memory_space<vmem>>, vector<16x32xf32>
    tpu.vector_store %arg19[%c0_368, %c0_369], %312 {strides = array<i32>} : memref<16x64xf32, #tpu.memory_space<vmem>>, vector<16x32xf32>,
    %c0_370 = arith.constant 0 : index
    %c0_371 = arith.constant 0 : index
    %314 = vector.load %arg19[%c0_370, %c0_371] : memref<16x64xf32, #tpu.memory_space<vmem>>, vector<16x64xf32>
    %cst_372 = arith.constant dense<0.000000e+00> : vector<16x128xf32>
    %315 = tpu.matmul %314, %141, %cst_372 {dimension_numbers = #tpu.dot_dimension_numbers<[1], [0], [0], [1], [0, 0, 1, 1], [], []>} : vector<16x64xf32>, vector<64x128xf32>, vector<16x128xf32> -> vector<16x128xf32>
    %316 = vector.broadcast %142 : vector<1x128xf32> to vector<16x128xf32>
    %317 = arith.addf %315, %316 : vector<16x128xf32>
    %318 = arith.negf %317 : vector<16x128xf32>
    %319 = math.exp %318 : vector<16x128xf32>
    %cst_373 = arith.constant 1.000000e+00 : f32
    %320 = vector.broadcast %cst_373 : f32 to vector<16x128xf32>
    %321 = arith.addf %320, %319 : vector<16x128xf32>
    %322 = arith.divf %320, %321 : vector<16x128xf32>
    %323 = vector.extract_strided_slice %322 {offsets = [0, 0], sizes = [16, 32], strides = [1, 1]} : vector<16x128xf32> to vector<16x32xf32>
    %324 = vector.extract_strided_slice %322 {offsets = [0, 32], sizes = [16, 32], strides = [1, 1]} : vector<16x128xf32> to vector<16x32xf32>
    %325 = vector.extract_strided_slice %322 {offsets = [0, 64], sizes = [16, 32], strides = [1, 1]} : vector<16x128xf32> to vector<16x32xf32>
    %cst_374 = arith.constant 2.000000e+00 : f32
    %326 = vector.broadcast %cst_374 : f32 to vector<16x32xf32>
    %327 = arith.mulf %326, %325 : vector<16x32xf32>
    %cst_375 = arith.constant 1.000000e+00 : f32
    %328 = vector.broadcast %cst_375 : f32 to vector<16x32xf32>
    %329 = arith.subf %327, %328 : vector<16x32xf32>
    %330 = vector.extract_strided_slice %322 {offsets = [0, 96], sizes = [16, 32], strides = [1, 1]} : vector<16x128xf32> to vector<16x32xf32>
    %331 = arith.mulf %324, %285 : vector<16x32xf32>
    %332 = arith.mulf %323, %329 : vector<16x32xf32>
    %333 = arith.addf %331, %332 : vector<16x32xf32>
    %334 = math.tanh %333 : vector<16x32xf32>
    %335 = arith.mulf %330, %334 : vector<16x32xf32>
    %c0_376 = arith.constant 0 : index
    %c32_377 = arith.constant 32 : index
    %336 = vector.load %arg19[%c0_376, %c32_377] : memref<16x64xf32, #tpu.memory_space<vmem>>, vector<16x32xf32>
    tpu.vector_store %arg19[%c0_376, %c32_377], %335 {strides = array<i32>} : memref<16x64xf32, #tpu.memory_space<vmem>>, vector<16x32xf32>,
    %c3_378 = arith.constant 3 : index
    %c0_379 = arith.constant 0 : index
    %c0_380 = arith.constant 0 : index
    %337 = vector.load %arg20[%c3_378, %c0_379, %c0_380] : memref<4x16x32xf32, #tpu.memory_space<vmem>>, vector<1x16x32xf32>
    %338 = vector.shape_cast %337 : vector<1x16x32xf32> to vector<16x32xf32>
    %339 = vector.shape_cast %335 : vector<16x32xf32> to vector<1x16x32xf32>
    tpu.vector_store %arg20[%c3_378, %c0_379, %c0_380], %339 {strides = array<i32>} : memref<4x16x32xf32, #tpu.memory_space<vmem>>, vector<1x16x32xf32>,
    %cst_381 = arith.constant 0.000000e+00 : f32
    %340 = vector.broadcast %cst_381 : f32 to vector<4x128xf32>
    %c0_382 = arith.constant 0 : index
    %c0_383 = arith.constant 0 : index
    %c0_384 = arith.constant 0 : index
    %341 = vector.load %arg20[%c0_382, %c0_383, %c0_384] : memref<4x16x32xf32, #tpu.memory_space<vmem>>, vector<4x1x32xf32>
    %342 = vector.shape_cast %341 : vector<4x1x32xf32> to vector<4x32xf32>
    %343 = arith.truncf %342 : vector<4x32xf32> to vector<4x32xbf16>
    %c0_385 = arith.constant 0 : index
    %c0_386 = arith.constant 0 : index
    %c0_387 = arith.constant 0 : index
    %344 = vector.load %arg14[%c0_385, %c0_386, %c0_387] : memref<16x32x128xbf16, #tpu.memory_space<vmem>>, vector<1x32x128xbf16>
    %345 = vector.shape_cast %344 : vector<1x32x128xbf16> to vector<32x128xbf16>
    %cst_388 = arith.constant dense<0.000000e+00> : vector<4x128xf32>
    %346 = tpu.matmul %343, %345, %cst_388 {dimension_numbers = #tpu.dot_dimension_numbers<[1], [0], [0], [1], [0, 0, 1, 1], [], []>} : vector<4x32xbf16>, vector<32x128xbf16>, vector<4x128xf32> -> vector<4x128xf32>
    %347 = arith.addf %340, %346 : vector<4x128xf32>
    %c0_389 = arith.constant 0 : index
    %c1_390 = arith.constant 1 : index
    %c0_391 = arith.constant 0 : index
    %348 = vector.load %arg20[%c0_389, %c1_390, %c0_391] : memref<4x16x32xf32, #tpu.memory_space<vmem>>, vector<4x1x32xf32>
    %349 = vector.shape_cast %348 : vector<4x1x32xf32> to vector<4x32xf32>
    %350 = arith.truncf %349 : vector<4x32xf32> to vector<4x32xbf16>
    %c1_392 = arith.constant 1 : index
    %c0_393 = arith.constant 0 : index
    %c0_394 = arith.constant 0 : index
    %351 = vector.load %arg14[%c1_392, %c0_393, %c0_394] : memref<16x32x128xbf16, #tpu.memory_space<vmem>>, vector<1x32x128xbf16>
    %352 = vector.shape_cast %351 : vector<1x32x128xbf16> to vector<32x128xbf16>
    %cst_395 = arith.constant dense<0.000000e+00> : vector<4x128xf32>
    %353 = tpu.matmul %350, %352, %cst_395 {dimension_numbers = #tpu.dot_dimension_numbers<[1], [0], [0], [1], [0, 0, 1, 1], [], []>} : vector<4x32xbf16>, vector<32x128xbf16>, vector<4x128xf32> -> vector<4x128xf32>
    %354 = arith.addf %347, %353 : vector<4x128xf32>
    %c0_396 = arith.constant 0 : index
    %c2_397 = arith.constant 2 : index
    %c0_398 = arith.constant 0 : index
    %355 = vector.load %arg20[%c0_396, %c2_397, %c0_398] : memref<4x16x32xf32, #tpu.memory_space<vmem>>, vector<4x1x32xf32>
    %356 = vector.shape_cast %355 : vector<4x1x32xf32> to vector<4x32xf32>
    %357 = arith.truncf %356 : vector<4x32xf32> to vector<4x32xbf16>
    %c2_399 = arith.constant 2 : index
    %c0_400 = arith.constant 0 : index
    %c0_401 = arith.constant 0 : index
    %358 = vector.load %arg14[%c2_399, %c0_400, %c0_401] : memref<16x32x128xbf16, #tpu.memory_space<vmem>>, vector<1x32x128xbf16>
    %359 = vector.shape_cast %358 : vector<1x32x128xbf16> to vector<32x128xbf16>
    %cst_402 = arith.constant dense<0.000000e+00> : vector<4x128xf32>
    %360 = tpu.matmul %357, %359, %cst_402 {dimension_numbers = #tpu.dot_dimension_numbers<[1], [0], [0], [1], [0, 0, 1, 1], [], []>} : vector<4x32xbf16>, vector<32x128xbf16>, vector<4x128xf32> -> vector<4x128xf32>
    %361 = arith.addf %354, %360 : vector<4x128xf32>
    %c0_403 = arith.constant 0 : index
    %c3_404 = arith.constant 3 : index
    %c0_405 = arith.constant 0 : index
    %362 = vector.load %arg20[%c0_403, %c3_404, %c0_405] : memref<4x16x32xf32, #tpu.memory_space<vmem>>, vector<4x1x32xf32>
    %363 = vector.shape_cast %362 : vector<4x1x32xf32> to vector<4x32xf32>
    %364 = arith.truncf %363 : vector<4x32xf32> to vector<4x32xbf16>
    %c3_406 = arith.constant 3 : index
    %c0_407 = arith.constant 0 : index
    %c0_408 = arith.constant 0 : index
    %365 = vector.load %arg14[%c3_406, %c0_407, %c0_408] : memref<16x32x128xbf16, #tpu.memory_space<vmem>>, vector<1x32x128xbf16>
    %366 = vector.shape_cast %365 : vector<1x32x128xbf16> to vector<32x128xbf16>
    %cst_409 = arith.constant dense<0.000000e+00> : vector<4x128xf32>
    %367 = tpu.matmul %364, %366, %cst_409 {dimension_numbers = #tpu.dot_dimension_numbers<[1], [0], [0], [1], [0, 0, 1, 1], [], []>} : vector<4x32xbf16>, vector<32x128xbf16>, vector<4x128xf32> -> vector<4x128xf32>
    %368 = arith.addf %361, %367 : vector<4x128xf32>
    %c0_410 = arith.constant 0 : index
    %c4_411 = arith.constant 4 : index
    %c0_412 = arith.constant 0 : index
    %369 = vector.load %arg20[%c0_410, %c4_411, %c0_412] : memref<4x16x32xf32, #tpu.memory_space<vmem>>, vector<4x1x32xf32>
    %370 = vector.shape_cast %369 : vector<4x1x32xf32> to vector<4x32xf32>
    %371 = arith.truncf %370 : vector<4x32xf32> to vector<4x32xbf16>
    %c4_413 = arith.constant 4 : index
    %c0_414 = arith.constant 0 : index
    %c0_415 = arith.constant 0 : index
    %372 = vector.load %arg14[%c4_413, %c0_414, %c0_415] : memref<16x32x128xbf16, #tpu.memory_space<vmem>>, vector<1x32x128xbf16>
    %373 = vector.shape_cast %372 : vector<1x32x128xbf16> to vector<32x128xbf16>
    %cst_416 = arith.constant dense<0.000000e+00> : vector<4x128xf32>
    %374 = tpu.matmul %371, %373, %cst_416 {dimension_numbers = #tpu.dot_dimension_numbers<[1], [0], [0], [1], [0, 0, 1, 1], [], []>} : vector<4x32xbf16>, vector<32x128xbf16>, vector<4x128xf32> -> vector<4x128xf32>
    %375 = arith.addf %368, %374 : vector<4x128xf32>
    %c0_417 = arith.constant 0 : index
    %c5_418 = arith.constant 5 : index
    %c0_419 = arith.constant 0 : index
    %376 = vector.load %arg20[%c0_417, %c5_418, %c0_419] : memref<4x16x32xf32, #tpu.memory_space<vmem>>, vector<4x1x32xf32>
    %377 = vector.shape_cast %376 : vector<4x1x32xf32> to vector<4x32xf32>
    %378 = arith.truncf %377 : vector<4x32xf32> to vector<4x32xbf16>
    %c5_420 = arith.constant 5 : index
    %c0_421 = arith.constant 0 : index
    %c0_422 = arith.constant 0 : index
    %379 = vector.load %arg14[%c5_420, %c0_421, %c0_422] : memref<16x32x128xbf16, #tpu.memory_space<vmem>>, vector<1x32x128xbf16>
    %380 = vector.shape_cast %379 : vector<1x32x128xbf16> to vector<32x128xbf16>
    %cst_423 = arith.constant dense<0.000000e+00> : vector<4x128xf32>
    %381 = tpu.matmul %378, %380, %cst_423 {dimension_numbers = #tpu.dot_dimension_numbers<[1], [0], [0], [1], [0, 0, 1, 1], [], []>} : vector<4x32xbf16>, vector<32x128xbf16>, vector<4x128xf32> -> vector<4x128xf32>
    %382 = arith.addf %375, %381 : vector<4x128xf32>
    %c0_424 = arith.constant 0 : index
    %c6_425 = arith.constant 6 : index
    %c0_426 = arith.constant 0 : index
    %383 = vector.load %arg20[%c0_424, %c6_425, %c0_426] : memref<4x16x32xf32, #tpu.memory_space<vmem>>, vector<4x1x32xf32>
    %384 = vector.shape_cast %383 : vector<4x1x32xf32> to vector<4x32xf32>
    %385 = arith.truncf %384 : vector<4x32xf32> to vector<4x32xbf16>
    %c6_427 = arith.constant 6 : index
    %c0_428 = arith.constant 0 : index
    %c0_429 = arith.constant 0 : index
    %386 = vector.load %arg14[%c6_427, %c0_428, %c0_429] : memref<16x32x128xbf16, #tpu.memory_space<vmem>>, vector<1x32x128xbf16>
    %387 = vector.shape_cast %386 : vector<1x32x128xbf16> to vector<32x128xbf16>
    %cst_430 = arith.constant dense<0.000000e+00> : vector<4x128xf32>
    %388 = tpu.matmul %385, %387, %cst_430 {dimension_numbers = #tpu.dot_dimension_numbers<[1], [0], [0], [1], [0, 0, 1, 1], [], []>} : vector<4x32xbf16>, vector<32x128xbf16>, vector<4x128xf32> -> vector<4x128xf32>
    %389 = arith.addf %382, %388 : vector<4x128xf32>
    %c0_431 = arith.constant 0 : index
    %c7_432 = arith.constant 7 : index
    %c0_433 = arith.constant 0 : index
    %390 = vector.load %arg20[%c0_431, %c7_432, %c0_433] : memref<4x16x32xf32, #tpu.memory_space<vmem>>, vector<4x1x32xf32>
    %391 = vector.shape_cast %390 : vector<4x1x32xf32> to vector<4x32xf32>
    %392 = arith.truncf %391 : vector<4x32xf32> to vector<4x32xbf16>
    %c7_434 = arith.constant 7 : index
    %c0_435 = arith.constant 0 : index
    %c0_436 = arith.constant 0 : index
    %393 = vector.load %arg14[%c7_434, %c0_435, %c0_436] : memref<16x32x128xbf16, #tpu.memory_space<vmem>>, vector<1x32x128xbf16>
    %394 = vector.shape_cast %393 : vector<1x32x128xbf16> to vector<32x128xbf16>
    %cst_437 = arith.constant dense<0.000000e+00> : vector<4x128xf32>
    %395 = tpu.matmul %392, %394, %cst_437 {dimension_numbers = #tpu.dot_dimension_numbers<[1], [0], [0], [1], [0, 0, 1, 1], [], []>} : vector<4x32xbf16>, vector<32x128xbf16>, vector<4x128xf32> -> vector<4x128xf32>
    %396 = arith.addf %389, %395 : vector<4x128xf32>
    %c0_438 = arith.constant 0 : index
    %c8_439 = arith.constant 8 : index
    %c0_440 = arith.constant 0 : index
    %397 = vector.load %arg20[%c0_438, %c8_439, %c0_440] : memref<4x16x32xf32, #tpu.memory_space<vmem>>, vector<4x1x32xf32>
    %398 = vector.shape_cast %397 : vector<4x1x32xf32> to vector<4x32xf32>
    %399 = arith.truncf %398 : vector<4x32xf32> to vector<4x32xbf16>
    %c8_441 = arith.constant 8 : index
    %c0_442 = arith.constant 0 : index
    %c0_443 = arith.constant 0 : index
    %400 = vector.load %arg14[%c8_441, %c0_442, %c0_443] : memref<16x32x128xbf16, #tpu.memory_space<vmem>>, vector<1x32x128xbf16>
    %401 = vector.shape_cast %400 : vector<1x32x128xbf16> to vector<32x128xbf16>
    %cst_444 = arith.constant dense<0.000000e+00> : vector<4x128xf32>
    %402 = tpu.matmul %399, %401, %cst_444 {dimension_numbers = #tpu.dot_dimension_numbers<[1], [0], [0], [1], [0, 0, 1, 1], [], []>} : vector<4x32xbf16>, vector<32x128xbf16>, vector<4x128xf32> -> vector<4x128xf32>
    %403 = arith.addf %396, %402 : vector<4x128xf32>
    %c0_445 = arith.constant 0 : index
    %c9_446 = arith.constant 9 : index
    %c0_447 = arith.constant 0 : index
    %404 = vector.load %arg20[%c0_445, %c9_446, %c0_447] : memref<4x16x32xf32, #tpu.memory_space<vmem>>, vector<4x1x32xf32>
    %405 = vector.shape_cast %404 : vector<4x1x32xf32> to vector<4x32xf32>
    %406 = arith.truncf %405 : vector<4x32xf32> to vector<4x32xbf16>
    %c9_448 = arith.constant 9 : index
    %c0_449 = arith.constant 0 : index
    %c0_450 = arith.constant 0 : index
    %407 = vector.load %arg14[%c9_448, %c0_449, %c0_450] : memref<16x32x128xbf16, #tpu.memory_space<vmem>>, vector<1x32x128xbf16>
    %408 = vector.shape_cast %407 : vector<1x32x128xbf16> to vector<32x128xbf16>
    %cst_451 = arith.constant dense<0.000000e+00> : vector<4x128xf32>
    %409 = tpu.matmul %406, %408, %cst_451 {dimension_numbers = #tpu.dot_dimension_numbers<[1], [0], [0], [1], [0, 0, 1, 1], [], []>} : vector<4x32xbf16>, vector<32x128xbf16>, vector<4x128xf32> -> vector<4x128xf32>
    %410 = arith.addf %403, %409 : vector<4x128xf32>
    %c0_452 = arith.constant 0 : index
    %c10_453 = arith.constant 10 : index
    %c0_454 = arith.constant 0 : index
    %411 = vector.load %arg20[%c0_452, %c10_453, %c0_454] : memref<4x16x32xf32, #tpu.memory_space<vmem>>, vector<4x1x32xf32>
    %412 = vector.shape_cast %411 : vector<4x1x32xf32> to vector<4x32xf32>
    %413 = arith.truncf %412 : vector<4x32xf32> to vector<4x32xbf16>
    %c10_455 = arith.constant 10 : index
    %c0_456 = arith.constant 0 : index
    %c0_457 = arith.constant 0 : index
    %414 = vector.load %arg14[%c10_455, %c0_456, %c0_457] : memref<16x32x128xbf16, #tpu.memory_space<vmem>>, vector<1x32x128xbf16>
    %415 = vector.shape_cast %414 : vector<1x32x128xbf16> to vector<32x128xbf16>
    %cst_458 = arith.constant dense<0.000000e+00> : vector<4x128xf32>
    %416 = tpu.matmul %413, %415, %cst_458 {dimension_numbers = #tpu.dot_dimension_numbers<[1], [0], [0], [1], [0, 0, 1, 1], [], []>} : vector<4x32xbf16>, vector<32x128xbf16>, vector<4x128xf32> -> vector<4x128xf32>
    %417 = arith.addf %410, %416 : vector<4x128xf32>
    %c0_459 = arith.constant 0 : index
    %c11 = arith.constant 11 : index
    %c0_460 = arith.constant 0 : index
    %418 = vector.load %arg20[%c0_459, %c11, %c0_460] : memref<4x16x32xf32, #tpu.memory_space<vmem>>, vector<4x1x32xf32>
    %419 = vector.shape_cast %418 : vector<4x1x32xf32> to vector<4x32xf32>
    %420 = arith.truncf %419 : vector<4x32xf32> to vector<4x32xbf16>
    %c11_461 = arith.constant 11 : index
    %c0_462 = arith.constant 0 : index
    %c0_463 = arith.constant 0 : index
    %421 = vector.load %arg14[%c11_461, %c0_462, %c0_463] : memref<16x32x128xbf16, #tpu.memory_space<vmem>>, vector<1x32x128xbf16>
    %422 = vector.shape_cast %421 : vector<1x32x128xbf16> to vector<32x128xbf16>
    %cst_464 = arith.constant dense<0.000000e+00> : vector<4x128xf32>
    %423 = tpu.matmul %420, %422, %cst_464 {dimension_numbers = #tpu.dot_dimension_numbers<[1], [0], [0], [1], [0, 0, 1, 1], [], []>} : vector<4x32xbf16>, vector<32x128xbf16>, vector<4x128xf32> -> vector<4x128xf32>
    %424 = arith.addf %417, %423 : vector<4x128xf32>
    %c0_465 = arith.constant 0 : index
    %c12 = arith.constant 12 : index
    %c0_466 = arith.constant 0 : index
    %425 = vector.load %arg20[%c0_465, %c12, %c0_466] : memref<4x16x32xf32, #tpu.memory_space<vmem>>, vector<4x1x32xf32>
    %426 = vector.shape_cast %425 : vector<4x1x32xf32> to vector<4x32xf32>
    %427 = arith.truncf %426 : vector<4x32xf32> to vector<4x32xbf16>
    %c12_467 = arith.constant 12 : index
    %c0_468 = arith.constant 0 : index
    %c0_469 = arith.constant 0 : index
    %428 = vector.load %arg14[%c12_467, %c0_468, %c0_469] : memref<16x32x128xbf16, #tpu.memory_space<vmem>>, vector<1x32x128xbf16>
    %429 = vector.shape_cast %428 : vector<1x32x128xbf16> to vector<32x128xbf16>
    %cst_470 = arith.constant dense<0.000000e+00> : vector<4x128xf32>
    %430 = tpu.matmul %427, %429, %cst_470 {dimension_numbers = #tpu.dot_dimension_numbers<[1], [0], [0], [1], [0, 0, 1, 1], [], []>} : vector<4x32xbf16>, vector<32x128xbf16>, vector<4x128xf32> -> vector<4x128xf32>
    %431 = arith.addf %424, %430 : vector<4x128xf32>
    %c0_471 = arith.constant 0 : index
    %c13 = arith.constant 13 : index
    %c0_472 = arith.constant 0 : index
    %432 = vector.load %arg20[%c0_471, %c13, %c0_472] : memref<4x16x32xf32, #tpu.memory_space<vmem>>, vector<4x1x32xf32>
    %433 = vector.shape_cast %432 : vector<4x1x32xf32> to vector<4x32xf32>
    %434 = arith.truncf %433 : vector<4x32xf32> to vector<4x32xbf16>
    %c13_473 = arith.constant 13 : index
    %c0_474 = arith.constant 0 : index
    %c0_475 = arith.constant 0 : index
    %435 = vector.load %arg14[%c13_473, %c0_474, %c0_475] : memref<16x32x128xbf16, #tpu.memory_space<vmem>>, vector<1x32x128xbf16>
    %436 = vector.shape_cast %435 : vector<1x32x128xbf16> to vector<32x128xbf16>
    %cst_476 = arith.constant dense<0.000000e+00> : vector<4x128xf32>
    %437 = tpu.matmul %434, %436, %cst_476 {dimension_numbers = #tpu.dot_dimension_numbers<[1], [0], [0], [1], [0, 0, 1, 1], [], []>} : vector<4x32xbf16>, vector<32x128xbf16>, vector<4x128xf32> -> vector<4x128xf32>
    %438 = arith.addf %431, %437 : vector<4x128xf32>
    %c0_477 = arith.constant 0 : index
    %c14 = arith.constant 14 : index
    %c0_478 = arith.constant 0 : index
    %439 = vector.load %arg20[%c0_477, %c14, %c0_478] : memref<4x16x32xf32, #tpu.memory_space<vmem>>, vector<4x1x32xf32>
    %440 = vector.shape_cast %439 : vector<4x1x32xf32> to vector<4x32xf32>
    %441 = arith.truncf %440 : vector<4x32xf32> to vector<4x32xbf16>
    %c14_479 = arith.constant 14 : index
    %c0_480 = arith.constant 0 : index
    %c0_481 = arith.constant 0 : index
    %442 = vector.load %arg14[%c14_479, %c0_480, %c0_481] : memref<16x32x128xbf16, #tpu.memory_space<vmem>>, vector<1x32x128xbf16>
    %443 = vector.shape_cast %442 : vector<1x32x128xbf16> to vector<32x128xbf16>
    %cst_482 = arith.constant dense<0.000000e+00> : vector<4x128xf32>
    %444 = tpu.matmul %441, %443, %cst_482 {dimension_numbers = #tpu.dot_dimension_numbers<[1], [0], [0], [1], [0, 0, 1, 1], [], []>} : vector<4x32xbf16>, vector<32x128xbf16>, vector<4x128xf32> -> vector<4x128xf32>
    %445 = arith.addf %438, %444 : vector<4x128xf32>
    %c0_483 = arith.constant 0 : index
    %c15 = arith.constant 15 : index
    %c0_484 = arith.constant 0 : index
    %446 = vector.load %arg20[%c0_483, %c15, %c0_484] : memref<4x16x32xf32, #tpu.memory_space<vmem>>, vector<4x1x32xf32>
    %447 = vector.shape_cast %446 : vector<4x1x32xf32> to vector<4x32xf32>
    %448 = arith.truncf %447 : vector<4x32xf32> to vector<4x32xbf16>
    %c15_485 = arith.constant 15 : index
    %c0_486 = arith.constant 0 : index
    %c0_487 = arith.constant 0 : index
    %449 = vector.load %arg14[%c15_485, %c0_486, %c0_487] : memref<16x32x128xbf16, #tpu.memory_space<vmem>>, vector<1x32x128xbf16>
    %450 = vector.shape_cast %449 : vector<1x32x128xbf16> to vector<32x128xbf16>
    %cst_488 = arith.constant dense<0.000000e+00> : vector<4x128xf32>
    %451 = tpu.matmul %448, %450, %cst_488 {dimension_numbers = #tpu.dot_dimension_numbers<[1], [0], [0], [1], [0, 0, 1, 1], [], []>} : vector<4x32xbf16>, vector<32x128xbf16>, vector<4x128xf32> -> vector<4x128xf32>
    %452 = arith.addf %445, %451 : vector<4x128xf32>
    %c0_489 = arith.constant 0 : index
    %c0_490 = arith.constant 0 : index
    %453 = vector.load %arg15[%c0_489, %c0_490] : memref<1x128xf32, #tpu.memory_space<vmem>>, vector<1x128xf32>
    %454 = vector.broadcast %453 : vector<1x128xf32> to vector<4x128xf32>
    %455 = arith.addf %452, %454 : vector<4x128xf32>
    %c0_491 = arith.constant 0 : index
    %c0_492 = arith.constant 0 : index
    %456 = vector.load %arg16[%c0_491, %c0_492] : memref<4x128xf32, #tpu.memory_space<vmem>>, vector<4x128xf32>
    tpu.vector_store %arg16[%c0_491, %c0_492], %455 {strides = array<i32>} : memref<4x128xf32, #tpu.memory_space<vmem>>, vector<4x128xf32>,
    return
  }
}

</mosaic_0001>

<bundles_post_ra>
// kernel: deep_conv_lstm_forward.1
= control target key start
LH: loop header
LB: loop body
LE: loop exit
PB: predicated region body
PF: predicated region fallthrough
CT: control target
= control target key end

     0   :  { %s10539_s0 = inlined_call_operand.vmem [shape: f32[4,16,64], index: 0, kind: input, shape index: {}]   ;;  %s10540_s1 = inlined_call_operand.vmem [shape: bf16[768,64], index: 1, kind: input, shape index: {}]   ;;  %s10541_s2 = inlined_call_operand.vmem [shape: f32[1,64], index: 2, kind: input, shape index: {}]   ;;  %s10542_s3 = inlined_call_operand.vmem [shape: bf16[768,64], index: 3, kind: input, shape index: {}]   ;;  %s10543_s4 = inlined_call_operand.vmem [shape: f32[1,64], index: 4, kind: input, shape index: {}]   ;;  %s10544_s5 = inlined_call_operand.vmem [shape: bf16[768,64], index: 5, kind: input, shape index: {}]   ;;  %s10545_s6 = inlined_call_operand.vmem [shape: f32[1,64], index: 6, kind: input, shape index: {}]   ;;  %s10546_s7 = inlined_call_operand.vmem [shape: bf16[768,64], index: 7, kind: input, shape index: {}]   ;;  %s10547_s8 = inlined_call_operand.vmem [shape: f32[1,64], index: 8, kind: input, shape index: {}]   ;;  %s10548_s9 = inlined_call_operand.vmem [shape: bf16[64,128], index: 9, kind: input, shape index: {}]   ;;  %s10549_s10 = inlined_call_operand.vmem [shape: f32[1,128], index: 10, kind: input, shape index: {}]   ;;  %s10550_s11 = inlined_call_operand.vmem [shape: f32[32,128], index: 11, kind: input, shape index: {}]   ;;  %s10551_s12 = inlined_call_operand.vmem [shape: f32[64,128], index: 12, kind: input, shape index: {}]   ;;  %s10552_s13 = inlined_call_operand.vmem [shape: f32[1,128], index: 13, kind: input, shape index: {}]   ;;  %s10553_s14 = inlined_call_operand.vmem [shape: bf16[16,32,128], index: 14, kind: input, shape index: {}]   ;;  %s10554_s15 = inlined_call_operand.vmem [shape: f32[1,128], index: 15, kind: input, shape index: {}]   ;;  %s10555_s16 = inlined_call_operand.hbm [shape: f32[4,128], index: 16, kind: output, shape index: {}]  }
   0x1   :  { %10557 = sst [smem:[#allocation9_spill]] %s10539_s0 }
   0x2   :  { %vm55_vm0 = vcmask 523264   ;;  %s10558_s23 = sld [smem:[#allocation9_spill]]  ;;  %v8492_v3 = vmov 0.0   ;;  %vm59_vm1 = vcmask 517120   ;;  %v8144_v9 = vld [vmem:[%s10540_s1 + $0x40] sm:$0xff]   ;;  %v8146_v11 = vld [vmem:[%s10540_s1 + $0x48] sm:$0xff]  }
   0x3   :  { %56 = vst.msk [vmem:[#allocation2] sm:$0xff] %vm55_vm0, %v8492_v3  ;;  %57 = vst.msk [vmem:[#allocation2 + $0x8] sm:$0xff] %vm55_vm0, %v8492_v3  ;;  %v8145_v10 = vld [vmem:[%s10540_s1] sm:$0xff]   ;;  %7179 = vmatprep.subr.bf16.mxu0 %v8144_v9  ;;  %v8147_v12 = vld [vmem:[%s10540_s1 + $0x8] sm:$0xff]   ;;  %s8493_s18 = smov 64   ;;  %vm193_vm2 = vcmask 1048064  }
   0x4   :  { %58 = vst.msk [vmem:[#allocation2 + $0x10] sm:$0xff] %vm55_vm0, %v8492_v3  ;;  %61 = vst.msk [vmem:[#allocation2 + $0x20] sm:$0xff] %vm55_vm0, %v8492_v3  ;;  %7180 = vmatpush3.bf16.msra.mxu0 %v8145_v10  ;;  %v8148_v13 = vld [vmem:[%s10540_s1 + $0x50] sm:$0xff]   ;;  %v8150_v25 = vld [vmem:[%s10540_s1 + $0x58] sm:$0xff]  }
   0x5   :  { %62 = vst.msk [vmem:[#allocation2 + $0x28] sm:$0xff] %vm55_vm0, %v8492_v3  ;;  %63 = vst.msk [vmem:[#allocation2 + $0x30] sm:$0xff] %vm55_vm0, %v8492_v3  ;;  %7181 = vmatprep.subr.bf16.mxu0 %v8146_v11  ;;  %v8149_v18 = vld [vmem:[%s10540_s1 + $0x10] sm:$0xff]   ;;  %v8151_v26 = vld [vmem:[%s10540_s1 + $0x18] sm:$0xff]  }
   0x6   :  { %65 = vst.msk [vmem:[#allocation2 + $0x40] sm:$0xff] %vm55_vm0, %v8492_v3  ;;  %66 = vst.msk [vmem:[#allocation2 + $0x48] sm:$0xff] %vm55_vm0, %v8492_v3  ;;  %v8152_v28 = vld [vmem:[%s10540_s1 + $0x60] sm:$0xff]   ;;  %v8154_v33 = vld [vmem:[%s10540_s1 + $0x68] sm:$0xff]  }
   0x7   :  { %67 = vst.msk [vmem:[#allocation2 + $0x50] sm:$0xff] %vm55_vm0, %v8492_v3  ;;  %69 = vst.msk [vmem:[#allocation2 + $0x60] sm:$0xff] %vm55_vm0, %v8492_v3  ;;  %v8153_v32 = vld [vmem:[%s10540_s1 + $0x20] sm:$0xff]   ;;  %v8155_v36 = vld [vmem:[%s10540_s1 + $0x28] sm:$0xff]  }
   0x8   :  { %v8585_v0 = vld [vmem:[%s10558_s23] sm:$0xff]  ;;  %v8590_v1 = vld [vmem:[%s10558_s23 + $0x8] sm:$0xff]  ;;  %v8595_v2 = vld [vmem:[%s10558_s23 + $0x10] sm:$0xff]  ;;  %70 = vst.msk [vmem:[#allocation2 + $0x68] sm:$0xff] %vm55_vm0, %v8492_v3  ;;  %7182 = vmatpush3.bf16.msra.mxu0 %v8147_v12 }
   0x9   :  { %71 = vst.msk [vmem:[#allocation2 + $0x70] sm:$0xff] %vm55_vm0, %v8492_v3  ;;  %73 = vst [vmem:[#allocation3] sm:$0xff] %v8492_v3  ;;  %v124_v4 = vld [vmem:[%s10558_s23 + $0x18] sm:$0xff]  ;;  %v125_v5 = vld [vmem:[%s10558_s23 + $0x20] sm:$0xff]  ;;  %7183 = vmatprep.subr.bf16.mxu0 %v8148_v13 }
   0xa   :  { %74 = vst [vmem:[#allocation3 + $0x8] sm:$0xff] %v8492_v3  ;;  %75 = vst [vmem:[#allocation3 + $0x10] sm:$0xff] %v8492_v3  ;;  %v126_v6 = vld [vmem:[%s10558_s23 + $0x28] sm:$0xff]  ;;  %v127_v7 = vld [vmem:[%s10558_s23 + $0x30] sm:$0xff] }
   0xb   :  { %76 = vst [vmem:[#allocation3 + $0x18] sm:$0xff] %v8492_v3  ;;  %77 = vst [vmem:[#allocation3 + $0x20] sm:$0xff] %v8492_v3  ;;  %v128_v8 = vld [vmem:[%s10558_s23 + $0x38] sm:$0xff]  ;;  %v8156_v37 = vld [vmem:[%s10540_s1 + $0x70] sm:$0xff]  }
   0xc   :  { %78 = vst [vmem:[#allocation3 + $0x28] sm:$0xff] %v8492_v3  ;;  %79 = vst [vmem:[#allocation3 + $0x30] sm:$0xff] %v8492_v3  ;;  %7184 = vmatpush3.bf16.msra.mxu0 %v8149_v18  ;;  %v8157_v43 = vld [vmem:[%s10540_s1 + $0x30] sm:$0xff]   ;;  %v8158_v47 = vld [vmem:[%s10540_s1 + $0x78] sm:$0xff]  }
   0xd   :  { %80 = vst [vmem:[#allocation3 + $0x38] sm:$0xff] %v8492_v3  ;;  %81 = vst [vmem:[#allocation3 + $0x40] sm:$0xff] %v8492_v3  ;;  %7185 = vmatprep.subr.bf16.mxu0 %v8150_v25  ;;  %v8159_v48 = vld [vmem:[%s10540_s1 + $0x38] sm:$0xff]   ;;  %v8160_v49 = vld [vmem:[%s10540_s1 + $0xc0] sm:$0xff]  }
   0xe   :  { %82 = vst [vmem:[#allocation3 + $0x48] sm:$0xff] %v8492_v3  ;;  %83 = vst [vmem:[#allocation3 + $0x50] sm:$0xff] %v8492_v3  ;;  %v8161_v51 = vld [vmem:[%s10540_s1 + $0x80] sm:$0xff]   ;;  %7219 = vmatprep.subr.bf16.mxu1 %v8160_v49  ;;  %v8163_v55 = vld [vmem:[%s10540_s1 + $0xc8] sm:$0xff]  }
   0xf   :  { %84 = vst [vmem:[#allocation3 + $0x58] sm:$0xff] %v8492_v3  ;;  %85 = vst [vmem:[#allocation3 + $0x60] sm:$0xff] %v8492_v3  ;;  %v8162_v53 = vld [vmem:[%s10540_s1 + $0x140] sm:$0xff]   ;;  %7220 = vmatpush3.bf16.msra.mxu1 %v8161_v51  ;;  %v8165_v58 = vld [vmem:[%s10540_s1 + $0x88] sm:$0xff]  }
  0x10   :  { %86 = vst [vmem:[#allocation3 + $0x68] sm:$0xff] %v8492_v3  ;;  %87 = vst [vmem:[#allocation3 + $0x70] sm:$0xff] %v8492_v3  ;;  %7186 = vmatpush3.bf16.msra.mxu0 %v8151_v26  ;;  %7221 = vmatprep.subr.bf16.mxu1 %v8163_v55  ;;  %v8167_v61 = vld [vmem:[%s10540_s1 + $0xd0] sm:$0xff]   ;;  %v8175_v11 = vld [vmem:[%s10540_s1 + $0xe0] sm:$0xff]  }
  0x11   :  { %88 = vst [vmem:[#allocation3 + $0x78] sm:$0xff] %v8492_v3  ;;  %89 = vst [vmem:[#allocation3 + $0x80] sm:$0xff] %v8492_v3  ;;  %7187 = vmatprep.subr.bf16.mxu0 %v8152_v28  ;;  %v8177_v13 = vld [vmem:[%s10540_s1 + $0xa0] sm:$0xff]   ;;  %v8181_v18 = vld [vmem:[%s10540_s1 + $0xa8] sm:$0xff]  }
  0x12   :  { %90 = vst [vmem:[#allocation3 + $0x88] sm:$0xff] %v8492_v3  ;;  %91 = vst [vmem:[#allocation3 + $0x90] sm:$0xff] %v8492_v3  ;;  %v8185_v26 = vld [vmem:[%s10540_s1 + $0xb0] sm:$0xff]   ;;  %v8187_v28 = vld [vmem:[%s10540_s1 + $0xf8] sm:$0xff]  }
  0x13   :  { %92 = vst [vmem:[#allocation3 + $0x98] sm:$0xff] %v8492_v3  ;;  %93 = vst [vmem:[#allocation3 + $0xa0] sm:$0xff] %v8492_v3  ;;  %7222 = vmatpush3.bf16.msra.mxu1 %v8165_v58 }
  0x14   :  { %94 = vst [vmem:[#allocation3 + $0xa8] sm:$0xff] %v8492_v3  ;;  %95 = vst [vmem:[#allocation3 + $0xb0] sm:$0xff] %v8492_v3  ;;  %7188 = vmatpush3.bf16.msra.mxu0 %v8153_v32  ;;  %7223 = vmatprep.subr.bf16.mxu1 %v8167_v61 }
  0x15   :  { %96 = vst [vmem:[#allocation3 + $0xb8] sm:$0xff] %v8492_v3  ;;  %97 = vst [vmem:[#allocation3 + $0xc0] sm:$0xff] %v8492_v3  ;;  %7189 = vmatprep.subr.bf16.mxu0 %v8154_v33 }
  0x16   :  { %98 = vst [vmem:[#allocation3 + $0xc8] sm:$0xff] %v8492_v3  ;;  %99 = vst [vmem:[#allocation3 + $0xd0] sm:$0xff] %v8492_v3 }
  0x17   :  { %100 = vst [vmem:[#allocation3 + $0xd8] sm:$0xff] %v8492_v3  ;;  %101 = vst [vmem:[#allocation3 + $0xe0] sm:$0xff] %v8492_v3 }
  0x18   :  { %102 = vst [vmem:[#allocation3 + $0xe8] sm:$0xff] %v8492_v3  ;;  %103 = vst [vmem:[#allocation3 + $0xf0] sm:$0xff] %v8492_v3  ;;  %7190 = vmatpush3.bf16.msra.mxu0 %v8155_v36 }
  0x19   :  { %104 = vst [vmem:[#allocation3 + $0xf8] sm:$0xff] %v8492_v3  ;;  %105 = vst [vmem:[#allocation3 + $0x100] sm:$0xff] %v8492_v3  ;;  %7191 = vmatprep.subr.bf16.mxu0 %v8156_v37 }
  0x1a   :  { %106 = vst [vmem:[#allocation3 + $0x108] sm:$0xff] %v8492_v3  ;;  %107 = vst [vmem:[#allocation3 + $0x110] sm:$0xff] %v8492_v3 }
  0x1b   :  { %108 = vst [vmem:[#allocation3 + $0x118] sm:$0xff] %v8492_v3  ;;  %109 = vst [vmem:[#allocation3 + $0x120] sm:$0xff] %v8492_v3 }
  0x1c   :  { %110 = vst [vmem:[#allocation3 + $0x128] sm:$0xff] %v8492_v3  ;;  %111 = vst [vmem:[#allocation3 + $0x130] sm:$0xff] %v8492_v3  ;;  %7192 = vmatpush3.bf16.msra.mxu0 %v8157_v43 }
  0x1d   :  { %112 = vst [vmem:[#allocation3 + $0x138] sm:$0xff] %v8492_v3  ;;  %113 = vst [vmem:[#allocation3 + $0x140] sm:$0xff] %v8492_v3  ;;  %7193 = vmatprep.subr.bf16.mxu0 %v8158_v47 }
  0x1e   :  { %114 = vst [vmem:[#allocation3 + $0x148] sm:$0xff] %v8492_v3  ;;  %115 = vst [vmem:[#allocation3 + $0x150] sm:$0xff] %v8492_v3 }
  0x1f   :  { %116 = vst [vmem:[#allocation3 + $0x158] sm:$0xff] %v8492_v3  ;;  %117 = vst [vmem:[#allocation3 + $0x160] sm:$0xff] %v8492_v3 }
  0x20   :  { %118 = vst [vmem:[#allocation3 + $0x168] sm:$0xff] %v8492_v3  ;;  %119 = vst [vmem:[#allocation3 + $0x170] sm:$0xff] %v8492_v3  ;;  %7194 = vmatpush3.bf16.msra.mxu0 %v8159_v48 }
  0x21   :  { %120 = vst [vmem:[#allocation3 + $0x178] sm:$0xff] %v8492_v3  ;;  %4271 = vst.msk [vmem:[#allocation4] sm:$0xff] %vm55_vm0, %v8492_v3  ;;  %7259 = vmatprep.subr.bf16.mxu0 %v8162_v53 }
  0x22   :  { %4272 = vst.msk [vmem:[#allocation4 + $0x8] sm:$0xff] %vm55_vm0, %v8492_v3  ;;  %129 = vst.msk [vmem:[#allocation2 + $0x5] sm:$0xff] %vm55_vm0, %v8585_v0  ;;  %v8169_v0 = vld [vmem:[%s10540_s1 + $0x90] sm:$0xff]  }
  0x23   :  { %130 = vst.msk [vmem:[#allocation2 + $0xd] sm:$0xff] %vm55_vm0, %v8590_v1  ;;  %131 = vst.msk [vmem:[#allocation2 + $0x25] sm:$0xff] %vm55_vm0, %v8595_v2  ;;  %7224 = vmatpush3.bf16.msra.mxu1 %v8169_v0 }
  0x24   :  { %132 = vst.msk [vmem:[#allocation2 + $0x2d] sm:$0xff] %vm55_vm0, %v124_v4  ;;  %133 = vst.msk [vmem:[#allocation2 + $0x45] sm:$0xff] %vm55_vm0, %v125_v5  ;;  %v8171_v5 = vld [vmem:[%s10540_s1 + $0xd8] sm:$0xff]  }
  0x25   :  { %134 = vst.msk [vmem:[#allocation2 + $0x4d] sm:$0xff] %vm55_vm0, %v126_v6  ;;  %135 = vst.msk [vmem:[#allocation2 + $0x65] sm:$0xff] %vm55_vm0, %v127_v7  ;;  %7225 = vmatprep.subr.bf16.mxu1 %v8171_v5  ;;  %v8173_v7 = vld [vmem:[%s10540_s1 + $0x98] sm:$0xff]   ;;  %v8166_v5 = vld [vmem:[%s10540_s1 + $0x148] sm:$0xff]  }
  0x26   :  { %60 = vst.msk [vmem:[#allocation2 + $0x18] sm:$0x3] %vm59_vm1, %v8492_v3  ;;  %64 = vst.msk [vmem:[#allocation2 + $0x38] sm:$0x3] %vm59_vm1, %v8492_v3 }
  0x27   :  { %68 = vst.msk [vmem:[#allocation2 + $0x58] sm:$0x3] %vm59_vm1, %v8492_v3  ;;  %72 = vst.msk [vmem:[#allocation2 + $0x78] sm:$0x3] %vm59_vm1, %v8492_v3  ;;  %7226 = vmatpush3.bf16.msra.mxu1 %v8173_v7 }
  0x28   :  { %136 = vst.msk [vmem:[#allocation2 + $0x6d] sm:$0xff] %vm55_vm0, %v128_v8  ;;  %7227 = vmatprep.subr.bf16.mxu1 %v8175_v11 }
  0x29   :  { %v218_v14 = vld [vmem:[#allocation2 + $0x3] sm:$0xff] }
  0x2a   :  { %v153_v15 = vld [vmem:[#allocation2 + $0x1] sm:$0xff]  ;;  %234 = vrot.lane.b32.xlu0 %v218_v14, %s8493_s18  ;;  %v219_v16 = vld [vmem:[#allocation2 + $0xb] sm:$0xff] }
  0x2b   :  { %169 = vrot.lane.b32.xlu1 %v153_v15, %s8493_s18  ;;  %v8720_v17 = vld [vmem:[#allocation2 + $0x9] sm:$0xff]  ;;  %v155_v21 = vld [vmem:[#allocation2 + $0x21] sm:$0xff]  ;;  %7228 = vmatpush3.bf16.msra.mxu1 %v8177_v13 }
  0x2c   :  { %v220_v19 = vld [vmem:[#allocation2 + $0x23] sm:$0xff]  ;;  %v221_v20 = vld [vmem:[#allocation2 + $0x2b] sm:$0xff] }
  0x2d   :  { %v8730_v22 = vld [vmem:[#allocation2 + $0x29] sm:$0xff]  ;;  %v137_v29 = vld [vmem:[#allocation2] sm:$0xff]  ;;  %v411_v2 = vld [vmem:[#allocation2 + $0x11] sm:$0xff] }
  0x2e   :  { %236 = vrot.lane.b32.xlu0 %v219_v16, %s8493_s18  ;;  %v222_v23 = vld [vmem:[#allocation2 + $0x43] sm:$0xff]  ;;  %v223_v24 = vld [vmem:[#allocation2 + $0x4b] sm:$0xff]  ;;  %145 = vst.msk [vmem:[#allocation3] sm:$0xff] %vm55_vm0, %v137_v29 }
  0x2f   :  { %171 = vrot.lane.b32.xlu1 %v8720_v17, %s8493_s18  ;;  %v202_v27 = vld [vmem:[#allocation2 + $0x2] sm:$0xff]  ;;  %v203_v34 = vld [vmem:[#allocation2 + $0xa] sm:$0xff]  ;;  %v459_v36 = vld [vmem:[#allocation2 + $0x12] sm:$0xff] }
  0x30   :  { %210 = vst.msk [vmem:[#allocation3 + $0x8] sm:$0xff] %vm55_vm0, %v202_v27  ;;  %v157_v30 = vld [vmem:[#allocation2 + $0x41] sm:$0xff]  ;;  %v8745_v31 = vld [vmem:[#allocation2 + $0x49] sm:$0xff]  ;;  %211 = vst.msk [vmem:[#allocation3 + $0x38] sm:$0xff] %vm55_vm0, %v203_v34 }
  0x31   :  { %v138_v35 = vld [vmem:[#allocation2 + $0x8] sm:$0xff]  ;;  %466 = vst.msk [vmem:[#allocation3 + $0x28] sm:$0xff] %vm55_vm0, %v203_v34  ;;  %v139_v42 = vld [vmem:[#allocation2 + $0x20] sm:$0xff]  ;;  %v395_v25 = vld [vmem:[#allocation2 + $0x10] sm:$0xff] }
  0x32   :  { %238 = vrot.lane.b32.xlu0 %v220_v19, %s8493_s18  ;;  %146 = vst.msk [vmem:[#allocation3 + $0x30] sm:$0xff] %vm55_vm0, %v138_v35  ;;  %402 = vst.msk [vmem:[#allocation3 + $0x20] sm:$0xff] %vm55_vm0, %v138_v35  ;;  %v224_v38 = vld [vmem:[#allocation2 + $0x63] sm:$0xff]  ;;  %v225_v41 = vld [vmem:[#allocation2 + $0x6b] sm:$0xff] }
  0x33   :  { %240 = vrot.lane.b32.xlu1 %v221_v20, %s8493_s18  ;;  %v204_v39 = vld [vmem:[#allocation2 + $0x22] sm:$0xff]  ;;  %v205_v40 = vld [vmem:[#allocation2 + $0x2a] sm:$0xff]  ;;  %147 = vst.msk [vmem:[#allocation3 + $0x60] sm:$0xff] %vm55_vm0, %v139_v42  ;;  %403 = vst.msk [vmem:[#allocation3 + $0x50] sm:$0xff] %vm55_vm0, %v395_v25 }
  0x34   :  { %212 = vst.msk [vmem:[#allocation3 + $0x68] sm:$0xff] %vm55_vm0, %v204_v39  ;;  %213 = vst.msk [vmem:[#allocation3 + $0x98] sm:$0xff] %vm55_vm0, %v205_v40  ;;  %v140_v44 = vld [vmem:[#allocation2 + $0x28] sm:$0xff]  ;;  %v141_v56 = vld [vmem:[#allocation2 + $0x40] sm:$0xff] }
  0x35   :  { %468 = vst.msk [vmem:[#allocation3 + $0x88] sm:$0xff] %vm55_vm0, %v205_v40  ;;  %v159_v45 = vld [vmem:[#allocation2 + $0x61] sm:$0xff]  ;;  %v8776_v46 = vld [vmem:[#allocation2 + $0x69] sm:$0xff]  ;;  %148 = vst.msk [vmem:[#allocation3 + $0x90] sm:$0xff] %vm55_vm0, %v140_v44 }
  0x36   :  { %173 = vrot.lane.b32.xlu0 %v155_v21, %s8493_s18  ;;  %404 = vst.msk [vmem:[#allocation3 + $0x80] sm:$0xff] %vm55_vm0, %v140_v44  ;;  %v206_v50 = vld [vmem:[#allocation2 + $0x42] sm:$0xff]  ;;  %v207_v52 = vld [vmem:[#allocation2 + $0x4a] sm:$0xff]  ;;  %149 = vst.msk [vmem:[#allocation3 + $0xc0] sm:$0xff] %vm55_vm0, %v141_v56 }
  0x37   :  { %175 = vrot.lane.b32.xlu1 %v8730_v22, %s8493_s18  ;;  %214 = vst.msk [vmem:[#allocation3 + $0xc8] sm:$0xff] %vm55_vm0, %v206_v50  ;;  %215 = vst.msk [vmem:[#allocation3 + $0xf8] sm:$0xff] %vm55_vm0, %v207_v52  ;;  %v346_v54 = vld [vmem:[#allocation2 + $0x7] sm:$0xff]  ;;  %v347_v57 = vld [vmem:[#allocation2 + $0xf] sm:$0xff] }
  0x38   :  { %470 = vst.msk [vmem:[#allocation3 + $0xe8] sm:$0xff] %vm55_vm0, %v207_v52  ;;  %v142_v59 = vld [vmem:[#allocation2 + $0x48] sm:$0xff]  ;;  %v143_v4 = vld [vmem:[#allocation2 + $0x60] sm:$0xff]  ;;  %v415_v35 = vld [vmem:[#allocation2 + $0x51] sm:$0xff] }
  0x39   :  { %v282_v60 = vld [vmem:[#allocation2 + $0x5] sm:$0xff]  ;;  %150 = vst.msk [vmem:[#allocation3 + $0xf0] sm:$0xff] %vm55_vm0, %v142_v59  ;;  %406 = vst.msk [vmem:[#allocation3 + $0xe0] sm:$0xff] %vm55_vm0, %v142_v59  ;;  %v283_v63 = vld [vmem:[#allocation2 + $0xd] sm:$0xff] }
  0x3a   :  { %242 = vrot.lane.b32.xlu0 %v222_v23, %s8493_s18  ;;  %v208_v62 = vld [vmem:[#allocation2 + $0x62] sm:$0xff]  ;;  %v209_v1 = vld [vmem:[#allocation2 + $0x6a] sm:$0xff]  ;;  %151 = vst.msk [vmem:[#allocation3 + $0x120] sm:$0xff] %vm55_vm0, %v143_v4  ;;  %467 = vst.msk [vmem:[#allocation3 + $0x58] sm:$0xff] %vm55_vm0, %v459_v36 }
  0x3b   :  { %244 = vrot.lane.b32.xlu1 %v223_v24, %s8493_s18  ;;  %216 = vst.msk [vmem:[#allocation3 + $0x128] sm:$0xff] %vm55_vm0, %v208_v62  ;;  %217 = vst.msk [vmem:[#allocation3 + $0x158] sm:$0xff] %vm55_vm0, %v209_v1  ;;  %v348_v6 = vld [vmem:[#allocation2 + $0x27] sm:$0xff]  ;;  %v349_v10 = vld [vmem:[#allocation2 + $0x2f] sm:$0xff] }
  0x3c   :  { %472 = vst.msk [vmem:[#allocation3 + $0x148] sm:$0xff] %vm55_vm0, %v209_v1  ;;  %v144_v8 = vld [vmem:[#allocation2 + $0x68] sm:$0xff]  ;;  %v8183_v23 = vld [vmem:[%s10540_s1 + $0xf0] sm:$0xff]  }
  0x3d   :  { %152 = vst.msk [vmem:[#allocation3 + $0x150] sm:$0xff] %vm55_vm0, %v144_v8  ;;  %v330_v9 = vld [vmem:[#allocation2 + $0x6] sm:$0xff]  ;;  %408 = vst.msk [vmem:[#allocation3 + $0x140] sm:$0xff] %vm55_vm0, %v144_v8  ;;  %v331_v14 = vld [vmem:[#allocation2 + $0xe] sm:$0xff] }
  0x3e   :  { %177 = vrot.lane.b32.xlu0 %v157_v30, %s8493_s18  ;;  %338 = vst.msk [vmem:[#allocation3 + $0x18] sm:$0xff] %vm55_vm0, %v330_v9  ;;  %v284_v12 = vld [vmem:[#allocation2 + $0x25] sm:$0xff]  ;;  %v285_v15 = vld [vmem:[#allocation2 + $0x2d] sm:$0xff]  ;;  %339 = vst.msk [vmem:[#allocation3 + $0x48] sm:$0xff] %vm55_vm0, %v331_v14 }
  0x3f   :  { %179 = vrot.lane.b32.xlu1 %v8745_v31, %s8493_s18  ;;  %v8179_v16 = vld [vmem:[%s10540_s1 + $0xe8] sm:$0xff]   ;;  %v8189_v30 = vld [vmem:[%s10540_s1 + $0xb8] sm:$0xff]   ;;  %v397_v37 = vld [vmem:[#allocation2 + $0x30] sm:$0xff] }
  0x40   :  { %v266_v19 = vld [vmem:[#allocation2 + $0x4] sm:$0xff]  ;;  %7229 = vmatprep.subr.bf16.mxu1 %v8179_v16  ;;  %v267_v20 = vld [vmem:[#allocation2 + $0xc] sm:$0xff]  ;;  %405 = vst.msk [vmem:[#allocation3 + $0xb0] sm:$0xff] %vm55_vm0, %v397_v37 }
  0x41   :  { %274 = vst.msk [vmem:[#allocation3 + $0x10] sm:$0xff] %vm55_vm0, %v266_v19  ;;  %7230 = vmatpush3.bf16.msra.mxu1 %v8181_v18  ;;  %275 = vst.msk [vmem:[#allocation3 + $0x40] sm:$0xff] %vm55_vm0, %v267_v20  ;;  %v350_v21 = vld [vmem:[#allocation2 + $0x47] sm:$0xff]  ;;  %v351_v24 = vld [vmem:[#allocation2 + $0x4f] sm:$0xff] }
  0x42   :  { %246 = vrot.lane.b32.xlu0 %v224_v38, %s8493_s18  ;;  %7231 = vmatprep.subr.bf16.mxu1 %v8183_v23  ;;  %v286_v27 = vld [vmem:[#allocation2 + $0x45] sm:$0xff]  ;;  %v333_v32 = vld [vmem:[#allocation2 + $0x2e] sm:$0xff]  ;;  %v8174_v20 = vld [vmem:[%s10540_s1 + $0x158] sm:$0xff]  }
  0x43   :  { %248 = vrot.lane.b32.xlu1 %v225_v41, %s8493_s18  ;;  %v332_v29 = vld [vmem:[#allocation2 + $0x26] sm:$0xff]  ;;  %341 = vst.msk [vmem:[#allocation3 + $0xa8] sm:$0xff] %vm55_vm0, %v333_v32  ;;  %v335_v39 = vld [vmem:[#allocation2 + $0x4e] sm:$0xff]  ;;  %v8176_v23 = vld [vmem:[%s10540_s1 + $0x118] sm:$0xff]  }
  0x44   :  { %340 = vst.msk [vmem:[#allocation3 + $0x78] sm:$0xff] %vm55_vm0, %v332_v29  ;;  %v268_v33 = vld [vmem:[#allocation2 + $0x24] sm:$0xff]  ;;  %v269_v34 = vld [vmem:[#allocation2 + $0x2c] sm:$0xff]  ;;  %343 = vst.msk [vmem:[#allocation3 + $0x108] sm:$0xff] %vm55_vm0, %v335_v39 }
  0x45   :  { %7232 = vmatpush3.bf16.msra.mxu1 %v8185_v26  ;;  %276 = vst.msk [vmem:[#allocation3 + $0x70] sm:$0xff] %vm55_vm0, %v268_v33  ;;  %277 = vst.msk [vmem:[#allocation3 + $0xa0] sm:$0xff] %vm55_vm0, %v269_v34  ;;  %v334_v38 = vld [vmem:[#allocation2 + $0x46] sm:$0xff]  ;;  %v353_v42 = vld [vmem:[#allocation2 + $0x6f] sm:$0xff] }
  0x46   :  { %181 = vrot.lane.b32.xlu0 %v159_v45, %s8493_s18  ;;  %7233 = vmatprep.subr.bf16.mxu1 %v8187_v28  ;;  %v270_v40 = vld [vmem:[#allocation2 + $0x44] sm:$0xff]  ;;  %342 = vst.msk [vmem:[#allocation3 + $0xd8] sm:$0xff] %vm55_vm0, %v334_v38  ;;  %v271_v43 = vld [vmem:[#allocation2 + $0x4c] sm:$0xff] }
  0x47   :  { %183 = vrot.lane.b32.xlu1 %v8776_v46, %s8493_s18  ;;  %v352_v41 = vld [vmem:[#allocation2 + $0x67] sm:$0xff]  ;;  %278 = vst.msk [vmem:[#allocation3 + $0xd0] sm:$0xff] %vm55_vm0, %v270_v40  ;;  %v461_v44 = vld [vmem:[#allocation2 + $0x32] sm:$0xff]  ;;  %279 = vst.msk [vmem:[#allocation3 + $0x100] sm:$0xff] %vm55_vm0, %v271_v43 }
  0x48   :  { %469 = vst.msk [vmem:[#allocation3 + $0xb8] sm:$0xff] %vm55_vm0, %v461_v44  ;;  %v399_v45 = vld [vmem:[#allocation2 + $0x50] sm:$0xff]  ;;  %v336_v47 = vld [vmem:[#allocation2 + $0x66] sm:$0xff]  ;;  %v485_v44 = vld [vmem:[#allocation3 + $0x58] sm:$0xff] }
  0x49   :  { %7234 = vmatpush3.bf16.msra.mxu1 %v8189_v30  ;;  %v337_v48 = vld [vmem:[#allocation2 + $0x6e] sm:$0xff]  ;;  %407 = vst.msk [vmem:[#allocation3 + $0x110] sm:$0xff] %vm55_vm0, %v399_v45  ;;  %344 = vst.msk [vmem:[#allocation3 + $0x138] sm:$0xff] %vm55_vm0, %v336_v47  ;;  %v272_v49 = vld [vmem:[#allocation2 + $0x64] sm:$0xff] }
  0x4a   :  { %362 = vrot.lane.b32.xlu0 %v346_v54, %s8493_s18  ;;  %345 = vst.msk [vmem:[#allocation3 + $0x168] sm:$0xff] %vm55_vm0, %v337_v48  ;;  %v273_v50 = vld [vmem:[#allocation2 + $0x6c] sm:$0xff]  ;;  %280 = vst.msk [vmem:[#allocation3 + $0x130] sm:$0xff] %vm55_vm0, %v272_v49  ;;  %v8178_v28 = vld [vmem:[%s10540_s1 + $0x160] sm:$0xff]  }
  0x4b   :  { %364 = vrot.lane.b32.xlu1 %v347_v57, %s8493_s18  ;;  %v463_v51 = vld [vmem:[#allocation2 + $0x52] sm:$0xff]  ;;  %281 = vst.msk [vmem:[#allocation3 + $0x160] sm:$0xff] %vm55_vm0, %v273_v50  ;;  %v288_v53 = vld [vmem:[#allocation2 + $0x65] sm:$0xff] }
  0x4c   :  { %471 = vst.msk [vmem:[#allocation3 + $0x118] sm:$0xff] %vm55_vm0, %v463_v51  ;;  %v465_v52 = vld [vmem:[#allocation2 + $0x72] sm:$0xff]  ;;  %v8168_v8 = vld [vmem:[%s10540_s1 + $0x108] sm:$0xff]   ;;  %v8180_v29 = vld [vmem:[%s10540_s1 + $0x120] sm:$0xff]  }
  0x4d   :  { %473 = vst.msk [vmem:[#allocation3 + $0x178] sm:$0xff] %vm55_vm0, %v465_v52  ;;  %v289_v54 = vld [vmem:[#allocation2 + $0x6d] sm:$0xff] }
  0x4e   :  { %298 = vrot.lane.b32.xlu0 %v282_v60, %s8493_s18  ;;  %v417_v55 = vld [vmem:[#allocation2 + $0x71] sm:$0xff]  ;;  %v8184_v37 = vld [vmem:[%s10540_s1 + $0x128] sm:$0xff]  }
  0x4f   :  { %300 = vrot.lane.b32.xlu1 %v283_v63, %s8493_s18  ;;  %v8164_v63 = vld [vmem:[%s10540_s1 + $0x100] sm:$0xff]   ;;  %v8170_v13 = vld [vmem:[%s10540_s1 + $0x150] sm:$0xff]   ;;  %v479_v43 = vld [vmem:[#allocation3 + $0x28] sm:$0xff] }
  0x50   :  { %v8188_v47 = vld [vmem:[%s10540_s1 + $0x130] sm:$0xff]  }
  0x52   :  { %426 = vrot.lane.b32.xlu0 %v8720_v17, %s8493_s18  ;;  %v413_v17 = vld [vmem:[#allocation2 + $0x31] sm:$0xff] }
  0x53   :  { %428 = vrot.lane.b32.xlu1 %v411_v2, %s8493_s18 }
  0x56   :  { %366 = vrot.lane.b32.xlu0 %v348_v6, %s8493_s18 }
  0x57   :  { %368 = vrot.lane.b32.xlu1 %v349_v10, %s8493_s18 }
  0x5a   :  { %302 = vrot.lane.b32.xlu0 %v284_v12, %s8493_s18 }
  0x5b   :  { %304 = vrot.lane.b32.xlu1 %v285_v15, %s8493_s18  ;;  %v8172_v15 = vld [vmem:[%s10540_s1 + $0x110] sm:$0xff]  }
  0x5e   :  { %430 = vrot.lane.b32.xlu0 %v8730_v22, %s8493_s18  ;;  %v287_v22 = vld [vmem:[#allocation2 + $0x4d] sm:$0xff] }
  0x5f   :  { %432 = vrot.lane.b32.xlu1 %v413_v17, %s8493_s18 }
  0x62   :  { %370 = vrot.lane.b32.xlu0 %v350_v21, %s8493_s18 }
  0x63   :  { %372 = vrot.lane.b32.xlu1 %v351_v24, %s8493_s18 }
  0x66   :  { %306 = vrot.lane.b32.xlu0 %v286_v27, %s8493_s18 }
  0x67   :  { %308 = vrot.lane.b32.xlu1 %v287_v22, %s8493_s18 }
  0x6a   :  { %434 = vrot.lane.b32.xlu0 %v8745_v31, %s8493_s18  ;;  %v401_v31 = vld [vmem:[#allocation2 + $0x70] sm:$0xff] }
  0x6b   :  { %436 = vrot.lane.b32.xlu1 %v415_v35, %s8493_s18  ;;  %409 = vst.msk [vmem:[#allocation3 + $0x170] sm:$0xff] %vm55_vm0, %v401_v31  ;;  %v8182_v35 = vld [vmem:[%s10540_s1 + $0x168] sm:$0xff]   ;;  %v8190_v31 = vld [vmem:[%s10540_s1 + $0x178] sm:$0xff]  }
  0x6e   :  { %374 = vrot.lane.b32.xlu0 %v352_v41, %s8493_s18 }
  0x6f   :  { %376 = vrot.lane.b32.xlu1 %v353_v42, %s8493_s18  ;;  %v8186_v42 = vld [vmem:[%s10540_s1 + $0x170] sm:$0xff]  }
  0x72   :  { %310 = vrot.lane.b32.xlu0 %v288_v53, %s8493_s18  ;;  %v527_v53 = vpack.c.bf16 %v485_v44, %v479_v43 }
  0x73   :  { %312 = vrot.lane.b32.xlu1 %v289_v54, %s8493_s18  ;;  %v8191_v54 = vld [vmem:[%s10540_s1 + $0x138] sm:$0xff]  }
  0x76   :  { %438 = vrot.lane.b32.xlu0 %v8776_v46, %s8493_s18 }
  0x77   :  { %440 = vrot.lane.b32.xlu1 %v417_v55, %s8493_s18 }
  0x9c   :  { %v235_v56 = vpop.permute.xlu0 %234 }
  0x9d   :  { %v170_v57 = vpop.permute.xlu1 %169  ;;  %258 = vst.msk [vmem:[#allocation3 + $0x8] sm:$0xff] %vm193_vm2, %v235_v56 }
  0x9e   :  { %194 = vst.msk [vmem:[#allocation3] sm:$0xff] %vm193_vm2, %v170_v57 }
  0xa0   :  { %v237_v58 = vpop.permute.xlu0 %236 }
  0xa1   :  { %v172_v59 = vpop.permute.xlu1 %171  ;;  %259 = vst.msk [vmem:[#allocation3 + $0x38] sm:$0xff] %vm193_vm2, %v237_v58 }
  0xa2   :  { %195 = vst.msk [vmem:[#allocation3 + $0x30] sm:$0xff] %vm193_vm2, %v172_v59 }
  0xa4   :  { %v239_v60 = vpop.permute.xlu0 %238  ;;  %v475_v46 = vld [vmem:[#allocation3 + $0x8] sm:$0xff] }
  0xa5   :  { %v241_v61 = vpop.permute.xlu1 %240  ;;  %260 = vst.msk [vmem:[#allocation3 + $0x68] sm:$0xff] %vm193_vm2, %v239_v60  ;;  %v474_v62 = vld [vmem:[#allocation3] sm:$0xff]  ;;  %v491_v60 = vld [vmem:[#allocation3 + $0x88] sm:$0xff] }
  0xa6   :  { %261 = vst.msk [vmem:[#allocation3 + $0x98] sm:$0xff] %vm193_vm2, %v241_v61  ;;  %v497_v61 = vld [vmem:[#allocation3 + $0xb8] sm:$0xff] }
  0xa8   :  { %v174_v0 = vpop.permute.xlu0 %173  ;;  %v481_v2 = vld [vmem:[#allocation3 + $0x38] sm:$0xff] }
  0xa9   :  { %v176_v1 = vpop.permute.xlu1 %175  ;;  %v480_v4 = vld [vmem:[#allocation3 + $0x30] sm:$0xff]  ;;  %196 = vst.msk [vmem:[#allocation3 + $0x60] sm:$0xff] %vm193_vm2, %v174_v0  ;;  %v523_v6 = vpack.c.bf16 %v481_v2, %v475_v46 }
  0xaa   :  { %197 = vst.msk [vmem:[#allocation3 + $0x90] sm:$0xff] %vm193_vm2, %v176_v1  ;;  %v522_v7 = vpack.c.bf16 %v480_v4, %v474_v62 }
  0xab   :  { %969 = vmatprep.mubr.bf16.mxu0 %v523_v6 }
  0xac   :  { %v243_v9 = vpop.permute.xlu0 %242  ;;  %970 = vmatmul.mubr.bf16.vlgmr.msra.gmra.mrb[0].mxu0 %v522_v7  ;;  %v487_v11 = vld [vmem:[#allocation3 + $0x68] sm:$0xff]  ;;  %v533_v7 = vpack.c.bf16 %v497_v61, %v491_v60 }
  0xad   :  { %v245_v10 = vpop.permute.xlu1 %244  ;;  %v493_v12 = vld [vmem:[#allocation3 + $0x98] sm:$0xff]  ;;  %262 = vst.msk [vmem:[#allocation3 + $0xc8] sm:$0xff] %vm193_vm2, %v243_v9  ;;  %7260 = vmatpush3.bf16.msra.mxu0 %v8164_v63 }
  0xae   :  { %263 = vst.msk [vmem:[#allocation3 + $0xf8] sm:$0xff] %vm193_vm2, %v245_v10  ;;  %v529_v14 = vpack.c.bf16 %v493_v12, %v487_v11  ;;  %7261 = vmatprep.subr.bf16.mxu0 %v8166_v5 }
  0xb0   :  { %977 = vmatprep.mubr.bf16.mxu0 %v529_v14  ;;  %v178_v16 = vpop.permute.xlu0 %177  ;;  %v486_v18 = vld [vmem:[#allocation3 + $0x60] sm:$0xff]  ;;  %v503_v14 = vld [vmem:[#allocation3 + $0xe8] sm:$0xff] }
  0xb1   :  { %v180_v17 = vpop.permute.xlu1 %179  ;;  %v492_v19 = vld [vmem:[#allocation3 + $0x90] sm:$0xff]  ;;  %198 = vst.msk [vmem:[#allocation3 + $0xc0] sm:$0xff] %vm193_vm2, %v178_v16  ;;  %7262 = vmatpush3.bf16.msra.mxu0 %v8168_v8 }
  0xb2   :  { %199 = vst.msk [vmem:[#allocation3 + $0xf0] sm:$0xff] %vm193_vm2, %v180_v17  ;;  %v528_v21 = vpack.c.bf16 %v492_v19, %v486_v18  ;;  %7263 = vmatprep.subr.bf16.mxu0 %v8170_v13 }
  0xb4   :  { %v247_v24 = vpop.permute.xlu0 %246  ;;  %978 = vmatmul.mubr.bf16.gmra.mrb[4].mxu0 %v528_v21  ;;  %v499_v26 = vld [vmem:[#allocation3 + $0xc8] sm:$0xff] }
  0xb5   :  { %v249_v25 = vpop.permute.xlu1 %248  ;;  %v505_v27 = vld [vmem:[#allocation3 + $0xf8] sm:$0xff]  ;;  %264 = vst.msk [vmem:[#allocation3 + $0x128] sm:$0xff] %vm193_vm2, %v247_v24  ;;  %7264 = vmatpush3.bf16.msra.mxu0 %v8172_v15 }
  0xb6   :  { %265 = vst.msk [vmem:[#allocation3 + $0x158] sm:$0xff] %vm193_vm2, %v249_v25  ;;  %v535_v22 = vpack.c.bf16 %v505_v27, %v499_v26  ;;  %7265 = vmatprep.subr.bf16.mxu0 %v8174_v20  ;;  %v509_v15 = vld [vmem:[#allocation3 + $0x118] sm:$0xff] }
  0xb7   :  { %v539_v26 = vpack.c.bf16 %v509_v15, %v503_v14 }
  0xb8   :  { %985 = vmatprep.mubr.bf16.mxu0 %v535_v22  ;;  %v182_v30 = vpop.permute.xlu0 %181  ;;  %v498_v33 = vld [vmem:[#allocation3 + $0xc0] sm:$0xff] }
  0xb9   :  { %v184_v32 = vpop.permute.xlu1 %183  ;;  %v504_v34 = vld [vmem:[#allocation3 + $0xf0] sm:$0xff]  ;;  %200 = vst.msk [vmem:[#allocation3 + $0x120] sm:$0xff] %vm193_vm2, %v182_v30  ;;  %7266 = vmatpush3.bf16.msra.mxu0 %v8176_v23 }
  0xba   :  { %201 = vst.msk [vmem:[#allocation3 + $0x150] sm:$0xff] %vm193_vm2, %v184_v32  ;;  %v534_v36 = vpack.c.bf16 %v504_v34, %v498_v33  ;;  %7267 = vmatprep.subr.bf16.mxu0 %v8178_v28  ;;  %v515_v33 = vld [vmem:[#allocation3 + $0x148] sm:$0xff]  ;;  %v521_v34 = vld [vmem:[#allocation3 + $0x178] sm:$0xff] }
  0xbb   :  { %v545_v44 = vpack.c.bf16 %v521_v34, %v515_v33 }
  0xbc   :  { %v363_v38 = vpop.permute.xlu0 %362  ;;  %986 = vmatmul.mubr.bf16.gmra.mrb[8].mxu0 %v534_v36  ;;  %v511_v40 = vld [vmem:[#allocation3 + $0x128] sm:$0xff] }
  0xbd   :  { %v365_v39 = vpop.permute.xlu1 %364  ;;  %v517_v41 = vld [vmem:[#allocation3 + $0x158] sm:$0xff]  ;;  %386 = vst.msk [vmem:[#allocation3 + $0x18] sm:$0xff] %vm193_vm2, %v363_v38  ;;  %7268 = vmatpush3.bf16.msra.mxu0 %v8180_v29 }
  0xbe   :  { %387 = vst.msk [vmem:[#allocation3 + $0x48] sm:$0xff] %vm193_vm2, %v365_v39  ;;  %v541_v45 = vpack.c.bf16 %v517_v41, %v511_v40  ;;  %7269 = vmatprep.subr.bf16.mxu0 %v8182_v35 }
  0xc0   :  { %993 = vmatprep.mubr.bf16.mxu0 %v541_v45  ;;  %v299_v48 = vpop.permute.xlu0 %298  ;;  %v510_v50 = vld [vmem:[#allocation3 + $0x120] sm:$0xff] }
  0xc1   :  { %v301_v49 = vpop.permute.xlu1 %300  ;;  %v516_v51 = vld [vmem:[#allocation3 + $0x150] sm:$0xff]  ;;  %322 = vst.msk [vmem:[#allocation3 + $0x10] sm:$0xff] %vm193_vm2, %v299_v48  ;;  %7270 = vmatpush3.bf16.msra.mxu0 %v8184_v37 }
  0xc2   :  { %323 = vst.msk [vmem:[#allocation3 + $0x40] sm:$0xff] %vm193_vm2, %v301_v49  ;;  %v540_v52 = vpack.c.bf16 %v516_v51, %v510_v50  ;;  %7271 = vmatprep.subr.bf16.mxu0 %v8186_v42 }
  0xc4   :  { %v427_v55 = vpop.permute.xlu0 %426  ;;  %994 = vmatmul.mubr.bf16.gmra.mrb[12].mxu0 %v540_v52  ;;  %v477_v57 = vld [vmem:[#allocation3 + $0x18] sm:$0xff] }
  0xc5   :  { %v429_v56 = vpop.permute.xlu1 %428  ;;  %v483_v58 = vld [vmem:[#allocation3 + $0x48] sm:$0xff]  ;;  %450 = vst.msk [vmem:[#allocation3 + $0x20] sm:$0xff] %vm193_vm2, %v427_v55  ;;  %7272 = vmatpush3.bf16.msra.mxu0 %v8188_v47  ;;  %1099 = vmatprep.mubr.bf16.mxu0 %v527_v53 }
  0xc6   :  { %451 = vst.msk [vmem:[#allocation3 + $0x50] sm:$0xff] %vm193_vm2, %v429_v56  ;;  %v525_v59 = vpack.c.bf16 %v483_v58, %v477_v57  ;;  %7273 = vmatprep.subr.bf16.mxu0 %v8190_v31 }
  0xc8   :  { %1034 = vmatprep.mubr.bf16.mxu1 %v525_v59  ;;  %v367_v46 = vpop.permute.xlu0 %366  ;;  %v476_v63 = vld [vmem:[#allocation3 + $0x10] sm:$0xff] }
  0xc9   :  { %v369_v62 = vpop.permute.xlu1 %368  ;;  %v482_v0 = vld [vmem:[#allocation3 + $0x40] sm:$0xff]  ;;  %388 = vst.msk [vmem:[#allocation3 + $0x78] sm:$0xff] %vm193_vm2, %v367_v46  ;;  %7274 = vmatpush3.bf16.msra.mxu0 %v8191_v54 }
  0xca   :  { %389 = vst.msk [vmem:[#allocation3 + $0xa8] sm:$0xff] %vm193_vm2, %v369_v62  ;;  %v524_v1 = vpack.c.bf16 %v482_v0, %v476_v63 }
  0xcc   :  { %1035 = vmatmul.mubr.bf16.vlgmr.msra.gmra.mrb[0].mxu1 %v524_v1  ;;  %v303_v2 = vpop.permute.xlu0 %302  ;;  %v478_v5 = vld [vmem:[#allocation3 + $0x20] sm:$0xff] }
  0xcd   :  { %v305_v4 = vpop.permute.xlu1 %304  ;;  %v484_v6 = vld [vmem:[#allocation3 + $0x50] sm:$0xff]  ;;  %324 = vst.msk [vmem:[#allocation3 + $0x70] sm:$0xff] %vm193_vm2, %v303_v2 }
  0xce   :  { %325 = vst.msk [vmem:[#allocation3 + $0xa0] sm:$0xff] %vm193_vm2, %v305_v4  ;;  %v526_v8 = vpack.c.bf16 %v484_v6, %v478_v5 }
  0xd0   :  { %1100 = vmatmul.mubr.bf16.vlgmr.msra.gmra.mrb[16].mxu0 %v526_v8  ;;  %v431_v9 = vpop.permute.xlu0 %430  ;;  %v489_v11 = vld [vmem:[#allocation3 + $0x78] sm:$0xff] }
  0xd1   :  { %v433_v10 = vpop.permute.xlu1 %432  ;;  %v495_v12 = vld [vmem:[#allocation3 + $0xa8] sm:$0xff]  ;;  %1107 = vmatprep.mubr.bf16.mxu0 %v533_v7  ;;  %452 = vst.msk [vmem:[#allocation3 + $0x80] sm:$0xff] %vm193_vm2, %v431_v9 }
  0xd2   :  { %453 = vst.msk [vmem:[#allocation3 + $0xb0] sm:$0xff] %vm193_vm2, %v433_v10  ;;  %v531_v13 = vpack.c.bf16 %v495_v12, %v489_v11 }
  0xd4   :  { %1042 = vmatprep.mubr.bf16.mxu1 %v531_v13  ;;  %v371_v16 = vpop.permute.xlu0 %370  ;;  %v488_v18 = vld [vmem:[#allocation3 + $0x70] sm:$0xff] }
  0xd5   :  { %v373_v17 = vpop.permute.xlu1 %372  ;;  %v494_v19 = vld [vmem:[#allocation3 + $0xa0] sm:$0xff]  ;;  %390 = vst.msk [vmem:[#allocation3 + $0xd8] sm:$0xff] %vm193_vm2, %v371_v16 }
  0xd6   :  { %391 = vst.msk [vmem:[#allocation3 + $0x108] sm:$0xff] %vm193_vm2, %v373_v17  ;;  %v530_v20 = vpack.c.bf16 %v494_v19, %v488_v18 }
  0xd8   :  { %1043 = vmatmul.mubr.bf16.gmra.mrb[4].mxu1 %v530_v20  ;;  %v307_v21 = vpop.permute.xlu0 %306  ;;  %v490_v24 = vld [vmem:[#allocation3 + $0x80] sm:$0xff] }
  0xd9   :  { %v309_v23 = vpop.permute.xlu1 %308  ;;  %v496_v25 = vld [vmem:[#allocation3 + $0xb0] sm:$0xff]  ;;  %326 = vst.msk [vmem:[#allocation3 + $0xd0] sm:$0xff] %vm193_vm2, %v307_v21 }
  0xda   :  { %327 = vst.msk [vmem:[#allocation3 + $0x100] sm:$0xff] %vm193_vm2, %v309_v23  ;;  %v532_v27 = vpack.c.bf16 %v496_v25, %v490_v24 }
  0xdc   :  { %1108 = vmatmul.mubr.bf16.gmra.mrb[20].mxu0 %v532_v27  ;;  %v435_v28 = vpop.permute.xlu0 %434  ;;  %v501_v29 = vld [vmem:[#allocation3 + $0xd8] sm:$0xff] }
  0xdd   :  { %v437_v22 = vpop.permute.xlu1 %436  ;;  %v507_v30 = vld [vmem:[#allocation3 + $0x108] sm:$0xff]  ;;  %1115 = vmatprep.mubr.bf16.mxu0 %v539_v26  ;;  %454 = vst.msk [vmem:[#allocation3 + $0xe0] sm:$0xff] %vm193_vm2, %v435_v28 }
  0xde   :  { %455 = vst.msk [vmem:[#allocation3 + $0x110] sm:$0xff] %vm193_vm2, %v437_v22  ;;  %v537_v32 = vpack.c.bf16 %v507_v30, %v501_v29 }
  0xe0   :  { %1050 = vmatprep.mubr.bf16.mxu1 %v537_v32  ;;  %v375_v35 = vpop.permute.xlu0 %374  ;;  %v500_v37 = vld [vmem:[#allocation3 + $0xd0] sm:$0xff] }
  0xe1   :  { %v377_v36 = vpop.permute.xlu1 %376  ;;  %v506_v38 = vld [vmem:[#allocation3 + $0x100] sm:$0xff]  ;;  %392 = vst.msk [vmem:[#allocation3 + $0x138] sm:$0xff] %vm193_vm2, %v375_v35 }
  0xe2   :  { %393 = vst.msk [vmem:[#allocation3 + $0x168] sm:$0xff] %vm193_vm2, %v377_v36  ;;  %v536_v39 = vpack.c.bf16 %v506_v38, %v500_v37 }
  0xe4   :  { %1051 = vmatmul.mubr.bf16.gmra.mrb[8].mxu1 %v536_v39  ;;  %v311_v40 = vpop.permute.xlu0 %310  ;;  %v502_v42 = vld [vmem:[#allocation3 + $0xe0] sm:$0xff] }
  0xe5   :  { %v313_v41 = vpop.permute.xlu1 %312  ;;  %v508_v43 = vld [vmem:[#allocation3 + $0x110] sm:$0xff]  ;;  %328 = vst.msk [vmem:[#allocation3 + $0x130] sm:$0xff] %vm193_vm2, %v311_v40 }
  0xe6   :  { %329 = vst.msk [vmem:[#allocation3 + $0x160] sm:$0xff] %vm193_vm2, %v313_v41  ;;  %v538_v45 = vpack.c.bf16 %v508_v43, %v502_v42 }
  0xe8   :  { %1116 = vmatmul.mubr.bf16.gmra.mrb[24].mxu0 %v538_v45  ;;  %v439_v47 = vpop.permute.xlu0 %438  ;;  %v513_v49 = vld [vmem:[#allocation3 + $0x138] sm:$0xff] }
  0xe9   :  { %v441_v48 = vpop.permute.xlu1 %440  ;;  %v519_v50 = vld [vmem:[#allocation3 + $0x168] sm:$0xff]  ;;  %1123 = vmatprep.mubr.bf16.mxu0 %v545_v44  ;;  %456 = vst.msk [vmem:[#allocation3 + $0x140] sm:$0xff] %vm193_vm2, %v439_v47 }
  0xea   :  { %457 = vst.msk [vmem:[#allocation3 + $0x170] sm:$0xff] %vm193_vm2, %v441_v48  ;;  %v543_v51 = vpack.c.bf16 %v519_v50, %v513_v49 }
  0xec   :  { %1058 = vmatprep.mubr.bf16.mxu1 %v543_v51  ;;  %v512_v31 = vld [vmem:[#allocation3 + $0x130] sm:$0xff] }
  0xed   :  { %v518_v52 = vld [vmem:[#allocation3 + $0x160] sm:$0xff] }
  0xee   :  { %v542_v53 = vpack.c.bf16 %v518_v52, %v512_v31 }
  0xf0   :  { %1059 = vmatmul.mubr.bf16.gmra.mrb[12].mxu1 %v542_v53  ;;  %v514_v54 = vld [vmem:[#allocation3 + $0x140] sm:$0xff] }
  0xf1   :  { %v520_v55 = vld [vmem:[#allocation3 + $0x170] sm:$0xff] }
  0xf2   :  { %v544_v56 = vpack.c.bf16 %v520_v55, %v514_v54 }
  0xf4   :  { %1124 = vmatmul.mubr.bf16.gmra.mrb[28].mxu0 %v544_v56 }
  0xf5   :  { %21 = vsyncpa [#allocation7], 0  ;;  %v8192_v57 = vld [vmem:[%s10542_s3 + $0x40] sm:$0xff]   ;;  %v8194_v59 = vld [vmem:[%s10542_s3 + $0x48] sm:$0xff]   ;;  %vm4273_vm3 = vcmask 261120   ;;  %vm4561_vm4 = vcmask 523520  }
  0xf6   :  { %v8193_v58 = vld [vmem:[%s10542_s3] sm:$0xff]   ;;  %7299 = vmatprep.subr.bf16.mxu1 %v8192_v57  ;;  %v8195_v1 = vld [vmem:[%s10542_s3 + $0x8] sm:$0xff]   ;;  %v8196_v5 = vld [vmem:[%s10542_s3 + $0x50] sm:$0xff]   ;;  %vm8495_vm5 = vmmov 0   ;;  %vm5485_vm6 = vcmask 1041409   ;;  %vm5488_vm7 = vcmask 1042434  }
  0xf7   :  { %v8197_v61 = vld [vmem:[%s10542_s3 + $0xc0] sm:$0xff]   ;;  %7300 = vmatpush3.bf16.msra.mxu1 %v8193_v58  ;;  %v8201_v2 = vld [vmem:[%s10542_s3 + $0xc8] sm:$0xff]   ;;  %v8198_v8 = vld [vmem:[%s10542_s3 + $0x10] sm:$0xff]   ;;  %vm5491_vm8 = vcmask 1043459  }
  0xf8   :  { %v8199_v62 = vld [vmem:[%s10542_s3 + $0x80] sm:$0xff]   ;;  %7339 = vmatprep.subr.bf16.mxu0 %v8197_v61  ;;  %7301 = vmatprep.subr.bf16.mxu1 %v8194_v59  ;;  %v8203_v6 = vld [vmem:[%s10542_s3 + $0x88] sm:$0xff]   ;;  %v8200_v9 = vld [vmem:[%s10542_s3 + $0x58] sm:$0xff]  }
  0xf9   :  { %7340 = vmatpush3.bf16.msra.mxu0 %v8199_v62  ;;  %v8202_v14 = vld [vmem:[%s10542_s3 + $0x18] sm:$0xff]   ;;  %v9040_v29 = vld [vmem:[%s10541_s2] ss:$0 sm:$0xff]  ;;  %v8205_v42 = vld [vmem:[%s10542_s3 + $0xd0] sm:$0xff]  }
  0xfa   :  { %7341 = vmatprep.subr.bf16.mxu0 %v8201_v2  ;;  %v8204_v41 = vld [vmem:[%s10542_s3 + $0x60] sm:$0xff]   ;;  %v8207_v45 = vld [vmem:[%s10542_s3 + $0x90] sm:$0xff]   ;;  %v8208_v52 = vld [vmem:[%s10542_s3 + $0x68] sm:$0xff]  }
  0xfb   :  { %7302 = vmatpush3.bf16.msra.mxu1 %v8195_v1  ;;  %v8206_v44 = vld [vmem:[%s10542_s3 + $0x20] sm:$0xff]   ;;  %v8209_v53 = vld [vmem:[%s10542_s3 + $0xd8] sm:$0xff]   ;;  %v8210_v54 = vld [vmem:[%s10542_s3 + $0x28] sm:$0xff]  }
  0xfc   :  { %7303 = vmatprep.subr.bf16.mxu1 %v8196_v5  ;;  %v8211_v56 = vld [vmem:[%s10542_s3 + $0x98] sm:$0xff]   ;;  %v8212_v59 = vld [vmem:[%s10542_s3 + $0x70] sm:$0xff]  }
  0xfd   :  { %7342 = vmatpush3.bf16.msra.mxu0 %v8203_v6  ;;  %v8214_v61 = vld [vmem:[%s10542_s3 + $0x30] sm:$0xff]  }
  0xfe   :  { %7343 = vmatprep.subr.bf16.mxu0 %v8205_v42 }
  0xff   :  { %7304 = vmatpush3.bf16.msra.mxu1 %v8198_v8 }
 0x100   :  { %7305 = vmatprep.subr.bf16.mxu1 %v8200_v9 }
 0x101   :  { %7344 = vmatpush3.bf16.msra.mxu0 %v8207_v45 }
 0x102   :  { %7345 = vmatprep.subr.bf16.mxu0 %v8209_v53 }
 0x103   :  { %7306 = vmatpush3.bf16.msra.mxu1 %v8202_v14 }
 0x104   :  { %7307 = vmatprep.subr.bf16.mxu1 %v8204_v41 }
 0x105   :  { %7346 = vmatpush3.bf16.msra.mxu0 %v8211_v56 }
 0x107   :  { %7308 = vmatpush3.bf16.msra.mxu1 %v8206_v44 }
 0x108   :  { %7309 = vmatprep.subr.bf16.mxu1 %v8208_v52 }
 0x10b   :  { %7310 = vmatpush3.bf16.msra.mxu1 %v8210_v54 }
 0x10c   :  { %7311 = vmatprep.subr.bf16.mxu1 %v8212_v59 }
 0x10f   :  { %7312 = vmatpush3.bf16.msra.mxu1 %v8214_v61 }
 0x17f   :  { %v7195_v60 = vpop.f32.mrb[0].mxu0 }
 0x180   :  { %v7196_v46 = vpop.f32.mrb[1].mxu0 }
 0x181   :  { %v7197_v63 = vadd.f32 %v7196_v46, %v7195_v60  ;;  %v7198_v0 = vpop.f32.mrb[2].mxu0  ;;  %v8213_v60 = vld [vmem:[%s10542_s3 + $0xe0] sm:$0xff]  }
 0x182   :  { %v7199_v4 = vpop.f32.mrb[3].mxu0  ;;  %7347 = vmatprep.subr.bf16.mxu0 %v8213_v60 }
 0x183   :  { %v7200_v7 = vadd.f32 %v7199_v4, %v7198_v0  ;;  %v972_v33 = vadd.f32 %v7197_v63, %v9040_v29  ;;  %v8215_v0 = vld [vmem:[%s10542_s3 + $0xa0] sm:$0xff]  }
 0x184   :  { %7348 = vmatpush3.bf16.msra.mxu0 %v8215_v0 }
 0x185   :  { %v975_v37 = vadd.f32 %v7200_v7, %v9040_v29 }
 0x187   :  { %v7201_v10 = vpop.f32.mrb[4].mxu0 }
 0x188   :  { %v7202_v11 = vpop.f32.mrb[5].mxu0 }
 0x189   :  { %v7203_v12 = vadd.f32 %v7202_v11, %v7201_v10  ;;  %v7204_v13 = vpop.f32.mrb[6].mxu0 }
 0x18a   :  { %v7205_v15 = vpop.f32.mrb[7].mxu0 }
 0x18b   :  { %v9027_v16 = vadd.f32 %v7205_v15, %v7204_v13  ;;  %v980_v46 = vadd.f32 %v7203_v12, %v9040_v29 }
 0x18d   :  { %v983_v2 = vadd.f32 %v9027_v16, %v9040_v29 }
 0x18f   :  { %v7207_v17 = vpop.f32.mrb[8].mxu0 }
 0x190   :  { %v7208_v18 = vpop.f32.mrb[9].mxu0 }
 0x191   :  { %v9029_v19 = vadd.f32 %v7208_v18, %v7207_v17  ;;  %v7210_v20 = vpop.f32.mrb[10].mxu0 }
 0x192   :  { %v7211_v21 = vpop.f32.mrb[11].mxu0 }
 0x193   :  { %v9031_v23 = vadd.f32 %v7211_v21, %v7210_v20 }
 0x197   :  { %v7213_v24 = vpop.f32.mrb[12].mxu0 }
 0x198   :  { %v7214_v25 = vpop.f32.mrb[13].mxu0 }
 0x199   :  { %v9033_v26 = vadd.f32 %v7214_v25, %v7213_v24  ;;  %v7216_v27 = vpop.f32.mrb[14].mxu0 }
 0x19a   :  { %v7217_v28 = vpop.f32.mrb[15].mxu0 }
 0x19b   :  { %v9035_v22 = vadd.f32 %v7217_v28, %v7216_v27 }
 0x19f   :  { %v7235_v30 = vpop.f32.mrb[0].mxu1 }
 0x1a0   :  { %v7236_v32 = vpop.f32.mrb[1].mxu1 }
 0x1a1   :  { %v7237_v34 = vadd.f32 %v7236_v32, %v7235_v30  ;;  %v7238_v35 = vpop.f32.mrb[2].mxu1  ;;  %v8216_v32 = vld [vmem:[%s10542_s3 + $0x78] sm:$0xff]  }
 0x1a2   :  { %v7239_v36 = vpop.f32.mrb[3].mxu1  ;;  %7313 = vmatprep.subr.bf16.mxu1 %v8216_v32 }
 0x1a3   :  { %v1037_v38 = vadd.f32 %v7237_v34, %v972_v33  ;;  %v7240_v39 = vadd.f32 %v7239_v36, %v7238_v35  ;;  %v7275_v40 = vpop.f32.mrb[16].mxu0  ;;  %v8217_v33 = vld [vmem:[%s10542_s3 + $0xe8] sm:$0xff]   ;;  %v8218_v34 = vld [vmem:[%s10542_s3 + $0x38] sm:$0xff]  }
 0x1a4   :  { %v7276_v43 = vpop.f32.mrb[17].mxu0  ;;  %v8219_v35 = vld [vmem:[%s10542_s3 + $0xa8] sm:$0xff]   ;;  %7349 = vmatprep.subr.bf16.mxu0 %v8217_v33  ;;  %7314 = vmatpush3.bf16.msra.mxu1 %v8218_v34 }
 0x1a5   :  { %v1040_v47 = vadd.f32 %v7240_v39, %v975_v37  ;;  %v7277_v48 = vadd.f32 %v7276_v43, %v7275_v40  ;;  %v7278_v49 = vpop.f32.mrb[18].mxu0  ;;  %v988_v43 = vadd.f32 %v9029_v19, %v9040_v29  ;;  %7350 = vmatpush3.bf16.msra.mxu0 %v8219_v35  ;;  %v991_v19 = vadd.f32 %v9031_v23, %v9040_v29 }
 0x1a6   :  { %v7279_v50 = vpop.f32.mrb[19].mxu0 }
 0x1a7   :  { %v1102_v51 = vadd.f32 %v7277_v48, %v1037_v38  ;;  %v7280_v31 = vadd.f32 %v7279_v50, %v7278_v49  ;;  %v8220_v38 = vld [vmem:[%s10542_s3 + $0xf0] sm:$0xff]   ;;  %v8222_v50 = vld [vmem:[%s10542_s3 + $0xf8] sm:$0xff]  }
 0x1a8   :  { %7351 = vmatprep.subr.bf16.mxu0 %v8220_v38 }
 0x1a9   :  { %1132 = vst.msk [vmem:[#allocation2 + $0x5] sm:$0xff] %vm55_vm0, %v1102_v51  ;;  %v1105_v55 = vadd.f32 %v7280_v31, %v1040_v47  ;;  %v8221_v47 = vld [vmem:[%s10542_s3 + $0xb0] sm:$0xff]  }
 0x1aa   :  { %7352 = vmatpush3.bf16.msra.mxu0 %v8221_v47 }
 0x1ab   :  { %1133 = vst.msk [vmem:[#allocation2 + $0xd] sm:$0xff] %vm55_vm0, %v1105_v55  ;;  %v7241_v57 = vpop.f32.mrb[4].mxu1  ;;  %v8223_v55 = vld [vmem:[%s10542_s3 + $0xb8] sm:$0xff]   ;;  %7353 = vmatprep.subr.bf16.mxu0 %v8222_v50 }
 0x1ac   :  { %v7242_v58 = vpop.f32.mrb[5].mxu1 }
 0x1ad   :  { %v7243_v62 = vadd.f32 %v7242_v58, %v7241_v57  ;;  %v7244_v63 = vpop.f32.mrb[6].mxu1 }
 0x1ae   :  { %v7245_v1 = vpop.f32.mrb[7].mxu1  ;;  %7354 = vmatpush3.bf16.msra.mxu0 %v8223_v55 }
 0x1af   :  { %v1045_v4 = vadd.f32 %v7243_v62, %v980_v46  ;;  %v7246_v5 = vadd.f32 %v7245_v1, %v7244_v63  ;;  %v7281_v6 = vpop.f32.mrb[20].mxu0 }
 0x1b0   :  { %v7282_v7 = vpop.f32.mrb[21].mxu0  ;;  %v1220_v8 = vld [vmem:[#allocation2 + $0x3] sm:$0xff] }
 0x1b1   :  { %v1048_v9 = vadd.f32 %v7246_v5, %v983_v2  ;;  %v7283_v10 = vadd.f32 %v7282_v7, %v7281_v6  ;;  %v7284_v11 = vpop.f32.mrb[22].mxu0  ;;  %1236 = vrot.lane.b32.xlu0 %v1220_v8, %s8493_s18  ;;  %v1204_v12 = vld [vmem:[#allocation2 + $0x2] sm:$0xff] }
 0x1b2   :  { %v1140_v13 = vld [vmem:[#allocation2] sm:$0xff]  ;;  %v7285_v15 = vpop.f32.mrb[23].mxu0  ;;  %v1221_v17 = vld [vmem:[#allocation2 + $0xb] sm:$0xff]  ;;  %1212 = vst.msk [vmem:[#allocation3 + $0x8] sm:$0xff] %vm55_vm0, %v1204_v12 }
 0x1b3   :  { %v1268_v14 = vld [vmem:[#allocation2 + $0x4] sm:$0xff]  ;;  %1148 = vst.msk [vmem:[#allocation3] sm:$0xff] %vm55_vm0, %v1140_v13  ;;  %v1110_v16 = vadd.f32 %v7283_v10, %v1045_v4  ;;  %v7286_v18 = vadd.f32 %v7285_v15, %v7284_v11  ;;  %1238 = vrot.lane.b32.xlu1 %v1221_v17, %s8493_s18  ;;  %v1333_v27 = vld [vmem:[#allocation2 + $0xe] sm:$0xff] }
 0x1b4   :  { %1276 = vst.msk [vmem:[#allocation3 + $0x10] sm:$0xff] %vm55_vm0, %v1268_v14  ;;  %v1156_v20 = vld [vmem:[#allocation2 + $0x1] sm:$0xff]  ;;  %v9090_v21 = vld [vmem:[#allocation2 + $0x9] sm:$0xff]  ;;  %1341 = vst.msk [vmem:[#allocation3 + $0x48] sm:$0xff] %vm55_vm0, %v1333_v27  ;;  %v996_v14 = vadd.f32 %v9033_v26, %v9040_v29 }
 0x1b5   :  { %v1205_v24 = vld [vmem:[#allocation2 + $0xa] sm:$0xff]  ;;  %1134 = vst.msk [vmem:[#allocation2 + $0x25] sm:$0xff] %vm55_vm0, %v1110_v16  ;;  %v1113_v28 = vadd.f32 %v7286_v18, %v1048_v9  ;;  %1172 = vrot.lane.b32.xlu0 %v1156_v20, %s8493_s18  ;;  %v1461_v42 = vld [vmem:[#allocation2 + $0x12] sm:$0xff]  ;;  %v8224_v9 = vld [vmem:[%s10542_s3 + $0x140] sm:$0xff]   ;;  %v999_v20 = vadd.f32 %v9035_v22, %v9040_v29 }
 0x1b6   :  { %v1141_v25 = vld [vmem:[#allocation2 + $0x8] sm:$0xff]  ;;  %1213 = vst.msk [vmem:[#allocation3 + $0x38] sm:$0xff] %vm55_vm0, %v1205_v24  ;;  %1468 = vst.msk [vmem:[#allocation3 + $0x28] sm:$0xff] %vm55_vm0, %v1205_v24  ;;  %v1397_v39 = vld [vmem:[#allocation2 + $0x10] sm:$0xff]  ;;  %7379 = vmatprep.subr.bf16.mxu1 %v8224_v9 }
 0x1b7   :  { %1149 = vst.msk [vmem:[#allocation3 + $0x30] sm:$0xff] %vm55_vm0, %v1141_v25  ;;  %v1332_v30 = vld [vmem:[#allocation2 + $0x6] sm:$0xff]  ;;  %1404 = vst.msk [vmem:[#allocation3 + $0x20] sm:$0xff] %vm55_vm0, %v1141_v25  ;;  %v7247_v37 = vpop.f32.mrb[8].mxu1  ;;  %1174 = vrot.lane.b32.xlu1 %v9090_v21, %s8493_s18  ;;  %v1349_v49 = vld [vmem:[#allocation2 + $0xf] sm:$0xff] }
 0x1b8   :  { %1340 = vst.msk [vmem:[#allocation3 + $0x18] sm:$0xff] %vm55_vm0, %v1332_v30  ;;  %v1269_v36 = vld [vmem:[#allocation2 + $0xc] sm:$0xff]  ;;  %1135 = vst.msk [vmem:[#allocation2 + $0x2d] sm:$0xff] %vm55_vm0, %v1113_v28  ;;  %v7248_v40 = vpop.f32.mrb[9].mxu1 }
 0x1b9   :  { %1277 = vst.msk [vmem:[#allocation3 + $0x40] sm:$0xff] %vm55_vm0, %v1269_v36  ;;  %v1284_v41 = vld [vmem:[#allocation2 + $0x5] sm:$0xff]  ;;  %1405 = vst.msk [vmem:[#allocation3 + $0x50] sm:$0xff] %vm55_vm0, %v1397_v39  ;;  %v7249_v44 = vadd.f32 %v7248_v40, %v7247_v37  ;;  %v7250_v45 = vpop.f32.mrb[10].mxu1  ;;  %v1285_v46 = vld [vmem:[#allocation2 + $0xd] sm:$0xff] }
 0x1ba   :  { %1300 = vrot.lane.b32.xlu0 %v1284_v41, %s8493_s18  ;;  %1469 = vst.msk [vmem:[#allocation3 + $0x58] sm:$0xff] %vm55_vm0, %v1461_v42  ;;  %v7251_v48 = vpop.f32.mrb[11].mxu1  ;;  %v1348_v54 = vld [vmem:[#allocation2 + $0x7] sm:$0xff]  ;;  %v1413_v8 = vld [vmem:[#allocation2 + $0x11] sm:$0xff] }
 0x1bb   :  { %v1053_v51 = vadd.f32 %v7249_v44, %v988_v43  ;;  %v7252_v31 = vadd.f32 %v7251_v48, %v7250_v45  ;;  %v7287_v52 = vpop.f32.mrb[24].mxu0  ;;  %1366 = vrot.lane.b32.xlu1 %v1349_v49, %s8493_s18 }
 0x1bc   :  { %v7288_v53 = vpop.f32.mrb[25].mxu0  ;;  %v1206_v59 = vld [vmem:[#allocation2 + $0x22] sm:$0xff] }
 0x1bd   :  { %v1056_v56 = vadd.f32 %v7252_v31, %v991_v19  ;;  %v7289_v57 = vadd.f32 %v7288_v53, %v7287_v52  ;;  %v7290_v58 = vpop.f32.mrb[26].mxu0  ;;  %v1142_v60 = vld [vmem:[#allocation2 + $0x20] sm:$0xff]  ;;  %1214 = vst.msk [vmem:[#allocation3 + $0x68] sm:$0xff] %vm55_vm0, %v1206_v59 }
 0x1be   :  { %1364 = vrot.lane.b32.xlu0 %v1348_v54, %s8493_s18  ;;  %v1270_v23 = vld [vmem:[#allocation2 + $0x24] sm:$0xff]  ;;  %v7291_v61 = vpop.f32.mrb[27].mxu0  ;;  %1150 = vst.msk [vmem:[#allocation3 + $0x60] sm:$0xff] %vm55_vm0, %v1142_v60 }
 0x1bf   :  { %1278 = vst.msk [vmem:[#allocation3 + $0x70] sm:$0xff] %vm55_vm0, %v1270_v23  ;;  %v1118_v62 = vadd.f32 %v7289_v57, %v1053_v51  ;;  %v7292_v63 = vadd.f32 %v7291_v61, %v7290_v58  ;;  %1302 = vrot.lane.b32.xlu1 %v1285_v46, %s8493_s18  ;;  %v1207_v0 = vld [vmem:[#allocation2 + $0x2a] sm:$0xff]  ;;  %v1463_v11 = vld [vmem:[#allocation2 + $0x32] sm:$0xff]  ;;  %v1158_v28 = vld [vmem:[#allocation2 + $0x21] sm:$0xff] }
 0x1c0   :  { %v1143_v1 = vld [vmem:[#allocation2 + $0x28] sm:$0xff]  ;;  %1215 = vst.msk [vmem:[#allocation3 + $0x98] sm:$0xff] %vm55_vm0, %v1207_v0  ;;  %v1399_v7 = vld [vmem:[#allocation2 + $0x30] sm:$0xff]  ;;  %1470 = vst.msk [vmem:[#allocation3 + $0x88] sm:$0xff] %vm55_vm0, %v1207_v0 }
 0x1c1   :  { %v1334_v2 = vld [vmem:[#allocation2 + $0x26] sm:$0xff]  ;;  %1136 = vst.msk [vmem:[#allocation2 + $0x45] sm:$0xff] %vm55_vm0, %v1118_v62  ;;  %v1121_v4 = vadd.f32 %v7292_v63, %v1056_v56  ;;  %1151 = vst.msk [vmem:[#allocation3 + $0x90] sm:$0xff] %vm55_vm0, %v1143_v1  ;;  %v1335_v5 = vld [vmem:[#allocation2 + $0x2e] sm:$0xff] }
 0x1c2   :  { %1428 = vrot.lane.b32.xlu0 %v9090_v21, %s8493_s18  ;;  %1342 = vst.msk [vmem:[#allocation3 + $0x78] sm:$0xff] %vm55_vm0, %v1334_v2  ;;  %v1271_v6 = vld [vmem:[#allocation2 + $0x2c] sm:$0xff]  ;;  %1406 = vst.msk [vmem:[#allocation3 + $0x80] sm:$0xff] %vm55_vm0, %v1143_v1  ;;  %v1222_v13 = vld [vmem:[#allocation2 + $0x23] sm:$0xff] }
 0x1c3   :  { %1343 = vst.msk [vmem:[#allocation3 + $0xa8] sm:$0xff] %vm55_vm0, %v1335_v5  ;;  %1279 = vst.msk [vmem:[#allocation3 + $0xa0] sm:$0xff] %vm55_vm0, %v1271_v6  ;;  %v7253_v10 = vpop.f32.mrb[12].mxu1  ;;  %1430 = vrot.lane.b32.xlu1 %v1413_v8, %s8493_s18  ;;  %v1223_v18 = vld [vmem:[#allocation2 + $0x2b] sm:$0xff] }
 0x1c4   :  { %1407 = vst.msk [vmem:[#allocation3 + $0xb0] sm:$0xff] %vm55_vm0, %v1399_v7  ;;  %1137 = vst.msk [vmem:[#allocation2 + $0x4d] sm:$0xff] %vm55_vm0, %v1121_v4  ;;  %v7254_v12 = vpop.f32.mrb[13].mxu1  ;;  %v9165_v36 = vld [vmem:[#allocation2 + $0x29] sm:$0xff]  ;;  %v1415_v1 = vld [vmem:[#allocation2 + $0x31] sm:$0xff] }
 0x1c5   :  { %1471 = vst.msk [vmem:[#allocation3 + $0xb8] sm:$0xff] %vm55_vm0, %v1463_v11  ;;  %v7255_v15 = vadd.f32 %v7254_v12, %v7253_v10  ;;  %v7256_v17 = vpop.f32.mrb[14].mxu1  ;;  %v1350_v37 = vld [vmem:[#allocation2 + $0x27] sm:$0xff]  ;;  %v1351_v41 = vld [vmem:[#allocation2 + $0x2f] sm:$0xff] }
 0x1c6   :  { %1240 = vrot.lane.b32.xlu0 %v1222_v13, %s8493_s18  ;;  %v7257_v16 = vpop.f32.mrb[15].mxu1  ;;  %v1286_v63 = vld [vmem:[#allocation2 + $0x25] sm:$0xff]  ;;  %v1287_v0 = vld [vmem:[#allocation2 + $0x2d] sm:$0xff] }
 0x1c7   :  { %v1061_v21 = vadd.f32 %v7255_v15, %v996_v14  ;;  %v7258_v24 = vadd.f32 %v7257_v16, %v7256_v17  ;;  %v7293_v25 = vpop.f32.mrb[28].mxu0  ;;  %1242 = vrot.lane.b32.xlu1 %v1223_v18, %s8493_s18 }
 0x1c8   :  { %v7294_v27 = vpop.f32.mrb[29].mxu0  ;;  %v1208_v26 = vld [vmem:[#allocation2 + $0x42] sm:$0xff] }
 0x1c9   :  { %v1064_v30 = vadd.f32 %v7258_v24, %v999_v20  ;;  %v7295_v32 = vadd.f32 %v7294_v27, %v7293_v25  ;;  %v7296_v33 = vpop.f32.mrb[30].mxu0  ;;  %v1144_v34 = vld [vmem:[#allocation2 + $0x40] sm:$0xff]  ;;  %1216 = vst.msk [vmem:[#allocation3 + $0xc8] sm:$0xff] %vm55_vm0, %v1208_v26  ;;  %v8226_v26 = vld [vmem:[%s10542_s3 + $0x148] sm:$0xff]  }
 0x1ca   :  { %1176 = vrot.lane.b32.xlu0 %v1158_v28, %s8493_s18  ;;  %v7297_v35 = vpop.f32.mrb[31].mxu0  ;;  %1152 = vst.msk [vmem:[#allocation3 + $0xc0] sm:$0xff] %vm55_vm0, %v1144_v34  ;;  %v1272_v44 = vld [vmem:[#allocation2 + $0x44] sm:$0xff] }
 0x1cb   :  { %v1126_v22 = vadd.f32 %v7295_v32, %v1061_v21  ;;  %v7298_v29 = vadd.f32 %v7297_v35, %v7296_v33  ;;  %1178 = vrot.lane.b32.xlu1 %v9165_v36, %s8493_s18  ;;  %v1209_v38 = vld [vmem:[#allocation2 + $0x4a] sm:$0xff]  ;;  %1280 = vst.msk [vmem:[#allocation3 + $0xd0] sm:$0xff] %vm55_vm0, %v1272_v44  ;;  %v1465_v49 = vld [vmem:[#allocation2 + $0x52] sm:$0xff]  ;;  %v1160_v19 = vld [vmem:[#allocation2 + $0x41] sm:$0xff] }
 0x1cc   :  { %v1145_v39 = vld [vmem:[#allocation2 + $0x48] sm:$0xff]  ;;  %1217 = vst.msk [vmem:[#allocation3 + $0xf8] sm:$0xff] %vm55_vm0, %v1209_v38  ;;  %1472 = vst.msk [vmem:[#allocation3 + $0xe8] sm:$0xff] %vm55_vm0, %v1209_v38  ;;  %v1401_v47 = vld [vmem:[#allocation2 + $0x50] sm:$0xff] }
 0x1cd   :  { %1138 = vst.msk [vmem:[#allocation2 + $0x65] sm:$0xff] %vm55_vm0, %v1126_v22  ;;  %v1129_v40 = vadd.f32 %v7298_v29, %v1064_v30  ;;  %1153 = vst.msk [vmem:[#allocation3 + $0xf0] sm:$0xff] %vm55_vm0, %v1145_v39  ;;  %v1336_v42 = vld [vmem:[#allocation2 + $0x46] sm:$0xff]  ;;  %v1337_v43 = vld [vmem:[#allocation2 + $0x4e] sm:$0xff] }
 0x1ce   :  { %1368 = vrot.lane.b32.xlu0 %v1350_v37, %s8493_s18  ;;  %1408 = vst.msk [vmem:[#allocation3 + $0xe0] sm:$0xff] %vm55_vm0, %v1145_v39  ;;  %1344 = vst.msk [vmem:[#allocation3 + $0xd8] sm:$0xff] %vm55_vm0, %v1336_v42  ;;  %v1273_v45 = vld [vmem:[#allocation2 + $0x4c] sm:$0xff]  ;;  %v1224_v48 = vld [vmem:[#allocation2 + $0x43] sm:$0xff] }
 0x1cf   :  { %1139 = vst.msk [vmem:[#allocation2 + $0x6d] sm:$0xff] %vm55_vm0, %v1129_v40  ;;  %1370 = vrot.lane.b32.xlu1 %v1351_v41, %s8493_s18  ;;  %1345 = vst.msk [vmem:[#allocation3 + $0x108] sm:$0xff] %vm55_vm0, %v1337_v43  ;;  %v1225_v50 = vld [vmem:[#allocation2 + $0x4b] sm:$0xff]  ;;  %v8225_v32 = vld [vmem:[%s10542_s3 + $0x100] sm:$0xff]  }
 0x1d0   :  { %1281 = vst.msk [vmem:[#allocation3 + $0x100] sm:$0xff] %vm55_vm0, %v1273_v45  ;;  %1409 = vst.msk [vmem:[#allocation3 + $0x110] sm:$0xff] %vm55_vm0, %v1401_v47  ;;  %v1161_v52 = vld [vmem:[#allocation2 + $0x49] sm:$0xff]  ;;  %v1417_v7 = vld [vmem:[#allocation2 + $0x51] sm:$0xff] }
 0x1d1   :  { %1473 = vst.msk [vmem:[#allocation3 + $0x118] sm:$0xff] %vm55_vm0, %v1465_v49  ;;  %v1352_v2 = vld [vmem:[#allocation2 + $0x47] sm:$0xff]  ;;  %v1353_v4 = vld [vmem:[#allocation2 + $0x4f] sm:$0xff]  ;;  %v8230_v45 = vld [vmem:[%s10542_s3 + $0x158] sm:$0xff]  }
 0x1d2   :  { %1244 = vrot.lane.b32.xlu0 %v1224_v48, %s8493_s18  ;;  %v1288_v5 = vld [vmem:[#allocation2 + $0x45] sm:$0xff]  ;;  %v1289_v6 = vld [vmem:[#allocation2 + $0x4d] sm:$0xff]  ;;  %v8231_v49 = vld [vmem:[%s10542_s3 + $0x118] sm:$0xff]  }
 0x1d3   :  { %1246 = vrot.lane.b32.xlu1 %v1225_v50, %s8493_s18  ;;  %v8228_v22 = vld [vmem:[%s10542_s3 + $0x150] sm:$0xff]   ;;  %v8232_v50 = vld [vmem:[%s10542_s3 + $0x160] sm:$0xff]  }
 0x1d4   :  { %v1210_v51 = vld [vmem:[#allocation2 + $0x62] sm:$0xff]  ;;  %v8229_v43 = vld [vmem:[%s10542_s3 + $0x110] sm:$0xff]  }
 0x1d5   :  { %v1146_v31 = vld [vmem:[#allocation2 + $0x60] sm:$0xff]  ;;  %1218 = vst.msk [vmem:[#allocation3 + $0x128] sm:$0xff] %vm55_vm0, %v1210_v51 }
 0x1d6   :  { %1180 = vrot.lane.b32.xlu0 %v1160_v19, %s8493_s18  ;;  %1154 = vst.msk [vmem:[#allocation3 + $0x120] sm:$0xff] %vm55_vm0, %v1146_v31  ;;  %v1226_v53 = vld [vmem:[#allocation2 + $0x63] sm:$0xff]  ;;  %v1227_v56 = vld [vmem:[#allocation2 + $0x6b] sm:$0xff] }
 0x1d7   :  { %1182 = vrot.lane.b32.xlu1 %v1161_v52, %s8493_s18  ;;  %v1211_v54 = vld [vmem:[#allocation2 + $0x6a] sm:$0xff]  ;;  %v1162_v61 = vld [vmem:[#allocation2 + $0x61] sm:$0xff]  ;;  %v1467_v46 = vld [vmem:[#allocation2 + $0x72] sm:$0xff] }
 0x1d8   :  { %v1147_v55 = vld [vmem:[#allocation2 + $0x68] sm:$0xff]  ;;  %1219 = vst.msk [vmem:[#allocation3 + $0x158] sm:$0xff] %vm55_vm0, %v1211_v54  ;;  %1474 = vst.msk [vmem:[#allocation3 + $0x148] sm:$0xff] %vm55_vm0, %v1211_v54  ;;  %v1403_v23 = vld [vmem:[#allocation2 + $0x70] sm:$0xff] }
 0x1d9   :  { %1155 = vst.msk [vmem:[#allocation3 + $0x150] sm:$0xff] %vm55_vm0, %v1147_v55  ;;  %v1274_v57 = vld [vmem:[#allocation2 + $0x64] sm:$0xff]  ;;  %1410 = vst.msk [vmem:[#allocation3 + $0x140] sm:$0xff] %vm55_vm0, %v1147_v55  ;;  %v1339_v58 = vld [vmem:[#allocation2 + $0x6e] sm:$0xff] }
 0x1da   :  { %1248 = vrot.lane.b32.xlu0 %v1226_v53, %s8493_s18  ;;  %1282 = vst.msk [vmem:[#allocation3 + $0x130] sm:$0xff] %vm55_vm0, %v1274_v57  ;;  %v1338_v59 = vld [vmem:[#allocation2 + $0x66] sm:$0xff]  ;;  %1347 = vst.msk [vmem:[#allocation3 + $0x168] sm:$0xff] %vm55_vm0, %v1339_v58  ;;  %v1355_v9 = vld [vmem:[#allocation2 + $0x6f] sm:$0xff] }
 0x1db   :  { %v1275_v60 = vld [vmem:[#allocation2 + $0x6c] sm:$0xff]  ;;  %1250 = vrot.lane.b32.xlu1 %v1227_v56, %s8493_s18  ;;  %1346 = vst.msk [vmem:[#allocation3 + $0x138] sm:$0xff] %vm55_vm0, %v1338_v59  ;;  %1411 = vst.msk [vmem:[#allocation3 + $0x170] sm:$0xff] %vm55_vm0, %v1403_v23  ;;  %v8233_v53 = vld [vmem:[%s10542_s3 + $0x120] sm:$0xff]  }
 0x1dc   :  { %1283 = vst.msk [vmem:[#allocation3 + $0x160] sm:$0xff] %vm55_vm0, %v1275_v60  ;;  %1475 = vst.msk [vmem:[#allocation3 + $0x178] sm:$0xff] %vm55_vm0, %v1467_v46  ;;  %v1163_v62 = vld [vmem:[#allocation2 + $0x69] sm:$0xff]  ;;  %v1419_v12 = vld [vmem:[#allocation2 + $0x71] sm:$0xff] }
 0x1dd   :  { %v1290_v8 = vld [vmem:[#allocation2 + $0x65] sm:$0xff]  ;;  %v1291_v11 = vld [vmem:[#allocation2 + $0x6d] sm:$0xff] }
 0x1de   :  { %1184 = vrot.lane.b32.xlu0 %v1162_v61, %s8493_s18  ;;  %v1354_v10 = vld [vmem:[#allocation2 + $0x67] sm:$0xff]  ;;  %v8236_v61 = vld [vmem:[%s10542_s3 + $0x170] sm:$0xff]  }
 0x1df   :  { %1186 = vrot.lane.b32.xlu1 %v1163_v62, %s8493_s18  ;;  %v8234_v55 = vld [vmem:[%s10542_s3 + $0x168] sm:$0xff]  }
 0x1e0   :  { %v8235_v60 = vld [vmem:[%s10542_s3 + $0x128] sm:$0xff]  }
 0x1e2   :  { %1304 = vrot.lane.b32.xlu0 %v1286_v63, %s8493_s18 }
 0x1e3   :  { %1306 = vrot.lane.b32.xlu1 %v1287_v0, %s8493_s18 }
 0x1e6   :  { %1432 = vrot.lane.b32.xlu0 %v9165_v36, %s8493_s18  ;;  %v8227_v36 = vld [vmem:[%s10542_s3 + $0x108] sm:$0xff]  }
 0x1e7   :  { %1434 = vrot.lane.b32.xlu1 %v1415_v1, %s8493_s18  ;;  %v8237_v1 = vld [vmem:[%s10542_s3 + $0x130] sm:$0xff]  }
 0x1ea   :  { %1372 = vrot.lane.b32.xlu0 %v1352_v2, %s8493_s18 }
 0x1eb   :  { %1374 = vrot.lane.b32.xlu1 %v1353_v4, %s8493_s18  ;;  %v8238_v4 = vld [vmem:[%s10542_s3 + $0x178] sm:$0xff]  }
 0x1ee   :  { %1308 = vrot.lane.b32.xlu0 %v1288_v5, %s8493_s18 }
 0x1ef   :  { %1310 = vrot.lane.b32.xlu1 %v1289_v6, %s8493_s18 }
 0x1f2   :  { %1436 = vrot.lane.b32.xlu0 %v1161_v52, %s8493_s18 }
 0x1f3   :  { %1438 = vrot.lane.b32.xlu1 %v1417_v7, %s8493_s18 }
 0x1f6   :  { %1312 = vrot.lane.b32.xlu0 %v1290_v8, %s8493_s18 }
 0x1f7   :  { %1378 = vrot.lane.b32.xlu1 %v1355_v9, %s8493_s18  ;;  %v8239_v9 = vld [vmem:[%s10542_s3 + $0x138] sm:$0xff]  }
 0x1fa   :  { %1376 = vrot.lane.b32.xlu0 %v1354_v10, %s8493_s18 }
 0x1fb   :  { %1314 = vrot.lane.b32.xlu1 %v1291_v11, %s8493_s18 }
 0x1fe   :  { %1440 = vrot.lane.b32.xlu0 %v1163_v62, %s8493_s18 }
 0x1ff   :  { %1442 = vrot.lane.b32.xlu1 %v1419_v12, %s8493_s18 }
 0x223   :  { %v1237_v13 = vpop.permute.xlu0 %1236 }
 0x224   :  { %1260 = vst.msk [vmem:[#allocation3 + $0x8] sm:$0xff] %vm193_vm2, %v1237_v13 }
 0x225   :  { %v1239_v14 = vpop.permute.xlu1 %1238 }
 0x226   :  { %1261 = vst.msk [vmem:[#allocation3 + $0x38] sm:$0xff] %vm193_vm2, %v1239_v14 }
 0x227   :  { %v1173_v15 = vpop.permute.xlu0 %1172 }
 0x228   :  { %1196 = vst.msk [vmem:[#allocation3] sm:$0xff] %vm193_vm2, %v1173_v15 }
 0x229   :  { %v1175_v17 = vpop.permute.xlu1 %1174 }
 0x22a   :  { %1197 = vst.msk [vmem:[#allocation3 + $0x30] sm:$0xff] %vm193_vm2, %v1175_v17 }
 0x22b   :  { %v1477_v20 = vld [vmem:[#allocation3 + $0x8] sm:$0xff] }
 0x22c   :  { %v1301_v16 = vpop.permute.xlu0 %1300 }
 0x22d   :  { %1324 = vst.msk [vmem:[#allocation3 + $0x10] sm:$0xff] %vm193_vm2, %v1301_v16  ;;  %v1367_v18 = vpop.permute.xlu1 %1366  ;;  %v1483_v21 = vld [vmem:[#allocation3 + $0x38] sm:$0xff] }
 0x22e   :  { %1389 = vst.msk [vmem:[#allocation3 + $0x48] sm:$0xff] %vm193_vm2, %v1367_v18  ;;  %v1525_v24 = vpack.c.bf16 %v1483_v21, %v1477_v20 }
 0x22f   :  { %v1476_v28 = vld [vmem:[#allocation3] sm:$0xff] }
 0x230   :  { %v1365_v25 = vpop.permute.xlu0 %1364  ;;  %1971 = vmatprep.mubr.bf16.mxu1 %v1525_v24 }
 0x231   :  { %1388 = vst.msk [vmem:[#allocation3 + $0x18] sm:$0xff] %vm193_vm2, %v1365_v25  ;;  %v1303_v27 = vpop.permute.xlu1 %1302  ;;  %v1482_v30 = vld [vmem:[#allocation3 + $0x30] sm:$0xff]  ;;  %v1481_v25 = vld [vmem:[#allocation3 + $0x28] sm:$0xff] }
 0x232   :  { %1325 = vst.msk [vmem:[#allocation3 + $0x40] sm:$0xff] %vm193_vm2, %v1303_v27  ;;  %v1524_v33 = vpack.c.bf16 %v1482_v30, %v1476_v28  ;;  %v1487_v27 = vld [vmem:[#allocation3 + $0x58] sm:$0xff] }
 0x234   :  { %v1429_v34 = vpop.permute.xlu0 %1428  ;;  %1972 = vmatmul.mubr.bf16.vlgmr.msra.gmra.mrb[16].mxu1 %v1524_v33  ;;  %v1478_v41 = vld [vmem:[#allocation3 + $0x10] sm:$0xff] }
 0x235   :  { %1452 = vst.msk [vmem:[#allocation3 + $0x20] sm:$0xff] %vm193_vm2, %v1429_v34  ;;  %v1431_v35 = vpop.permute.xlu1 %1430  ;;  %7380 = vmatpush3.bf16.msra.mxu1 %v8225_v32  ;;  %v1485_v38 = vld [vmem:[#allocation3 + $0x48] sm:$0xff]  ;;  %v1529_v34 = vpack.c.bf16 %v1487_v27, %v1481_v25 }
 0x236   :  { %1453 = vst.msk [vmem:[#allocation3 + $0x50] sm:$0xff] %vm193_vm2, %v1431_v35  ;;  %7381 = vmatprep.subr.bf16.mxu1 %v8226_v26 }
 0x238   :  { %v1241_v29 = vpop.permute.xlu0 %1240  ;;  %v1479_v37 = vld [vmem:[#allocation3 + $0x18] sm:$0xff] }
 0x239   :  { %1262 = vst.msk [vmem:[#allocation3 + $0x68] sm:$0xff] %vm193_vm2, %v1241_v29  ;;  %v1527_v39 = vpack.c.bf16 %v1485_v38, %v1479_v37  ;;  %v1243_v40 = vpop.permute.xlu1 %1242  ;;  %v1484_v42 = vld [vmem:[#allocation3 + $0x40] sm:$0xff]  ;;  %7382 = vmatpush3.bf16.msra.mxu1 %v8227_v36 }
 0x23a   :  { %1263 = vst.msk [vmem:[#allocation3 + $0x98] sm:$0xff] %vm193_vm2, %v1243_v40  ;;  %v1526_v44 = vpack.c.bf16 %v1484_v42, %v1478_v41  ;;  %7383 = vmatprep.subr.bf16.mxu1 %v8228_v22  ;;  %v1499_v40 = vld [vmem:[#allocation3 + $0xb8] sm:$0xff] }
 0x23b   :  { %2036 = vmatprep.mubr.bf16.mxu0 %v1527_v39  ;;  %v1493_v39 = vld [vmem:[#allocation3 + $0x88] sm:$0xff] }
 0x23c   :  { %v1177_v47 = vpop.permute.xlu0 %1176  ;;  %2037 = vmatmul.mubr.bf16.vlgmr.msra.gmra.mrb[32].mxu0 %v1526_v44  ;;  %v1480_v42 = vld [vmem:[#allocation3 + $0x20] sm:$0xff] }
 0x23d   :  { %1198 = vst.msk [vmem:[#allocation3 + $0x60] sm:$0xff] %vm193_vm2, %v1177_v47  ;;  %v1179_v48 = vpop.permute.xlu1 %1178  ;;  %7384 = vmatpush3.bf16.msra.mxu1 %v8229_v43  ;;  %v1486_v38 = vld [vmem:[#allocation3 + $0x50] sm:$0xff] }
 0x23e   :  { %1199 = vst.msk [vmem:[#allocation3 + $0x90] sm:$0xff] %vm193_vm2, %v1179_v48  ;;  %7385 = vmatprep.subr.bf16.mxu1 %v8230_v45  ;;  %v1528_v43 = vpack.c.bf16 %v1486_v38, %v1480_v42  ;;  %v1535_v45 = vpack.c.bf16 %v1499_v40, %v1493_v39  ;;  %v8247_v38 = vld [vmem:[%s10544_s5 + $0x80] sm:$0xff]   ;;  %v8243_v39 = vld [vmem:[%s10544_s5 + $0x8] sm:$0xff]  }
 0x23f   :  { %v8249_v40 = vld [vmem:[%s10544_s5 + $0xc8] sm:$0xff]  }
 0x240   :  { %v1369_v19 = vpop.permute.xlu0 %1368  ;;  %v1489_v31 = vld [vmem:[#allocation3 + $0x68] sm:$0xff] }
 0x241   :  { %1390 = vst.msk [vmem:[#allocation3 + $0x78] sm:$0xff] %vm193_vm2, %v1369_v19  ;;  %v1371_v51 = vpop.permute.xlu1 %1370  ;;  %v1495_v52 = vld [vmem:[#allocation3 + $0x98] sm:$0xff]  ;;  %7386 = vmatpush3.bf16.msra.mxu1 %v8231_v49  ;;  %v8251_v42 = vld [vmem:[%s10544_s5 + $0x88] sm:$0xff]  }
 0x242   :  { %1391 = vst.msk [vmem:[#allocation3 + $0xa8] sm:$0xff] %vm193_vm2, %v1371_v51  ;;  %v1531_v54 = vpack.c.bf16 %v1495_v52, %v1489_v31  ;;  %7387 = vmatprep.subr.bf16.mxu1 %v8232_v50  ;;  %v1505_v31 = vld [vmem:[#allocation3 + $0xe8] sm:$0xff]  ;;  %v1511_v52 = vld [vmem:[#allocation3 + $0x118] sm:$0xff] }
 0x244   :  { %v1245_v56 = vpop.permute.xlu0 %1244  ;;  %1979 = vmatprep.mubr.bf16.mxu1 %v1531_v54  ;;  %v1488_v58 = vld [vmem:[#allocation3 + $0x60] sm:$0xff] }
 0x245   :  { %1264 = vst.msk [vmem:[#allocation3 + $0xc8] sm:$0xff] %vm193_vm2, %v1245_v56  ;;  %v1247_v57 = vpop.permute.xlu1 %1246  ;;  %v1494_v59 = vld [vmem:[#allocation3 + $0x90] sm:$0xff]  ;;  %7388 = vmatpush3.bf16.msra.mxu1 %v8233_v53 }
 0x246   :  { %1265 = vst.msk [vmem:[#allocation3 + $0xf8] sm:$0xff] %vm193_vm2, %v1247_v57  ;;  %v1530_v23 = vpack.c.bf16 %v1494_v59, %v1488_v58  ;;  %7389 = vmatprep.subr.bf16.mxu1 %v8234_v55 }
 0x248   :  { %v1181_v46 = vpop.permute.xlu0 %1180  ;;  %1980 = vmatmul.mubr.bf16.gmra.mrb[20].mxu1 %v1530_v23  ;;  %v1491_v63 = vld [vmem:[#allocation3 + $0x78] sm:$0xff] }
 0x249   :  { %1200 = vst.msk [vmem:[#allocation3 + $0xc0] sm:$0xff] %vm193_vm2, %v1181_v46  ;;  %v1183_v62 = vpop.permute.xlu1 %1182  ;;  %v1497_v0 = vld [vmem:[#allocation3 + $0xa8] sm:$0xff]  ;;  %7390 = vmatpush3.bf16.msra.mxu1 %v8235_v60  ;;  %v1541_v60 = vpack.c.bf16 %v1511_v52, %v1505_v31 }
 0x24a   :  { %1201 = vst.msk [vmem:[#allocation3 + $0xf0] sm:$0xff] %vm193_vm2, %v1183_v62  ;;  %v1533_v2 = vpack.c.bf16 %v1497_v0, %v1491_v63  ;;  %7391 = vmatprep.subr.bf16.mxu1 %v8236_v61  ;;  %v1517_v62 = vld [vmem:[#allocation3 + $0x148] sm:$0xff]  ;;  %v1523_v63 = vld [vmem:[#allocation3 + $0x178] sm:$0xff] }
 0x24c   :  { %v1249_v5 = vpop.permute.xlu0 %1248  ;;  %2044 = vmatprep.mubr.bf16.mxu0 %v1533_v2  ;;  %v1501_v7 = vld [vmem:[#allocation3 + $0xc8] sm:$0xff] }
 0x24d   :  { %1266 = vst.msk [vmem:[#allocation3 + $0x128] sm:$0xff] %vm193_vm2, %v1249_v5  ;;  %v1251_v6 = vpop.permute.xlu1 %1250  ;;  %v1507_v8 = vld [vmem:[#allocation3 + $0xf8] sm:$0xff]  ;;  %7392 = vmatpush3.bf16.msra.mxu1 %v8237_v1 }
 0x24e   :  { %1267 = vst.msk [vmem:[#allocation3 + $0x158] sm:$0xff] %vm193_vm2, %v1251_v6  ;;  %v1537_v10 = vpack.c.bf16 %v1507_v8, %v1501_v7  ;;  %7393 = vmatprep.subr.bf16.mxu1 %v8238_v4  ;;  %v1547_v4 = vpack.c.bf16 %v1523_v63, %v1517_v62 }
 0x250   :  { %v1185_v11 = vpop.permute.xlu0 %1184  ;;  %1987 = vmatprep.mubr.bf16.mxu1 %v1537_v10  ;;  %v1500_v13 = vld [vmem:[#allocation3 + $0xc0] sm:$0xff] }
 0x251   :  { %1202 = vst.msk [vmem:[#allocation3 + $0x120] sm:$0xff] %vm193_vm2, %v1185_v11  ;;  %v1187_v12 = vpop.permute.xlu1 %1186  ;;  %v1506_v14 = vld [vmem:[#allocation3 + $0xf0] sm:$0xff]  ;;  %7394 = vmatpush3.bf16.msra.mxu1 %v8239_v9 }
 0x252   :  { %1203 = vst.msk [vmem:[#allocation3 + $0x150] sm:$0xff] %vm193_vm2, %v1187_v12  ;;  %v1536_v15 = vpack.c.bf16 %v1506_v14, %v1500_v13 }
 0x254   :  { %v1305_v17 = vpop.permute.xlu0 %1304  ;;  %1988 = vmatmul.mubr.bf16.gmra.mrb[24].mxu1 %v1536_v15  ;;  %v1513_v18 = vld [vmem:[#allocation3 + $0x128] sm:$0xff] }
 0x255   :  { %1326 = vst.msk [vmem:[#allocation3 + $0x70] sm:$0xff] %vm193_vm2, %v1305_v17  ;;  %v1307_v16 = vpop.permute.xlu1 %1306  ;;  %v1519_v20 = vld [vmem:[#allocation3 + $0x158] sm:$0xff] }
 0x256   :  { %1327 = vst.msk [vmem:[#allocation3 + $0xa0] sm:$0xff] %vm193_vm2, %v1307_v16  ;;  %v1543_v21 = vpack.c.bf16 %v1519_v20, %v1513_v18 }
 0x258   :  { %v1433_v24 = vpop.permute.xlu0 %1432  ;;  %1995 = vmatprep.mubr.bf16.mxu1 %v1543_v21  ;;  %v1512_v30 = vld [vmem:[#allocation3 + $0x120] sm:$0xff] }
 0x259   :  { %1454 = vst.msk [vmem:[#allocation3 + $0x80] sm:$0xff] %vm193_vm2, %v1433_v24  ;;  %v1435_v28 = vpop.permute.xlu1 %1434  ;;  %v1518_v32 = vld [vmem:[#allocation3 + $0x150] sm:$0xff]  ;;  %v9310_v21 = vld [vmem:[%s10543_s4] ss:$0 sm:$0xff] }
 0x25a   :  { %1455 = vst.msk [vmem:[#allocation3 + $0xb0] sm:$0xff] %vm193_vm2, %v1435_v28  ;;  %v1542_v33 = vpack.c.bf16 %v1518_v32, %v1512_v30 }
 0x25c   :  { %v1373_v26 = vpop.permute.xlu0 %1372  ;;  %1996 = vmatmul.mubr.bf16.gmra.mrb[28].mxu1 %v1542_v33  ;;  %v1490_v36 = vld [vmem:[#allocation3 + $0x70] sm:$0xff] }
 0x25d   :  { %1392 = vst.msk [vmem:[#allocation3 + $0xd8] sm:$0xff] %vm193_vm2, %v1373_v26  ;;  %v1375_v35 = vpop.permute.xlu1 %1374  ;;  %2101 = vmatprep.mubr.bf16.mxu1 %v1529_v34  ;;  %v1496_v22 = vld [vmem:[#allocation3 + $0xa0] sm:$0xff] }
 0x25e   :  { %1393 = vst.msk [vmem:[#allocation3 + $0x108] sm:$0xff] %vm193_vm2, %v1375_v35  ;;  %v1532_v29 = vpack.c.bf16 %v1496_v22, %v1490_v36  ;;  %v8240_v35 = vld [vmem:[%s10544_s5 + $0x40] sm:$0xff]   ;;  %v8242_v22 = vld [vmem:[%s10544_s5 + $0x48] sm:$0xff]  }
 0x25f   :  { %v8241_v36 = vld [vmem:[%s10544_s5] sm:$0xff]   ;;  %7419 = vmatprep.subr.bf16.mxu0 %v8240_v35 }
 0x260   :  { %v1309_v37 = vpop.permute.xlu0 %1308  ;;  %2045 = vmatmul.mubr.bf16.gmra.mrb[36].mxu0 %v1532_v29  ;;  %v1492_v56 = vld [vmem:[#allocation3 + $0x80] sm:$0xff] }
 0x261   :  { %1328 = vst.msk [vmem:[#allocation3 + $0xd0] sm:$0xff] %vm193_vm2, %v1309_v37  ;;  %v1311_v41 = vpop.permute.xlu1 %1310  ;;  %v1498_v51 = vld [vmem:[#allocation3 + $0xb0] sm:$0xff]  ;;  %v8245_v29 = vld [vmem:[%s10544_s5 + $0xc0] sm:$0xff]   ;;  %7420 = vmatpush3.bf16.msra.mxu0 %v8241_v36 }
 0x262   :  { %1329 = vst.msk [vmem:[#allocation3 + $0x100] sm:$0xff] %vm193_vm2, %v1311_v41  ;;  %v1534_v58 = vpack.c.bf16 %v1498_v51, %v1492_v56  ;;  %7459 = vmatprep.subr.bf16.mxu1 %v8245_v29  ;;  %7421 = vmatprep.subr.bf16.mxu0 %v8242_v22  ;;  %v8244_v41 = vld [vmem:[%s10544_s5 + $0x50] sm:$0xff]   ;;  %v8261_v35 = vld [vmem:[%s10544_s5 + $0xe0] sm:$0xff]  }
 0x263   :  { %v8262_v36 = vld [vmem:[%s10544_s5 + $0x30] sm:$0xff]  }
 0x264   :  { %v1437_v44 = vpop.permute.xlu0 %1436  ;;  %2102 = vmatmul.mubr.bf16.vlgmr.msra.gmra.mrb[32].mxu1 %v1528_v43  ;;  %v1503_v48 = vld [vmem:[#allocation3 + $0xd8] sm:$0xff]  ;;  %v8246_v43 = vld [vmem:[%s10544_s5 + $0x10] sm:$0xff]  }
 0x265   :  { %1456 = vst.msk [vmem:[#allocation3 + $0xe0] sm:$0xff] %vm193_vm2, %v1437_v44  ;;  %v1439_v47 = vpop.permute.xlu1 %1438  ;;  %2109 = vmatprep.mubr.bf16.mxu1 %v1535_v45  ;;  %v1509_v49 = vld [vmem:[#allocation3 + $0x108] sm:$0xff]  ;;  %7460 = vmatpush3.bf16.msra.mxu1 %v8247_v38  ;;  %v8248_v45 = vld [vmem:[%s10544_s5 + $0x58] sm:$0xff]  }
 0x266   :  { %1457 = vst.msk [vmem:[#allocation3 + $0x110] sm:$0xff] %vm193_vm2, %v1439_v47  ;;  %v1539_v50 = vpack.c.bf16 %v1509_v49, %v1503_v48  ;;  %7461 = vmatprep.subr.bf16.mxu1 %v8249_v40  ;;  %7422 = vmatpush3.bf16.msra.mxu0 %v8243_v39  ;;  %v8263_v40 = vld [vmem:[%s10544_s5 + $0xa0] sm:$0xff]  }
 0x267   :  { %7423 = vmatprep.subr.bf16.mxu0 %v8244_v41 }
 0x268   :  { %v1313_v19 = vpop.permute.xlu0 %1312  ;;  %2052 = vmatprep.mubr.bf16.mxu0 %v1539_v50  ;;  %v1502_v54 = vld [vmem:[#allocation3 + $0xd0] sm:$0xff] }
 0x269   :  { %1330 = vst.msk [vmem:[#allocation3 + $0x130] sm:$0xff] %vm193_vm2, %v1313_v19  ;;  %v1379_v53 = vpop.permute.xlu1 %1378  ;;  %v1508_v55 = vld [vmem:[#allocation3 + $0x100] sm:$0xff]  ;;  %7462 = vmatpush3.bf16.msra.mxu1 %v8251_v42  ;;  %v8250_v19 = vld [vmem:[%s10544_s5 + $0x18] sm:$0xff]  }
 0x26a   :  { %1395 = vst.msk [vmem:[#allocation3 + $0x168] sm:$0xff] %vm193_vm2, %v1379_v53  ;;  %v1538_v57 = vpack.c.bf16 %v1508_v55, %v1502_v54  ;;  %7424 = vmatpush3.bf16.msra.mxu0 %v8246_v43 }
 0x26b   :  { %7425 = vmatprep.subr.bf16.mxu0 %v8248_v45 }
 0x26c   :  { %v1377_v59 = vpop.permute.xlu0 %1376  ;;  %2053 = vmatmul.mubr.bf16.gmra.mrb[40].mxu0 %v1538_v57  ;;  %2110 = vmatmul.mubr.bf16.gmra.mrb[36].mxu1 %v1534_v58  ;;  %v1504_v1 = vld [vmem:[#allocation3 + $0xe0] sm:$0xff] }
 0x26d   :  { %1394 = vst.msk [vmem:[#allocation3 + $0x138] sm:$0xff] %vm193_vm2, %v1377_v59  ;;  %v1315_v23 = vpop.permute.xlu1 %1314  ;;  %2117 = vmatprep.mubr.bf16.mxu1 %v1541_v60  ;;  %v1510_v46 = vld [vmem:[#allocation3 + $0x110] sm:$0xff] }
 0x26e   :  { %1331 = vst.msk [vmem:[#allocation3 + $0x160] sm:$0xff] %vm193_vm2, %v1315_v23  ;;  %v1540_v2 = vpack.c.bf16 %v1510_v46, %v1504_v1  ;;  %7426 = vmatpush3.bf16.msra.mxu0 %v8250_v19 }
 0x270   :  { %v1441_v61 = vpop.permute.xlu0 %1440  ;;  %v1514_v8 = vld [vmem:[#allocation3 + $0x130] sm:$0xff] }
 0x271   :  { %1458 = vst.msk [vmem:[#allocation3 + $0x140] sm:$0xff] %vm193_vm2, %v1441_v61  ;;  %v1443_v0 = vpop.permute.xlu1 %1442  ;;  %v1521_v6 = vld [vmem:[#allocation3 + $0x168] sm:$0xff] }
 0x272   :  { %1459 = vst.msk [vmem:[#allocation3 + $0x170] sm:$0xff] %vm193_vm2, %v1443_v0 }
 0x274   :  { %v1515_v5 = vld [vmem:[#allocation3 + $0x138] sm:$0xff]  ;;  %2118 = vmatmul.mubr.bf16.gmra.mrb[40].mxu1 %v1540_v2 }
 0x275   :  { %v1545_v7 = vpack.c.bf16 %v1521_v6, %v1515_v5  ;;  %2125 = vmatprep.mubr.bf16.mxu1 %v1547_v4  ;;  %v1520_v9 = vld [vmem:[#allocation3 + $0x160] sm:$0xff] }
 0x276   :  { %v1544_v10 = vpack.c.bf16 %v1520_v9, %v1514_v8  ;;  %v8252_v9 = vld [vmem:[%s10544_s5 + $0x60] sm:$0xff]  }
 0x277   :  { %2060 = vmatprep.mubr.bf16.mxu0 %v1545_v7  ;;  %7427 = vmatprep.subr.bf16.mxu0 %v8252_v9 }
 0x278   :  { %2061 = vmatmul.mubr.bf16.gmra.mrb[44].mxu0 %v1544_v10  ;;  %v1516_v11 = vld [vmem:[#allocation3 + $0x140] sm:$0xff]  ;;  %v8253_v10 = vld [vmem:[%s10544_s5 + $0xd0] sm:$0xff]  }
 0x279   :  { %v1522_v12 = vld [vmem:[#allocation3 + $0x170] sm:$0xff]  ;;  %7463 = vmatprep.subr.bf16.mxu1 %v8253_v10 }
 0x27a   :  { %v1546_v13 = vpack.c.bf16 %v1522_v12, %v1516_v11  ;;  %v8254_v11 = vld [vmem:[%s10544_s5 + $0x20] sm:$0xff]   ;;  %v8268_v10 = vld [vmem:[%s10544_s5 + $0xf0] sm:$0xff]  }
 0x27b   :  { %7428 = vmatpush3.bf16.msra.mxu0 %v8254_v11 }
 0x27c   :  { %2126 = vmatmul.mubr.bf16.gmra.mrb[44].mxu1 %v1546_v13 }
 0x307   :  { %v7315_v14 = vpop.f32.mrb[16].mxu1 }
 0x308   :  { %v7316_v15 = vpop.f32.mrb[17].mxu1 }
 0x309   :  { %v7317_v17 = vadd.f32 %v7316_v15, %v7315_v14  ;;  %v7318_v16 = vpop.f32.mrb[18].mxu1  ;;  %v8255_v15 = vld [vmem:[%s10544_s5 + $0x90] sm:$0xff]  }
 0x30a   :  { %v7319_v18 = vpop.f32.mrb[19].mxu1  ;;  %7464 = vmatpush3.bf16.msra.mxu1 %v8255_v15 }
 0x30b   :  { %v7320_v20 = vadd.f32 %v7319_v18, %v7318_v16  ;;  %v1974_v27 = vadd.f32 %v7317_v17, %v9310_v21 }
 0x30d   :  { %v1977_v33 = vadd.f32 %v7320_v20, %v9310_v21  ;;  %v8256_v20 = vld [vmem:[%s10544_s5 + $0x68] sm:$0xff]  }
 0x30e   :  { %7429 = vmatprep.subr.bf16.mxu0 %v8256_v20 }
 0x30f   :  { %v7355_v24 = vpop.f32.mrb[32].mxu0 }
 0x310   :  { %v7356_v25 = vpop.f32.mrb[33].mxu0 }
 0x311   :  { %v7357_v28 = vadd.f32 %v7356_v25, %v7355_v24  ;;  %v7358_v30 = vpop.f32.mrb[34].mxu0  ;;  %v8257_v24 = vld [vmem:[%s10544_s5 + $0xd8] sm:$0xff]   ;;  %v8258_v25 = vld [vmem:[%s10544_s5 + $0x28] sm:$0xff]  }
 0x312   :  { %v7359_v32 = vpop.f32.mrb[35].mxu0  ;;  %7465 = vmatprep.subr.bf16.mxu1 %v8257_v24  ;;  %7430 = vmatpush3.bf16.msra.mxu0 %v8258_v25 }
 0x313   :  { %v9314_v26 = vadd.f32 %v7357_v28, %v1974_v27  ;;  %v7360_v34 = vadd.f32 %v7359_v32, %v7358_v30  ;;  %v8259_v28 = vld [vmem:[%s10544_s5 + $0x98] sm:$0xff]  }
 0x314   :  { %7466 = vmatpush3.bf16.msra.mxu1 %v8259_v28 }
 0x315   :  { %v9328_v37 = vadd.f32 %v7360_v34, %v1977_v33  ;;  %v8260_v34 = vld [vmem:[%s10544_s5 + $0x70] sm:$0xff]   ;;  %7467 = vmatprep.subr.bf16.mxu1 %v8261_v35 }
 0x316   :  { %7431 = vmatprep.subr.bf16.mxu0 %v8260_v34 }
 0x317   :  { %7432 = vmatpush3.bf16.msra.mxu0 %v8262_v36 }
 0x318   :  { %7468 = vmatpush3.bf16.msra.mxu1 %v8263_v40 }
 0x31b   :  { %v7321_v44 = vpop.f32.mrb[20].mxu1 }
 0x31c   :  { %v7322_v47 = vpop.f32.mrb[21].mxu1 }
 0x31d   :  { %v7323_v48 = vadd.f32 %v7322_v47, %v7321_v44  ;;  %v7324_v49 = vpop.f32.mrb[22].mxu1 }
 0x31e   :  { %v7325_v50 = vpop.f32.mrb[23].mxu1 }
 0x31f   :  { %v7326_v51 = vadd.f32 %v7325_v50, %v7324_v49  ;;  %v1982_v63 = vadd.f32 %v7323_v48, %v9310_v21 }
 0x321   :  { %v1985_v4 = vadd.f32 %v7326_v51, %v9310_v21 }
 0x327   :  { %v7327_v31 = vpop.f32.mrb[24].mxu1 }
 0x328   :  { %v7328_v52 = vpop.f32.mrb[25].mxu1 }
 0x329   :  { %v7329_v53 = vadd.f32 %v7328_v52, %v7327_v31  ;;  %v7330_v54 = vpop.f32.mrb[26].mxu1 }
 0x32a   :  { %v7331_v55 = vpop.f32.mrb[27].mxu1 }
 0x32b   :  { %v7332_v56 = vadd.f32 %v7331_v55, %v7330_v54  ;;  %v1990_v22 = vadd.f32 %v7329_v53, %v9310_v21 }
 0x32d   :  { %v1993_v41 = vadd.f32 %v7332_v56, %v9310_v21 }
 0x32f   :  { %v7333_v57 = vpop.f32.mrb[28].mxu1 }
 0x330   :  { %v7334_v58 = vpop.f32.mrb[29].mxu1 }
 0x331   :  { %v9354_v59 = vadd.f32 %v7334_v58, %v7333_v57  ;;  %v7336_v60 = vpop.f32.mrb[30].mxu1 }
 0x332   :  { %v7337_v23 = vpop.f32.mrb[31].mxu1 }
 0x333   :  { %v9356_v61 = vadd.f32 %v7337_v23, %v7336_v60  ;;  %v7361_v46 = vpop.f32.mrb[36].mxu0 }
 0x334   :  { %v7362_v62 = vpop.f32.mrb[37].mxu0 }
 0x335   :  { %v7363_v0 = vadd.f32 %v7362_v62, %v7361_v46  ;;  %v7364_v1 = vpop.f32.mrb[38].mxu0 }
 0x336   :  { %v7365_v2 = vpop.f32.mrb[39].mxu0 }
 0x337   :  { %v2047_v5 = vadd.f32 %v7363_v0, %v1982_v63  ;;  %v7366_v6 = vadd.f32 %v7365_v2, %v7364_v1  ;;  %v7395_v7 = vpop.f32.mrb[32].mxu1  ;;  %v8264_v0 = vld [vmem:[%s10544_s5 + $0x78] sm:$0xff]   ;;  %v8265_v1 = vld [vmem:[%s10544_s5 + $0xe8] sm:$0xff]  }
 0x338   :  { %v7396_v8 = vpop.f32.mrb[33].mxu1  ;;  %7433 = vmatprep.subr.bf16.mxu0 %v8264_v0  ;;  %7469 = vmatprep.subr.bf16.mxu1 %v8265_v1 }
 0x339   :  { %v2050_v12 = vadd.f32 %v7366_v6, %v1985_v4  ;;  %v7397_v13 = vadd.f32 %v7396_v8, %v7395_v7  ;;  %v7398_v14 = vpop.f32.mrb[34].mxu1  ;;  %v8266_v4 = vld [vmem:[%s10544_s5 + $0x38] sm:$0xff]  }
 0x33a   :  { %v7399_v17 = vpop.f32.mrb[35].mxu1  ;;  %7434 = vmatpush3.bf16.msra.mxu0 %v8266_v4 }
 0x33b   :  { %v2104_v16 = vadd.f32 %v7397_v13, %v9314_v26  ;;  %v7400_v18 = vadd.f32 %v7399_v17, %v7398_v14  ;;  %v1998_v14 = vadd.f32 %v9354_v59, %v9310_v21  ;;  %v8270_v59 = vld [vmem:[%s10544_s5 + $0xf8] sm:$0xff]  }
 0x33d   :  { %2134 = vst.msk [vmem:[#allocation2 + $0x5] sm:$0xff] %vm55_vm0, %v2104_v16  ;;  %v2107_v27 = vadd.f32 %v7400_v18, %v9328_v37  ;;  %v8269_v18 = vld [vmem:[%s10544_s5 + $0xb0] sm:$0xff]  }
 0x33f   :  { %2135 = vst.msk [vmem:[#allocation2 + $0xd] sm:$0xff] %vm55_vm0, %v2107_v27  ;;  %v7367_v30 = vpop.f32.mrb[40].mxu0  ;;  %v7401_v32 = vpop.f32.mrb[36].mxu1  ;;  %v2001_v27 = vadd.f32 %v9356_v61, %v9310_v21 }
 0x340   :  { %v7368_v33 = vpop.f32.mrb[41].mxu0  ;;  %v7402_v26 = vpop.f32.mrb[37].mxu1 }
 0x341   :  { %v7369_v29 = vadd.f32 %v7368_v33, %v7367_v30  ;;  %v7403_v37 = vadd.f32 %v7402_v26, %v7401_v32  ;;  %v7370_v38 = vpop.f32.mrb[42].mxu0  ;;  %v7404_v39 = vpop.f32.mrb[38].mxu1  ;;  %v8271_v26 = vld [vmem:[%s10544_s5 + $0xb8] sm:$0xff]  }
 0x342   :  { %v7371_v42 = vpop.f32.mrb[43].mxu0  ;;  %v7405_v43 = vpop.f32.mrb[39].mxu1 }
 0x343   :  { %v2055_v44 = vadd.f32 %v7369_v29, %v1990_v22  ;;  %v2112_v45 = vadd.f32 %v7403_v37, %v2047_v5  ;;  %v7372_v47 = vadd.f32 %v7371_v42, %v7370_v38  ;;  %v7406_v48 = vadd.f32 %v7405_v43, %v7404_v39  ;;  %v8267_v5 = vld [vmem:[%s10544_s5 + $0xa8] sm:$0xff]  }
 0x344   :  { %v2222_v49 = vld [vmem:[#allocation2 + $0x3] sm:$0xff]  ;;  %7470 = vmatpush3.bf16.msra.mxu1 %v8267_v5 }
 0x345   :  { %2136 = vst.msk [vmem:[#allocation2 + $0x25] sm:$0xff] %vm55_vm0, %v2112_v45  ;;  %v2058_v50 = vadd.f32 %v7372_v47, %v1993_v41  ;;  %v2115_v19 = vadd.f32 %v7406_v48, %v2050_v12  ;;  %2238 = vrot.lane.b32.xlu0 %v2222_v49, %s8493_s18  ;;  %v2206_v51 = vld [vmem:[#allocation2 + $0x2] sm:$0xff]  ;;  %7471 = vmatprep.subr.bf16.mxu1 %v8268_v10 }
 0x346   :  { %v2142_v31 = vld [vmem:[#allocation2] sm:$0xff]  ;;  %v2223_v53 = vld [vmem:[#allocation2 + $0xb] sm:$0xff]  ;;  %2214 = vst.msk [vmem:[#allocation3 + $0x8] sm:$0xff] %vm55_vm0, %v2206_v51 }
 0x347   :  { %v2270_v52 = vld [vmem:[#allocation2 + $0x4] sm:$0xff]  ;;  %2150 = vst.msk [vmem:[#allocation3] sm:$0xff] %vm55_vm0, %v2142_v31  ;;  %2137 = vst.msk [vmem:[#allocation2 + $0x2d] sm:$0xff] %vm55_vm0, %v2115_v19  ;;  %v7407_v54 = vpop.f32.mrb[40].mxu1  ;;  %2240 = vrot.lane.b32.xlu1 %v2223_v53, %s8493_s18  ;;  %v2335_v23 = vld [vmem:[#allocation2 + $0xe] sm:$0xff] }
 0x348   :  { %2278 = vst.msk [vmem:[#allocation3 + $0x10] sm:$0xff] %vm55_vm0, %v2270_v52  ;;  %v2158_v55 = vld [vmem:[#allocation2 + $0x1] sm:$0xff]  ;;  %v7408_v56 = vpop.f32.mrb[41].mxu1  ;;  %v9409_v57 = vld [vmem:[#allocation2 + $0x9] sm:$0xff]  ;;  %2343 = vst.msk [vmem:[#allocation3 + $0x48] sm:$0xff] %vm55_vm0, %v2335_v23  ;;  %7472 = vmatpush3.bf16.msra.mxu1 %v8269_v18 }
 0x349   :  { %v2207_v58 = vld [vmem:[#allocation2 + $0xa] sm:$0xff]  ;;  %v7409_v46 = vadd.f32 %v7408_v56, %v7407_v54  ;;  %v7410_v62 = vpop.f32.mrb[42].mxu1  ;;  %2174 = vrot.lane.b32.xlu0 %v2158_v55, %s8493_s18  ;;  %7473 = vmatprep.subr.bf16.mxu1 %v8270_v59  ;;  %v8272_v53 = vld [vmem:[%s10544_s5 + $0x140] sm:$0xff]  }
 0x34a   :  { %v2143_v60 = vld [vmem:[#allocation2 + $0x8] sm:$0xff]  ;;  %2215 = vst.msk [vmem:[#allocation3 + $0x38] sm:$0xff] %vm55_vm0, %v2207_v58  ;;  %2470 = vst.msk [vmem:[#allocation3 + $0x28] sm:$0xff] %vm55_vm0, %v2207_v58  ;;  %v7411_v2 = vpop.f32.mrb[43].mxu1  ;;  %v2399_v11 = vld [vmem:[#allocation2 + $0x10] sm:$0xff]  ;;  %7499 = vmatprep.subr.bf16.mxu0 %v8272_v53 }
 0x34b   :  { %2151 = vst.msk [vmem:[#allocation3 + $0x30] sm:$0xff] %vm55_vm0, %v2143_v60  ;;  %v2334_v63 = vld [vmem:[#allocation2 + $0x6] sm:$0xff]  ;;  %2406 = vst.msk [vmem:[#allocation3 + $0x20] sm:$0xff] %vm55_vm0, %v2143_v60  ;;  %v2120_v7 = vadd.f32 %v7409_v46, %v2055_v44  ;;  %v7412_v8 = vadd.f32 %v7411_v2, %v7410_v62  ;;  %v7373_v9 = vpop.f32.mrb[44].mxu0  ;;  %2176 = vrot.lane.b32.xlu1 %v9409_v57, %s8493_s18  ;;  %v2351_v25 = vld [vmem:[#allocation2 + $0xf] sm:$0xff] }
 0x34c   :  { %2342 = vst.msk [vmem:[#allocation3 + $0x18] sm:$0xff] %vm55_vm0, %v2334_v63  ;;  %v2271_v6 = vld [vmem:[#allocation2 + $0xc] sm:$0xff]  ;;  %v7374_v12 = vpop.f32.mrb[45].mxu0  ;;  %2407 = vst.msk [vmem:[#allocation3 + $0x50] sm:$0xff] %vm55_vm0, %v2399_v11  ;;  %v2208_v20 = vld [vmem:[#allocation2 + $0x22] sm:$0xff]  ;;  %7474 = vmatpush3.bf16.msra.mxu1 %v8271_v26 }
 0x34d   :  { %2279 = vst.msk [vmem:[#allocation3 + $0x40] sm:$0xff] %vm55_vm0, %v2271_v6  ;;  %v2286_v13 = vld [vmem:[#allocation2 + $0x5] sm:$0xff]  ;;  %2138 = vst.msk [vmem:[#allocation2 + $0x45] sm:$0xff] %vm55_vm0, %v2120_v7  ;;  %v2123_v15 = vadd.f32 %v7412_v8, %v2058_v50  ;;  %v7375_v17 = vadd.f32 %v7374_v12, %v7373_v9  ;;  %v7376_v16 = vpop.f32.mrb[46].mxu0  ;;  %v2287_v35 = vld [vmem:[#allocation2 + $0xd] sm:$0xff] }
 0x34e   :  { %2302 = vrot.lane.b32.xlu0 %v2286_v13, %s8493_s18  ;;  %v7377_v24 = vpop.f32.mrb[47].mxu0  ;;  %2216 = vst.msk [vmem:[#allocation3 + $0x68] sm:$0xff] %vm55_vm0, %v2208_v20  ;;  %v2350_v33 = vld [vmem:[#allocation2 + $0x7] sm:$0xff]  ;;  %v2401_v43 = vld [vmem:[#allocation2 + $0x30] sm:$0xff] }
 0x34f   :  { %2139 = vst.msk [vmem:[#allocation2 + $0x4d] sm:$0xff] %vm55_vm0, %v2123_v15  ;;  %v2063_v28 = vadd.f32 %v7375_v17, %v1998_v14  ;;  %v7378_v30 = vadd.f32 %v7377_v24, %v7376_v16  ;;  %v7413_v32 = vpop.f32.mrb[44].mxu1  ;;  %2368 = vrot.lane.b32.xlu1 %v2351_v25, %s8493_s18  ;;  %v2209_v36 = vld [vmem:[#allocation2 + $0x2a] sm:$0xff]  ;;  %v2144_v22 = vld [vmem:[#allocation2 + $0x20] sm:$0xff]  ;;  %v2463_v44 = vld [vmem:[#allocation2 + $0x12] sm:$0xff] }
 0x350   :  { %v7414_v34 = vpop.f32.mrb[45].mxu1  ;;  %v2145_v29 = vld [vmem:[#allocation2 + $0x28] sm:$0xff]  ;;  %2217 = vst.msk [vmem:[#allocation3 + $0x98] sm:$0xff] %vm55_vm0, %v2209_v36  ;;  %2152 = vst.msk [vmem:[#allocation3 + $0x60] sm:$0xff] %vm55_vm0, %v2144_v22  ;;  %v2465_v48 = vld [vmem:[#allocation2 + $0x32] sm:$0xff] }
 0x351   :  { %v2066_v37 = vadd.f32 %v7378_v30, %v2001_v27  ;;  %v7415_v38 = vadd.f32 %v7414_v34, %v7413_v32  ;;  %v7416_v21 = vpop.f32.mrb[46].mxu1  ;;  %2153 = vst.msk [vmem:[#allocation3 + $0x90] sm:$0xff] %vm55_vm0, %v2145_v29  ;;  %v2336_v61 = vld [vmem:[#allocation2 + $0x26] sm:$0xff]  ;;  %v2337_v39 = vld [vmem:[#allocation2 + $0x2e] sm:$0xff]  ;;  %2408 = vst.msk [vmem:[#allocation3 + $0x80] sm:$0xff] %vm55_vm0, %v2145_v29 }
 0x352   :  { %2366 = vrot.lane.b32.xlu0 %v2350_v33, %s8493_s18  ;;  %v2272_v40 = vld [vmem:[#allocation2 + $0x24] sm:$0xff]  ;;  %2472 = vst.msk [vmem:[#allocation3 + $0x88] sm:$0xff] %vm55_vm0, %v2209_v36  ;;  %v7417_v41 = vpop.f32.mrb[47].mxu1  ;;  %2344 = vst.msk [vmem:[#allocation3 + $0x78] sm:$0xff] %vm55_vm0, %v2336_v61  ;;  %v2273_v42 = vld [vmem:[#allocation2 + $0x2c] sm:$0xff] }
 0x353   :  { %2345 = vst.msk [vmem:[#allocation3 + $0xa8] sm:$0xff] %vm55_vm0, %v2337_v39  ;;  %2280 = vst.msk [vmem:[#allocation3 + $0x70] sm:$0xff] %vm55_vm0, %v2272_v40  ;;  %v2128_v45 = vadd.f32 %v7415_v38, %v2063_v28  ;;  %v7418_v47 = vadd.f32 %v7417_v41, %v7416_v21  ;;  %2304 = vrot.lane.b32.xlu1 %v2287_v35, %s8493_s18  ;;  %v2415_v31 = vld [vmem:[#allocation2 + $0x11] sm:$0xff]  ;;  %v2224_v52 = vld [vmem:[#allocation2 + $0x23] sm:$0xff] }
 0x354   :  { %2281 = vst.msk [vmem:[#allocation3 + $0xa0] sm:$0xff] %vm55_vm0, %v2273_v42  ;;  %2409 = vst.msk [vmem:[#allocation3 + $0xb0] sm:$0xff] %vm55_vm0, %v2401_v43  ;;  %v2210_v50 = vld [vmem:[#allocation2 + $0x42] sm:$0xff]  ;;  %v2225_v58 = vld [vmem:[#allocation2 + $0x2b] sm:$0xff] }
 0x355   :  { %2471 = vst.msk [vmem:[#allocation3 + $0x58] sm:$0xff] %vm55_vm0, %v2463_v44  ;;  %2473 = vst.msk [vmem:[#allocation3 + $0xb8] sm:$0xff] %vm55_vm0, %v2465_v48  ;;  %v2131_v49 = vadd.f32 %v7418_v47, %v2066_v37  ;;  %v2146_v19 = vld [vmem:[#allocation2 + $0x40] sm:$0xff]  ;;  %v2161_v0 = vld [vmem:[#allocation2 + $0x29] sm:$0xff] }
 0x356   :  { %2140 = vst.msk [vmem:[#allocation2 + $0x65] sm:$0xff] %vm55_vm0, %v2128_v45  ;;  %2430 = vrot.lane.b32.xlu0 %v9409_v57, %s8493_s18  ;;  %v2274_v51 = vld [vmem:[#allocation2 + $0x44] sm:$0xff]  ;;  %2218 = vst.msk [vmem:[#allocation3 + $0xc8] sm:$0xff] %vm55_vm0, %v2210_v50  ;;  %v2339_v57 = vld [vmem:[#allocation2 + $0x4e] sm:$0xff] }
 0x357   :  { %2154 = vst.msk [vmem:[#allocation3 + $0xc0] sm:$0xff] %vm55_vm0, %v2146_v19  ;;  %2282 = vst.msk [vmem:[#allocation3 + $0xd0] sm:$0xff] %vm55_vm0, %v2274_v51  ;;  %2432 = vrot.lane.b32.xlu1 %v2415_v31, %s8493_s18  ;;  %v2211_v54 = vld [vmem:[#allocation2 + $0x4a] sm:$0xff]  ;;  %v2467_v46 = vld [vmem:[#allocation2 + $0x52] sm:$0xff] }
 0x358   :  { %2141 = vst.msk [vmem:[#allocation2 + $0x6d] sm:$0xff] %vm55_vm0, %v2131_v49  ;;  %2219 = vst.msk [vmem:[#allocation3 + $0xf8] sm:$0xff] %vm55_vm0, %v2211_v54  ;;  %v2147_v55 = vld [vmem:[#allocation2 + $0x48] sm:$0xff]  ;;  %v2403_v23 = vld [vmem:[#allocation2 + $0x50] sm:$0xff] }
 0x359   :  { %v2338_v56 = vld [vmem:[#allocation2 + $0x46] sm:$0xff]  ;;  %2474 = vst.msk [vmem:[#allocation3 + $0xe8] sm:$0xff] %vm55_vm0, %v2211_v54  ;;  %2155 = vst.msk [vmem:[#allocation3 + $0xf0] sm:$0xff] %vm55_vm0, %v2147_v55  ;;  %v2353_v2 = vld [vmem:[#allocation2 + $0x2f] sm:$0xff] }
 0x35a   :  { %2242 = vrot.lane.b32.xlu0 %v2224_v52, %s8493_s18  ;;  %2346 = vst.msk [vmem:[#allocation3 + $0xd8] sm:$0xff] %vm55_vm0, %v2338_v56  ;;  %2347 = vst.msk [vmem:[#allocation3 + $0x108] sm:$0xff] %vm55_vm0, %v2339_v57  ;;  %v2275_v60 = vld [vmem:[#allocation2 + $0x4c] sm:$0xff]  ;;  %v2160_v62 = vld [vmem:[#allocation2 + $0x21] sm:$0xff] }
 0x35b   :  { %2410 = vst.msk [vmem:[#allocation3 + $0xe0] sm:$0xff] %vm55_vm0, %v2147_v55  ;;  %2244 = vrot.lane.b32.xlu1 %v2225_v58, %s8493_s18  ;;  %2283 = vst.msk [vmem:[#allocation3 + $0x100] sm:$0xff] %vm55_vm0, %v2275_v60  ;;  %v2352_v1 = vld [vmem:[#allocation2 + $0x27] sm:$0xff]  ;;  %v2417_v27 = vld [vmem:[#allocation2 + $0x31] sm:$0xff] }
 0x35c   :  { %2411 = vst.msk [vmem:[#allocation3 + $0x110] sm:$0xff] %vm55_vm0, %v2403_v23  ;;  %2475 = vst.msk [vmem:[#allocation3 + $0x118] sm:$0xff] %vm55_vm0, %v2467_v46  ;;  %v2226_v12 = vld [vmem:[#allocation2 + $0x43] sm:$0xff]  ;;  %v2227_v14 = vld [vmem:[#allocation2 + $0x4b] sm:$0xff] }
 0x35d   :  { %v2212_v63 = vld [vmem:[#allocation2 + $0x62] sm:$0xff]  ;;  %v2289_v59 = vld [vmem:[#allocation2 + $0x2d] sm:$0xff] }
 0x35e   :  { %2178 = vrot.lane.b32.xlu0 %v2160_v62, %s8493_s18  ;;  %2220 = vst.msk [vmem:[#allocation3 + $0x128] sm:$0xff] %vm55_vm0, %v2212_v63  ;;  %v2148_v5 = vld [vmem:[#allocation2 + $0x60] sm:$0xff]  ;;  %v2163_v17 = vld [vmem:[#allocation2 + $0x49] sm:$0xff]  ;;  %v2419_v26 = vld [vmem:[#allocation2 + $0x51] sm:$0xff] }
 0x35f   :  { %2180 = vrot.lane.b32.xlu1 %v2161_v0, %s8493_s18  ;;  %v2213_v4 = vld [vmem:[#allocation2 + $0x6a] sm:$0xff]  ;;  %2156 = vst.msk [vmem:[#allocation3 + $0x120] sm:$0xff] %vm55_vm0, %v2148_v5  ;;  %v2469_v13 = vld [vmem:[#allocation2 + $0x72] sm:$0xff]  ;;  %v2162_v15 = vld [vmem:[#allocation2 + $0x41] sm:$0xff] }
 0x360   :  { %2221 = vst.msk [vmem:[#allocation3 + $0x158] sm:$0xff] %vm55_vm0, %v2213_v4  ;;  %v2149_v6 = vld [vmem:[#allocation2 + $0x68] sm:$0xff]  ;;  %2476 = vst.msk [vmem:[#allocation3 + $0x148] sm:$0xff] %vm55_vm0, %v2213_v4  ;;  %v2405_v11 = vld [vmem:[#allocation2 + $0x70] sm:$0xff] }
 0x361   :  { %v2276_v7 = vld [vmem:[#allocation2 + $0x64] sm:$0xff]  ;;  %2157 = vst.msk [vmem:[#allocation3 + $0x150] sm:$0xff] %vm55_vm0, %v2149_v6  ;;  %v2341_v8 = vld [vmem:[#allocation2 + $0x6e] sm:$0xff]  ;;  %2412 = vst.msk [vmem:[#allocation3 + $0x140] sm:$0xff] %vm55_vm0, %v2149_v6 }
 0x362   :  { %2370 = vrot.lane.b32.xlu0 %v2352_v1, %s8493_s18  ;;  %2284 = vst.msk [vmem:[#allocation3 + $0x130] sm:$0xff] %vm55_vm0, %v2276_v7  ;;  %v2340_v9 = vld [vmem:[#allocation2 + $0x66] sm:$0xff]  ;;  %2349 = vst.msk [vmem:[#allocation3 + $0x168] sm:$0xff] %vm55_vm0, %v2341_v8  ;;  %v2355_v30 = vld [vmem:[#allocation2 + $0x4f] sm:$0xff] }
 0x363   :  { %v2277_v10 = vld [vmem:[#allocation2 + $0x6c] sm:$0xff]  ;;  %2372 = vrot.lane.b32.xlu1 %v2353_v2, %s8493_s18  ;;  %2348 = vst.msk [vmem:[#allocation3 + $0x138] sm:$0xff] %vm55_vm0, %v2340_v9  ;;  %2413 = vst.msk [vmem:[#allocation3 + $0x170] sm:$0xff] %vm55_vm0, %v2405_v11  ;;  %v2228_v16 = vld [vmem:[#allocation2 + $0x63] sm:$0xff] }
 0x364   :  { %2285 = vst.msk [vmem:[#allocation3 + $0x160] sm:$0xff] %vm55_vm0, %v2277_v10  ;;  %2477 = vst.msk [vmem:[#allocation3 + $0x178] sm:$0xff] %vm55_vm0, %v2469_v13  ;;  %v2229_v18 = vld [vmem:[#allocation2 + $0x6b] sm:$0xff]  ;;  %v2164_v20 = vld [vmem:[#allocation2 + $0x61] sm:$0xff] }
 0x365   :  { %v2165_v24 = vld [vmem:[#allocation2 + $0x69] sm:$0xff]  ;;  %v2421_v29 = vld [vmem:[#allocation2 + $0x71] sm:$0xff]  ;;  %v8273_v49 = vld [vmem:[%s10544_s5 + $0x100] sm:$0xff]  }
 0x366   :  { %2246 = vrot.lane.b32.xlu0 %v2226_v12, %s8493_s18  ;;  %v2288_v25 = vld [vmem:[#allocation2 + $0x25] sm:$0xff]  ;;  %v2291_v33 = vld [vmem:[#allocation2 + $0x4d] sm:$0xff]  ;;  %v8278_v63 = vld [vmem:[%s10544_s5 + $0x158] sm:$0xff]  }
 0x367   :  { %2248 = vrot.lane.b32.xlu1 %v2227_v14, %s8493_s18  ;;  %v2354_v28 = vld [vmem:[#allocation2 + $0x47] sm:$0xff]  ;;  %v2357_v35 = vld [vmem:[#allocation2 + $0x6f] sm:$0xff]  ;;  %v8279_v2 = vld [vmem:[%s10544_s5 + $0x118] sm:$0xff]  }
 0x368   :  { %v2290_v32 = vld [vmem:[#allocation2 + $0x45] sm:$0xff]  ;;  %v2293_v22 = vld [vmem:[#allocation2 + $0x6d] sm:$0xff] }
 0x369   :  { %v2292_v34 = vld [vmem:[#allocation2 + $0x65] sm:$0xff]  ;;  %v8276_v53 = vld [vmem:[%s10544_s5 + $0x150] sm:$0xff]  }
 0x36a   :  { %2182 = vrot.lane.b32.xlu0 %v2162_v15, %s8493_s18  ;;  %v2356_v36 = vld [vmem:[#allocation2 + $0x67] sm:$0xff]  ;;  %v8277_v46 = vld [vmem:[%s10544_s5 + $0x110] sm:$0xff]  }
 0x36b   :  { %2184 = vrot.lane.b32.xlu1 %v2163_v17, %s8493_s18  ;;  %v8274_v19 = vld [vmem:[%s10544_s5 + $0x148] sm:$0xff]   ;;  %v8280_v4 = vld [vmem:[%s10544_s5 + $0x160] sm:$0xff]  }
 0x36c   :  { %v8275_v52 = vld [vmem:[%s10544_s5 + $0x108] sm:$0xff]   ;;  %v8281_v9 = vld [vmem:[%s10544_s5 + $0x120] sm:$0xff]  }
 0x36d   :  { %v8282_v11 = vld [vmem:[%s10544_s5 + $0x168] sm:$0xff]  }
 0x36e   :  { %2250 = vrot.lane.b32.xlu0 %v2228_v16, %s8493_s18 }
 0x36f   :  { %2252 = vrot.lane.b32.xlu1 %v2229_v18, %s8493_s18  ;;  %v8284_v18 = vld [vmem:[%s10544_s5 + $0x170] sm:$0xff]  }
 0x372   :  { %2186 = vrot.lane.b32.xlu0 %v2164_v20, %s8493_s18 }
 0x373   :  { %2188 = vrot.lane.b32.xlu1 %v2165_v24, %s8493_s18 }
 0x376   :  { %2306 = vrot.lane.b32.xlu0 %v2288_v25, %s8493_s18 }
 0x377   :  { %2308 = vrot.lane.b32.xlu1 %v2289_v59, %s8493_s18 }
 0x37a   :  { %2434 = vrot.lane.b32.xlu0 %v2161_v0, %s8493_s18 }
 0x37b   :  { %2436 = vrot.lane.b32.xlu1 %v2417_v27, %s8493_s18  ;;  %v8285_v27 = vld [vmem:[%s10544_s5 + $0x130] sm:$0xff]  }
 0x37e   :  { %2374 = vrot.lane.b32.xlu0 %v2354_v28, %s8493_s18 }
 0x37f   :  { %2376 = vrot.lane.b32.xlu1 %v2355_v30, %s8493_s18  ;;  %v8286_v30 = vld [vmem:[%s10544_s5 + $0x178] sm:$0xff]  }
 0x382   :  { %2310 = vrot.lane.b32.xlu0 %v2290_v32, %s8493_s18 }
 0x383   :  { %2312 = vrot.lane.b32.xlu1 %v2291_v33, %s8493_s18 }
 0x386   :  { %2438 = vrot.lane.b32.xlu0 %v2163_v17, %s8493_s18  ;;  %v8283_v17 = vld [vmem:[%s10544_s5 + $0x128] sm:$0xff]  }
 0x387   :  { %2440 = vrot.lane.b32.xlu1 %v2419_v26, %s8493_s18 }
 0x38a   :  { %2314 = vrot.lane.b32.xlu0 %v2292_v34, %s8493_s18 }
 0x38b   :  { %2380 = vrot.lane.b32.xlu1 %v2357_v35, %s8493_s18  ;;  %v8287_v35 = vld [vmem:[%s10544_s5 + $0x138] sm:$0xff]  }
 0x38e   :  { %2378 = vrot.lane.b32.xlu0 %v2356_v36, %s8493_s18 }
 0x38f   :  { %2316 = vrot.lane.b32.xlu1 %v2293_v22, %s8493_s18 }
 0x392   :  { %2442 = vrot.lane.b32.xlu0 %v2165_v24, %s8493_s18 }
 0x393   :  { %2444 = vrot.lane.b32.xlu1 %v2421_v29, %s8493_s18 }
 0x3b7   :  { %v2239_v37 = vpop.permute.xlu0 %2238 }
 0x3b8   :  { %2262 = vst.msk [vmem:[#allocation3 + $0x8] sm:$0xff] %vm193_vm2, %v2239_v37 }
 0x3b9   :  { %v2241_v38 = vpop.permute.xlu1 %2240 }
 0x3ba   :  { %2263 = vst.msk [vmem:[#allocation3 + $0x38] sm:$0xff] %vm193_vm2, %v2241_v38 }
 0x3bb   :  { %v2175_v21 = vpop.permute.xlu0 %2174 }
 0x3bc   :  { %2198 = vst.msk [vmem:[#allocation3] sm:$0xff] %vm193_vm2, %v2175_v21 }
 0x3bd   :  { %v2177_v61 = vpop.permute.xlu1 %2176 }
 0x3be   :  { %2199 = vst.msk [vmem:[#allocation3 + $0x30] sm:$0xff] %vm193_vm2, %v2177_v61 }
 0x3bf   :  { %v2479_v41 = vld [vmem:[#allocation3 + $0x8] sm:$0xff] }
 0x3c0   :  { %v2303_v39 = vpop.permute.xlu0 %2302 }
 0x3c1   :  { %2326 = vst.msk [vmem:[#allocation3 + $0x10] sm:$0xff] %vm193_vm2, %v2303_v39  ;;  %v2369_v40 = vpop.permute.xlu1 %2368  ;;  %v2485_v42 = vld [vmem:[#allocation3 + $0x38] sm:$0xff] }
 0x3c2   :  { %2391 = vst.msk [vmem:[#allocation3 + $0x48] sm:$0xff] %vm193_vm2, %v2369_v40  ;;  %v2527_v43 = vpack.c.bf16 %v2485_v42, %v2479_v41 }
 0x3c3   :  { %v2478_v47 = vld [vmem:[#allocation3] sm:$0xff] }
 0x3c4   :  { %v2367_v44 = vpop.permute.xlu0 %2366  ;;  %2973 = vmatprep.mubr.bf16.mxu0 %v2527_v43 }
 0x3c5   :  { %2390 = vst.msk [vmem:[#allocation3 + $0x18] sm:$0xff] %vm193_vm2, %v2367_v44  ;;  %v2305_v45 = vpop.permute.xlu1 %2304  ;;  %v2484_v48 = vld [vmem:[#allocation3 + $0x30] sm:$0xff]  ;;  %v2483_v44 = vld [vmem:[#allocation3 + $0x28] sm:$0xff] }
 0x3c6   :  { %2327 = vst.msk [vmem:[#allocation3 + $0x40] sm:$0xff] %vm193_vm2, %v2305_v45  ;;  %v2526_v50 = vpack.c.bf16 %v2484_v48, %v2478_v47  ;;  %v2489_v45 = vld [vmem:[#allocation3 + $0x58] sm:$0xff] }
 0x3c8   :  { %v2431_v51 = vpop.permute.xlu0 %2430  ;;  %2974 = vmatmul.mubr.bf16.vlgmr.msra.gmra.mrb[48].mxu0 %v2526_v50  ;;  %v2480_v60 = vld [vmem:[#allocation3 + $0x10] sm:$0xff] }
 0x3c9   :  { %2454 = vst.msk [vmem:[#allocation3 + $0x20] sm:$0xff] %vm193_vm2, %v2431_v51  ;;  %v2433_v31 = vpop.permute.xlu1 %2432  ;;  %7500 = vmatpush3.bf16.msra.mxu0 %v8273_v49  ;;  %v2487_v56 = vld [vmem:[#allocation3 + $0x48] sm:$0xff]  ;;  %v2531_v51 = vpack.c.bf16 %v2489_v45, %v2483_v44 }
 0x3ca   :  { %2455 = vst.msk [vmem:[#allocation3 + $0x50] sm:$0xff] %vm193_vm2, %v2433_v31  ;;  %7501 = vmatprep.subr.bf16.mxu0 %v8274_v19 }
 0x3cc   :  { %v2243_v54 = vpop.permute.xlu0 %2242  ;;  %v2481_v55 = vld [vmem:[#allocation3 + $0x18] sm:$0xff] }
 0x3cd   :  { %2264 = vst.msk [vmem:[#allocation3 + $0x68] sm:$0xff] %vm193_vm2, %v2243_v54  ;;  %v2529_v57 = vpack.c.bf16 %v2487_v56, %v2481_v55  ;;  %v2245_v58 = vpop.permute.xlu1 %2244  ;;  %v2486_v23 = vld [vmem:[#allocation3 + $0x40] sm:$0xff]  ;;  %7502 = vmatpush3.bf16.msra.mxu0 %v8275_v52 }
 0x3ce   :  { %2265 = vst.msk [vmem:[#allocation3 + $0x98] sm:$0xff] %vm193_vm2, %v2245_v58  ;;  %v2528_v62 = vpack.c.bf16 %v2486_v23, %v2480_v60  ;;  %7503 = vmatprep.subr.bf16.mxu0 %v8276_v53  ;;  %v2501_v58 = vld [vmem:[#allocation3 + $0xb8] sm:$0xff] }
 0x3cf   :  { %3038 = vmatprep.mubr.bf16.mxu1 %v2529_v57  ;;  %v2495_v57 = vld [vmem:[#allocation3 + $0x88] sm:$0xff] }
 0x3d0   :  { %v2179_v0 = vpop.permute.xlu0 %2178  ;;  %3039 = vmatmul.mubr.bf16.vlgmr.msra.gmra.mrb[48].mxu1 %v2528_v62  ;;  %v2482_v23 = vld [vmem:[#allocation3 + $0x20] sm:$0xff] }
 0x3d1   :  { %2200 = vst.msk [vmem:[#allocation3 + $0x60] sm:$0xff] %vm193_vm2, %v2179_v0  ;;  %v2181_v1 = vpop.permute.xlu1 %2180  ;;  %7504 = vmatpush3.bf16.msra.mxu0 %v8277_v46  ;;  %v2488_v56 = vld [vmem:[#allocation3 + $0x50] sm:$0xff] }
 0x3d2   :  { %2201 = vst.msk [vmem:[#allocation3 + $0x90] sm:$0xff] %vm193_vm2, %v2181_v1  ;;  %7505 = vmatprep.subr.bf16.mxu0 %v8278_v63  ;;  %v2530_v46 = vpack.c.bf16 %v2488_v56, %v2482_v23  ;;  %v2537_v63 = vpack.c.bf16 %v2501_v58, %v2495_v57  ;;  %v8295_v56 = vld [vmem:[%s10546_s7 + $0x80] sm:$0xff]   ;;  %v8291_v57 = vld [vmem:[%s10546_s7 + $0x8] sm:$0xff]  }
 0x3d3   :  { %v8297_v58 = vld [vmem:[%s10546_s7 + $0xc8] sm:$0xff]  }
 0x3d4   :  { %v2371_v5 = vpop.permute.xlu0 %2370  ;;  %v2491_v7 = vld [vmem:[#allocation3 + $0x68] sm:$0xff] }
 0x3d5   :  { %2392 = vst.msk [vmem:[#allocation3 + $0x78] sm:$0xff] %vm193_vm2, %v2371_v5  ;;  %v2373_v6 = vpop.permute.xlu1 %2372  ;;  %v2497_v8 = vld [vmem:[#allocation3 + $0x98] sm:$0xff]  ;;  %7506 = vmatpush3.bf16.msra.mxu0 %v8279_v2  ;;  %v8299_v23 = vld [vmem:[%s10546_s7 + $0x88] sm:$0xff]  }
 0x3d6   :  { %2393 = vst.msk [vmem:[#allocation3 + $0xa8] sm:$0xff] %vm193_vm2, %v2373_v6  ;;  %v2533_v10 = vpack.c.bf16 %v2497_v8, %v2491_v7  ;;  %7507 = vmatprep.subr.bf16.mxu0 %v8280_v4  ;;  %v2507_v7 = vld [vmem:[#allocation3 + $0xe8] sm:$0xff]  ;;  %v2513_v8 = vld [vmem:[#allocation3 + $0x118] sm:$0xff] }
 0x3d8   :  { %v2247_v12 = vpop.permute.xlu0 %2246  ;;  %2981 = vmatprep.mubr.bf16.mxu0 %v2533_v10  ;;  %v2490_v14 = vld [vmem:[#allocation3 + $0x60] sm:$0xff] }
 0x3d9   :  { %2266 = vst.msk [vmem:[#allocation3 + $0xc8] sm:$0xff] %vm193_vm2, %v2247_v12  ;;  %v2249_v13 = vpop.permute.xlu1 %2248  ;;  %v2496_v15 = vld [vmem:[#allocation3 + $0x90] sm:$0xff]  ;;  %7508 = vmatpush3.bf16.msra.mxu0 %v8281_v9 }
 0x3da   :  { %2267 = vst.msk [vmem:[#allocation3 + $0xf8] sm:$0xff] %vm193_vm2, %v2249_v13  ;;  %v2532_v16 = vpack.c.bf16 %v2496_v15, %v2490_v14  ;;  %7509 = vmatprep.subr.bf16.mxu0 %v8282_v11 }
 0x3dc   :  { %v2183_v20 = vpop.permute.xlu0 %2182  ;;  %2982 = vmatmul.mubr.bf16.gmra.mrb[52].mxu0 %v2532_v16  ;;  %v2493_v25 = vld [vmem:[#allocation3 + $0x78] sm:$0xff] }
 0x3dd   :  { %2202 = vst.msk [vmem:[#allocation3 + $0xc0] sm:$0xff] %vm193_vm2, %v2183_v20  ;;  %v2185_v24 = vpop.permute.xlu1 %2184  ;;  %v2499_v59 = vld [vmem:[#allocation3 + $0xa8] sm:$0xff]  ;;  %7510 = vmatpush3.bf16.msra.mxu0 %v8283_v17  ;;  %v2543_v17 = vpack.c.bf16 %v2513_v8, %v2507_v7 }
 0x3de   :  { %2203 = vst.msk [vmem:[#allocation3 + $0xf0] sm:$0xff] %vm193_vm2, %v2185_v24  ;;  %v2535_v28 = vpack.c.bf16 %v2499_v59, %v2493_v25  ;;  %7511 = vmatprep.subr.bf16.mxu0 %v8284_v18  ;;  %v2519_v24 = vld [vmem:[#allocation3 + $0x148] sm:$0xff]  ;;  %v2525_v25 = vld [vmem:[#allocation3 + $0x178] sm:$0xff] }
 0x3e0   :  { %v2251_v32 = vpop.permute.xlu0 %2250  ;;  %3046 = vmatprep.mubr.bf16.mxu1 %v2535_v28  ;;  %v2503_v26 = vld [vmem:[#allocation3 + $0xc8] sm:$0xff] }
 0x3e1   :  { %2268 = vst.msk [vmem:[#allocation3 + $0x128] sm:$0xff] %vm193_vm2, %v2251_v32  ;;  %v2253_v33 = vpop.permute.xlu1 %2252  ;;  %v2509_v34 = vld [vmem:[#allocation3 + $0xf8] sm:$0xff]  ;;  %7512 = vmatpush3.bf16.msra.mxu0 %v8285_v27 }
 0x3e2   :  { %2269 = vst.msk [vmem:[#allocation3 + $0x158] sm:$0xff] %vm193_vm2, %v2253_v33  ;;  %v2539_v36 = vpack.c.bf16 %v2509_v34, %v2503_v26  ;;  %7513 = vmatprep.subr.bf16.mxu0 %v8286_v30  ;;  %v2549_v30 = vpack.c.bf16 %v2525_v25, %v2519_v24 }
 0x3e4   :  { %v2187_v22 = vpop.permute.xlu0 %2186  ;;  %2989 = vmatprep.mubr.bf16.mxu0 %v2539_v36  ;;  %v2502_v37 = vld [vmem:[#allocation3 + $0xc0] sm:$0xff] }
 0x3e5   :  { %2204 = vst.msk [vmem:[#allocation3 + $0x120] sm:$0xff] %vm193_vm2, %v2187_v22  ;;  %v2189_v29 = vpop.permute.xlu1 %2188  ;;  %v2508_v38 = vld [vmem:[#allocation3 + $0xf0] sm:$0xff]  ;;  %7514 = vmatpush3.bf16.msra.mxu0 %v8287_v35 }
 0x3e6   :  { %2205 = vst.msk [vmem:[#allocation3 + $0x150] sm:$0xff] %vm193_vm2, %v2189_v29  ;;  %v2538_v21 = vpack.c.bf16 %v2508_v38, %v2502_v37 }
 0x3e8   :  { %v2307_v61 = vpop.permute.xlu0 %2306  ;;  %2990 = vmatmul.mubr.bf16.gmra.mrb[56].mxu0 %v2538_v21  ;;  %v2515_v40 = vld [vmem:[#allocation3 + $0x128] sm:$0xff] }
 0x3e9   :  { %2328 = vst.msk [vmem:[#allocation3 + $0x70] sm:$0xff] %vm193_vm2, %v2307_v61  ;;  %v2309_v39 = vpop.permute.xlu1 %2308  ;;  %v2521_v41 = vld [vmem:[#allocation3 + $0x158] sm:$0xff] }
 0x3ea   :  { %2329 = vst.msk [vmem:[#allocation3 + $0xa0] sm:$0xff] %vm193_vm2, %v2309_v39  ;;  %v2545_v42 = vpack.c.bf16 %v2521_v41, %v2515_v40 }
 0x3ec   :  { %v2435_v43 = vpop.permute.xlu0 %2434  ;;  %2997 = vmatprep.mubr.bf16.mxu0 %v2545_v42  ;;  %v2514_v48 = vld [vmem:[#allocation3 + $0x120] sm:$0xff] }
 0x3ed   :  { %2456 = vst.msk [vmem:[#allocation3 + $0x80] sm:$0xff] %vm193_vm2, %v2435_v43  ;;  %v2437_v47 = vpop.permute.xlu1 %2436  ;;  %v2520_v49 = vld [vmem:[#allocation3 + $0x150] sm:$0xff]  ;;  %v9619_v42 = vld [vmem:[%s10545_s6] ss:$0 sm:$0xff] }
 0x3ee   :  { %2457 = vst.msk [vmem:[#allocation3 + $0xb0] sm:$0xff] %vm193_vm2, %v2437_v47  ;;  %v2544_v50 = vpack.c.bf16 %v2520_v49, %v2514_v48 }
 0x3f0   :  { %v2375_v19 = vpop.permute.xlu0 %2374  ;;  %2998 = vmatmul.mubr.bf16.gmra.mrb[60].mxu0 %v2544_v50  ;;  %v2492_v52 = vld [vmem:[#allocation3 + $0x70] sm:$0xff] }
 0x3f1   :  { %2394 = vst.msk [vmem:[#allocation3 + $0xd8] sm:$0xff] %vm193_vm2, %v2375_v19  ;;  %v2377_v31 = vpop.permute.xlu1 %2376  ;;  %3103 = vmatprep.mubr.bf16.mxu0 %v2531_v51  ;;  %v2498_v53 = vld [vmem:[#allocation3 + $0xa0] sm:$0xff] }
 0x3f2   :  { %2395 = vst.msk [vmem:[#allocation3 + $0x108] sm:$0xff] %vm193_vm2, %v2377_v31  ;;  %v2534_v54 = vpack.c.bf16 %v2498_v53, %v2492_v52  ;;  %v8288_v31 = vld [vmem:[%s10546_s7 + $0x40] sm:$0xff]   ;;  %v8290_v53 = vld [vmem:[%s10546_s7 + $0x48] sm:$0xff]  }
 0x3f3   :  { %v8289_v52 = vld [vmem:[%s10546_s7] sm:$0xff]   ;;  %7539 = vmatprep.subr.bf16.mxu1 %v8288_v31 }
 0x3f4   :  { %v2311_v55 = vpop.permute.xlu0 %2310  ;;  %3047 = vmatmul.mubr.bf16.gmra.mrb[52].mxu1 %v2534_v54  ;;  %v2494_v12 = vld [vmem:[#allocation3 + $0x80] sm:$0xff] }
 0x3f5   :  { %2330 = vst.msk [vmem:[#allocation3 + $0xd0] sm:$0xff] %vm193_vm2, %v2311_v55  ;;  %v2313_v60 = vpop.permute.xlu1 %2312  ;;  %v2500_v6 = vld [vmem:[#allocation3 + $0xb0] sm:$0xff]  ;;  %v8293_v54 = vld [vmem:[%s10546_s7 + $0xc0] sm:$0xff]   ;;  %7540 = vmatpush3.bf16.msra.mxu1 %v8289_v52 }
 0x3f6   :  { %2331 = vst.msk [vmem:[#allocation3 + $0x100] sm:$0xff] %vm193_vm2, %v2313_v60  ;;  %v2536_v14 = vpack.c.bf16 %v2500_v6, %v2494_v12  ;;  %7579 = vmatprep.subr.bf16.mxu0 %v8293_v54  ;;  %7541 = vmatprep.subr.bf16.mxu1 %v8290_v53  ;;  %v8292_v60 = vld [vmem:[%s10546_s7 + $0x50] sm:$0xff]   ;;  %v8309_v31 = vld [vmem:[%s10546_s7 + $0xe0] sm:$0xff]  }
 0x3f7   :  { %v8310_v52 = vld [vmem:[%s10546_s7 + $0x30] sm:$0xff]  }
 0x3f8   :  { %v2439_v62 = vpop.permute.xlu0 %2438  ;;  %3104 = vmatmul.mubr.bf16.vlgmr.msra.gmra.mrb[64].mxu0 %v2530_v46  ;;  %v2505_v1 = vld [vmem:[#allocation3 + $0xd8] sm:$0xff]  ;;  %v8294_v46 = vld [vmem:[%s10546_s7 + $0x10] sm:$0xff]  }
 0x3f9   :  { %2458 = vst.msk [vmem:[#allocation3 + $0xe0] sm:$0xff] %vm193_vm2, %v2439_v62  ;;  %v2441_v0 = vpop.permute.xlu1 %2440  ;;  %3111 = vmatprep.mubr.bf16.mxu0 %v2537_v63  ;;  %v2511_v2 = vld [vmem:[#allocation3 + $0x108] sm:$0xff]  ;;  %7580 = vmatpush3.bf16.msra.mxu0 %v8295_v56  ;;  %v8296_v63 = vld [vmem:[%s10546_s7 + $0x58] sm:$0xff]  }
 0x3fa   :  { %2459 = vst.msk [vmem:[#allocation3 + $0x110] sm:$0xff] %vm193_vm2, %v2441_v0  ;;  %v2541_v4 = vpack.c.bf16 %v2511_v2, %v2505_v1  ;;  %7581 = vmatprep.subr.bf16.mxu0 %v8297_v58  ;;  %7542 = vmatpush3.bf16.msra.mxu1 %v8291_v57  ;;  %v8311_v58 = vld [vmem:[%s10546_s7 + $0xa0] sm:$0xff]  }
 0x3fb   :  { %7543 = vmatprep.subr.bf16.mxu1 %v8292_v60 }
 0x3fc   :  { %v2315_v5 = vpop.permute.xlu0 %2314  ;;  %3054 = vmatprep.mubr.bf16.mxu1 %v2541_v4  ;;  %v2504_v10 = vld [vmem:[#allocation3 + $0xd0] sm:$0xff] }
 0x3fd   :  { %2332 = vst.msk [vmem:[#allocation3 + $0x130] sm:$0xff] %vm193_vm2, %v2315_v5  ;;  %v2381_v9 = vpop.permute.xlu1 %2380  ;;  %v2510_v11 = vld [vmem:[#allocation3 + $0x100] sm:$0xff]  ;;  %7582 = vmatpush3.bf16.msra.mxu0 %v8299_v23  ;;  %v8298_v5 = vld [vmem:[%s10546_s7 + $0x18] sm:$0xff]  }
 0x3fe   :  { %2397 = vst.msk [vmem:[#allocation3 + $0x168] sm:$0xff] %vm193_vm2, %v2381_v9  ;;  %v2540_v13 = vpack.c.bf16 %v2510_v11, %v2504_v10  ;;  %7544 = vmatpush3.bf16.msra.mxu1 %v8294_v46 }
 0x3ff   :  { %7545 = vmatprep.subr.bf16.mxu1 %v8296_v63 }
 0x400   :  { %v2379_v15 = vpop.permute.xlu0 %2378  ;;  %3055 = vmatmul.mubr.bf16.gmra.mrb[56].mxu1 %v2540_v13  ;;  %3112 = vmatmul.mubr.bf16.gmra.mrb[68].mxu0 %v2536_v14  ;;  %v2506_v27 = vld [vmem:[#allocation3 + $0xe0] sm:$0xff] }
 0x401   :  { %2396 = vst.msk [vmem:[#allocation3 + $0x138] sm:$0xff] %vm193_vm2, %v2379_v15  ;;  %v2317_v16 = vpop.permute.xlu1 %2316  ;;  %3119 = vmatprep.mubr.bf16.mxu0 %v2543_v17  ;;  %v2512_v20 = vld [vmem:[#allocation3 + $0x110] sm:$0xff] }
 0x402   :  { %2333 = vst.msk [vmem:[#allocation3 + $0x160] sm:$0xff] %vm193_vm2, %v2317_v16  ;;  %v2542_v28 = vpack.c.bf16 %v2512_v20, %v2506_v27  ;;  %7546 = vmatpush3.bf16.msra.mxu1 %v8298_v5 }
 0x404   :  { %v2443_v18 = vpop.permute.xlu0 %2442  ;;  %v2516_v34 = vld [vmem:[#allocation3 + $0x130] sm:$0xff] }
 0x405   :  { %2460 = vst.msk [vmem:[#allocation3 + $0x140] sm:$0xff] %vm193_vm2, %v2443_v18  ;;  %v2445_v59 = vpop.permute.xlu1 %2444  ;;  %v2523_v33 = vld [vmem:[#allocation3 + $0x168] sm:$0xff] }
 0x406   :  { %2461 = vst.msk [vmem:[#allocation3 + $0x170] sm:$0xff] %vm193_vm2, %v2445_v59 }
 0x408   :  { %v2517_v32 = vld [vmem:[#allocation3 + $0x138] sm:$0xff]  ;;  %3120 = vmatmul.mubr.bf16.gmra.mrb[72].mxu0 %v2542_v28 }
 0x409   :  { %v2547_v26 = vpack.c.bf16 %v2523_v33, %v2517_v32  ;;  %3127 = vmatprep.mubr.bf16.mxu0 %v2549_v30  ;;  %v2522_v35 = vld [vmem:[#allocation3 + $0x160] sm:$0xff] }
 0x40a   :  { %v2546_v36 = vpack.c.bf16 %v2522_v35, %v2516_v34  ;;  %v8300_v35 = vld [vmem:[%s10546_s7 + $0x60] sm:$0xff]  }
 0x40b   :  { %3062 = vmatprep.mubr.bf16.mxu1 %v2547_v26  ;;  %7547 = vmatprep.subr.bf16.mxu1 %v8300_v35 }
 0x40c   :  { %3063 = vmatmul.mubr.bf16.gmra.mrb[60].mxu1 %v2546_v36  ;;  %v2518_v22 = vld [vmem:[#allocation3 + $0x140] sm:$0xff]  ;;  %v8301_v36 = vld [vmem:[%s10546_s7 + $0xd0] sm:$0xff]  }
 0x40d   :  { %v2524_v29 = vld [vmem:[#allocation3 + $0x170] sm:$0xff]  ;;  %7583 = vmatprep.subr.bf16.mxu0 %v8301_v36 }
 0x40e   :  { %v2548_v37 = vpack.c.bf16 %v2524_v29, %v2518_v22  ;;  %v8302_v22 = vld [vmem:[%s10546_s7 + $0x20] sm:$0xff]   ;;  %v8316_v36 = vld [vmem:[%s10546_s7 + $0xf0] sm:$0xff]  }
 0x40f   :  { %7548 = vmatpush3.bf16.msra.mxu1 %v8302_v22 }
 0x410   :  { %3128 = vmatmul.mubr.bf16.gmra.mrb[76].mxu0 %v2548_v37 }
 0x49b   :  { %v7435_v38 = vpop.f32.mrb[48].mxu0 }
 0x49c   :  { %v7436_v21 = vpop.f32.mrb[49].mxu0 }
 0x49d   :  { %v7437_v61 = vadd.f32 %v7436_v21, %v7435_v38  ;;  %v7438_v39 = vpop.f32.mrb[50].mxu0  ;;  %v8303_v21 = vld [vmem:[%s10546_s7 + $0x90] sm:$0xff]  }
 0x49e   :  { %v7439_v40 = vpop.f32.mrb[51].mxu0  ;;  %7584 = vmatpush3.bf16.msra.mxu0 %v8303_v21 }
 0x49f   :  { %v7440_v41 = vadd.f32 %v7439_v40, %v7438_v39  ;;  %v2976_v45 = vadd.f32 %v7437_v61, %v9619_v42 }
 0x4a1   :  { %v2979_v50 = vadd.f32 %v7440_v41, %v9619_v42  ;;  %v8304_v41 = vld [vmem:[%s10546_s7 + $0x68] sm:$0xff]  }
 0x4a2   :  { %7549 = vmatprep.subr.bf16.mxu1 %v8304_v41  ;;  %v8317_v41 = vld [vmem:[%s10546_s7 + $0xb0] sm:$0xff]  }
 0x4a3   :  { %v7475_v43 = vpop.f32.mrb[48].mxu1 }
 0x4a4   :  { %v7476_v44 = vpop.f32.mrb[49].mxu1 }
 0x4a5   :  { %v7477_v47 = vadd.f32 %v7476_v44, %v7475_v43  ;;  %v7478_v48 = vpop.f32.mrb[50].mxu1  ;;  %v8305_v43 = vld [vmem:[%s10546_s7 + $0xd8] sm:$0xff]   ;;  %v8306_v44 = vld [vmem:[%s10546_s7 + $0x28] sm:$0xff]  }
 0x4a6   :  { %v7479_v49 = vpop.f32.mrb[51].mxu1  ;;  %7585 = vmatprep.subr.bf16.mxu0 %v8305_v43  ;;  %7550 = vmatpush3.bf16.msra.mxu1 %v8306_v44 }
 0x4a7   :  { %v9623_v19 = vadd.f32 %v7477_v47, %v2976_v45  ;;  %v7480_v51 = vadd.f32 %v7479_v49, %v7478_v48  ;;  %v8307_v47 = vld [vmem:[%s10546_s7 + $0x98] sm:$0xff]  }
 0x4a8   :  { %7586 = vmatpush3.bf16.msra.mxu0 %v8307_v47 }
 0x4a9   :  { %v9637_v55 = vadd.f32 %v7480_v51, %v2979_v50  ;;  %v8308_v51 = vld [vmem:[%s10546_s7 + $0x70] sm:$0xff]   ;;  %7587 = vmatprep.subr.bf16.mxu0 %v8309_v31 }
 0x4aa   :  { %7551 = vmatprep.subr.bf16.mxu1 %v8308_v51 }
 0x4ab   :  { %7552 = vmatpush3.bf16.msra.mxu1 %v8310_v52 }
 0x4ac   :  { %7588 = vmatpush3.bf16.msra.mxu0 %v8311_v58 }
 0x4af   :  { %v7441_v62 = vpop.f32.mrb[52].mxu0 }
 0x4b0   :  { %v7442_v0 = vpop.f32.mrb[53].mxu0 }
 0x4b1   :  { %v7443_v1 = vadd.f32 %v7442_v0, %v7441_v62  ;;  %v7444_v2 = vpop.f32.mrb[54].mxu0 }
 0x4b2   :  { %v7445_v4 = vpop.f32.mrb[55].mxu0 }
 0x4b3   :  { %v7446_v6 = vadd.f32 %v7445_v4, %v7444_v2  ;;  %v2984_v25 = vadd.f32 %v7443_v1, %v9619_v42 }
 0x4b5   :  { %v2987_v30 = vadd.f32 %v7446_v6, %v9619_v42 }
 0x4bb   :  { %v7447_v7 = vpop.f32.mrb[56].mxu0 }
 0x4bc   :  { %v7448_v8 = vpop.f32.mrb[57].mxu0 }
 0x4bd   :  { %v7449_v9 = vadd.f32 %v7448_v8, %v7447_v7  ;;  %v7450_v10 = vpop.f32.mrb[58].mxu0 }
 0x4be   :  { %v7451_v11 = vpop.f32.mrb[59].mxu0 }
 0x4bf   :  { %v7452_v12 = vadd.f32 %v7451_v11, %v7450_v10  ;;  %v2992_v53 = vadd.f32 %v7449_v9, %v9619_v42 }
 0x4c1   :  { %v2995_v60 = vadd.f32 %v7452_v12, %v9619_v42 }
 0x4c3   :  { %v7453_v13 = vpop.f32.mrb[60].mxu0 }
 0x4c4   :  { %v7454_v14 = vpop.f32.mrb[61].mxu0 }
 0x4c5   :  { %v9663_v15 = vadd.f32 %v7454_v14, %v7453_v13  ;;  %v7456_v17 = vpop.f32.mrb[62].mxu0 }
 0x4c6   :  { %v7457_v16 = vpop.f32.mrb[63].mxu0 }
 0x4c7   :  { %v9665_v18 = vadd.f32 %v7457_v16, %v7456_v17  ;;  %v7481_v20 = vpop.f32.mrb[52].mxu1 }
 0x4c8   :  { %v7482_v24 = vpop.f32.mrb[53].mxu1 }
 0x4c9   :  { %v7483_v59 = vadd.f32 %v7482_v24, %v7481_v20  ;;  %v7484_v27 = vpop.f32.mrb[54].mxu1  ;;  %v3003_v47 = vadd.f32 %v9665_v18, %v9619_v42  ;;  %v8320_v18 = vld [vmem:[%s10546_s7 + $0x140] sm:$0xff]  }
 0x4ca   :  { %v7485_v28 = vpop.f32.mrb[55].mxu1 }
 0x4cb   :  { %v3049_v32 = vadd.f32 %v7483_v59, %v2984_v25  ;;  %v7486_v33 = vadd.f32 %v7485_v28, %v7484_v27  ;;  %v7515_v26 = vpop.f32.mrb[64].mxu0  ;;  %v8312_v59 = vld [vmem:[%s10546_s7 + $0x78] sm:$0xff]   ;;  %v8313_v27 = vld [vmem:[%s10546_s7 + $0xe8] sm:$0xff]  }
 0x4cc   :  { %v7516_v34 = vpop.f32.mrb[65].mxu0  ;;  %7553 = vmatprep.subr.bf16.mxu1 %v8312_v59  ;;  %7589 = vmatprep.subr.bf16.mxu0 %v8313_v27 }
 0x4cd   :  { %v3052_v29 = vadd.f32 %v7486_v33, %v2987_v30  ;;  %v7517_v37 = vadd.f32 %v7516_v34, %v7515_v26  ;;  %v7518_v38 = vpop.f32.mrb[66].mxu0  ;;  %v8314_v30 = vld [vmem:[%s10546_s7 + $0x38] sm:$0xff]  }
 0x4ce   :  { %v7519_v61 = vpop.f32.mrb[67].mxu0  ;;  %7554 = vmatpush3.bf16.msra.mxu1 %v8314_v30 }
 0x4cf   :  { %v3106_v39 = vadd.f32 %v7517_v37, %v9623_v19  ;;  %v7520_v40 = vadd.f32 %v7519_v61, %v7518_v38  ;;  %v3000_v38 = vadd.f32 %v9663_v15, %v9619_v42  ;;  %v8318_v15 = vld [vmem:[%s10546_s7 + $0xf8] sm:$0xff]   ;;  %7619 = vmatprep.subr.bf16.mxu1 %v8320_v18 }
 0x4d0   :  { %v8319_v42 = vld [vmem:[%s10546_s7 + $0xb8] sm:$0xff]  }
 0x4d1   :  { %3136 = vst.msk [vmem:[#allocation2 + $0x5] sm:$0xff] %vm55_vm0, %v3106_v39  ;;  %v3109_v45 = vadd.f32 %v7520_v40, %v9637_v55 }
 0x4d3   :  { %3137 = vst.msk [vmem:[#allocation2 + $0xd] sm:$0xff] %vm55_vm0, %v3109_v45  ;;  %v7487_v48 = vpop.f32.mrb[56].mxu1  ;;  %v7521_v49 = vpop.f32.mrb[68].mxu0 }
 0x4d4   :  { %v7488_v50 = vpop.f32.mrb[57].mxu1  ;;  %v7522_v19 = vpop.f32.mrb[69].mxu0 }
 0x4d5   :  { %v7489_v54 = vadd.f32 %v7488_v50, %v7487_v48  ;;  %v7523_v55 = vadd.f32 %v7522_v19, %v7521_v49  ;;  %v7490_v56 = vpop.f32.mrb[58].mxu1  ;;  %v7524_v57 = vpop.f32.mrb[70].mxu0 }
 0x4d6   :  { %v7491_v23 = vpop.f32.mrb[59].mxu1  ;;  %v7525_v46 = vpop.f32.mrb[71].mxu0 }
 0x4d7   :  { %v3057_v62 = vadd.f32 %v7489_v54, %v2992_v53  ;;  %v3114_v63 = vadd.f32 %v7523_v55, %v3049_v32  ;;  %v7492_v0 = vadd.f32 %v7491_v23, %v7490_v56  ;;  %v7526_v1 = vadd.f32 %v7525_v46, %v7524_v57  ;;  %v8315_v32 = vld [vmem:[%s10546_s7 + $0xa8] sm:$0xff]  }
 0x4d8   :  { %v3224_v2 = vld [vmem:[#allocation2 + $0x3] sm:$0xff]  ;;  %7590 = vmatpush3.bf16.msra.mxu0 %v8315_v32 }
 0x4d9   :  { %3138 = vst.msk [vmem:[#allocation2 + $0x25] sm:$0xff] %vm55_vm0, %v3114_v63  ;;  %v3060_v4 = vadd.f32 %v7492_v0, %v2995_v60  ;;  %v3117_v5 = vadd.f32 %v7526_v1, %v3052_v29  ;;  %3240 = vrot.lane.b32.xlu0 %v3224_v2, %s8493_s18  ;;  %v3208_v6 = vld [vmem:[#allocation2 + $0x2] sm:$0xff]  ;;  %7591 = vmatprep.subr.bf16.mxu0 %v8316_v36 }
 0x4da   :  { %v3144_v7 = vld [vmem:[#allocation2] sm:$0xff]  ;;  %v3225_v9 = vld [vmem:[#allocation2 + $0xb] sm:$0xff]  ;;  %3216 = vst.msk [vmem:[#allocation3 + $0x8] sm:$0xff] %vm55_vm0, %v3208_v6 }
 0x4db   :  { %v3272_v8 = vld [vmem:[#allocation2 + $0x4] sm:$0xff]  ;;  %3152 = vst.msk [vmem:[#allocation3] sm:$0xff] %vm55_vm0, %v3144_v7  ;;  %3139 = vst.msk [vmem:[#allocation2 + $0x2d] sm:$0xff] %vm55_vm0, %v3117_v5  ;;  %v7527_v10 = vpop.f32.mrb[72].mxu0  ;;  %3242 = vrot.lane.b32.xlu1 %v3225_v9, %s8493_s18  ;;  %v3337_v16 = vld [vmem:[#allocation2 + $0xe] sm:$0xff] }
 0x4dc   :  { %3280 = vst.msk [vmem:[#allocation3 + $0x10] sm:$0xff] %vm55_vm0, %v3272_v8  ;;  %v3160_v11 = vld [vmem:[#allocation2 + $0x1] sm:$0xff]  ;;  %v7528_v12 = vpop.f32.mrb[73].mxu0  ;;  %v9718_v13 = vld [vmem:[#allocation2 + $0x9] sm:$0xff]  ;;  %3345 = vst.msk [vmem:[#allocation3 + $0x48] sm:$0xff] %vm55_vm0, %v3337_v16  ;;  %7592 = vmatpush3.bf16.msra.mxu0 %v8317_v41 }
 0x4dd   :  { %v3209_v14 = vld [vmem:[#allocation2 + $0xa] sm:$0xff]  ;;  %v7529_v20 = vadd.f32 %v7528_v12, %v7527_v10  ;;  %v7530_v24 = vpop.f32.mrb[74].mxu0  ;;  %3176 = vrot.lane.b32.xlu0 %v3160_v11, %s8493_s18  ;;  %7593 = vmatprep.subr.bf16.mxu0 %v8318_v15  ;;  %v3465_v0 = vld [vmem:[#allocation2 + $0x12] sm:$0xff] }
 0x4de   :  { %v3145_v17 = vld [vmem:[#allocation2 + $0x8] sm:$0xff]  ;;  %3217 = vst.msk [vmem:[#allocation3 + $0x38] sm:$0xff] %vm55_vm0, %v3209_v14  ;;  %3472 = vst.msk [vmem:[#allocation3 + $0x28] sm:$0xff] %vm55_vm0, %v3209_v14  ;;  %v7531_v28 = vpop.f32.mrb[75].mxu0  ;;  %v3401_v22 = vld [vmem:[#allocation2 + $0x10] sm:$0xff] }
 0x4df   :  { %3153 = vst.msk [vmem:[#allocation3 + $0x30] sm:$0xff] %vm55_vm0, %v3145_v17  ;;  %v3336_v25 = vld [vmem:[#allocation2 + $0x6] sm:$0xff]  ;;  %3408 = vst.msk [vmem:[#allocation3 + $0x20] sm:$0xff] %vm55_vm0, %v3145_v17  ;;  %v3122_v26 = vadd.f32 %v7529_v20, %v3057_v62  ;;  %v7532_v34 = vadd.f32 %v7531_v28, %v7530_v24  ;;  %v7493_v35 = vpop.f32.mrb[60].mxu1  ;;  %3178 = vrot.lane.b32.xlu1 %v9718_v13, %s8493_s18  ;;  %v3353_v45 = vld [vmem:[#allocation2 + $0xf] sm:$0xff] }
 0x4e0   :  { %3344 = vst.msk [vmem:[#allocation3 + $0x18] sm:$0xff] %vm55_vm0, %v3336_v25  ;;  %v3273_v33 = vld [vmem:[#allocation2 + $0xc] sm:$0xff]  ;;  %v7494_v29 = vpop.f32.mrb[61].mxu1  ;;  %3409 = vst.msk [vmem:[#allocation3 + $0x50] sm:$0xff] %vm55_vm0, %v3401_v22  ;;  %v3210_v40 = vld [vmem:[#allocation2 + $0x22] sm:$0xff]  ;;  %7594 = vmatpush3.bf16.msra.mxu0 %v8319_v42 }
 0x4e1   :  { %3281 = vst.msk [vmem:[#allocation3 + $0x40] sm:$0xff] %vm55_vm0, %v3273_v33  ;;  %v3288_v37 = vld [vmem:[#allocation2 + $0x5] sm:$0xff]  ;;  %3140 = vst.msk [vmem:[#allocation2 + $0x45] sm:$0xff] %vm55_vm0, %v3122_v26  ;;  %v3125_v21 = vadd.f32 %v7532_v34, %v3060_v4  ;;  %v7495_v61 = vadd.f32 %v7494_v29, %v7493_v35  ;;  %v7496_v39 = vpop.f32.mrb[62].mxu1  ;;  %v3289_v31 = vld [vmem:[#allocation2 + $0xd] sm:$0xff] }
 0x4e2   :  { %3304 = vrot.lane.b32.xlu0 %v3288_v37, %s8493_s18  ;;  %v3146_v43 = vld [vmem:[#allocation2 + $0x20] sm:$0xff]  ;;  %v7497_v44 = vpop.f32.mrb[63].mxu1  ;;  %3218 = vst.msk [vmem:[#allocation3 + $0x68] sm:$0xff] %vm55_vm0, %v3210_v40  ;;  %v3211_v52 = vld [vmem:[#allocation2 + $0x2a] sm:$0xff]  ;;  %3473 = vst.msk [vmem:[#allocation3 + $0x58] sm:$0xff] %vm55_vm0, %v3465_v0 }
 0x4e3   :  { %3154 = vst.msk [vmem:[#allocation3 + $0x60] sm:$0xff] %vm55_vm0, %v3146_v43  ;;  %3141 = vst.msk [vmem:[#allocation2 + $0x4d] sm:$0xff] %vm55_vm0, %v3125_v21  ;;  %v3065_v48 = vadd.f32 %v7495_v61, %v3000_v38  ;;  %v7498_v49 = vadd.f32 %v7497_v44, %v7496_v39  ;;  %v7533_v50 = vpop.f32.mrb[76].mxu0  ;;  %3370 = vrot.lane.b32.xlu1 %v3353_v45, %s8493_s18  ;;  %v3352_v19 = vld [vmem:[#allocation2 + $0x7] sm:$0xff]  ;;  %v3403_v1 = vld [vmem:[#allocation2 + $0x30] sm:$0xff] }
 0x4e4   :  { %v7534_v51 = vpop.f32.mrb[77].mxu0  ;;  %v3147_v53 = vld [vmem:[#allocation2 + $0x28] sm:$0xff]  ;;  %3219 = vst.msk [vmem:[#allocation3 + $0x98] sm:$0xff] %vm55_vm0, %v3211_v52  ;;  %3474 = vst.msk [vmem:[#allocation3 + $0x88] sm:$0xff] %vm55_vm0, %v3211_v52  ;;  %v3467_v17 = vld [vmem:[#allocation2 + $0x32] sm:$0xff] }
 0x4e5   :  { %v3068_v54 = vadd.f32 %v7498_v49, %v3003_v47  ;;  %v7535_v55 = vadd.f32 %v7534_v51, %v7533_v50  ;;  %v7536_v56 = vpop.f32.mrb[78].mxu0  ;;  %3155 = vst.msk [vmem:[#allocation3 + $0x90] sm:$0xff] %vm55_vm0, %v3147_v53  ;;  %v3338_v57 = vld [vmem:[#allocation2 + $0x26] sm:$0xff]  ;;  %3410 = vst.msk [vmem:[#allocation3 + $0x80] sm:$0xff] %vm55_vm0, %v3147_v53  ;;  %v3339_v60 = vld [vmem:[#allocation2 + $0x2e] sm:$0xff] }
 0x4e6   :  { %3368 = vrot.lane.b32.xlu0 %v3352_v19, %s8493_s18  ;;  %v7537_v58 = vpop.f32.mrb[79].mxu0  ;;  %3346 = vst.msk [vmem:[#allocation3 + $0x78] sm:$0xff] %vm55_vm0, %v3338_v57  ;;  %v3274_v23 = vld [vmem:[#allocation2 + $0x24] sm:$0xff]  ;;  %v3275_v46 = vld [vmem:[#allocation2 + $0x2c] sm:$0xff]  ;;  %3347 = vst.msk [vmem:[#allocation3 + $0xa8] sm:$0xff] %vm55_vm0, %v3339_v60 }
 0x4e7   :  { %v3130_v62 = vadd.f32 %v7535_v55, %v3065_v48  ;;  %v7538_v63 = vadd.f32 %v7537_v58, %v7536_v56  ;;  %3306 = vrot.lane.b32.xlu1 %v3289_v31, %s8493_s18  ;;  %3282 = vst.msk [vmem:[#allocation3 + $0x70] sm:$0xff] %vm55_vm0, %v3274_v23  ;;  %3283 = vst.msk [vmem:[#allocation3 + $0xa0] sm:$0xff] %vm55_vm0, %v3275_v46  ;;  %v3226_v2 = vld [vmem:[#allocation2 + $0x23] sm:$0xff]  ;;  %v3227_v7 = vld [vmem:[#allocation2 + $0x2b] sm:$0xff] }
 0x4e8   :  { %3411 = vst.msk [vmem:[#allocation3 + $0xb0] sm:$0xff] %vm55_vm0, %v3403_v1  ;;  %v3212_v5 = vld [vmem:[#allocation2 + $0x42] sm:$0xff]  ;;  %3475 = vst.msk [vmem:[#allocation3 + $0xb8] sm:$0xff] %vm55_vm0, %v3467_v17  ;;  %v3417_v41 = vld [vmem:[#allocation2 + $0x11] sm:$0xff] }
 0x4e9   :  { %3142 = vst.msk [vmem:[#allocation2 + $0x65] sm:$0xff] %vm55_vm0, %v3130_v62  ;;  %v3133_v4 = vadd.f32 %v7538_v63, %v3068_v54  ;;  %v3148_v6 = vld [vmem:[#allocation2 + $0x40] sm:$0xff]  ;;  %3220 = vst.msk [vmem:[#allocation3 + $0xc8] sm:$0xff] %vm55_vm0, %v3212_v5  ;;  %v9791_v12 = vld [vmem:[#allocation2 + $0x29] sm:$0xff] }
 0x4ea   :  { %3244 = vrot.lane.b32.xlu0 %v3226_v2, %s8493_s18  ;;  %3156 = vst.msk [vmem:[#allocation3 + $0xc0] sm:$0xff] %vm55_vm0, %v3148_v6  ;;  %v3162_v8 = vld [vmem:[#allocation2 + $0x21] sm:$0xff]  ;;  %v3213_v9 = vld [vmem:[#allocation2 + $0x4a] sm:$0xff]  ;;  %v3469_v34 = vld [vmem:[#allocation2 + $0x52] sm:$0xff] }
 0x4eb   :  { %3143 = vst.msk [vmem:[#allocation2 + $0x6d] sm:$0xff] %vm55_vm0, %v3133_v4  ;;  %3246 = vrot.lane.b32.xlu1 %v3227_v7, %s8493_s18  ;;  %v3149_v10 = vld [vmem:[#allocation2 + $0x48] sm:$0xff]  ;;  %3221 = vst.msk [vmem:[#allocation3 + $0xf8] sm:$0xff] %vm55_vm0, %v3213_v9  ;;  %v3405_v33 = vld [vmem:[#allocation2 + $0x50] sm:$0xff] }
 0x4ec   :  { %3157 = vst.msk [vmem:[#allocation3 + $0xf0] sm:$0xff] %vm55_vm0, %v3149_v10  ;;  %v3340_v11 = vld [vmem:[#allocation2 + $0x46] sm:$0xff]  ;;  %3412 = vst.msk [vmem:[#allocation3 + $0xe0] sm:$0xff] %vm55_vm0, %v3149_v10  ;;  %v3341_v14 = vld [vmem:[#allocation2 + $0x4e] sm:$0xff] }
 0x4ed   :  { %3476 = vst.msk [vmem:[#allocation3 + $0xe8] sm:$0xff] %vm55_vm0, %v3213_v9  ;;  %3348 = vst.msk [vmem:[#allocation3 + $0xd8] sm:$0xff] %vm55_vm0, %v3340_v11  ;;  %v3276_v16 = vld [vmem:[#allocation2 + $0x44] sm:$0xff]  ;;  %v3277_v20 = vld [vmem:[#allocation2 + $0x4c] sm:$0xff] }
 0x4ee   :  { %3180 = vrot.lane.b32.xlu0 %v3162_v8, %s8493_s18  ;;  %3349 = vst.msk [vmem:[#allocation3 + $0x108] sm:$0xff] %vm55_vm0, %v3341_v14  ;;  %v3228_v24 = vld [vmem:[#allocation2 + $0x43] sm:$0xff]  ;;  %3284 = vst.msk [vmem:[#allocation3 + $0xd0] sm:$0xff] %vm55_vm0, %v3276_v16  ;;  %v3229_v27 = vld [vmem:[#allocation2 + $0x4b] sm:$0xff] }
 0x4ef   :  { %3182 = vrot.lane.b32.xlu1 %v9791_v12, %s8493_s18  ;;  %3285 = vst.msk [vmem:[#allocation3 + $0x100] sm:$0xff] %vm55_vm0, %v3277_v20  ;;  %v3164_v28 = vld [vmem:[#allocation2 + $0x41] sm:$0xff]  ;;  %v3165_v26 = vld [vmem:[#allocation2 + $0x49] sm:$0xff]  ;;  %3413 = vst.msk [vmem:[#allocation3 + $0x110] sm:$0xff] %vm55_vm0, %v3405_v33 }
 0x4f0   :  { %v3214_v25 = vld [vmem:[#allocation2 + $0x62] sm:$0xff]  ;;  %3477 = vst.msk [vmem:[#allocation3 + $0x118] sm:$0xff] %vm55_vm0, %v3469_v34  ;;  %v3355_v44 = vld [vmem:[#allocation2 + $0x2f] sm:$0xff]  ;;  %v8327_v33 = vld [vmem:[%s10546_s7 + $0x118] sm:$0xff]  }
 0x4f1   :  { %v3150_v59 = vld [vmem:[#allocation2 + $0x60] sm:$0xff]  ;;  %3222 = vst.msk [vmem:[#allocation3 + $0x128] sm:$0xff] %vm55_vm0, %v3214_v25  ;;  %v3291_v15 = vld [vmem:[#allocation2 + $0x2d] sm:$0xff] }
 0x4f2   :  { %3248 = vrot.lane.b32.xlu0 %v3228_v24, %s8493_s18  ;;  %3158 = vst.msk [vmem:[#allocation3 + $0x120] sm:$0xff] %vm55_vm0, %v3150_v59  ;;  %v3215_v30 = vld [vmem:[#allocation2 + $0x6a] sm:$0xff]  ;;  %v3471_v21 = vld [vmem:[#allocation2 + $0x72] sm:$0xff]  ;;  %v3166_v39 = vld [vmem:[#allocation2 + $0x61] sm:$0xff] }
 0x4f3   :  { %3250 = vrot.lane.b32.xlu1 %v3229_v27, %s8493_s18  ;;  %v3151_v32 = vld [vmem:[#allocation2 + $0x68] sm:$0xff]  ;;  %3223 = vst.msk [vmem:[#allocation3 + $0x158] sm:$0xff] %vm55_vm0, %v3215_v30  ;;  %3478 = vst.msk [vmem:[#allocation3 + $0x148] sm:$0xff] %vm55_vm0, %v3215_v30  ;;  %v3407_v38 = vld [vmem:[#allocation2 + $0x70] sm:$0xff] }
 0x4f4   :  { %3159 = vst.msk [vmem:[#allocation3 + $0x150] sm:$0xff] %vm55_vm0, %v3151_v32  ;;  %3414 = vst.msk [vmem:[#allocation3 + $0x140] sm:$0xff] %vm55_vm0, %v3151_v32  ;;  %v3278_v35 = vld [vmem:[#allocation2 + $0x64] sm:$0xff]  ;;  %v3343_v36 = vld [vmem:[#allocation2 + $0x6e] sm:$0xff] }
 0x4f5   :  { %v3342_v22 = vld [vmem:[#allocation2 + $0x66] sm:$0xff]  ;;  %3286 = vst.msk [vmem:[#allocation3 + $0x130] sm:$0xff] %vm55_vm0, %v3278_v35  ;;  %3351 = vst.msk [vmem:[#allocation3 + $0x168] sm:$0xff] %vm55_vm0, %v3343_v36  ;;  %v3419_v47 = vld [vmem:[#allocation2 + $0x31] sm:$0xff] }
 0x4f6   :  { %3184 = vrot.lane.b32.xlu0 %v3164_v28, %s8493_s18  ;;  %v3230_v29 = vld [vmem:[#allocation2 + $0x63] sm:$0xff]  ;;  %3350 = vst.msk [vmem:[#allocation3 + $0x138] sm:$0xff] %vm55_vm0, %v3342_v22  ;;  %v3279_v37 = vld [vmem:[#allocation2 + $0x6c] sm:$0xff]  ;;  %3415 = vst.msk [vmem:[#allocation3 + $0x170] sm:$0xff] %vm55_vm0, %v3407_v38 }
 0x4f7   :  { %3186 = vrot.lane.b32.xlu1 %v3165_v26, %s8493_s18  ;;  %3287 = vst.msk [vmem:[#allocation3 + $0x160] sm:$0xff] %vm55_vm0, %v3279_v37  ;;  %v3231_v61 = vld [vmem:[#allocation2 + $0x6b] sm:$0xff]  ;;  %3479 = vst.msk [vmem:[#allocation3 + $0x178] sm:$0xff] %vm55_vm0, %v3471_v21  ;;  %v8321_v2 = vld [vmem:[%s10546_s7 + $0x100] sm:$0xff]  }
 0x4f8   :  { %v3167_v40 = vld [vmem:[#allocation2 + $0x69] sm:$0xff]  ;;  %v3421_v19 = vld [vmem:[#allocation2 + $0x51] sm:$0xff]  ;;  %v8328_v34 = vld [vmem:[%s10546_s7 + $0x160] sm:$0xff]  }
 0x4f9   :  { %v3354_v43 = vld [vmem:[#allocation2 + $0x27] sm:$0xff]  ;;  %v3357_v48 = vld [vmem:[#allocation2 + $0x4f] sm:$0xff]  ;;  %v8326_v59 = vld [vmem:[%s10546_s7 + $0x158] sm:$0xff]  }
 0x4fa   :  { %3252 = vrot.lane.b32.xlu0 %v3230_v29, %s8493_s18  ;;  %v3290_v45 = vld [vmem:[#allocation2 + $0x25] sm:$0xff]  ;;  %v3293_v50 = vld [vmem:[#allocation2 + $0x4d] sm:$0xff] }
 0x4fb   :  { %3254 = vrot.lane.b32.xlu1 %v3231_v61, %s8493_s18  ;;  %v3292_v49 = vld [vmem:[#allocation2 + $0x45] sm:$0xff]  ;;  %v3359_v31 = vld [vmem:[#allocation2 + $0x6f] sm:$0xff] }
 0x4fc   :  { %v3294_v51 = vld [vmem:[#allocation2 + $0x65] sm:$0xff]  ;;  %v3295_v53 = vld [vmem:[#allocation2 + $0x6d] sm:$0xff] }
 0x4fd   :  { %v3358_v52 = vld [vmem:[#allocation2 + $0x67] sm:$0xff]  ;;  %v3423_v54 = vld [vmem:[#allocation2 + $0x71] sm:$0xff] }
 0x4fe   :  { %3188 = vrot.lane.b32.xlu0 %v3166_v39, %s8493_s18  ;;  %v8322_v5 = vld [vmem:[%s10546_s7 + $0x148] sm:$0xff]   ;;  %v8324_v9 = vld [vmem:[%s10546_s7 + $0x150] sm:$0xff]   ;;  %v8329_v37 = vld [vmem:[%s10546_s7 + $0x120] sm:$0xff]  }
 0x4ff   :  { %3190 = vrot.lane.b32.xlu1 %v3167_v40, %s8493_s18  ;;  %v8323_v8 = vld [vmem:[%s10546_s7 + $0x108] sm:$0xff]   ;;  %v8325_v24 = vld [vmem:[%s10546_s7 + $0x110] sm:$0xff]  }
 0x500   :  { %v8330_v21 = vld [vmem:[%s10546_s7 + $0x168] sm:$0xff]  }
 0x502   :  { %3432 = vrot.lane.b32.xlu0 %v9718_v13, %s8493_s18  ;;  %v3356_v13 = vld [vmem:[#allocation2 + $0x47] sm:$0xff] }
 0x503   :  { %3434 = vrot.lane.b32.xlu1 %v3417_v41, %s8493_s18 }
 0x506   :  { %3372 = vrot.lane.b32.xlu0 %v3354_v43, %s8493_s18  ;;  %v8331_v43 = vld [vmem:[%s10546_s7 + $0x128] sm:$0xff]  }
 0x507   :  { %3374 = vrot.lane.b32.xlu1 %v3355_v44, %s8493_s18 }
 0x50a   :  { %3308 = vrot.lane.b32.xlu0 %v3290_v45, %s8493_s18  ;;  %v8332_v45 = vld [vmem:[%s10546_s7 + $0x170] sm:$0xff]  }
 0x50b   :  { %3310 = vrot.lane.b32.xlu1 %v3291_v15, %s8493_s18 }
 0x50e   :  { %3436 = vrot.lane.b32.xlu0 %v9791_v12, %s8493_s18 }
 0x50f   :  { %3438 = vrot.lane.b32.xlu1 %v3419_v47, %s8493_s18 }
 0x512   :  { %3376 = vrot.lane.b32.xlu0 %v3356_v13, %s8493_s18 }
 0x513   :  { %3378 = vrot.lane.b32.xlu1 %v3357_v48, %s8493_s18 }
 0x516   :  { %3312 = vrot.lane.b32.xlu0 %v3292_v49, %s8493_s18  ;;  %v8333_v49 = vld [vmem:[%s10546_s7 + $0x130] sm:$0xff]  }
 0x517   :  { %3314 = vrot.lane.b32.xlu1 %v3293_v50, %s8493_s18 }
 0x51a   :  { %3440 = vrot.lane.b32.xlu0 %v3165_v26, %s8493_s18 }
 0x51b   :  { %3442 = vrot.lane.b32.xlu1 %v3421_v19, %s8493_s18  ;;  %v8334_v19 = vld [vmem:[%s10546_s7 + $0x178] sm:$0xff]  }
 0x51e   :  { %3316 = vrot.lane.b32.xlu0 %v3294_v51, %s8493_s18 }
 0x51f   :  { %3382 = vrot.lane.b32.xlu1 %v3359_v31, %s8493_s18 }
 0x522   :  { %3380 = vrot.lane.b32.xlu0 %v3358_v52, %s8493_s18 }
 0x523   :  { %3318 = vrot.lane.b32.xlu1 %v3295_v53, %s8493_s18 }
 0x526   :  { %3444 = vrot.lane.b32.xlu0 %v3167_v40, %s8493_s18 }
 0x527   :  { %3446 = vrot.lane.b32.xlu1 %v3423_v54, %s8493_s18  ;;  %v8335_v54 = vld [vmem:[%s10546_s7 + $0x138] sm:$0xff]  }
 0x54b   :  { %v3241_v55 = vpop.permute.xlu0 %3240 }
 0x54c   :  { %3264 = vst.msk [vmem:[#allocation3 + $0x8] sm:$0xff] %vm193_vm2, %v3241_v55 }
 0x54d   :  { %v3243_v56 = vpop.permute.xlu1 %3242 }
 0x54e   :  { %3265 = vst.msk [vmem:[#allocation3 + $0x38] sm:$0xff] %vm193_vm2, %v3243_v56 }
 0x54f   :  { %v3177_v42 = vpop.permute.xlu0 %3176 }
 0x550   :  { %3200 = vst.msk [vmem:[#allocation3] sm:$0xff] %vm193_vm2, %v3177_v42  ;;  %v3485_v42 = vld [vmem:[#allocation3 + $0x28] sm:$0xff] }
 0x551   :  { %v3179_v18 = vpop.permute.xlu1 %3178 }
 0x552   :  { %3201 = vst.msk [vmem:[#allocation3 + $0x30] sm:$0xff] %vm193_vm2, %v3179_v18  ;;  %v3491_v18 = vld [vmem:[#allocation3 + $0x58] sm:$0xff] }
 0x553   :  { %v3481_v60 = vld [vmem:[#allocation3 + $0x8] sm:$0xff] }
 0x554   :  { %v3305_v57 = vpop.permute.xlu0 %3304 }
 0x555   :  { %3328 = vst.msk [vmem:[#allocation3 + $0x10] sm:$0xff] %vm193_vm2, %v3305_v57  ;;  %v3371_v58 = vpop.permute.xlu1 %3370  ;;  %v3487_v23 = vld [vmem:[#allocation3 + $0x38] sm:$0xff] }
 0x556   :  { %3393 = vst.msk [vmem:[#allocation3 + $0x48] sm:$0xff] %vm193_vm2, %v3371_v58  ;;  %v3529_v46 = vpack.c.bf16 %v3487_v23, %v3481_v60 }
 0x557   :  { %v3480_v0 = vld [vmem:[#allocation3] sm:$0xff] }
 0x558   :  { %v3369_v62 = vpop.permute.xlu0 %3368  ;;  %3975 = vmatprep.mubr.bf16.mxu1 %v3529_v46 }
 0x559   :  { %3392 = vst.msk [vmem:[#allocation3 + $0x18] sm:$0xff] %vm193_vm2, %v3369_v62  ;;  %v3307_v63 = vpop.permute.xlu1 %3306  ;;  %v3486_v1 = vld [vmem:[#allocation3 + $0x30] sm:$0xff]  ;;  %v3533_v62 = vpack.c.bf16 %v3491_v18, %v3485_v42  ;;  %v4258_v42 = vld [vmem:[%s10550_s11] sm:$0xff]  ;;  %v4259_v18 = vld [vmem:[%s10550_s11 + $0x8] sm:$0xff] }
 0x55a   :  { %3329 = vst.msk [vmem:[#allocation3 + $0x40] sm:$0xff] %vm193_vm2, %v3307_v63  ;;  %v3528_v4 = vpack.c.bf16 %v3486_v1, %v3480_v0 }
 0x55c   :  { %v3245_v6 = vpop.permute.xlu0 %3244  ;;  %3976 = vmatmul.mubr.bf16.vlgmr.msra.gmra.mrb[64].mxu1 %v3528_v4  ;;  %v3482_v16 = vld [vmem:[#allocation3 + $0x10] sm:$0xff]  ;;  %v3503_v4 = vld [vmem:[#allocation3 + $0xb8] sm:$0xff] }
 0x55d   :  { %3266 = vst.msk [vmem:[#allocation3 + $0x68] sm:$0xff] %vm193_vm2, %v3245_v6  ;;  %v3247_v7 = vpop.permute.xlu1 %3246  ;;  %7620 = vmatpush3.bf16.msra.mxu1 %v8321_v2  ;;  %v3489_v12 = vld [vmem:[#allocation3 + $0x48] sm:$0xff] }
 0x55e   :  { %3267 = vst.msk [vmem:[#allocation3 + $0x98] sm:$0xff] %vm193_vm2, %v3247_v7  ;;  %7621 = vmatprep.subr.bf16.mxu1 %v8322_v5  ;;  %v3497_v2 = vld [vmem:[#allocation3 + $0x88] sm:$0xff] }
 0x560   :  { %v3181_v10 = vpop.permute.xlu0 %3180  ;;  %v3483_v11 = vld [vmem:[#allocation3 + $0x18] sm:$0xff] }
 0x561   :  { %3202 = vst.msk [vmem:[#allocation3 + $0x60] sm:$0xff] %vm193_vm2, %v3181_v10  ;;  %v3531_v14 = vpack.c.bf16 %v3489_v12, %v3483_v11  ;;  %v3183_v17 = vpop.permute.xlu1 %3182  ;;  %v3488_v20 = vld [vmem:[#allocation3 + $0x40] sm:$0xff]  ;;  %7622 = vmatpush3.bf16.msra.mxu1 %v8323_v8  ;;  %v3539_v12 = vpack.c.bf16 %v3503_v4, %v3497_v2 }
 0x562   :  { %3203 = vst.msk [vmem:[#allocation3 + $0x90] sm:$0xff] %vm193_vm2, %v3183_v17  ;;  %v3530_v25 = vpack.c.bf16 %v3488_v20, %v3482_v16  ;;  %7623 = vmatprep.subr.bf16.mxu1 %v8324_v9 }
 0x563   :  { %4040 = vmatprep.mubr.bf16.mxu0 %v3531_v14 }
 0x564   :  { %v3249_v27 = vpop.permute.xlu0 %3248  ;;  %4041 = vmatmul.mubr.bf16.vlgmr.msra.gmra.mrb[80].mxu0 %v3530_v25  ;;  %v3493_v30 = vld [vmem:[#allocation3 + $0x68] sm:$0xff] }
 0x565   :  { %3268 = vst.msk [vmem:[#allocation3 + $0xc8] sm:$0xff] %vm193_vm2, %v3249_v27  ;;  %v3251_v28 = vpop.permute.xlu1 %3250  ;;  %v3499_v32 = vld [vmem:[#allocation3 + $0x98] sm:$0xff]  ;;  %7624 = vmatpush3.bf16.msra.mxu1 %v8325_v24  ;;  %v3509_v25 = vld [vmem:[#allocation3 + $0xe8] sm:$0xff] }
 0x566   :  { %3269 = vst.msk [vmem:[#allocation3 + $0xf8] sm:$0xff] %vm193_vm2, %v3251_v28  ;;  %v3535_v26 = vpack.c.bf16 %v3499_v32, %v3493_v30  ;;  %7625 = vmatprep.subr.bf16.mxu1 %v8326_v59  ;;  %v3515_v59 = vld [vmem:[#allocation3 + $0x118] sm:$0xff] }
 0x568   :  { %v3185_v35 = vpop.permute.xlu0 %3184  ;;  %3983 = vmatprep.mubr.bf16.mxu1 %v3535_v26  ;;  %v3492_v22 = vld [vmem:[#allocation3 + $0x60] sm:$0xff]  ;;  %v3545_v26 = vpack.c.bf16 %v3515_v59, %v3509_v25 }
 0x569   :  { %3204 = vst.msk [vmem:[#allocation3 + $0xc0] sm:$0xff] %vm193_vm2, %v3185_v35  ;;  %v3187_v36 = vpop.permute.xlu1 %3186  ;;  %v3498_v29 = vld [vmem:[#allocation3 + $0x90] sm:$0xff]  ;;  %7626 = vmatpush3.bf16.msra.mxu1 %v8327_v33 }
 0x56a   :  { %3205 = vst.msk [vmem:[#allocation3 + $0xf0] sm:$0xff] %vm193_vm2, %v3187_v36  ;;  %v3534_v38 = vpack.c.bf16 %v3498_v29, %v3492_v22  ;;  %7627 = vmatprep.subr.bf16.mxu1 %v8328_v34 }
 0x56c   :  { %v3253_v61 = vpop.permute.xlu0 %3252  ;;  %3984 = vmatmul.mubr.bf16.gmra.mrb[68].mxu1 %v3534_v38  ;;  %v3505_v40 = vld [vmem:[#allocation3 + $0xc8] sm:$0xff] }
 0x56d   :  { %3270 = vst.msk [vmem:[#allocation3 + $0x128] sm:$0xff] %vm193_vm2, %v3253_v61  ;;  %v3255_v39 = vpop.permute.xlu1 %3254  ;;  %v3511_v41 = vld [vmem:[#allocation3 + $0xf8] sm:$0xff]  ;;  %7628 = vmatpush3.bf16.msra.mxu1 %v8329_v37 }
 0x56e   :  { %3271 = vst.msk [vmem:[#allocation3 + $0x158] sm:$0xff] %vm193_vm2, %v3255_v39  ;;  %v3541_v44 = vpack.c.bf16 %v3511_v41, %v3505_v40  ;;  %7629 = vmatprep.subr.bf16.mxu1 %v8330_v21  ;;  %v3521_v40 = vld [vmem:[#allocation3 + $0x148] sm:$0xff]  ;;  %v3527_v41 = vld [vmem:[#allocation3 + $0x178] sm:$0xff] }
 0x570   :  { %v3189_v15 = vpop.permute.xlu0 %3188  ;;  %3991 = vmatprep.mubr.bf16.mxu1 %v3541_v44  ;;  %v3504_v13 = vld [vmem:[#allocation3 + $0xc0] sm:$0xff] }
 0x571   :  { %3206 = vst.msk [vmem:[#allocation3 + $0x120] sm:$0xff] %vm193_vm2, %v3189_v15  ;;  %v3191_v47 = vpop.permute.xlu1 %3190  ;;  %v3510_v48 = vld [vmem:[#allocation3 + $0xf0] sm:$0xff]  ;;  %7630 = vmatpush3.bf16.msra.mxu1 %v8331_v43 }
 0x572   :  { %3207 = vst.msk [vmem:[#allocation3 + $0x150] sm:$0xff] %vm193_vm2, %v3191_v47  ;;  %v3540_v50 = vpack.c.bf16 %v3510_v48, %v3504_v13  ;;  %7631 = vmatprep.subr.bf16.mxu1 %v8332_v45  ;;  %v3551_v13 = vpack.c.bf16 %v3527_v41, %v3521_v40 }
 0x574   :  { %v3433_v51 = vpop.permute.xlu0 %3432  ;;  %3992 = vmatmul.mubr.bf16.gmra.mrb[72].mxu1 %v3540_v50  ;;  %v3517_v52 = vld [vmem:[#allocation3 + $0x128] sm:$0xff] }
 0x575   :  { %3456 = vst.msk [vmem:[#allocation3 + $0x20] sm:$0xff] %vm193_vm2, %v3433_v51  ;;  %v3435_v31 = vpop.permute.xlu1 %3434  ;;  %v3523_v53 = vld [vmem:[#allocation3 + $0x158] sm:$0xff]  ;;  %7632 = vmatpush3.bf16.msra.mxu1 %v8333_v49 }
 0x576   :  { %3457 = vst.msk [vmem:[#allocation3 + $0x50] sm:$0xff] %vm193_vm2, %v3435_v31  ;;  %v3547_v55 = vpack.c.bf16 %v3523_v53, %v3517_v52  ;;  %7633 = vmatprep.subr.bf16.mxu1 %v8334_v19 }
 0x578   :  { %v3373_v56 = vpop.permute.xlu0 %3372  ;;  %3999 = vmatprep.mubr.bf16.mxu1 %v3547_v55  ;;  %v3516_v58 = vld [vmem:[#allocation3 + $0x120] sm:$0xff] }
 0x579   :  { %3394 = vst.msk [vmem:[#allocation3 + $0x78] sm:$0xff] %vm193_vm2, %v3373_v56  ;;  %v3375_v57 = vpop.permute.xlu1 %3374  ;;  %v3522_v60 = vld [vmem:[#allocation3 + $0x150] sm:$0xff]  ;;  %7634 = vmatpush3.bf16.msra.mxu1 %v8335_v54  ;;  %v8336_v56 = vld [vmem:[%s10548_s9] sm:$0xff]  }
 0x57a   :  { %3395 = vst.msk [vmem:[#allocation3 + $0xa8] sm:$0xff] %vm193_vm2, %v3375_v57  ;;  %v3546_v23 = vpack.c.bf16 %v3522_v60, %v3516_v58  ;;  %7779 = vmatprep.subr.bf16.mxu0 %v8336_v56  ;;  %v9939_v57 = vpack.c.bf16 %v4259_v18, %v4258_v42  ;;  %v8337_v58 = vld [vmem:[%s10548_s9 + $0x8] sm:$0xff]   ;;  %v8338_v60 = vld [vmem:[%s10548_s9 + $0x10] sm:$0xff]  }
 0x57b   :  { %7780 = vmatpush3.bf16.msra.mxu0 %v8336_v56 }
 0x57c   :  { %v3309_v46 = vpop.permute.xlu0 %3308  ;;  %4000 = vmatmul.mubr.bf16.gmra.mrb[76].mxu1 %v3546_v23  ;;  %v3484_v8 = vld [vmem:[#allocation3 + $0x20] sm:$0xff]  ;;  %8044 = vmatprep.subr.bf16.mxu1 %v9939_v57  ;;  %v4260_v23 = vld [vmem:[%s10550_s11 + $0x10] sm:$0xff] }
 0x57d   :  { %3330 = vst.msk [vmem:[#allocation3 + $0x70] sm:$0xff] %vm193_vm2, %v3309_v46  ;;  %v3311_v63 = vpop.permute.xlu1 %3310  ;;  %4105 = vmatprep.mubr.bf16.mxu1 %v3533_v62  ;;  %v3490_v1 = vld [vmem:[#allocation3 + $0x50] sm:$0xff]  ;;  %7781 = vmatprep.subr.bf16.mxu0 %v8337_v58  ;;  %v4261_v46 = vld [vmem:[%s10550_s11 + $0x18] sm:$0xff] }
 0x57e   :  { %3331 = vst.msk [vmem:[#allocation3 + $0xa0] sm:$0xff] %vm193_vm2, %v3311_v63  ;;  %v3532_v10 = vpack.c.bf16 %v3490_v1, %v3484_v8  ;;  %v9955_v62 = vpack.c.bf16 %v4261_v46, %v4260_v23  ;;  %v8339_v63 = vld [vmem:[%s10548_s9 + $0x18] sm:$0xff]  }
 0x57f   :  { %7782 = vmatpush3.bf16.msra.mxu0 %v8337_v58 }
 0x580   :  { %v3437_v0 = vpop.permute.xlu0 %3436  ;;  %v3495_v6 = vld [vmem:[#allocation3 + $0x78] sm:$0xff]  ;;  %7783 = vmatprep.subr.bf16.mxu0 %v8338_v60 }
 0x581   :  { %3458 = vst.msk [vmem:[#allocation3 + $0x80] sm:$0xff] %vm193_vm2, %v3437_v0  ;;  %v3439_v5 = vpop.permute.xlu1 %3438  ;;  %v3501_v7 = vld [vmem:[#allocation3 + $0xa8] sm:$0xff] }
 0x582   :  { %3459 = vst.msk [vmem:[#allocation3 + $0xb0] sm:$0xff] %vm193_vm2, %v3439_v5  ;;  %v3537_v9 = vpack.c.bf16 %v3501_v7, %v3495_v6  ;;  %v9970_v7 = vld [vmem:[%s10547_s8] ss:$0 sm:$0xff] }
 0x583   :  { %7784 = vmatpush3.bf16.msra.mxu0 %v8338_v60 }
 0x584   :  { %v3377_v11 = vpop.permute.xlu0 %3376  ;;  %4048 = vmatprep.mubr.bf16.mxu0 %v3537_v9  ;;  %4106 = vmatmul.mubr.bf16.vlgmr.msra.gmra.mrb[80].mxu1 %v3532_v10  ;;  %v3494_v17 = vld [vmem:[#allocation3 + $0x70] sm:$0xff] }
 0x585   :  { %3396 = vst.msk [vmem:[#allocation3 + $0xd8] sm:$0xff] %vm193_vm2, %v3377_v11  ;;  %v3379_v14 = vpop.permute.xlu1 %3378  ;;  %4113 = vmatprep.mubr.bf16.mxu1 %v3539_v12  ;;  %v3500_v16 = vld [vmem:[#allocation3 + $0xa0] sm:$0xff]  ;;  %8046 = vmatpush3.bf16.msra.mxu1 %v9939_v57 }
 0x586   :  { %3397 = vst.msk [vmem:[#allocation3 + $0x108] sm:$0xff] %vm193_vm2, %v3379_v14  ;;  %v3536_v20 = vpack.c.bf16 %v3500_v16, %v3494_v17  ;;  %8048 = vmatprep.subr.bf16.mxu1 %v9955_v62  ;;  %7785 = vmatprep.subr.bf16.mxu0 %v8339_v63 }
 0x587   :  { %7786 = vmatpush3.bf16.msra.mxu0 %v8339_v63 }
 0x588   :  { %v3313_v24 = vpop.permute.xlu0 %3312  ;;  %4049 = vmatmul.mubr.bf16.gmra.mrb[84].mxu0 %v3536_v20  ;;  %v3496_v28 = vld [vmem:[#allocation3 + $0x80] sm:$0xff] }
 0x589   :  { %3332 = vst.msk [vmem:[#allocation3 + $0xd0] sm:$0xff] %vm193_vm2, %v3313_v24  ;;  %v3315_v27 = vpop.permute.xlu1 %3314  ;;  %v3502_v30 = vld [vmem:[#allocation3 + $0xb0] sm:$0xff]  ;;  %8050 = vmatpush3.bf16.msra.mxu1 %v9955_v62 }
 0x58a   :  { %3333 = vst.msk [vmem:[#allocation3 + $0x100] sm:$0xff] %vm193_vm2, %v3315_v27  ;;  %v3538_v32 = vpack.c.bf16 %v3502_v30, %v3496_v28  ;;  %8068 = vmatprep.subr.bf16.mxu1 %v9939_v57 }
 0x58c   :  { %v3441_v33 = vpop.permute.xlu0 %3440  ;;  %4114 = vmatmul.mubr.bf16.gmra.mrb[84].mxu1 %v3538_v32  ;;  %v3507_v35 = vld [vmem:[#allocation3 + $0xd8] sm:$0xff] }
 0x58d   :  { %3460 = vst.msk [vmem:[#allocation3 + $0xe0] sm:$0xff] %vm193_vm2, %v3441_v33  ;;  %v3443_v34 = vpop.permute.xlu1 %3442  ;;  %4121 = vmatprep.mubr.bf16.mxu1 %v3545_v26  ;;  %v3513_v36 = vld [vmem:[#allocation3 + $0x108] sm:$0xff] }
 0x58e   :  { %3461 = vst.msk [vmem:[#allocation3 + $0x110] sm:$0xff] %vm193_vm2, %v3443_v34  ;;  %v3543_v22 = vpack.c.bf16 %v3513_v36, %v3507_v35 }
 0x590   :  { %v3317_v29 = vpop.permute.xlu0 %3316  ;;  %4056 = vmatprep.mubr.bf16.mxu0 %v3543_v22  ;;  %v3506_v38 = vld [vmem:[#allocation3 + $0xd0] sm:$0xff] }
 0x591   :  { %3334 = vst.msk [vmem:[#allocation3 + $0x130] sm:$0xff] %vm193_vm2, %v3317_v29  ;;  %v3383_v37 = vpop.permute.xlu1 %3382  ;;  %v3512_v21 = vld [vmem:[#allocation3 + $0x100] sm:$0xff] }
 0x592   :  { %3399 = vst.msk [vmem:[#allocation3 + $0x168] sm:$0xff] %vm193_vm2, %v3383_v37  ;;  %v3542_v61 = vpack.c.bf16 %v3512_v21, %v3506_v38 }
 0x594   :  { %v3381_v39 = vpop.permute.xlu0 %3380  ;;  %4057 = vmatmul.mubr.bf16.gmra.mrb[88].mxu0 %v3542_v61  ;;  %v3508_v44 = vld [vmem:[#allocation3 + $0xe0] sm:$0xff] }
 0x595   :  { %3398 = vst.msk [vmem:[#allocation3 + $0x138] sm:$0xff] %vm193_vm2, %v3381_v39  ;;  %v3319_v43 = vpop.permute.xlu1 %3318  ;;  %v3514_v45 = vld [vmem:[#allocation3 + $0x110] sm:$0xff] }
 0x596   :  { %3335 = vst.msk [vmem:[#allocation3 + $0x160] sm:$0xff] %vm193_vm2, %v3319_v43  ;;  %v3544_v15 = vpack.c.bf16 %v3514_v45, %v3508_v44 }
 0x598   :  { %v3445_v47 = vpop.permute.xlu0 %3444  ;;  %4122 = vmatmul.mubr.bf16.gmra.mrb[88].mxu1 %v3544_v15  ;;  %v3518_v51 = vld [vmem:[#allocation3 + $0x130] sm:$0xff] }
 0x599   :  { %3462 = vst.msk [vmem:[#allocation3 + $0x140] sm:$0xff] %vm193_vm2, %v3445_v47  ;;  %v3447_v48 = vpop.permute.xlu1 %3446  ;;  %4129 = vmatprep.mubr.bf16.mxu1 %v3551_v13  ;;  %v3525_v50 = vld [vmem:[#allocation3 + $0x168] sm:$0xff] }
 0x59a   :  { %3463 = vst.msk [vmem:[#allocation3 + $0x170] sm:$0xff] %vm193_vm2, %v3447_v48 }
 0x59c   :  { %v3519_v49 = vld [vmem:[#allocation3 + $0x138] sm:$0xff] }
 0x59d   :  { %v3549_v19 = vpack.c.bf16 %v3525_v50, %v3519_v49  ;;  %v3524_v31 = vld [vmem:[#allocation3 + $0x160] sm:$0xff] }
 0x59e   :  { %v3548_v52 = vpack.c.bf16 %v3524_v31, %v3518_v51 }
 0x59f   :  { %4064 = vmatprep.mubr.bf16.mxu0 %v3549_v19 }
 0x5a0   :  { %4065 = vmatmul.mubr.bf16.gmra.mrb[92].mxu0 %v3548_v52  ;;  %v3520_v53 = vld [vmem:[#allocation3 + $0x140] sm:$0xff] }
 0x5a1   :  { %v3526_v54 = vld [vmem:[#allocation3 + $0x170] sm:$0xff] }
 0x5a2   :  { %v3550_v55 = vpack.c.bf16 %v3526_v54, %v3520_v53 }
 0x5a4   :  { %4130 = vmatmul.mubr.bf16.gmra.mrb[92].mxu1 %v3550_v55 }
 0x5a5   :  { %7803 = vmatprep.mubr.f32.mxu1 %v8492_v3 }
 0x5ac   :  { %7804 = vmatmul.mubr.f32.vlgmr.msra.gmra.mrb[96].mxu1 %v8492_v3 }
 0x5ad   :  { %8070 = vmatpush3.bf16.msra.mxu1 %v9939_v57 }
 0x5ae   :  { %8072 = vmatprep.subr.bf16.mxu1 %v9955_v62 }
 0x5b1   :  { %8074 = vmatpush3.bf16.msra.mxu1 %v9955_v62 }
 0x62f   :  { %v7555_v0 = vpop.f32.mrb[64].mxu1 }
 0x630   :  { %v7556_v1 = vpop.f32.mrb[65].mxu1 }
 0x631   :  { %v7557_v2 = vadd.f32 %v7556_v1, %v7555_v0  ;;  %v7558_v4 = vpop.f32.mrb[66].mxu1 }
 0x632   :  { %v7559_v5 = vpop.f32.mrb[67].mxu1 }
 0x633   :  { %v7560_v6 = vadd.f32 %v7559_v5, %v7558_v4  ;;  %v3978_v10 = vadd.f32 %v7557_v2, %v9970_v7 }
 0x635   :  { %v3981_v17 = vadd.f32 %v7560_v6, %v9970_v7 }
 0x637   :  { %v7595_v8 = vpop.f32.mrb[80].mxu0 }
 0x638   :  { %v7596_v9 = vpop.f32.mrb[81].mxu0 }
 0x639   :  { %v7597_v11 = vadd.f32 %v7596_v9, %v7595_v8  ;;  %v7598_v12 = vpop.f32.mrb[82].mxu0 }
 0x63a   :  { %v7599_v14 = vpop.f32.mrb[83].mxu0 }
 0x63b   :  { %v4043_v16 = vadd.f32 %v7597_v11, %v3978_v10  ;;  %v7600_v20 = vadd.f32 %v7599_v14, %v7598_v12 }
 0x63d   :  { %v4046_v24 = vadd.f32 %v7600_v20, %v3981_v17 }
 0x63f   :  { %v7561_v25 = vpop.f32.mrb[68].mxu1 }
 0x640   :  { %v7562_v59 = vpop.f32.mrb[69].mxu1 }
 0x641   :  { %v7563_v27 = vadd.f32 %v7562_v59, %v7561_v25  ;;  %v7564_v28 = vpop.f32.mrb[70].mxu1 }
 0x642   :  { %v7565_v30 = vpop.f32.mrb[71].mxu1 }
 0x643   :  { %v7566_v32 = vadd.f32 %v7565_v30, %v7564_v28  ;;  %v3986_v49 = vadd.f32 %v7563_v27, %v9970_v7 }
 0x645   :  { %v3989_v52 = vadd.f32 %v7566_v32, %v9970_v7 }
 0x647   :  { %v7567_v33 = vpop.f32.mrb[72].mxu1 }
 0x648   :  { %v7568_v26 = vpop.f32.mrb[73].mxu1 }
 0x649   :  { %v7569_v34 = vadd.f32 %v7568_v26, %v7567_v33  ;;  %v7570_v35 = vpop.f32.mrb[74].mxu1 }
 0x64a   :  { %v7571_v36 = vpop.f32.mrb[75].mxu1 }
 0x64b   :  { %v7572_v22 = vadd.f32 %v7571_v36, %v7570_v35  ;;  %v3994_v5 = vadd.f32 %v7569_v34, %v9970_v7 }
 0x64d   :  { %v3997_v10 = vadd.f32 %v7572_v22, %v9970_v7 }
 0x64f   :  { %v7573_v29 = vpop.f32.mrb[76].mxu1 }
 0x650   :  { %v7574_v37 = vpop.f32.mrb[77].mxu1 }
 0x651   :  { %v7575_v38 = vadd.f32 %v7574_v37, %v7573_v29  ;;  %v7576_v21 = vpop.f32.mrb[78].mxu1 }
 0x652   :  { %v7577_v61 = vpop.f32.mrb[79].mxu1 }
 0x653   :  { %v7578_v39 = vadd.f32 %v7577_v61, %v7576_v21  ;;  %v4002_v26 = vadd.f32 %v7575_v38, %v9970_v7 }
 0x655   :  { %v4005_v22 = vadd.f32 %v7578_v39, %v9970_v7  ;;  %v7014_v7 = vld [vmem:[%s10549_s10] ss:$0 sm:$0xff]  ;;  %s8494_s10 = smov 32  }
 0x657   :  { %v7635_v40 = vpop.f32.mrb[80].mxu1 }
 0x658   :  { %v7636_v41 = vpop.f32.mrb[81].mxu1 }
 0x659   :  { %v7637_v43 = vadd.f32 %v7636_v41, %v7635_v40  ;;  %v7638_v44 = vpop.f32.mrb[82].mxu1 }
 0x65a   :  { %v7639_v45 = vpop.f32.mrb[83].mxu1 }
 0x65b   :  { %v4108_v15 = vadd.f32 %v7637_v43, %v4043_v16  ;;  %v7640_v47 = vadd.f32 %v7639_v45, %v7638_v44  ;;  %v7601_v13 = vpop.f32.mrb[84].mxu0 }
 0x65c   :  { %v7602_v48 = vpop.f32.mrb[85].mxu0 }
 0x65d   :  { %v4111_v50 = vadd.f32 %v7640_v47, %v4046_v24  ;;  %v7603_v19 = vadd.f32 %v7602_v48, %v7601_v13  ;;  %v7604_v51 = vpop.f32.mrb[86].mxu0 }
 0x65e   :  { %v7605_v31 = vpop.f32.mrb[87].mxu0 }
 0x65f   :  { %v4138_v53 = vpack.c.bf16 %v4111_v50, %v4108_v15  ;;  %v4051_v54 = vadd.f32 %v7603_v19, %v3986_v49  ;;  %v7606_v55 = vadd.f32 %v7605_v31, %v7604_v51  ;;  %v7641_v56 = vpop.f32.mrb[84].mxu1 }
 0x660   :  { %v7642_v42 = vpop.f32.mrb[85].mxu1 }
 0x661   :  { %v4054_v18 = vadd.f32 %v7606_v55, %v3989_v52  ;;  %v7643_v58 = vadd.f32 %v7642_v42, %v7641_v56  ;;  %v7644_v60 = vpop.f32.mrb[86].mxu1  ;;  %7787 = vmatprep.mubr.msk.bf16.mxu0 %vm55_vm0, %v4138_v53 }
 0x662   :  { %v7645_v23 = vpop.f32.mrb[87].mxu1 }
 0x663   :  { %v4116_v46 = vadd.f32 %v7643_v58, %v4051_v54  ;;  %v7646_v63 = vadd.f32 %v7645_v23, %v7644_v60 }
 0x665   :  { %v4119_v0 = vadd.f32 %v7646_v63, %v4054_v18 }
 0x667   :  { %v4139_v1 = vpack.c.bf16 %v4119_v0, %v4116_v46  ;;  %v7607_v2 = vpop.f32.mrb[88].mxu0 }
 0x668   :  { %v7608_v4 = vpop.f32.mrb[89].mxu0 }
 0x669   :  { %v7609_v6 = vadd.f32 %v7608_v4, %v7607_v2  ;;  %v7610_v8 = vpop.f32.mrb[90].mxu0  ;;  %7788 = vmatmul.mubr.msk.bf16.vlgmr.msra.gmra.mrb[96].mxu0 %vm55_vm0, %v4139_v1 }
 0x66a   :  { %v7611_v9 = vpop.f32.mrb[91].mxu0 }
 0x66b   :  { %v4059_v11 = vadd.f32 %v7609_v6, %v3994_v5  ;;  %v7612_v12 = vadd.f32 %v7611_v9, %v7610_v8  ;;  %v7647_v14 = vpop.f32.mrb[88].mxu1 }
 0x66c   :  { %v7648_v17 = vpop.f32.mrb[89].mxu1 }
 0x66d   :  { %v4062_v16 = vadd.f32 %v7612_v12, %v3997_v10  ;;  %v7649_v20 = vadd.f32 %v7648_v17, %v7647_v14  ;;  %v7650_v24 = vpop.f32.mrb[90].mxu1 }
 0x66e   :  { %v7651_v25 = vpop.f32.mrb[91].mxu1 }
 0x66f   :  { %v4124_v59 = vadd.f32 %v7649_v20, %v4059_v11  ;;  %v7652_v27 = vadd.f32 %v7651_v25, %v7650_v24 }
 0x671   :  { %v4127_v28 = vadd.f32 %v7652_v27, %v4062_v16 }
 0x673   :  { %v4140_v30 = vpack.c.bf16 %v4127_v28, %v4124_v59  ;;  %v7613_v32 = vpop.f32.mrb[92].mxu0 }
 0x674   :  { %v7614_v33 = vpop.f32.mrb[93].mxu0 }
 0x675   :  { %v7615_v34 = vadd.f32 %v7614_v33, %v7613_v32  ;;  %v7616_v35 = vpop.f32.mrb[94].mxu0  ;;  %7791 = vmatprep.mubr.msk.bf16.mxu0 %vm55_vm0, %v4140_v30  ;;  %v4262_v33 = vld [vmem:[%s10551_s12] sm:$0xff] }
 0x676   :  { %v7617_v36 = vpop.f32.mrb[95].mxu0 }
 0x677   :  { %v4067_v29 = vadd.f32 %v7615_v34, %v4002_v26  ;;  %v7618_v37 = vadd.f32 %v7617_v36, %v7616_v35  ;;  %v7653_v21 = vpop.f32.mrb[92].mxu1  ;;  %v4263_v26 = vld [vmem:[%s10551_s12 + $0x8] sm:$0xff]  ;;  %v4264_v34 = vld [vmem:[%s10551_s12 + $0x10] sm:$0xff]  ;;  %v4265_v36 = vld [vmem:[%s10551_s12 + $0x18] sm:$0xff] }
 0x678   :  { %v7654_v61 = vpop.f32.mrb[93].mxu1  ;;  %v10018_v35 = vpack.c.bf16 %v4263_v26, %v4262_v33 }
 0x679   :  { %v4070_v40 = vadd.f32 %v7618_v37, %v4005_v22  ;;  %v7655_v41 = vadd.f32 %v7654_v61, %v7653_v21  ;;  %v7656_v43 = vpop.f32.mrb[94].mxu1  ;;  %v10023_v22 = vpack.c.bf16 %v4265_v36, %v4264_v34  ;;  %v4266_v21 = vld [vmem:[%s10551_s12 + $0x20] sm:$0xff]  ;;  %v4267_v61 = vld [vmem:[%s10551_s12 + $0x28] sm:$0xff] }
 0x67a   :  { %v7657_v44 = vpop.f32.mrb[95].mxu1  ;;  %8052 = vmatprep.subr.bf16.mxu0 %v10018_v35  ;;  %8076 = vmatprep.subr.bf16.mxu1 %v10018_v35 }
 0x67b   :  { %v4132_v45 = vadd.f32 %v7655_v41, %v4067_v29  ;;  %v7658_v15 = vadd.f32 %v7657_v44, %v7656_v43  ;;  %8054 = vmatpush3.bf16.msra.mxu0 %v10018_v35  ;;  %v4268_v41 = vld [vmem:[%s10551_s12 + $0x30] sm:$0xff]  ;;  %v4269_v43 = vld [vmem:[%s10551_s12 + $0x38] sm:$0xff] }
 0x67c   :  { %8056 = vmatprep.subr.bf16.mxu0 %v10023_v22  ;;  %v10047_v44 = vpack.c.bf16 %v4269_v43, %v4268_v41 }
 0x67d   :  { %v4135_v47 = vadd.f32 %v7658_v15, %v4070_v40  ;;  %v10038_v40 = vpack.c.bf16 %v4267_v61, %v4266_v21 }
 0x67f   :  { %v4141_v13 = vpack.c.bf16 %v4135_v47, %v4132_v45  ;;  %v7805_v38 = vpop.f32.mrb[96].mxu1  ;;  %8058 = vmatpush3.bf16.msra.mxu0 %v10023_v22 }
 0x680   :  { %v4343_v48 = vpop.f32.mrb[97].mxu1  ;;  %8060 = vmatprep.subr.bf16.mxu0 %v10038_v40 }
 0x681   :  { %7792 = vmatmul.mubr.msk.bf16.gmra.mrb[100].mxu0 %vm55_vm0, %v4141_v13 }
 0x683   :  { %8062 = vmatpush3.bf16.msra.mxu0 %v10038_v40 }
 0x684   :  { %8064 = vmatprep.subr.bf16.mxu0 %v10047_v44 }
 0x687   :  { %8066 = vmatpush3.bf16.msra.mxu0 %v10047_v44 }
 0x688   :  { %8092 = vmatprep.subr.bf16.mxu0 %v9939_v57 }
 0x73c   :  { %v7789_v39 = vpop.f32.mrb[96].mxu0 }
 0x73d   :  { %v9987_v49 = vadd.f32 %v7789_v39, %v7014_v7  ;;  %v4227_v50 = vpop.f32.mrb[97].mxu0 }
 0x73e   :  { %v4228_v19 = vadd.f32 %v7014_v7, %v4227_v50  ;;  %v7790_v51 = vpop.f32.mrb[98].mxu0 }
 0x73f   :  { %v9989_v31 = vadd.f32 %v7790_v51, %v7014_v7  ;;  %v4230_v52 = vpop.f32.mrb[99].mxu0 }
 0x740   :  { %v4231_v53 = vadd.f32 %v7014_v7, %v4230_v52  ;;  %v4352_v54 = vadd.f32 %v4343_v48, %v4228_v19 }
 0x742   :  { %v4353_v55 = vadd.f32 %v7805_v38, %v4231_v53  ;;  %v7023_v56 = vmul.f32 -1.442695, %v4352_v54 }
 0x744   :  { %v7024_v42 = vmul.f32 -1.442695, %v4353_v55  ;;  %8372 = vpow2.f32 %v7023_v56  ;;  %v10078_v55 = vld [vmem:[%s10552_s13] ss:$0 sm:$0xff] }
 0x746   :  { %8374 = vpow2.f32 %v7024_v42 }
 0x74e   :  { %v8373_v18 = vpop.eup %8372 }
 0x74f   :  { %v4360_v58 = vadd.f32 1.0, %v8373_v18 }
 0x750   :  { %v8375_v60 = vpop.eup %8374 }
 0x751   :  { %v4361_v23 = vadd.f32 1.0, %v8375_v60  ;;  %8376 = vrcp.f32 %v4360_v58 }
 0x753   :  { %8378 = vrcp.f32 %v4361_v23 }
 0x754   :  { %v7793_v46 = vpop.f32.mrb[100].mxu0 }
 0x755   :  { %v9991_v63 = vadd.f32 %v7793_v46, %v7014_v7  ;;  %v4243_v0 = vpop.f32.mrb[101].mxu0 }
 0x756   :  { %v9993_v1 = vadd.f32 %v7014_v7, %v4243_v0  ;;  %v7794_v2 = vpop.f32.mrb[102].mxu0 }
 0x757   :  { %v9995_v4 = vadd.f32 %v7794_v2, %v7014_v7  ;;  %v4246_v5 = vpop.f32.mrb[103].mxu0 }
 0x758   :  { %v9997_v6 = vadd.f32 %v7014_v7, %v4246_v5 }
 0x75b   :  { %v8377_v8 = vpop.eup %8376 }
 0x75c   :  { %v4366_v9 = vmul.f32 2.0, %v8377_v8  ;;  %v4370_v25 = vmul.f32 0.0, %v8377_v8 }
 0x75d   :  { %v8379_v10 = vpop.eup %8378 }
 0x75e   :  { %v7025_v11 = vadd.f32 -1.0, %v4366_v9  ;;  %v4367_v12 = vmul.f32 2.0, %v8379_v10  ;;  %v4371_v28 = vmul.f32 0.0, %v8379_v10 }
 0x760   :  { %4374 = vrot.lane.b32.xlu0 %v7025_v11, %s8493_s18  ;;  %v7026_v14 = vadd.f32 -1.0, %v4367_v12 }
 0x762   :  { %4376 = vrot.lane.b32.xlu1 %v7026_v14, %s8493_s18 }
 0x7d2   :  { %v4375_v17 = vpop.permute.xlu0 %4374 }
 0x7d3   :  { %v4380_v16 = vmul.f32 %v8377_v8, %v4375_v17 }
 0x7d4   :  { %v4377_v20 = vpop.permute.xlu1 %4376 }
 0x7d5   :  { %v4381_v24 = vmul.f32 %v8379_v10, %v4377_v20  ;;  %4384 = vrot.lane.b32.xlu0 %v4380_v16, %s8494_s10 }
 0x7d7   :  { %4386 = vrot.lane.b32.xlu1 %v4381_v24, %s8494_s10 }
 0x847   :  { %v4385_v59 = vpop.permute.xlu0 %4384 }
 0x848   :  { %v10003_v27 = vadd.f32 %v4385_v59, %v4370_v25 }
 0x849   :  { %v4387_v30 = vpop.permute.xlu1 %4386 }
 0x84a   :  { %8380 = vtanh.f32 %v10003_v27  ;;  %v10006_v32 = vadd.f32 %v4387_v30, %v4371_v28 }
 0x84c   :  { %8382 = vtanh.f32 %v10006_v32 }
 0x854   :  { %v8381_v29 = vpop.eup %8380 }
 0x855   :  { %4396 = vrot.lane.b32.xlu0 %v8381_v29, %s8493_s18 }
 0x856   :  { %v8383_v37 = vpop.eup %8382 }
 0x857   :  { %4398 = vrot.lane.b32.xlu1 %v8383_v37, %s8493_s18 }
 0x8c7   :  { %v4397_v45 = vpop.permute.xlu0 %4396 }
 0x8c8   :  { %v4402_v15 = vmul.f32 %v8377_v8, %v4397_v45 }
 0x8c9   :  { %v4399_v47 = vpop.permute.xlu1 %4398 }
 0x8ca   :  { %v4403_v13 = vmul.f32 %v8379_v10, %v4399_v47  ;;  %4406 = vrot.lane.b32.xlu0 %v4402_v15, %s8494_s10 }
 0x8cc   :  { %4408 = vrot.lane.b32.xlu1 %v4403_v13, %s8494_s10 }
 0x93c   :  { %v4407_v38 = vpop.permute.xlu0 %4406 }
 0x93d   :  { %4412 = vst.msk [vmem:[#allocation4] sm:$0xff] %vm4273_vm3, %v4407_v38  ;;  %7833 = vmatprep.mubr.msk.f32.mxu1 %vm4273_vm3, %v4407_v38 }
 0x93e   :  { %v4409_v48 = vpop.permute.xlu1 %4408 }
 0x93f   :  { %4413 = vst.msk [vmem:[#allocation4 + $0x8] sm:$0xff] %vm4273_vm3, %v4409_v48  ;;  %7834 = vmatmul.mubr.msk.f32.vlgmr.msra.gmra.mrb[98].mxu1 %vm4273_vm3, %v4409_v48 }
 0x940   :  { %8078 = vmatpush3.bf16.msra.mxu1 %v10018_v35 }
 0x941   :  { %8080 = vmatprep.subr.bf16.mxu1 %v10023_v22 }
 0x944   :  { %v4414_v7 = vld [vmem:[#allocation4] sm:$0xff]  ;;  %8082 = vmatpush3.bf16.msra.mxu1 %v10023_v22 }
 0x945   :  { %7822 = vmatprep.mubr.msk.f32.mxu0 %vm55_vm0, %v4414_v7  ;;  %8084 = vmatprep.subr.bf16.mxu1 %v10038_v40 }
 0x946   :  { %v4415_v39 = vld [vmem:[#allocation4 + $0x8] sm:$0xff] }
 0x947   :  { %7823 = vmatmul.mubr.msk.f32.vlgmr.msra.gmra.mrb[104].mxu0 %vm55_vm0, %v4415_v39 }
 0x948   :  { %8094 = vmatpush3.bf16.msra.mxu0 %v9939_v57  ;;  %8086 = vmatpush3.bf16.msra.mxu1 %v10038_v40 }
 0x949   :  { %8096 = vmatprep.subr.bf16.mxu0 %v9955_v62  ;;  %8088 = vmatprep.subr.bf16.mxu1 %v10047_v44 }
 0x94c   :  { %8098 = vmatpush3.bf16.msra.mxu0 %v9955_v62  ;;  %8090 = vmatpush3.bf16.msra.mxu1 %v10047_v44 }
 0x94d   :  { %8100 = vmatprep.subr.bf16.mxu0 %v10018_v35  ;;  %8116 = vmatprep.subr.bf16.mxu1 %v9939_v57 }
 0xa12   :  { %v7835_v50 = vpop.f32.mrb[98].mxu1 }
 0xa13   :  { %v4652_v19 = vadd.f32 %v7835_v50, %v9989_v31  ;;  %v4642_v51 = vpop.f32.mrb[99].mxu1 }
 0xa14   :  { %v4651_v52 = vadd.f32 %v4642_v51, %v9987_v49 }
 0xa15   :  { %v7037_v53 = vmul.f32 -1.442695, %v4652_v19 }
 0xa16   :  { %v7036_v54 = vmul.f32 -1.442695, %v4651_v52 }
 0xa17   :  { %8384 = vpow2.f32 %v7037_v53 }
 0xa18   :  { %8386 = vpow2.f32 %v7036_v54 }
 0xa1a   :  { %v7824_v56 = vpop.f32.mrb[104].mxu0 }
 0xa1b   :  { %v4500_v42 = vadd.f32 %v7824_v56, %v10078_v55  ;;  %v4494_v18 = vpop.f32.mrb[105].mxu0 }
 0xa1c   :  { %v4495_v58 = vadd.f32 %v10078_v55, %v4494_v18 }
 0xa1d   :  { %v7031_v60 = vmul.f32 -1.442695, %v4500_v42 }
 0xa1e   :  { %v7030_v31 = vmul.f32 -1.442695, %v4495_v58 }
 0xa1f   :  { %8388 = vpow2.f32 %v7031_v60 }
 0xa20   :  { %8390 = vpow2.f32 %v7030_v31 }
 0xa21   :  { %v8385_v49 = vpop.eup %8384 }
 0xa22   :  { %v8387_v23 = vpop.eup %8386  ;;  %v4660_v46 = vadd.f32 1.0, %v8385_v49 }
 0xa23   :  { %v4659_v0 = vadd.f32 1.0, %v8387_v23 }
 0xa24   :  { %8392 = vrcp.f32 %v4660_v46 }
 0xa25   :  { %8394 = vrcp.f32 %v4659_v0 }
 0xa29   :  { %v8389_v2 = vpop.eup %8388 }
 0xa2a   :  { %v8391_v5 = vpop.eup %8390  ;;  %v4510_v8 = vadd.f32 1.0, %v8389_v2 }
 0xa2b   :  { %v4509_v9 = vadd.f32 1.0, %v8391_v5 }
 0xa2c   :  { %8396 = vrcp.f32 %v4510_v8 }
 0xa2d   :  { %8398 = vrcp.f32 %v4509_v9 }
 0xa2e   :  { %v8393_v10 = vpop.eup %8392 }
 0xa2f   :  { %v8395_v11 = vpop.eup %8394  ;;  %v4666_v24 = vmul.f32 2.0, %v8393_v10  ;;  %v4670_v38 = vmul.f32 %v8393_v10, %v10006_v32 }
 0xa30   :  { %v4665_v59 = vmul.f32 2.0, %v8395_v11  ;;  %v4669_v7 = vmul.f32 %v8395_v11, %v10003_v27 }
 0xa31   :  { %v7039_v28 = vadd.f32 -1.0, %v4666_v24 }
 0xa32   :  { %v7038_v30 = vadd.f32 -1.0, %v4665_v59 }
 0xa36   :  { %v8397_v12 = vpop.eup %8396 }
 0xa37   :  { %v8399_v14 = vpop.eup %8398  ;;  %v4516_v17 = vmul.f32 2.0, %v8397_v12  ;;  %v4520_v41 = vmul.f32 0.0, %v8397_v12 }
 0xa38   :  { %v4515_v16 = vmul.f32 2.0, %v8399_v14  ;;  %v4519_v45 = vmul.f32 0.0, %v8399_v14 }
 0xa39   :  { %v7033_v20 = vadd.f32 -1.0, %v4516_v17 }
 0xa3a   :  { %v7032_v25 = vadd.f32 -1.0, %v4515_v16 }
 0xa3b   :  { %4525 = vrot.lane.b32.xlu1 %v7033_v20, %s8493_s18 }
 0xa3c   :  { %4523 = vrot.lane.b32.xlu0 %v7032_v25, %s8493_s18 }
 0xa3f   :  { %4675 = vrot.lane.b32.xlu1 %v7039_v28, %s8493_s18 }
 0xa40   :  { %4673 = vrot.lane.b32.xlu0 %v7038_v30, %s8493_s18 }
 0xaad   :  { %v4526_v33 = vpop.permute.xlu1 %4525 }
 0xaae   :  { %v4530_v26 = vmul.f32 %v8397_v12, %v4526_v33  ;;  %v4524_v34 = vpop.permute.xlu0 %4523 }
 0xaaf   :  { %v4529_v36 = vmul.f32 %v8399_v14, %v4524_v34 }
 0xab0   :  { %4535 = vrot.lane.b32.xlu1 %v4530_v26, %s8494_s10 }
 0xab1   :  { %v4676_v29 = vpop.permute.xlu1 %4675  ;;  %4533 = vrot.lane.b32.xlu0 %v4529_v36, %s8494_s10 }
 0xab2   :  { %v4680_v37 = vmul.f32 %v8393_v10, %v4676_v29  ;;  %v4674_v21 = vpop.permute.xlu0 %4673 }
 0xab3   :  { %v4679_v61 = vmul.f32 %v8395_v11, %v4674_v21 }
 0xab4   :  { %4685 = vrot.lane.b32.xlu1 %v4680_v37, %s8494_s10 }
 0xab5   :  { %4683 = vrot.lane.b32.xlu0 %v4679_v61, %s8494_s10 }
 0xb22   :  { %v4536_v43 = vpop.permute.xlu1 %4535 }
 0xb23   :  { %v10090_v15 = vadd.f32 %v4536_v43, %v4520_v41  ;;  %v4534_v47 = vpop.permute.xlu0 %4533 }
 0xb24   :  { %v10092_v13 = vadd.f32 %v4534_v47, %v4519_v45 }
 0xb25   :  { %8400 = vtanh.f32 %v10090_v15 }
 0xb26   :  { %8402 = vtanh.f32 %v10092_v13  ;;  %v4686_v48 = vpop.permute.xlu1 %4685 }
 0xb27   :  { %v10098_v39 = vadd.f32 %v4686_v48, %v4670_v38  ;;  %v4684_v50 = vpop.permute.xlu0 %4683 }
 0xb28   :  { %v10100_v19 = vadd.f32 %v4684_v50, %v4669_v7 }
 0xb29   :  { %8404 = vtanh.f32 %v10098_v39 }
 0xb2a   :  { %8406 = vtanh.f32 %v10100_v19 }
 0xb2f   :  { %v8401_v51 = vpop.eup %8400 }
 0xb30   :  { %v8403_v52 = vpop.eup %8402  ;;  %4547 = vrot.lane.b32.xlu1 %v8401_v51, %s8493_s18 }
 0xb31   :  { %4545 = vrot.lane.b32.xlu0 %v8403_v52, %s8493_s18 }
 0xb33   :  { %v8405_v32 = vpop.eup %8404 }
 0xb34   :  { %v8407_v53 = vpop.eup %8406  ;;  %4697 = vrot.lane.b32.xlu1 %v8405_v32, %s8493_s18 }
 0xb35   :  { %4695 = vrot.lane.b32.xlu0 %v8407_v53, %s8493_s18 }
 0xba2   :  { %v4548_v27 = vpop.permute.xlu1 %4547 }
 0xba3   :  { %v10108_v54 = vmul.f32 %v8397_v12, %v4548_v27  ;;  %v4546_v56 = vpop.permute.xlu0 %4545 }
 0xba4   :  { %v10110_v42 = vmul.f32 %v8399_v14, %v4546_v56 }
 0xba5   :  { %4557 = vrot.lane.b32.xlu1 %v10108_v54, %s8493_s18 }
 0xba6   :  { %v4698_v18 = vpop.permute.xlu1 %4697  ;;  %4555 = vrot.lane.b32.xlu0 %v10110_v42, %s8493_s18 }
 0xba7   :  { %v4702_v58 = vmul.f32 %v8393_v10, %v4698_v18  ;;  %v4696_v60 = vpop.permute.xlu0 %4695 }
 0xba8   :  { %v4701_v31 = vmul.f32 %v8395_v11, %v4696_v60 }
 0xba9   :  { %4707 = vrot.lane.b32.xlu1 %v4702_v58, %s8494_s10 }
 0xbaa   :  { %4705 = vrot.lane.b32.xlu0 %v4701_v31, %s8494_s10 }
 0xc17   :  { %v4558_v49 = vpop.permute.xlu1 %4557 }
 0xc18   :  { %4563 = vst.msk [vmem:[#allocation4 + $0x8] sm:$0xff] %vm4561_vm4, %v4558_v49  ;;  %v4556_v23 = vpop.permute.xlu0 %4555 }
 0xc19   :  { %4562 = vst.msk [vmem:[#allocation4] sm:$0xff] %vm4561_vm4, %v4556_v23 }
 0xc1b   :  { %v4708_v46 = vpop.permute.xlu1 %4707 }
 0xc1c   :  { %4712 = vst.msk [vmem:[#allocation4 + $0x8] sm:$0xff] %vm4273_vm3, %v4708_v46  ;;  %v4706_v0 = vpop.permute.xlu0 %4705 }
 0xc1d   :  { %4711 = vst.msk [vmem:[#allocation4] sm:$0xff] %vm4273_vm3, %v4706_v0  ;;  %7863 = vmatprep.mubr.msk.f32.mxu0 %vm4273_vm3, %v4706_v0 }
 0xc1e   :  { %7864 = vmatmul.mubr.msk.f32.vlgmr.msra.gmra.mrb[106].mxu0 %vm4273_vm3, %v4708_v46 }
 0xc1f   :  { %8102 = vmatpush3.bf16.msra.mxu0 %v10018_v35 }
 0xc20   :  { %8104 = vmatprep.subr.bf16.mxu0 %v10023_v22 }
 0xc23   :  { %8106 = vmatpush3.bf16.msra.mxu0 %v10023_v22  ;;  %v4714_v5 = vld [vmem:[#allocation4 + $0x8] sm:$0xff] }
 0xc24   :  { %v4713_v2 = vld [vmem:[#allocation4] sm:$0xff]  ;;  %8108 = vmatprep.subr.bf16.mxu0 %v10038_v40 }
 0xc25   :  { %7852 = vmatprep.mubr.msk.f32.mxu1 %vm55_vm0, %v4713_v2 }
 0xc26   :  { %7853 = vmatmul.mubr.msk.f32.vlgmr.msra.gmra.mrb[100].mxu1 %vm55_vm0, %v4714_v5 }
 0xc27   :  { %8118 = vmatpush3.bf16.msra.mxu1 %v9939_v57  ;;  %8110 = vmatpush3.bf16.msra.mxu0 %v10038_v40 }
 0xc28   :  { %8120 = vmatprep.subr.bf16.mxu1 %v9955_v62  ;;  %8112 = vmatprep.subr.bf16.mxu0 %v10047_v44 }
 0xc2b   :  { %8122 = vmatpush3.bf16.msra.mxu1 %v9955_v62  ;;  %8114 = vmatpush3.bf16.msra.mxu0 %v10047_v44 }
 0xc2c   :  { %8124 = vmatprep.subr.bf16.mxu1 %v10018_v35  ;;  %7915 = vmatprep.subr.bf16.mxu0 %v8492_v3 }
 0xcf1   :  { %v7865_v8 = vpop.f32.mrb[106].mxu0 }
 0xcf2   :  { %v4945_v9 = vadd.f32 %v7865_v8, %v9997_v6  ;;  %v4935_v10 = vpop.f32.mrb[107].mxu0 }
 0xcf3   :  { %v4944_v57 = vadd.f32 %v4935_v10, %v9993_v1 }
 0xcf4   :  { %v7049_v11 = vmul.f32 -1.442695, %v4945_v9 }
 0xcf5   :  { %v7048_v12 = vmul.f32 -1.442695, %v4944_v57 }
 0xcf6   :  { %8408 = vpow2.f32 %v7049_v11 }
 0xcf7   :  { %8410 = vpow2.f32 %v7048_v12 }
 0xcf9   :  { %v7854_v14 = vpop.f32.mrb[100].mxu1 }
 0xcfa   :  { %v4793_v17 = vadd.f32 %v7854_v14, %v10078_v55  ;;  %v4787_v62 = vpop.f32.mrb[101].mxu1 }
 0xcfb   :  { %v4788_v16 = vadd.f32 %v10078_v55, %v4787_v62 }
 0xcfc   :  { %v7043_v20 = vmul.f32 -1.442695, %v4793_v17 }
 0xcfd   :  { %v7042_v24 = vmul.f32 -1.442695, %v4788_v16 }
 0xcfe   :  { %8412 = vpow2.f32 %v7043_v20 }
 0xcff   :  { %8414 = vpow2.f32 %v7042_v24 }
 0xd00   :  { %v8409_v25 = vpop.eup %8408 }
 0xd01   :  { %v8411_v59 = vpop.eup %8410  ;;  %v4953_v6 = vadd.f32 1.0, %v8409_v25 }
 0xd02   :  { %v4952_v28 = vadd.f32 1.0, %v8411_v59 }
 0xd03   :  { %8416 = vrcp.f32 %v4953_v6 }
 0xd04   :  { %8418 = vrcp.f32 %v4952_v28 }
 0xd08   :  { %v8413_v30 = vpop.eup %8412 }
 0xd09   :  { %v8415_v1 = vpop.eup %8414  ;;  %v4803_v33 = vadd.f32 1.0, %v8413_v30 }
 0xd0a   :  { %v4802_v26 = vadd.f32 1.0, %v8415_v1 }
 0xd0b   :  { %8420 = vrcp.f32 %v4803_v33 }
 0xd0c   :  { %8422 = vrcp.f32 %v4802_v26 }
 0xd0d   :  { %v8417_v34 = vpop.eup %8416 }
 0xd0e   :  { %v8419_v36 = vpop.eup %8418  ;;  %v4959_v43 = vmul.f32 2.0, %v8417_v34  ;;  %v4963_v46 = vmul.f32 %v8417_v34, %v10098_v39 }
 0xd0f   :  { %v4958_v47 = vmul.f32 2.0, %v8419_v36  ;;  %v4962_v2 = vmul.f32 %v8419_v36, %v10100_v19 }
 0xd10   :  { %v7051_v38 = vadd.f32 -1.0, %v4959_v43 }
 0xd11   :  { %v7050_v48 = vadd.f32 -1.0, %v4958_v47 }
 0xd15   :  { %v8421_v29 = vpop.eup %8420 }
 0xd16   :  { %v8423_v37 = vpop.eup %8422  ;;  %v4809_v21 = vmul.f32 2.0, %v8421_v29  ;;  %v4813_v18 = vmul.f32 %v8421_v29, %v10090_v15 }
 0xd17   :  { %v4808_v61 = vmul.f32 2.0, %v8423_v37  ;;  %v4812_v60 = vmul.f32 %v8423_v37, %v10092_v13 }
 0xd18   :  { %v7045_v41 = vadd.f32 -1.0, %v4809_v21 }
 0xd19   :  { %v7044_v45 = vadd.f32 -1.0, %v4808_v61 }
 0xd1a   :  { %4818 = vrot.lane.b32.xlu1 %v7045_v41, %s8493_s18 }
 0xd1b   :  { %4816 = vrot.lane.b32.xlu0 %v7044_v45, %s8493_s18 }
 0xd1e   :  { %4968 = vrot.lane.b32.xlu1 %v7051_v38, %s8493_s18 }
 0xd1f   :  { %4966 = vrot.lane.b32.xlu0 %v7050_v48, %s8493_s18 }
 0xd8c   :  { %v4819_v7 = vpop.permute.xlu1 %4818 }
 0xd8d   :  { %v4823_v50 = vmul.f32 %v8421_v29, %v4819_v7  ;;  %v4817_v51 = vpop.permute.xlu0 %4816 }
 0xd8e   :  { %v4822_v52 = vmul.f32 %v8423_v37, %v4817_v51 }
 0xd8f   :  { %4828 = vrot.lane.b32.xlu1 %v4823_v50, %s8494_s10 }
 0xd90   :  { %v4969_v32 = vpop.permute.xlu1 %4968  ;;  %4826 = vrot.lane.b32.xlu0 %v4822_v52, %s8494_s10 }
 0xd91   :  { %v4973_v53 = vmul.f32 %v8417_v34, %v4969_v32  ;;  %v4967_v27 = vpop.permute.xlu0 %4966 }
 0xd92   :  { %v4972_v56 = vmul.f32 %v8419_v36, %v4967_v27 }
 0xd93   :  { %4978 = vrot.lane.b32.xlu1 %v4973_v53, %s8494_s10 }
 0xd94   :  { %4976 = vrot.lane.b32.xlu0 %v4972_v56, %s8494_s10 }
 0xe01   :  { %v4829_v58 = vpop.permute.xlu1 %4828 }
 0xe02   :  { %v10152_v31 = vadd.f32 %v4829_v58, %v4813_v18  ;;  %v4827_v49 = vpop.permute.xlu0 %4826 }
 0xe03   :  { %v10154_v23 = vadd.f32 %v4827_v49, %v4812_v60 }
 0xe04   :  { %8424 = vtanh.f32 %v10152_v31 }
 0xe05   :  { %8426 = vtanh.f32 %v10154_v23  ;;  %v4979_v0 = vpop.permute.xlu1 %4978 }
 0xe06   :  { %v10160_v5 = vadd.f32 %v4979_v0, %v4963_v46  ;;  %v4977_v15 = vpop.permute.xlu0 %4976 }
 0xe07   :  { %v10162_v8 = vadd.f32 %v4977_v15, %v4962_v2 }
 0xe08   :  { %8428 = vtanh.f32 %v10160_v5 }
 0xe09   :  { %8430 = vtanh.f32 %v10162_v8 }
 0xe0e   :  { %v8425_v13 = vpop.eup %8424 }
 0xe0f   :  { %v8427_v9 = vpop.eup %8426  ;;  %4840 = vrot.lane.b32.xlu1 %v8425_v13, %s8493_s18 }
 0xe10   :  { %4838 = vrot.lane.b32.xlu0 %v8427_v9, %s8493_s18 }
 0xe12   :  { %v8429_v39 = vpop.eup %8428 }
 0xe13   :  { %v8431_v10 = vpop.eup %8430  ;;  %4990 = vrot.lane.b32.xlu1 %v8429_v39, %s8493_s18 }
 0xe14   :  { %4988 = vrot.lane.b32.xlu0 %v8431_v10, %s8493_s18 }
 0xe81   :  { %v4841_v19 = vpop.permute.xlu1 %4840 }
 0xe82   :  { %v10170_v57 = vmul.f32 %v8421_v29, %v4841_v19  ;;  %v4839_v11 = vpop.permute.xlu0 %4838 }
 0xe83   :  { %v10172_v12 = vmul.f32 %v8423_v37, %v4839_v11 }
 0xe84   :  { %4850 = vrot.lane.b32.xlu1 %v10170_v57, %s8493_s18 }
 0xe85   :  { %v4991_v14 = vpop.permute.xlu1 %4990  ;;  %4848 = vrot.lane.b32.xlu0 %v10172_v12, %s8493_s18 }
 0xe86   :  { %v4995_v17 = vmul.f32 %v8417_v34, %v4991_v14  ;;  %v4989_v62 = vpop.permute.xlu0 %4988 }
 0xe87   :  { %v4994_v16 = vmul.f32 %v8419_v36, %v4989_v62 }
 0xe88   :  { %5000 = vrot.lane.b32.xlu1 %v4995_v17, %s8494_s10 }
 0xe89   :  { %4998 = vrot.lane.b32.xlu0 %v4994_v16, %s8494_s10 }
 0xef6   :  { %v4851_v20 = vpop.permute.xlu1 %4850 }
 0xef7   :  { %4855 = vst.msk [vmem:[#allocation4 + $0x8] sm:$0xff] %vm4561_vm4, %v4851_v20  ;;  %v4849_v24 = vpop.permute.xlu0 %4848 }
 0xef8   :  { %4854 = vst.msk [vmem:[#allocation4] sm:$0xff] %vm4561_vm4, %v4849_v24 }
 0xefa   :  { %v5001_v25 = vpop.permute.xlu1 %5000 }
 0xefb   :  { %5005 = vst.msk [vmem:[#allocation4 + $0x8] sm:$0xff] %vm4273_vm3, %v5001_v25  ;;  %v4999_v59 = vpop.permute.xlu0 %4998 }
 0xefc   :  { %5004 = vst.msk [vmem:[#allocation4] sm:$0xff] %vm4273_vm3, %v4999_v59  ;;  %7893 = vmatprep.mubr.msk.f32.mxu1 %vm4273_vm3, %v4999_v59 }
 0xefd   :  { %7894 = vmatmul.mubr.msk.f32.vlgmr.msra.gmra.mrb[102].mxu1 %vm4273_vm3, %v5001_v25 }
 0xefe   :  { %8126 = vmatpush3.bf16.msra.mxu1 %v10018_v35 }
 0xeff   :  { %8128 = vmatprep.subr.bf16.mxu1 %v10023_v22 }
 0xf02   :  { %8130 = vmatpush3.bf16.msra.mxu1 %v10023_v22  ;;  %v5007_v28 = vld [vmem:[#allocation4 + $0x8] sm:$0xff] }
 0xf03   :  { %v5006_v6 = vld [vmem:[#allocation4] sm:$0xff]  ;;  %8132 = vmatprep.subr.bf16.mxu1 %v10038_v40 }
 0xf04   :  { %7882 = vmatprep.mubr.msk.f32.mxu0 %vm55_vm0, %v5006_v6 }
 0xf05   :  { %7883 = vmatmul.mubr.msk.f32.vlgmr.msra.gmra.mrb[108].mxu0 %vm55_vm0, %v5007_v28 }
 0xf06   :  { %8134 = vmatpush3.bf16.msra.mxu1 %v10038_v40  ;;  %7919 = vmatprep.mubr.msk.bf16.mxu0 %vm8495_vm5, %v8492_v3 }
 0xf07   :  { %8136 = vmatprep.subr.bf16.mxu1 %v10047_v44 }
 0xf0a   :  { %8138 = vmatpush3.bf16.msra.mxu1 %v10047_v44 }
 0xf0b   :  { %7931 = vmatprep.subr.bf16.mxu1 %v8492_v3 }
 0xfd0   :  { %v7895_v35 = vpop.f32.mrb[102].mxu1 }
 0xfd1   :  { %v5238_v30 = vadd.f32 %v7895_v35, %v9995_v4  ;;  %v5228_v22 = vpop.f32.mrb[103].mxu1 }
 0xfd2   :  { %v5237_v1 = vadd.f32 %v5228_v22, %v9991_v63 }
 0xfd3   :  { %v7061_v33 = vmul.f32 -1.442695, %v5238_v30 }
 0xfd4   :  { %v7060_v26 = vmul.f32 -1.442695, %v5237_v1 }
 0xfd5   :  { %8432 = vpow2.f32 %v7061_v33 }
 0xfd6   :  { %8434 = vpow2.f32 %v7060_v26 }
 0xfd8   :  { %v7884_v34 = vpop.f32.mrb[108].mxu0 }
 0xfd9   :  { %v5086_v36 = vadd.f32 %v7884_v34, %v10078_v55  ;;  %v5080_v40 = vpop.f32.mrb[109].mxu0 }
 0xfda   :  { %v5081_v29 = vadd.f32 %v10078_v55, %v5080_v40 }
 0xfdb   :  { %v7055_v37 = vmul.f32 -1.442695, %v5086_v36 }
 0xfdc   :  { %v7054_v44 = vmul.f32 -1.442695, %v5081_v29 }
 0xfdd   :  { %8436 = vpow2.f32 %v7055_v37 }
 0xfde   :  { %8438 = vpow2.f32 %v7054_v44 }
 0xfdf   :  { %v8433_v21 = vpop.eup %8432 }
 0xfe0   :  { %v8435_v61 = vpop.eup %8434  ;;  %v5246_v4 = vadd.f32 1.0, %v8433_v21 }
 0xfe1   :  { %v5245_v41 = vadd.f32 1.0, %v8435_v61 }
 0xfe2   :  { %8440 = vrcp.f32 %v5246_v4 }
 0xfe3   :  { %8442 = vrcp.f32 %v5245_v41 }
 0xfe7   :  { %v8437_v43 = vpop.eup %8436 }
 0xfe8   :  { %v8439_v63 = vpop.eup %8438  ;;  %v5096_v45 = vadd.f32 1.0, %v8437_v43 }
 0xfe9   :  { %v5095_v47 = vadd.f32 1.0, %v8439_v63 }
 0xfea   :  { %8444 = vrcp.f32 %v5096_v45 }
 0xfeb   :  { %8446 = vrcp.f32 %v5095_v47 }
 0xfec   :  { %v8441_v38 = vpop.eup %8440 }
 0xfed   :  { %v8443_v48 = vpop.eup %8442  ;;  %v5252_v53 = vmul.f32 2.0, %v8441_v38  ;;  %v5256_v62 = vmul.f32 %v8441_v38, %v10160_v5 }
 0xfee   :  { %v5251_v56 = vmul.f32 2.0, %v8443_v48  ;;  %v5255_v20 = vmul.f32 %v8443_v48, %v10162_v8 }
 0xfef   :  { %v7063_v18 = vadd.f32 -1.0, %v5252_v53 }
 0xff0   :  { %v7062_v58 = vadd.f32 -1.0, %v5251_v56 }
 0xff4   :  { %v8445_v7 = vpop.eup %8444 }
 0xff5   :  { %v8447_v50 = vpop.eup %8446  ;;  %v5102_v51 = vmul.f32 2.0, %v8445_v7  ;;  %v5106_v39 = vmul.f32 %v8445_v7, %v10152_v31 }
 0xff6   :  { %v5101_v52 = vmul.f32 2.0, %v8447_v50  ;;  %v5105_v19 = vmul.f32 %v8447_v50, %v10154_v23 }
 0xff7   :  { %v7057_v32 = vadd.f32 -1.0, %v5102_v51 }
 0xff8   :  { %v7056_v27 = vadd.f32 -1.0, %v5101_v52 }
 0xff9   :  { %5111 = vrot.lane.b32.xlu1 %v7057_v32, %s8493_s18 }
 0xffa   :  { %5109 = vrot.lane.b32.xlu0 %v7056_v27, %s8493_s18 }
 0xffd   :  { %5261 = vrot.lane.b32.xlu1 %v7063_v18, %s8493_s18 }
 0xffe   :  { %5259 = vrot.lane.b32.xlu0 %v7062_v58, %s8493_s18 }
0x106b   :  { %v5112_v60 = vpop.permute.xlu1 %5111 }
0x106c   :  { %v5116_v49 = vmul.f32 %v8445_v7, %v5112_v60  ;;  %v5110_v46 = vpop.permute.xlu0 %5109 }
0x106d   :  { %v5115_v0 = vmul.f32 %v8447_v50, %v5110_v46 }
0x106e   :  { %5121 = vrot.lane.b32.xlu1 %v5116_v49, %s8494_s10 }
0x106f   :  { %v5262_v2 = vpop.permute.xlu1 %5261  ;;  %5119 = vrot.lane.b32.xlu0 %v5115_v0, %s8494_s10 }
0x1070   :  { %v5266_v15 = vmul.f32 %v8441_v38, %v5262_v2  ;;  %v5260_v13 = vpop.permute.xlu0 %5259 }
0x1071   :  { %v5265_v9 = vmul.f32 %v8443_v48, %v5260_v13 }
0x1072   :  { %5271 = vrot.lane.b32.xlu1 %v5266_v15, %s8494_s10 }
0x1073   :  { %5269 = vrot.lane.b32.xlu0 %v5265_v9, %s8494_s10  ;;  %v8340_v9 = vld [vmem:[%s10553_s14 + $0x10] sm:$0xff]  }
0x1074   :  { %7916 = vmatpush3.bf16.msra.mxu0 %v8340_v9 }
0x1075   :  { %7917 = vmatprep.subr.bf16.mxu0 %v8492_v3 }
0x10e0   :  { %v5122_v10 = vpop.permute.xlu1 %5121 }
0x10e1   :  { %v10210_v11 = vadd.f32 %v5122_v10, %v5106_v39  ;;  %v5120_v14 = vpop.permute.xlu0 %5119  ;;  %v8341_v39 = vld [vmem:[%s10553_s14 + $0x20] sm:$0xff]  }
0x10e2   :  { %v10212_v17 = vadd.f32 %v5120_v14, %v5105_v19 }
0x10e3   :  { %8448 = vtanh.f32 %v10210_v11 }
0x10e4   :  { %8450 = vtanh.f32 %v10212_v17  ;;  %v5272_v16 = vpop.permute.xlu1 %5271 }
0x10e5   :  { %v5276_v24 = vadd.f32 %v5272_v16, %v5256_v62  ;;  %v5270_v25 = vpop.permute.xlu0 %5269 }
0x10e6   :  { %v5275_v31 = vadd.f32 %v5270_v25, %v5255_v20 }
0x10e7   :  { %8452 = vtanh.f32 %v5276_v24 }
0x10e8   :  { %8454 = vtanh.f32 %v5275_v31 }
0x10ed   :  { %v8449_v23 = vpop.eup %8448 }
0x10ee   :  { %v8451_v59 = vpop.eup %8450  ;;  %5133 = vrot.lane.b32.xlu1 %v8449_v23, %s8493_s18 }
0x10ef   :  { %5131 = vrot.lane.b32.xlu0 %v8451_v59, %s8493_s18 }
0x10f1   :  { %v8453_v6 = vpop.eup %8452 }
0x10f2   :  { %v8455_v28 = vpop.eup %8454  ;;  %5283 = vrot.lane.b32.xlu1 %v8453_v6, %s8493_s18 }
0x10f3   :  { %5281 = vrot.lane.b32.xlu0 %v8455_v28, %s8493_s18 }
0x1160   :  { %v5134_v5 = vpop.permute.xlu1 %5133 }
0x1161   :  { %v10222_v35 = vmul.f32 %v8445_v7, %v5134_v5  ;;  %v5132_v8 = vpop.permute.xlu0 %5131 }
0x1162   :  { %v5137_v30 = vmul.f32 %v8447_v50, %v5132_v8 }
0x1163   :  { %5143 = vrot.lane.b32.xlu1 %v10222_v35, %s8493_s18 }
0x1164   :  { %v5284_v22 = vpop.permute.xlu1 %5283  ;;  %5141 = vrot.lane.b32.xlu0 %v5137_v30, %s8493_s18 }
0x1165   :  { %v5288_v1 = vmul.f32 %v8441_v38, %v5284_v22  ;;  %v5282_v33 = vpop.permute.xlu0 %5281 }
0x1166   :  { %v5287_v26 = vmul.f32 %v8443_v48, %v5282_v33 }
0x1167   :  { %5293 = vrot.lane.b32.xlu1 %v5288_v1, %s8494_s10 }
0x1168   :  { %5291 = vrot.lane.b32.xlu0 %v5287_v26, %s8494_s10 }
0x11d5   :  { %v5144_v34 = vpop.permute.xlu1 %5143 }
0x11d6   :  { %5148 = vst.msk [vmem:[#allocation4 + $0x8] sm:$0xff] %vm4561_vm4, %v5144_v34  ;;  %v5142_v36 = vpop.permute.xlu0 %5141 }
0x11d7   :  { %5147 = vst.msk [vmem:[#allocation4] sm:$0xff] %vm4561_vm4, %v5142_v36 }
0x11d9   :  { %v5294_v40 = vpop.permute.xlu1 %5293 }
0x11da   :  { %5298 = vst.msk [vmem:[#allocation4 + $0x8] sm:$0xff] %vm4273_vm3, %v5294_v40  ;;  %v5292_v29 = vpop.permute.xlu0 %5291 }
0x11db   :  { %5297 = vst.msk [vmem:[#allocation4] sm:$0xff] %vm4273_vm3, %v5292_v29 }
0x11e1   :  { %v5300_v44 = vld [vmem:[#allocation4 + $0x8] sm:$0xff] }
0x11e2   :  { %v5299_v37 = vld [vmem:[#allocation4] sm:$0xff] }
0x11e3   :  { %7912 = vmatprep.mubr.msk.f32.mxu1 %vm55_vm0, %v5299_v37 }
0x11e4   :  { %7913 = vmatmul.mubr.msk.f32.vlgmr.msra.gmra.mrb[104].mxu1 %vm55_vm0, %v5300_v44 }
0x11e5   :  { %7932 = vmatpush3.bf16.msra.mxu1 %v8341_v39  ;;  %7935 = vmatprep.mubr.msk.bf16.mxu1 %vm8495_vm5, %v8492_v3 }
0x11e6   :  { %7933 = vmatprep.subr.bf16.mxu1 %v8492_v3 }
0x12b7   :  { %v7914_v21 = vpop.f32.mrb[104].mxu1 }
0x12b8   :  { %v5379_v61 = vadd.f32 %v7914_v21, %v10078_v55  ;;  %v5373_v4 = vpop.f32.mrb[105].mxu1 }
0x12b9   :  { %v5374_v41 = vadd.f32 %v10078_v55, %v5373_v4 }
0x12ba   :  { %v7067_v43 = vmul.f32 -1.442695, %v5379_v61 }
0x12bb   :  { %v7066_v63 = vmul.f32 -1.442695, %v5374_v41 }
0x12bc   :  { %8456 = vpow2.f32 %v7067_v43 }
0x12bd   :  { %8458 = vpow2.f32 %v7066_v63 }
0x12c6   :  { %v8457_v45 = vpop.eup %8456 }
0x12c7   :  { %v8459_v47 = vpop.eup %8458  ;;  %v5389_v38 = vadd.f32 1.0, %v8457_v45 }
0x12c8   :  { %v5388_v48 = vadd.f32 1.0, %v8459_v47 }
0x12c9   :  { %8460 = vrcp.f32 %v5389_v38 }
0x12ca   :  { %8462 = vrcp.f32 %v5388_v48 }
0x12d3   :  { %v8461_v7 = vpop.eup %8460 }
0x12d4   :  { %v8463_v50 = vpop.eup %8462  ;;  %v5395_v51 = vmul.f32 2.0, %v8461_v7  ;;  %v5399_v58 = vmul.f32 %v8461_v7, %v10210_v11 }
0x12d5   :  { %v5394_v52 = vmul.f32 2.0, %v8463_v50  ;;  %v5398_v49 = vmul.f32 %v8463_v50, %v10212_v17 }
0x12d6   :  { %v7069_v32 = vadd.f32 -1.0, %v5395_v51 }
0x12d7   :  { %v7068_v53 = vadd.f32 -1.0, %v5394_v52 }
0x12d8   :  { %5404 = vrot.lane.b32.xlu1 %v7069_v32, %s8493_s18 }
0x12d9   :  { %5402 = vrot.lane.b32.xlu0 %v7068_v53, %s8493_s18 }
0x134a   :  { %v5405_v55 = vpop.permute.xlu1 %5404 }
0x134b   :  { %v5409_v27 = vmul.f32 %v8461_v7, %v5405_v55  ;;  %v5403_v56 = vpop.permute.xlu0 %5402 }
0x134c   :  { %v5408_v18 = vmul.f32 %v8463_v50, %v5403_v56 }
0x134d   :  { %5414 = vrot.lane.b32.xlu1 %v5409_v27, %s8494_s10 }
0x134e   :  { %5412 = vrot.lane.b32.xlu0 %v5408_v18, %s8494_s10 }
0x13bf   :  { %v5415_v60 = vpop.permute.xlu1 %5414 }
0x13c0   :  { %v5419_v46 = vadd.f32 %v5415_v60, %v5399_v58  ;;  %v5413_v0 = vpop.permute.xlu0 %5412 }
0x13c1   :  { %v5418_v2 = vadd.f32 %v5413_v0, %v5398_v49 }
0x13c2   :  { %8464 = vtanh.f32 %v5419_v46 }
0x13c3   :  { %8466 = vtanh.f32 %v5418_v2 }
0x13cc   :  { %v8465_v15 = vpop.eup %8464 }
0x13cd   :  { %v8467_v13 = vpop.eup %8466  ;;  %5426 = vrot.lane.b32.xlu1 %v8465_v15, %s8493_s18 }
0x13ce   :  { %5424 = vrot.lane.b32.xlu0 %v8467_v13, %s8493_s18 }
0x13d1   :  { %5149 = vrot.lane.b32.xlu1 %v5137_v30, %s8494_s10 }
0x13d2   :  { %4856 = vrot.lane.b32.xlu0 %v10172_v12, %s8494_s10 }
0x13d6   :  { %4564 = vrot.lane.b32.xlu0 %v10110_v42, %s8494_s10  ;;  %v8343_v42 = vld [vmem:[%s10553_s14 + $0x28] sm:$0xff]  }
0x13d7   :  { %7934 = vmatpush3.bf16.msra.mxu1 %v8343_v42 }
0x13d8   :  { %7947 = vmatprep.subr.bf16.mxu1 %v8492_v3 }
0x13da   :  { %4858 = vrot.lane.b32.xlu0 %v10170_v57, %s8494_s10 }
0x13de   :  { %4566 = vrot.lane.b32.xlu0 %v10108_v54, %s8494_s10  ;;  %v8342_v54 = vld [vmem:[%s10553_s14 + $0x18] sm:$0xff]  }
0x13df   :  { %7918 = vmatpush3.bf16.msra.mxu0 %v8342_v54 }
0x13e0   :  { %7923 = vmatprep.subr.bf16.mxu0 %v8492_v3 }
0x143f   :  { %v5427_v10 = vpop.permute.xlu1 %5426 }
0x1440   :  { %v5425_v19 = vpop.permute.xlu0 %5424  ;;  %v5431_v17 = vmul.f32 %v8461_v7, %v5427_v10 }
0x1441   :  { %v5430_v12 = vmul.f32 %v8463_v50, %v5425_v19 }
0x1443   :  { %v5150_v57 = vpop.permute.xlu1 %5149  ;;  %5434 = vrot.lane.b32.xlu0 %v5430_v12, %s8493_s18  ;;  %5442 = vrot.lane.b32.xlu1 %v5430_v12, %s8494_s10 }
0x1444   :  { %5156 = vst.msk [vmem:[#allocation5 + $0x20] sm:$0xff] %vm4273_vm3, %v5150_v57  ;;  %v4857_v11 = vpop.permute.xlu0 %4856 }
0x1445   :  { %4863 = vst.msk [vmem:[#allocation5 + $0x10] sm:$0xff] %vm4273_vm3, %v4857_v11 }
0x1447   :  { %5151 = vrot.lane.b32.xlu1 %v10222_v35, %s8494_s10 }
0x1448   :  { %v4565_v14 = vpop.permute.xlu0 %4564 }
0x1449   :  { %4570 = vst.msk [vmem:[#allocation5] sm:$0xff] %vm4273_vm3, %v4565_v14 }
0x144b   :  { %5444 = vrot.lane.b32.xlu1 %v5431_v17, %s8494_s10  ;;  %v5465_v20 = vld [vmem:[#allocation5 + $0x21] sm:$0x1]  ;;  %v5621_v25 = vld [vmem:[#allocation5 + $0x22] sm:$0x1]  ;;  %v5453_v59 = vld [vmem:[#allocation5 + $0x20] sm:$0x1] }
0x144c   :  { %v4859_v62 = vpop.permute.xlu0 %4858  ;;  %v5464_v24 = vld [vmem:[#allocation5 + $0x11] sm:$0x1]  ;;  %v5620_v31 = vld [vmem:[#allocation5 + $0x12] sm:$0x1]  ;;  %v5452_v23 = vld [vmem:[#allocation5 + $0x10] sm:$0x1]  ;;  %v5469_v28 = vpack.c.bf16 %v5465_v20, %v5465_v20  ;;  %v5625_v8 = vpack.c.bf16 %v5621_v25, %v5621_v25  ;;  %v5457_v1 = vpack.c.bf16 %v5453_v59, %v5453_v59 }
0x144d   :  { %4864 = vst.msk [vmem:[#allocation5 + $0x18] sm:$0xff] %vm4273_vm3, %v4859_v62  ;;  %v5468_v5 = vpack.c.bf16 %v5464_v24, %v5464_v24  ;;  %v5624_v30 = vpack.c.bf16 %v5620_v31, %v5620_v31  ;;  %v5456_v22 = vpack.c.bf16 %v5452_v23, %v5452_v23  ;;  %v5788_v33 = vld [vmem:[#allocation5 + $0x14] sm:$0x1]  ;;  %v5789_v40 = vld [vmem:[#allocation5 + $0x24] sm:$0x1]  ;;  %s8496_s10 = smov [#allocation6]  }
0x144e   :  { %v5482_v29 = vunpack.c.l.b16 %v5469_v28  ;;  %v5638_v61 = vunpack.c.l.b16 %v5625_v8  ;;  %v5792_v4 = vpack.c.bf16 %v5788_v33, %v5788_v33  ;;  %v10287_v63 = vunpack.c.l.b16 %v5457_v1  ;;  %v5704_v32 = vld [vmem:[#allocation5 + $0x13] sm:$0x1]  ;;  %v5705_v46 = vld [vmem:[#allocation5 + $0x23] sm:$0x1]  ;;  %v5956_v23 = vld [vmem:[#allocation5 + $0x16] sm:$0x1] }
0x144f   :  { %5436 = vrot.lane.b32.xlu1 %v5431_v17, %s8493_s18  ;;  %v5481_v21 = vunpack.c.l.b16 %v5468_v5  ;;  %v5637_v41 = vunpack.c.l.b16 %v5624_v30  ;;  %v5554_v43 = vunpack.c.l.b16 %v5456_v22  ;;  %v5793_v47 = vpack.c.bf16 %v5789_v40, %v5789_v40  ;;  %v5957_v59 = vld [vmem:[#allocation5 + $0x26] sm:$0x1]  ;;  %v5872_v22 = vld [vmem:[#allocation5 + $0x15] sm:$0x1]  ;;  %s6810_s25 = sshll.u32 %s8496_s10, 4  ;;  %s6811_s25 = int_to_ptr.vmem [resolvable:$true] %s6810_s25 }
0x1450   :  { %v4567_v16 = vpop.permute.xlu0 %4566  ;;  %v5463_v6 = vld [vmem:[#allocation5 + $0x1] sm:$0x1]  ;;  %v5619_v35 = vld [vmem:[#allocation5 + $0x2] sm:$0x1]  ;;  %v5451_v44 = vld [vmem:[#allocation5] sm:$0x1]  ;;  %v5805_v56 = vunpack.c.l.b16 %v5792_v4  ;;  %v5708_v19 = vpack.c.bf16 %v5704_v32, %v5704_v32  ;;  %p8473_p1 = scmp.lt.s32.totalorder %s6811_s25, %s6811_s25 }
0x1451   :  { %4571 = vst.msk [vmem:[#allocation5 + $0x8] sm:$0xff] %vm4273_vm3, %v4567_v16  ;;  %v5467_v36 = vpack.c.bf16 %v5463_v6, %v5463_v6  ;;  %v5623_v37 = vpack.c.bf16 %v5619_v35, %v5619_v35  ;;  %v5787_v45 = vld [vmem:[#allocation5 + $0x4] sm:$0x1]  ;;  %v5455_v7 = vpack.c.bf16 %v5451_v44, %v5451_v44  ;;  %v5487_v50 = vrot.slane %v5482_v29, 6  ;;  %v5703_v52 = vld [vmem:[#allocation5 + $0x3] sm:$0x1] }
0x1452   :  { %v5484_v53 = vrot.slane %v5481_v21, 7  ;;  %v5642_v55 = vrot.slane %v5638_v61, 6  ;;  %v5791_v27 = vpack.c.bf16 %v5787_v45, %v5787_v45  ;;  %v5640_v18 = vrot.slane %v5637_v41, 7  ;;  %v5955_v30 = vld [vmem:[#allocation5 + $0x6] sm:$0x1]  ;;  %v8344_v41 = vld [vmem:[%s10553_s14] sm:$0xff]  }
0x1453   :  { %v5480_v48 = vunpack.c.l.b16 %v5467_v36  ;;  %v5636_v51 = vunpack.c.l.b16 %v5623_v37  ;;  %v5557_v58 = vrot.slane %v5554_v43, 7  ;;  %v5559_v60 = vrot.slane %v10287_v63, 6  ;;  %v5871_v40 = vld [vmem:[#allocation5 + $0x5] sm:$0x1]  ;;  %v8345_v45 = vld [vmem:[%s10553_s14 + $0x40] sm:$0xff]   ;;  %s8468_s26 = scalar_lea.vmem %s6811_s25, 64 }
0x1454   :  { %v10291_v49 = vunpack.c.l.b16 %v5793_v47  ;;  %v5553_v39 = vunpack.c.l.b16 %v5455_v7  ;;  %v5707_v10 = vpack.c.bf16 %v5703_v52, %v5703_v52  ;;  %v5804_v17 = vunpack.c.l.b16 %v5791_v27  ;;  %p8469_p0 = scmp.ne.s32.totalorder %s6811_s25, %s8468_s26  ;;  %p8474_p2 = scmp.lt.s32.totalorder %s8468_s26, %s8468_s26 }
0x1455   :  { %v5486_v15 = vsel %vm5485_vm6, %v5484_v53, %v5480_v48  ;;  %v5641_v42 = vsel %vm5485_vm6, %v5640_v18, %v5636_v51  ;;  %v5808_v62 = vrot.slane %v5805_v56, 7  ;;  %v5709_v16 = vpack.c.bf16 %v5705_v46, %v5705_v46  ;;  %v5873_v51 = vld [vmem:[#allocation5 + $0x25] sm:$0x1]  ;;  %v8346_v46 = vld [vmem:[%s10553_s14 + $0x8] sm:$0xff]  }
0x1456   :  { %v5489_v24 = vsel %vm5488_vm7, %v5487_v50, %v5486_v15  ;;  %v5810_v31 = vrot.slane %v10291_v49, 6  ;;  %v5643_v28 = vsel %vm5488_vm7, %v5642_v55, %v5641_v42  ;;  %v5558_v5 = vsel %vm5485_vm6, %v5557_v58, %v5553_v39  ;;  %p8475_p3 = por %p8474_p2, %p8473_p1 }
0x1457   :  { %v5720_v35 = vunpack.c.l.b16 %v5707_v10  ;;  %v5721_v8 = vunpack.c.l.b16 %v5708_v19  ;;  %v5809_v29 = vsel %vm5485_vm6, %v5808_v62, %v5804_v17  ;;  %v5722_v37 = vunpack.c.l.b16 %v5709_v16 }
0x1458   :  { %v5960_v21 = vpack.c.bf16 %v5956_v23, %v5956_v23  ;;  %v5961_v61 = vpack.c.bf16 %v5957_v59, %v5957_v59  ;;  %v5959_v47 = vpack.c.bf16 %v5955_v30, %v5955_v30  ;;  %v5875_v52 = vpack.c.bf16 %v5871_v40, %v5871_v40  ;;  %v10317_v49 = vld [vmem:[#allocation5 + $0x8] sm:$0x1]  ;;  %v6712_v23 = vld [vmem:[#allocation5 + $0x1f] sm:$0x1]  ;;  %v8349_v59 = vld [vmem:[%s10553_s14 + $0x60] sm:$0xff]   ;;  %p8476_p4 = pnand %p8475_p3, %p8469_p0 }
0x1459   :  { %v5724_v55 = vrot.slane %v5721_v8, 7  ;;  %v5560_v56 = vsel %vm5488_vm7, %v5559_v60, %v5558_v5  ;;  %v5877_v60 = vpack.c.bf16 %v5873_v51, %v5873_v51  ;;  %v5726_v39 = vrot.slane %v5722_v37, 6  ;;  %v6711_v30 = vld [vmem:[#allocation5 + $0xf] sm:$0x1] }
0x145a   :  { %v5973_v18 = vunpack.c.l.b16 %v5960_v21  ;;  %v10315_v58 = vunpack.c.l.b16 %v5961_v61  ;;  %v5972_v10 = vunpack.c.l.b16 %v5959_v47  ;;  %v6127_v62 = vpack.c.bf16 %v10317_v49, %v10317_v49 }
0x145b   :  { %v5725_v63 = vsel %vm5485_vm6, %v5724_v55, %v5720_v35  ;;  %v6040_v35 = vld [vmem:[#allocation5 + $0x17] sm:$0x1]  ;;  %v6716_v37 = vpack.c.bf16 %v6712_v23, %v6712_v23 }
0x145c   :  { %v5727_v16 = vsel %vm5488_vm7, %v5726_v39, %v5725_v63  ;;  %v6044_v61 = vpack.c.bf16 %v6040_v35, %v6040_v35  ;;  %v8353_v39 = vld [vmem:[%s10553_s14 + $0x80] sm:$0xff]   ;;  %v6208_v35 = vld [vmem:[#allocation5 + $0x19] sm:$0x1] }
0x14b5   :  { %v5443_v26 = vpop.permute.xlu1 %5442  ;;  %v5435_v34 = vpop.permute.xlu0 %5434 }
0x14b6   :  { %5449 = vst.msk [vmem:[#allocation5 + $0x30] sm:$0xff] %vm4273_vm3, %v5443_v26 }
0x14b7   :  { %5440 = vst.msk [vmem:[#allocation4] sm:$0xff] %vm4561_vm4, %v5435_v34 }
0x14b9   :  { %v5152_v38 = vpop.permute.xlu1 %5151 }
0x14ba   :  { %5157 = vst.msk [vmem:[#allocation5 + $0x28] sm:$0xff] %vm4273_vm3, %v5152_v38  ;;  %v5876_v38 = vpack.c.bf16 %v5872_v22, %v5872_v22 }
0x14bc   :  { %v5889_v15 = vunpack.c.l.b16 %v5876_v38  ;;  %v6140_v38 = vunpack.c.l.b16 %v6127_v62 }
0x14bd   :  { %v5445_v0 = vpop.permute.xlu1 %5444  ;;  %v5466_v2 = vld [vmem:[#allocation5 + $0x31] sm:$0x1]  ;;  %v5622_v13 = vld [vmem:[#allocation5 + $0x32] sm:$0x1]  ;;  %v5454_v9 = vld [vmem:[#allocation5 + $0x30] sm:$0x1] }
0x14be   :  { %5450 = vst.msk [vmem:[#allocation5 + $0x38] sm:$0xff] %vm4273_vm3, %v5445_v0  ;;  %v5470_v12 = vpack.c.bf16 %v5466_v2, %v5466_v2  ;;  %v5626_v54 = vpack.c.bf16 %v5622_v13, %v5622_v13  ;;  %v5458_v57 = vpack.c.bf16 %v5454_v9, %v5454_v9  ;;  %v5790_v11 = vld [vmem:[#allocation5 + $0x34] sm:$0x1]  ;;  %v5706_v36 = vld [vmem:[#allocation5 + $0x33] sm:$0x1]  ;;  %v8347_v0 = vld [vmem:[%s10553_s14 + $0x48] sm:$0xff]   ;;  %v5811_v2 = vsel %vm5488_vm7, %v5810_v31, %v5809_v29 }
0x14bf   :  { %v5794_v14 = vpack.c.bf16 %v5790_v11, %v5790_v11  ;;  %v5958_v44 = vld [vmem:[#allocation5 + $0x36] sm:$0x1]  ;;  %v5710_v50 = vpack.c.bf16 %v5706_v36, %v5706_v36  ;;  %v6124_v13 = vld [vmem:[#allocation5 + $0x18] sm:$0x1]  ;;  %v5874_v19 = vld [vmem:[#allocation5 + $0x35] sm:$0x1] }
0x14c0   :  { %v5483_v20 = vunpack.c.l.b16 %v5470_v12  ;;  %v5639_v25 = vunpack.c.l.b16 %v5626_v54  ;;  %v5556_v26 = vunpack.c.l.b16 %v5458_v57  ;;  %v5962_v27 = vpack.c.bf16 %v5958_v44, %v5958_v44  ;;  %v6039_v54 = vld [vmem:[#allocation5 + $0x7] sm:$0x1] }
0x14c1   :  { %v5437_v6 = vpop.permute.xlu1 %5436  ;;  %v5807_v34 = vunpack.c.l.b16 %v5794_v14  ;;  %v5723_v9 = vunpack.c.l.b16 %v5710_v50  ;;  %v5888_v12 = vunpack.c.l.b16 %v5875_v52  ;;  %v8348_v57 = vld [vmem:[%s10553_s14 + $0x30] sm:$0xff]   ;;  %v6125_v17 = vld [vmem:[#allocation5 + $0x28] sm:$0x1]  ;;  %v6128_v31 = vpack.c.bf16 %v6124_v13, %v6124_v13  ;;  %v6713_v55 = vld [vmem:[#allocation5 + $0x2f] sm:$0x1] }
0x14c2   :  { %5441 = vst.msk [vmem:[#allocation4 + $0x8] sm:$0xff] %vm4561_vm4, %v5437_v6  ;;  %v5490_v1 = vrot.slane %v5483_v20, 5  ;;  %v5644_v33 = vrot.slane %v5639_v25, 5  ;;  %v5561_v32 = vrot.slane %v5556_v26, 5  ;;  %v5975_v14 = vunpack.c.l.b16 %v5962_v27 }
0x14c3   :  { %v5812_v53 = vrot.slane %v5807_v34, 5  ;;  %v5976_v20 = vrot.slane %v5973_v18, 7  ;;  %v5878_v6 = vpack.c.bf16 %v5874_v19, %v5874_v19  ;;  %v5892_v5 = vrot.slane %v5889_v15, 7  ;;  %v6041_v34 = vld [vmem:[#allocation5 + $0x27] sm:$0x1] }
0x14c4   :  { %v5492_v4 = vsel %vm5491_vm8, %v5490_v1, %v5489_v24  ;;  %v5645_v43 = vsel %vm5491_vm8, %v5644_v33, %v5643_v28  ;;  %v5562_v42 = vsel %vm5491_vm8, %v5561_v32, %v5560_v56  ;;  %v5978_v24 = vrot.slane %v10315_v58, 6  ;;  %v6042_v32 = vld [vmem:[#allocation5 + $0x37] sm:$0x1]  ;;  %v6293_v58 = vld [vmem:[#allocation5 + $0x2a] sm:$0x1] }
0x14c5   :  { %v5493_v48 = vpack.c.b16 %v5492_v4, %v5492_v4  ;;  %v5646_v7 = vpack.c.b16 %v5645_v43, %v5645_v43  ;;  %v5813_v11 = vsel %vm5491_vm8, %v5812_v53, %v5811_v2  ;;  %v6126_v25 = vld [vmem:[#allocation5 + $0x38] sm:$0x1]  ;;  %v5890_v28 = vunpack.c.l.b16 %v5877_v60  ;;  %v6714_v49 = vld [vmem:[#allocation5 + $0x3f] sm:$0x1]  ;;  %v6294_v63 = vld [vmem:[#allocation5 + $0x3a] sm:$0x1] }
0x14c6   :  { %v6043_v8 = vpack.c.bf16 %v6039_v54, %v6039_v54  ;;  %v5563_v22 = vpack.c.b16 %v5562_v42, %v5562_v42  ;;  %v5814_v1 = vpack.c.b16 %v5813_v11, %v5813_v11  ;;  %v5728_v33 = vrot.slane %v5723_v9, 5  ;;  %v8351_v43 = vld [vmem:[%s10553_s14 + $0x68] sm:$0xff]   ;;  %v8352_v9 = vld [vmem:[%s10553_s14 + $0x50] sm:$0xff]  }
0x14c7   :  { %7920 = vmatmul.mubr.msk.bf16.vlgmr.msra.gmra.mrb[112].mxu0 %vm4273_vm3, %v5493_v48  ;;  %7936 = vmatmul.mubr.msk.bf16.vlgmr.msra.gmra.mrb[108].mxu1 %vm4273_vm3, %v5646_v7  ;;  %v6129_v26 = vpack.c.bf16 %v6125_v17, %v6125_v17  ;;  %v5977_v36 = vsel %vm5485_vm6, %v5976_v20, %v5972_v10  ;;  %v5980_v40 = vrot.slane %v5975_v14, 5  ;;  %v6130_v29 = vpack.c.bf16 %v6126_v25, %v6126_v25  ;;  %v10359_v7 = vld [vmem:[#allocation5 + $0x1a] sm:$0x1] }
0x14c8   :  { %7924 = vmatpush3.bf16.msra.mxu0 %v8344_v41  ;;  %7948 = vmatpush3.bf16.msra.mxu1 %v8345_v45  ;;  %v5893_v44 = vsel %vm5485_vm6, %v5892_v5, %v5888_v12  ;;  %v10351_v21 = vunpack.c.l.b16 %v6128_v31  ;;  %v6715_v4 = vpack.c.bf16 %v6711_v30, %v6711_v30  ;;  %v8350_v41 = vld [vmem:[%s10553_s14 + $0x38] sm:$0xff]   ;;  %v5891_v45 = vunpack.c.l.b16 %v5878_v6  ;;  %v8355_v6 = vld [vmem:[%s10553_s14 + $0x88] sm:$0xff]  }
0x14c9   :  { %7925 = vmatprep.subr.bf16.mxu0 %v8492_v3  ;;  %7949 = vmatprep.subr.bf16.mxu1 %v8492_v3  ;;  %v5894_v47 = vrot.slane %v5890_v28, 6  ;;  %v6045_v48 = vpack.c.bf16 %v6041_v34, %v6041_v34  ;;  %v5729_v50 = vsel %vm5491_vm8, %v5728_v33, %v5727_v16  ;;  %v5979_v51 = vsel %vm5488_vm7, %v5978_v24, %v5977_v36  ;;  %v6291_v12 = vld [vmem:[#allocation5 + $0xa] sm:$0x1]  ;;  %v6210_v34 = vld [vmem:[#allocation5 + $0x39] sm:$0x1] }
0x14ca   :  { %7927 = vmatprep.mubr.msk.bf16.mxu0 %vm8495_vm5, %v8492_v3  ;;  %7951 = vmatprep.mubr.msk.bf16.mxu1 %vm8495_vm5, %v8492_v3  ;;  %v6142_v52 = vunpack.c.l.b16 %v6129_v26  ;;  %v10365_v53 = vunpack.c.l.b16 %v6043_v8  ;;  %v5981_v27 = vsel %vm5491_vm8, %v5980_v40, %v5979_v51  ;;  %v6143_v18 = vunpack.c.l.b16 %v6130_v29  ;;  %v6209_v26 = vld [vmem:[#allocation5 + $0x29] sm:$0x1] }
0x14cb   :  { %v5895_v56 = vsel %vm5488_vm7, %v5894_v47, %v5893_v44  ;;  %v6057_v2 = vunpack.c.l.b16 %v6044_v61  ;;  %v6296_v60 = vpack.c.bf16 %v10359_v7, %v10359_v7  ;;  %v6728_v15 = vunpack.c.l.b16 %v6715_v4  ;;  %v6460_v44 = vld [vmem:[#allocation5 + $0x1c] sm:$0x1]  ;;  %v8356_v7 = vld [vmem:[%s10553_s14 + $0x70] sm:$0xff]  }
0x14cc   :  { %7926 = vmatpush3.bf16.msra.mxu0 %v8346_v46  ;;  %7950 = vmatpush3.bf16.msra.mxu1 %v8347_v0  ;;  %v6729_v46 = vunpack.c.l.b16 %v6716_v37  ;;  %v6144_v0 = vrot.slane %v10351_v21, 7  ;;  %v5730_v13 = vpack.c.b16 %v5729_v50, %v5729_v50  ;;  %v5896_v10 = vrot.slane %v5891_v45, 5  ;;  %v6461_v21 = vld [vmem:[#allocation5 + $0x2c] sm:$0x1]  ;;  %v6462_v47 = vld [vmem:[#allocation5 + $0x3c] sm:$0x1] }
0x14cd   :  { %7939 = vmatprep.subr.bf16.mxu0 %v8492_v3  ;;  %7963 = vmatprep.subr.bf16.mxu1 %v8492_v3  ;;  %v6046_v19 = vpack.c.bf16 %v6042_v32, %v6042_v32  ;;  %v6717_v54 = vpack.c.bf16 %v6713_v55, %v6713_v55  ;;  %v5982_v42 = vpack.c.b16 %v5981_v27, %v5981_v27  ;;  %v6148_v17 = vrot.slane %v6143_v18, 5  ;;  %v8357_v50 = vld [vmem:[%s10553_s14 + $0xa0] sm:$0xff]  }
0x14ce   :  { %v6297_v11 = vpack.c.bf16 %v6293_v58, %v6293_v58  ;;  %v6718_v14 = vpack.c.bf16 %v6714_v49, %v6714_v49  ;;  %v6298_v62 = vpack.c.bf16 %v6294_v63, %v6294_v63  ;;  %v6732_v20 = vrot.slane %v6729_v46, 7 }
0x14cf   :  { %7928 = vmatmul.mubr.msk.bf16.vlgmr.msra.gmra.mrb[116].mxu0 %vm4273_vm3, %v5563_v22  ;;  %7952 = vmatmul.mubr.msk.bf16.vlgmr.msra.gmra.mrb[112].mxu1 %vm4273_vm3, %v5814_v1  ;;  %v6730_v16 = vunpack.c.l.b16 %v6717_v54  ;;  %v10386_v24 = vunpack.c.l.b16 %v6045_v48  ;;  %v6060_v25 = vrot.slane %v6057_v2, 7  ;;  %v6295_v31 = vpack.c.bf16 %v6291_v12, %v6291_v12  ;;  %v6376_v12 = vld [vmem:[#allocation5 + $0x1b] sm:$0x1] }
0x14d0   :  { %7940 = vmatpush3.bf16.msra.mxu0 %v8348_v57  ;;  %7964 = vmatpush3.bf16.msra.mxu1 %v8349_v59  ;;  %v6146_v57 = vrot.slane %v6142_v52, 6  ;;  %v6731_v23 = vunpack.c.l.b16 %v6718_v14  ;;  %v8354_v59 = vld [vmem:[%s10553_s14 + $0x58] sm:$0xff]   ;;  %v5897_v28 = vsel %vm5491_vm8, %v5896_v10, %v5895_v56  ;;  %v6145_v5 = vsel %vm5485_vm6, %v6144_v0, %v6140_v38 }
0x14d1   :  { %7941 = vmatprep.subr.bf16.mxu0 %v8492_v3  ;;  %7965 = vmatprep.subr.bf16.mxu1 %v8492_v3  ;;  %v6733_v8 = vsel %vm5485_vm6, %v6732_v20, %v6728_v15  ;;  %v6734_v30 = vrot.slane %v6730_v16, 6  ;;  %v6059_v1 = vunpack.c.l.b16 %v6046_v19  ;;  %v6310_v33 = vunpack.c.l.b16 %v6297_v11  ;;  %v8358_v15 = vld [vmem:[%s10553_s14 + $0x78] sm:$0xff]   ;;  %v6628_v11 = vld [vmem:[#allocation5 + $0x1e] sm:$0x1] }
0x14d2   :  { %7943 = vmatprep.mubr.msk.bf16.mxu0 %vm8495_vm5, %v8492_v3  ;;  %7967 = vmatprep.mubr.msk.bf16.mxu1 %vm8495_vm5, %v8492_v3  ;;  %v6147_v22 = vsel %vm5488_vm7, %v6146_v57, %v6145_v5  ;;  %v6736_v36 = vrot.slane %v6731_v23, 5  ;;  %v6309_v29 = vunpack.c.l.b16 %v6296_v60  ;;  %v6311_v37 = vunpack.c.l.b16 %v6298_v62  ;;  %v6377_v16 = vld [vmem:[#allocation5 + $0x2b] sm:$0x1]  ;;  %v6629_v20 = vld [vmem:[#allocation5 + $0x2e] sm:$0x1]  ;;  %v8360_v5 = vld [vmem:[%s10553_s14 + $0x90] sm:$0xff]  }
0x14d3   :  { %v6149_v40 = vsel %vm5491_vm8, %v6148_v17, %v6147_v22  ;;  %v6735_v61 = vsel %vm5488_vm7, %v6734_v30, %v6733_v8  ;;  %v6061_v4 = vsel %vm5485_vm6, %v6060_v25, %v10365_v53  ;;  %v6212_v45 = vpack.c.bf16 %v6208_v35, %v6208_v35  ;;  %v6459_v53 = vld [vmem:[#allocation5 + $0xc] sm:$0x1]  ;;  %v6378_v23 = vld [vmem:[#allocation5 + $0x3b] sm:$0x1]  ;;  %v8361_v35 = vld [vmem:[%s10553_s14 + $0xc0] sm:$0xff]  }
0x14d4   :  { %7942 = vmatpush3.bf16.msra.mxu0 %v8350_v41  ;;  %7966 = vmatpush3.bf16.msra.mxu1 %v8351_v43  ;;  %v6062_v41 = vrot.slane %v10386_v24, 6  ;;  %v6207_v43 = vld [vmem:[#allocation5 + $0x9] sm:$0x1]  ;;  %v10410_v38 = vsel %vm5491_vm8, %v6736_v36, %v6735_v61  ;;  %v5898_v48 = vpack.c.b16 %v5897_v28, %v5897_v28  ;;  %v6308_v51 = vunpack.c.l.b16 %v6295_v31  ;;  %v6375_v22 = vld [vmem:[#allocation5 + $0xb] sm:$0x1] }
0x14d5   :  { %7955 = vmatprep.subr.bf16.mxu0 %v8492_v3  ;;  %7979 = vmatprep.subr.bf16.mxu1 %v8492_v3  ;;  %v6213_v52 = vpack.c.bf16 %v6209_v26, %v6209_v26  ;;  %v6214_v32 = vpack.c.bf16 %v6210_v34, %v6210_v34  ;;  %v6150_v55 = vpack.c.b16 %v6149_v40, %v6149_v40  ;;  %v6064_v27 = vrot.slane %v6059_v1, 5  ;;  %v6627_v36 = vld [vmem:[#allocation5 + $0xe] sm:$0x1] }
0x14d6   :  { %v6314_v56 = vrot.slane %v6310_v33, 6  ;;  %v6465_v18 = vpack.c.bf16 %v6461_v21, %v6461_v21  ;;  %v6312_v58 = vrot.slane %v6309_v29, 7  ;;  %v6316_v49 = vrot.slane %v6311_v37, 5 }
0x14d7   :  { %7944 = vmatmul.mubr.msk.bf16.vlgmr.msra.gmra.mrb[120].mxu0 %vm4273_vm3, %v5730_v13  ;;  %7968 = vmatmul.mubr.msk.bf16.vlgmr.msra.gmra.mrb[116].mxu1 %vm4273_vm3, %v5982_v42  ;;  %v6464_v46 = vpack.c.bf16 %v6460_v44, %v6460_v44  ;;  %v6466_v0 = vpack.c.bf16 %v6462_v47, %v6462_v47  ;;  %v6211_v2 = vpack.c.bf16 %v6207_v43, %v6207_v43  ;;  %v6225_v63 = vunpack.c.l.b16 %v6212_v45  ;;  %v8359_v13 = vld [vmem:[%s10553_s14 + $0xa8] sm:$0xff]  }
0x14d8   :  { %7956 = vmatpush3.bf16.msra.mxu0 %v8352_v9  ;;  %7980 = vmatpush3.bf16.msra.mxu1 %v8353_v39  ;;  %v6463_v60 = vpack.c.bf16 %v6459_v53, %v6459_v53  ;;  %v6063_v9 = vsel %vm5488_vm7, %v6062_v41, %v6061_v4  ;;  %v6313_v39 = vsel %vm5485_vm6, %v6312_v58, %v6308_v51  ;;  %v6226_v10 = vunpack.c.l.b16 %v6213_v52  ;;  %v8362_v41 = vld [vmem:[%s10553_s14 + $0x98] sm:$0xff]   ;;  %v8363_v43 = vld [vmem:[%s10553_s14 + $0xc8] sm:$0xff]  }
0x14d9   :  { %7957 = vmatprep.subr.bf16.mxu0 %v8492_v3  ;;  %7981 = vmatprep.subr.bf16.mxu1 %v8492_v3  ;;  %v6227_v19 = vunpack.c.l.b16 %v6214_v32  ;;  %v6065_v54 = vsel %vm5491_vm8, %v6064_v27, %v6063_v9  ;;  %v6315_v42 = vsel %vm5488_vm7, %v6314_v56, %v6313_v39  ;;  %v6478_v57 = vunpack.c.l.b16 %v6465_v18  ;;  %v6544_v53 = vld [vmem:[#allocation5 + $0x1d] sm:$0x1]  ;;  %v6545_v58 = vld [vmem:[#allocation5 + $0x2d] sm:$0x1] }
0x14da   :  { %7959 = vmatprep.mubr.msk.bf16.mxu0 %vm8495_vm5, %v8492_v3  ;;  %7983 = vmatprep.mubr.msk.bf16.mxu1 %vm8495_vm5, %v8492_v3  ;;  %v6317_v14 = vsel %vm5491_vm8, %v6316_v49, %v6315_v42  ;;  %v6477_v17 = vunpack.c.l.b16 %v6464_v46  ;;  %v6479_v62 = vunpack.c.l.b16 %v6466_v0  ;;  %v6224_v24 = vunpack.c.l.b16 %v6211_v2  ;;  %v6546_v46 = vld [vmem:[#allocation5 + $0x3d] sm:$0x1]  ;;  %v8364_v2 = vld [vmem:[%s10553_s14 + $0xb0] sm:$0xff]  }
0x14db   :  { %v6228_v25 = vrot.slane %v6225_v63, 7  ;;  %v6476_v31 = vunpack.c.l.b16 %v6463_v60  ;;  %v6066_v28 = vpack.c.b16 %v6065_v54, %v6065_v54  ;;  %v6230_v8 = vrot.slane %v6226_v10, 6  ;;  %v8365_v63 = vld [vmem:[%s10553_s14 + $0xe0] sm:$0xff]  }
0x14dc   :  { %7958 = vmatpush3.bf16.msra.mxu0 %v8354_v59  ;;  %7982 = vmatpush3.bf16.msra.mxu1 %v8355_v6  ;;  %v6380_v59 = vpack.c.bf16 %v6376_v12, %v6376_v12  ;;  %v6630_v6 = vld [vmem:[#allocation5 + $0x3e] sm:$0x1]  ;;  %v6232_v30 = vrot.slane %v6227_v19, 5  ;;  %v6632_v1 = vpack.c.bf16 %v6628_v11, %v6628_v11  ;;  %v6318_v33 = vpack.c.b16 %v6317_v14, %v6317_v14  ;;  %v6543_v19 = vld [vmem:[#allocation5 + $0xd] sm:$0x1] }
0x14dd   :  { %7971 = vmatprep.subr.bf16.mxu0 %v8492_v3  ;;  %7995 = vmatprep.subr.bf16.mxu1 %v8492_v3  ;;  %v6482_v26 = vrot.slane %v6478_v57, 6  ;;  %v6381_v34 = vpack.c.bf16 %v6377_v16, %v6377_v16  ;;  %v6633_v40 = vpack.c.bf16 %v6629_v20, %v6629_v20  ;;  %v6480_v29 = vrot.slane %v6477_v17, 7  ;;  %v8366_v14 = vld [vmem:[%s10553_s14 + $0xb8] sm:$0xff]   ;;  %v8367_v17 = vld [vmem:[%s10553_s14 + $0xe8] sm:$0xff]  }
0x14de   :  { %v6484_v37 = vrot.slane %v6479_v62, 5  ;;  %v6382_v44 = vpack.c.bf16 %v6378_v23, %v6378_v23  ;;  %v6634_v21 = vpack.c.bf16 %v6630_v6, %v6630_v6  ;;  %v6229_v61 = vsel %vm5485_vm6, %v6228_v25, %v6224_v24 }
0x14df   :  { %7960 = vmatmul.mubr.msk.bf16.vlgmr.msra.gmra.mrb[124].mxu0 %vm4273_vm3, %v5898_v48  ;;  %7984 = vmatmul.mubr.msk.bf16.vlgmr.msra.gmra.mrb[120].mxu1 %vm4273_vm3, %v6150_v55  ;;  %v6379_v4 = vpack.c.bf16 %v6375_v22, %v6375_v22  ;;  %v6231_v45 = vsel %vm5488_vm7, %v6230_v8, %v6229_v61  ;;  %v6481_v47 = vsel %vm5485_vm6, %v6480_v29, %v6476_v31  ;;  %v6393_v48 = vunpack.c.l.b16 %v6380_v59  ;;  %v8370_v29 = vld [vmem:[%s10553_s14 + $0xf0] sm:$0xff]  }
0x14e0   :  { %7972 = vmatpush3.bf16.msra.mxu0 %v8356_v7  ;;  %7996 = vmatpush3.bf16.msra.mxu1 %v8357_v50  ;;  %v6631_v7 = vpack.c.bf16 %v6627_v36, %v6627_v36  ;;  %v6233_v50 = vsel %vm5491_vm8, %v6232_v30, %v6231_v45  ;;  %v6483_v51 = vsel %vm5488_vm7, %v6482_v26, %v6481_v47  ;;  %v6394_v52 = vunpack.c.l.b16 %v6381_v34  ;;  %v8369_v26 = vld [vmem:[%s10553_s14 + $0xd8] sm:$0xff]  }
0x14e1   :  { %7973 = vmatprep.subr.bf16.mxu0 %v8492_v3  ;;  %7997 = vmatprep.subr.bf16.mxu1 %v8492_v3  ;;  %v6646_v32 = vunpack.c.l.b16 %v6633_v40  ;;  %v6485_v55 = vsel %vm5491_vm8, %v6484_v37, %v6483_v51  ;;  %v6395_v27 = vunpack.c.l.b16 %v6382_v44  ;;  %v6645_v56 = vunpack.c.l.b16 %v6632_v1  ;;  %v8371_v44 = vld [vmem:[%s10553_s14 + $0xf8] sm:$0xff]  }
0x14e2   :  { %7975 = vmatprep.mubr.msk.bf16.mxu0 %vm8495_vm5, %v8492_v3  ;;  %7999 = vmatprep.mubr.msk.bf16.mxu1 %vm8495_vm5, %v8492_v3  ;;  %v6647_v18 = vunpack.c.l.b16 %v6634_v21  ;;  %v6392_v49 = vunpack.c.l.b16 %v6379_v4  ;;  %v6234_v0 = vpack.c.b16 %v6233_v50, %v6233_v50  ;;  %v6396_v60 = vrot.slane %v6393_v48, 7 }
0x14e3   :  { %v6486_v9 = vpack.c.b16 %v6485_v55, %v6485_v55  ;;  %v6398_v39 = vrot.slane %v6394_v52, 6  ;;  %v6650_v10 = vrot.slane %v6646_v32, 6  ;;  %v6549_v12 = vpack.c.bf16 %v6545_v58, %v6545_v58 }
0x14e4   :  { %7974 = vmatpush3.bf16.msra.mxu0 %v8358_v15  ;;  %7998 = vmatpush3.bf16.msra.mxu1 %v8359_v13  ;;  %v6644_v15 = vunpack.c.l.b16 %v6631_v7  ;;  %v6548_v13 = vpack.c.bf16 %v6544_v53, %v6544_v53  ;;  %v6400_v54 = vrot.slane %v6395_v27, 5  ;;  %v6648_v42 = vrot.slane %v6645_v56, 7 }
0x14e5   :  { %7987 = vmatprep.subr.bf16.mxu0 %v8492_v3  ;;  %8011 = vmatprep.subr.bf16.mxu1 %v8492_v3  ;;  %v6652_v57 = vrot.slane %v6647_v18, 5  ;;  %v6550_v11 = vpack.c.bf16 %v6546_v46, %v6546_v46  ;;  %v6397_v62 = vsel %vm5485_vm6, %v6396_v60, %v6392_v49  ;;  %v6547_v20 = vpack.c.bf16 %v6543_v19, %v6543_v19 }
0x14e6   :  { %v6649_v16 = vsel %vm5485_vm6, %v6648_v42, %v6644_v15  ;;  %v6399_v24 = vsel %vm5488_vm7, %v6398_v39, %v6397_v62  ;;  %v6562_v31 = vunpack.c.l.b16 %v6549_v12  ;;  %v6561_v6 = vunpack.c.l.b16 %v6548_v13 }
0x14e7   :  { %7976 = vmatmul.mubr.msk.bf16.vlgmr.msra.gmra.mrb[128].mxu0 %vm4273_vm3, %v6066_v28  ;;  %8000 = vmatmul.mubr.msk.bf16.vlgmr.msra.gmra.mrb[124].mxu1 %vm4273_vm3, %v6318_v33  ;;  %v6651_v25 = vsel %vm5488_vm7, %v6650_v10, %v6649_v16  ;;  %v6401_v23 = vsel %vm5491_vm8, %v6400_v54, %v6399_v24  ;;  %v6563_v28 = vunpack.c.l.b16 %v6550_v11  ;;  %v6738_v21 = vpack.c.b16 %v10410_v38, %v10410_v38 }
0x14e8   :  { %7988 = vmatpush3.bf16.msra.mxu0 %v8360_v5  ;;  %8012 = vmatpush3.bf16.msra.mxu1 %v8361_v35  ;;  %v6653_v59 = vsel %vm5491_vm8, %v6652_v57, %v6651_v25  ;;  %v8368_v5 = vld [vmem:[%s10553_s14 + $0xd0] sm:$0xff]   ;;  %v6560_v35 = vunpack.c.l.b16 %v6547_v20  ;;  %v6402_v8 = vpack.c.b16 %v6401_v23, %v6401_v23  ;;  %v6566_v22 = vrot.slane %v6562_v31, 6 }
0x14e9   :  { %7989 = vmatprep.subr.bf16.mxu0 %v8492_v3  ;;  %8013 = vmatprep.subr.bf16.mxu1 %v8492_v3  ;;  %v6654_v30 = vpack.c.b16 %v6653_v59, %v6653_v59  ;;  %v6564_v1 = vrot.slane %v6561_v6, 7  ;;  %v6568_v33 = vrot.slane %v6563_v28, 5 }
0x14ea   :  { %7991 = vmatprep.mubr.msk.bf16.mxu0 %vm8495_vm5, %v8492_v3  ;;  %8015 = vmatprep.mubr.msk.bf16.mxu1 %vm8495_vm5, %v8492_v3 }
0x14eb   :  { %v6565_v34 = vsel %vm5485_vm6, %v6564_v1, %v6560_v35 }
0x14ec   :  { %7990 = vmatpush3.bf16.msra.mxu0 %v8362_v41  ;;  %8014 = vmatpush3.bf16.msra.mxu1 %v8363_v43  ;;  %v6567_v36 = vsel %vm5488_vm7, %v6566_v22, %v6565_v34 }
0x14ed   :  { %8003 = vmatprep.subr.bf16.mxu0 %v8492_v3  ;;  %8027 = vmatprep.subr.bf16.mxu1 %v8492_v3  ;;  %v6569_v40 = vsel %vm5491_vm8, %v6568_v33, %v6567_v36 }
0x14ee   :  { %v6570_v37 = vpack.c.b16 %v6569_v40, %v6569_v40 }
0x14ef   :  { %7992 = vmatmul.mubr.msk.bf16.vlgmr.msra.gmra.mrb[132].mxu0 %vm4273_vm3, %v6234_v0  ;;  %8016 = vmatmul.mubr.msk.bf16.vlgmr.msra.gmra.mrb[128].mxu1 %vm4273_vm3, %v6486_v9 }
0x14f0   :  { %8004 = vmatpush3.bf16.msra.mxu0 %v8364_v2  ;;  %8028 = vmatpush3.bf16.msra.mxu1 %v8365_v63 }
0x14f1   :  { %8005 = vmatprep.subr.bf16.mxu0 %v8492_v3  ;;  %8029 = vmatprep.subr.bf16.mxu1 %v8492_v3 }
0x14f2   :  { %8007 = vmatprep.mubr.msk.bf16.mxu0 %vm8495_vm5, %v8492_v3  ;;  %8031 = vmatprep.mubr.msk.bf16.mxu1 %vm8495_vm5, %v8492_v3 }
0x14f4   :  { %8006 = vmatpush3.bf16.msra.mxu0 %v8366_v14  ;;  %8030 = vmatpush3.bf16.msra.mxu1 %v8367_v17 }
0x14f5   :  { %8019 = vmatprep.subr.bf16.mxu0 %v8492_v3 }
0x14f7   :  { %8008 = vmatmul.mubr.msk.bf16.vlgmr.msra.gmra.mrb[136].mxu0 %vm4273_vm3, %v6402_v8  ;;  %8032 = vmatmul.mubr.msk.bf16.vlgmr.msra.gmra.mrb[132].mxu1 %vm4273_vm3, %v6654_v30 }
0x14f8   :  { %8020 = vmatpush3.bf16.msra.mxu0 %v8368_v5  ;;  %8023 = vmatprep.mubr.msk.bf16.mxu0 %vm8495_vm5, %v8492_v3 }
0x14f9   :  { %8021 = vmatprep.subr.bf16.mxu0 %v8492_v3 }
0x14fc   :  { %8022 = vmatpush3.bf16.msra.mxu0 %v8369_v26 }
0x14fd   :  { %8035 = vmatprep.subr.bf16.mxu0 %v8492_v3 }
0x14ff   :  { %8024 = vmatmul.mubr.msk.bf16.vlgmr.msra.gmra.mrb[140].mxu0 %vm4273_vm3, %v6570_v37 }
0x1500   :  { %8036 = vmatpush3.bf16.msra.mxu0 %v8370_v29  ;;  %8039 = vmatprep.mubr.msk.bf16.mxu0 %vm8495_vm5, %v8492_v3 }
0x1501   :  { %8037 = vmatprep.subr.bf16.mxu0 %v8492_v3 }
0x1504   :  { %8038 = vmatpush3.bf16.msra.mxu0 %v8371_v44 }
0x1507   :  { %8040 = vmatmul.mubr.msk.bf16.vlgmr.msra.gmra.mrb[144].mxu0 %vm4273_vm3, %v6738_v21 }
0x159a   :  { %v5543_v61 = vpop.f32.mrb[112].mxu0  ;;  %v5696_v4 = vpop.f32.mrb[108].mxu1 }
0x159b   :  { %v7921_v41 = vpop.f32.mrb[113].mxu0  ;;  %v7937_v43 = vpop.f32.mrb[109].mxu1 }
0x159c   :  { %v5546_v45 = vpop.f32.mrb[114].mxu0  ;;  %v5699_v47 = vpop.f32.mrb[110].mxu1 }
0x159d   :  { %v7922_v48 = vpop.f32.mrb[115].mxu0  ;;  %v7938_v7 = vpop.f32.mrb[111].mxu1 }
0x15a2   :  { %v5613_v50 = vpop.f32.mrb[116].mxu0  ;;  %v5864_v51 = vpop.f32.mrb[112].mxu1 }
0x15a3   :  { %v5614_v52 = vadd.f32 %v5613_v50, %v5543_v61  ;;  %v7929_v32 = vpop.f32.mrb[117].mxu0  ;;  %v7953_v53 = vpop.f32.mrb[113].mxu1 }
0x15a4   :  { %v5616_v3 = vpop.f32.mrb[118].mxu0  ;;  %v5867_v55 = vpop.f32.mrb[114].mxu1  ;;  %v7178_v32 = vld [vmem:[%s10554_s15] ss:$0 sm:$0xff] }
0x15a5   :  { %v7930_v27 = vpop.f32.mrb[119].mxu0  ;;  %v7954_v56 = vpop.f32.mrb[115].mxu1  ;;  %v5702_v38 = vadd.f32 %v5696_v4, %v5614_v52 }
0x15aa   :  { %v5780_v18 = vpop.f32.mrb[120].mxu0  ;;  %v6032_v58 = vpop.f32.mrb[116].mxu1 }
0x15ab   :  { %v5786_v49 = vadd.f32 %v5780_v18, %v5702_v38  ;;  %v7945_v46 = vpop.f32.mrb[121].mxu0  ;;  %v7969_v0 = vpop.f32.mrb[117].mxu1 }
0x15ac   :  { %v5783_v2 = vpop.f32.mrb[122].mxu0  ;;  %v6035_v63 = vpop.f32.mrb[118].mxu1 }
0x15ad   :  { %v7946_v60 = vpop.f32.mrb[123].mxu0  ;;  %v7970_v15 = vpop.f32.mrb[119].mxu1  ;;  %v5870_v13 = vadd.f32 %v5864_v51, %v5786_v49 }
0x15b2   :  { %v5948_v9 = vpop.f32.mrb[124].mxu0  ;;  %v6200_v39 = vpop.f32.mrb[120].mxu1 }
0x15b3   :  { %v5954_v10 = vadd.f32 %v5948_v9, %v5870_v13  ;;  %v7961_v19 = vpop.f32.mrb[125].mxu0  ;;  %v7985_v12 = vpop.f32.mrb[121].mxu1 }
0x15b4   :  { %v5951_v54 = vpop.f32.mrb[126].mxu0  ;;  %v6203_v42 = vpop.f32.mrb[122].mxu1 }
0x15b5   :  { %v7962_v57 = vpop.f32.mrb[127].mxu0  ;;  %v7986_v11 = vpop.f32.mrb[123].mxu1  ;;  %v6038_v14 = vadd.f32 %v6032_v58, %v5954_v10 }
0x15ba   :  { %v6116_v17 = vpop.f32.mrb[128].mxu0  ;;  %v6368_v62 = vpop.f32.mrb[124].mxu1 }
0x15bb   :  { %v6122_v16 = vadd.f32 %v6116_v17, %v6038_v14  ;;  %v7977_v20 = vpop.f32.mrb[129].mxu0  ;;  %v8001_v24 = vpop.f32.mrb[125].mxu1 }
0x15bc   :  { %v6119_v25 = vpop.f32.mrb[130].mxu0  ;;  %v6371_v31 = vpop.f32.mrb[126].mxu1 }
0x15bd   :  { %v7978_v23 = vpop.f32.mrb[131].mxu0  ;;  %v8002_v59 = vpop.f32.mrb[127].mxu1  ;;  %v6206_v6 = vadd.f32 %v6200_v39, %v6122_v16 }
0x15c2   :  { %v6284_v28 = vpop.f32.mrb[132].mxu0  ;;  %v6536_v5 = vpop.f32.mrb[128].mxu1 }
0x15c3   :  { %v6290_v35 = vadd.f32 %v6284_v28, %v6206_v6  ;;  %v7993_v8 = vpop.f32.mrb[133].mxu0  ;;  %v8017_v30 = vpop.f32.mrb[129].mxu1 }
0x15c4   :  { %v6287_v22 = vpop.f32.mrb[134].mxu0  ;;  %v6539_v1 = vpop.f32.mrb[130].mxu1 }
0x15c5   :  { %v7994_v33 = vpop.f32.mrb[135].mxu0  ;;  %v8018_v26 = vpop.f32.mrb[131].mxu1  ;;  %v6374_v34 = vadd.f32 %v6368_v62, %v6290_v35 }
0x15ca   :  { %v6452_v36 = vpop.f32.mrb[136].mxu0  ;;  %v6704_v40 = vpop.f32.mrb[132].mxu1 }
0x15cb   :  { %v6458_v29 = vadd.f32 %v6452_v36, %v6374_v34  ;;  %v8009_v37 = vpop.f32.mrb[137].mxu0  ;;  %v8033_v44 = vpop.f32.mrb[133].mxu1 }
0x15cc   :  { %v6455_v21 = vpop.f32.mrb[138].mxu0  ;;  %v6707_v61 = vpop.f32.mrb[134].mxu1 }
0x15cd   :  { %v8010_v4 = vpop.f32.mrb[139].mxu0  ;;  %v8034_v41 = vpop.f32.mrb[135].mxu1  ;;  %v6542_v43 = vadd.f32 %v6536_v5, %v6458_v29 }
0x15d2   :  { %v6620_v45 = vpop.f32.mrb[140].mxu0 }
0x15d3   :  { %v6626_v47 = vadd.f32 %v6620_v45, %v6542_v43  ;;  %v8025_v48 = vpop.f32.mrb[141].mxu0 }
0x15d4   :  { %v6623_v7 = vpop.f32.mrb[142].mxu0 }
0x15d5   :  { %v8026_v50 = vpop.f32.mrb[143].mxu0  ;;  %v6710_v51 = vadd.f32 %v6704_v40, %v6626_v47 }
0x15da   :  { %v6788_v52 = vpop.f32.mrb[144].mxu0 }
0x15db   :  { %v6794_v53 = vadd.f32 %v6788_v52, %v6710_v51  ;;  %v8041_v3 = vpop.f32.mrb[145].mxu0 }
0x15dc   :  { %v6791_v55 = vpop.f32.mrb[146].mxu0 }
0x15dd   :  { %v8042_v27 = vpop.f32.mrb[147].mxu0  ;;  %v6802_v56 = vadd.f32 %v7178_v32, %v6794_v53 }
0x15df   :  { %6803 = vst [vmem:[#allocation6] sm:$0xf] %v6802_v56 }
0x15e0   :  { %8479 = shalt.err (!%p8476_p4)
}
0x15e1   :  { %s8480_s15 = scalar_lea.hbm %s10555_s16, 64 }
0x15e2   :  { %p8481_p5 = scmp.ne.s32.totalorder %s10555_s16, %s8480_s15  ;;  %p8484_p6 = scmp.lt.u32.totalorder %s8480_s15, %s10555_s16 }
0x15e4   :  { %p8486_p7 = pnand %p8484_p6, %p8481_p5 }
0x15e6   :  { %8489 = shalt.err (!%p8486_p7)
}
0x15e7   :  { %6813 = dma.vmem_to_hbm [thread:$0]  %s6811_s25, 64, %s10555_s16, [#allocation7]  }
0x15e8   :  { %8490 = dma.done.wait [#allocation7], 64  }
0x15e9   :  { %8491 = vsyncadd [#allocation7], 4294967232 }
0x15ea   :  { %6817 = vsyncpa [#allocation7], 1 }

</bundles_post_ra>
